<compile_context>
chip_gen: v5e
topology: v5e:2x2
jax: 0.10.0
libtpu: 0.0.40
codegen_flags: <defaults>
</compile_context>

<pallas_src>
import functools

import jax
import jax.numpy as jnp
from jax.experimental import pallas as pl
from jax.experimental.pallas import tpu as pltpu

HIGHEST = jax.lax.Precision.HIGHEST


def where_ranker_kernel(ids_ref, tts_ref, mask_ref,
                        we_ref, te_ref, pe_ref,
                        wp_ref, bp_ref, wh_ref, bh_ref,
                        out_ref):
    """One TN-row tile: fused embedding gather + masked mean, pooler, head."""
    tn, s = ids_ref.shape
    v = we_ref.shape[0]

    mask = mask_ref[...].astype(jnp.float32)                      # [TN, S]
    summask = jnp.sum(mask, axis=-1, keepdims=True)               # [TN, 1]
    denom = jnp.maximum(summask, 1.0)

    # ---- fused embedding lookup + masked sum over S -----------------------
    #   word : (sum_s mask * onehot(ids)) @ word_emb              (MXU)
    #   pos  : mask @ pos_emb                                     (MXU)
    #   type : cnt0 * type_emb[0] + cnt1 * type_emb[1]            (VPU)
    ids = ids_ref[...]                                            # [TN, S] i32
    iota_v = jax.lax.broadcasted_iota(jnp.int32, (tn, s, v), 2)
    onehot = (ids[:, :, None] == iota_v).astype(jnp.float32)      # [TN, S, V]
    wcnt = jnp.sum(onehot * mask[:, :, None], axis=1)             # [TN, V]

    acc = jnp.dot(wcnt, we_ref[...],
                  precision=HIGHEST, preferred_element_type=jnp.float32)
    acc = acc + jnp.dot(mask, pe_ref[...],
                        precision=HIGHEST, preferred_element_type=jnp.float32)

    cnt1 = jnp.sum(mask * tts_ref[...].astype(jnp.float32),
                   axis=-1, keepdims=True)                        # [TN, 1]
    cnt0 = summask - cnt1
    acc = acc + cnt0 * te_ref[0:1, :] + cnt1 * te_ref[1:2, :]     # [TN, H]

    h_seq = acc / denom                                           # [TN, H]

    # ---- BERT pooler: dense(H, H) + tanh ----------------------------------
    pooled = jnp.tanh(
        jnp.dot(h_seq, wp_ref[...],
                precision=HIGHEST, preferred_element_type=jnp.float32)
        + bp_ref[...])                                            # [TN, H]

    # dropout(p=0.1) is identity at inference time.
    # ---- head: Linear(H, 1) + sigmoid, lane-dense [1, TN] output ----------
    logit = jax.lax.dot_general(
        wh_ref[...], pooled, (((1,), (1,)), ((), ())),            # [1,H]x[TN,H]->[1,TN]
        precision=HIGHEST, preferred_element_type=jnp.float32)
    out_ref[...] = jax.nn.sigmoid(logit + bh_ref[0, 0])           # [1, TN]


def make_params(key, vocab_size, max_seq, hidden):
    ks = jax.random.split(key, 7)
    scale = 0.1
    return {
        "word_emb": scale * jax.random.normal(ks[0], (vocab_size, hidden), jnp.float32),
        "type_emb": scale * jax.random.normal(ks[1], (2, hidden), jnp.float32),
        "pos_emb":  scale * jax.random.normal(ks[2], (max_seq, hidden), jnp.float32),
        "w_pool":   scale * jax.random.normal(ks[3], (hidden, hidden), jnp.float32),
        "b_pool":   scale * jax.random.normal(ks[4], (1, hidden), jnp.float32),
        # nn.Linear(H, 1): weight [1, H] (lane-dense row), bias [1, 1]
        "w_head":   scale * jax.random.normal(ks[5], (1, hidden), jnp.float32),
        "b_head":   scale * jax.random.normal(ks[6], (1, 1), jnp.float32),
    }


@functools.partial(jax.jit, static_argnames=("tile_n",))
def where_ranker_forward(params, input_ids, attention_mask, token_type_ids,
                         *, tile_n=128):
    # squeeze(0), as in the PyTorch forward
    ids = jnp.squeeze(input_ids, 0).astype(jnp.int32)             # [N, S]
    mask = jnp.squeeze(attention_mask, 0).astype(jnp.int32)       # [N, S]
    tts = jnp.squeeze(token_type_ids, 0).astype(jnp.int32)        # [N, S]

    n, s = ids.shape
    v, h = params["word_emb"].shape
    tn = min(tile_n, n)
    assert n % tn == 0, "pad N to a multiple of the N-tile (edge masking TODO)"
    assert tn % 8 == 0 and h % 128 == 0, "use (8,128)-aligned TN / H"

    cost = pl.CostEstimate(
        flops=2 * n * (v * h + s * h + h * h + h),
        transcendentals=n * (h + 1),
        bytes_accessed=4 * (3 * n * s + v * h + 2 * h + s * h + h * h + 2 * h + 1 + n),
    )

    grid_spec = pltpu.PrefetchScalarGridSpec(
        num_scalar_prefetch=0,
        grid=(n // tn,),
        in_specs=[
            pl.BlockSpec((tn, s), lambda i: (i, 0)),              # ids        (tiled)
            pl.BlockSpec((tn, s), lambda i: (i, 0)),              # token type (tiled)
            pl.BlockSpec((tn, s), lambda i: (i, 0)),              # attn mask  (tiled)
            pl.BlockSpec((v, h), lambda i: (0, 0)),               # word_emb (resident)
            pl.BlockSpec((2, h), lambda i: (0, 0)),               # type_emb (resident)
            pl.BlockSpec((s, h), lambda i: (0, 0)),               # pos_emb  (resident)
            pl.BlockSpec((h, h), lambda i: (0, 0)),               # w_pool   (resident)
            pl.BlockSpec((1, h), lambda i: (0, 0)),               # b_pool
            pl.BlockSpec((1, h), lambda i: (0, 0)),               # w_head row
            pl.BlockSpec(memory_space=pltpu.MemorySpace.SMEM),    # b_head scalar
        ],
        out_specs=pl.BlockSpec((1, tn), lambda i: (0, i)),        # lane-dense [1, N]
    )

    scores = pl.pallas_call(
        where_ranker_kernel,
        out_shape=jax.ShapeDtypeStruct((1, n), jnp.float32),
        grid_spec=grid_spec,
        compiler_params=pltpu.CompilerParams(
            dimension_semantics=("parallel",),   # shard N-tiles across TCs on v7x
            vmem_limit_bytes=32 * 1024 * 1024,   # safe on v5e/v6e/v7x (usage << 1 MiB)
        ),
        cost_estimate=cost,
    )(ids, tts, mask,
      params["word_emb"], params["type_emb"], params["pos_emb"],
      params["w_pool"], params["b_pool"], params["w_head"], params["b_head"])

    # The kernel already stores torch.transpose(sigmoid, 0, 1) == [1, N].
    return scores


def where_ranker_reference(params, input_ids, attention_mask, token_type_ids):
    """Pure-JAX reference (materializes the [N,S,H] embeddings) for checking."""
    ids = jnp.squeeze(input_ids, 0)
    mask = jnp.squeeze(attention_mask, 0).astype(jnp.float32)
    tts = jnp.squeeze(token_type_ids, 0)
    s = ids.shape[1]
    emb = (params["word_emb"][ids] + params["type_emb"][tts]
           + params["pos_emb"][None, :s, :])
    denom = jnp.maximum(jnp.sum(mask, axis=-1, keepdims=True), 1.0)
    h_seq = jnp.sum(emb * mask[:, :, None], axis=1) / denom
    pooled = jnp.tanh(jnp.dot(h_seq, params["w_pool"], precision=HIGHEST)
                      + params["b_pool"])
    logit = jnp.dot(pooled, params["w_head"].T, precision=HIGHEST) + params["b_head"]
    return jnp.transpose(jax.nn.sigmoid(logit), (1, 0))


if __name__ == "__main__":
    # N candidates, seq-len S, hidden H, vocab V — aligned to (8, 128) tiles.
    N, S, H, V = 256, 16, 128, 128

    key = jax.random.PRNGKey(0)
    k_params, k_ids, k_len = jax.random.split(key, 3)

    params = make_params(k_params, V, S, H)

    input_ids = jax.random.randint(k_ids, (1, N, S), 0, V, dtype=jnp.int32)
    lengths = jax.random.randint(k_len, (N,), 4, S + 1, dtype=jnp.int32)
    attention_mask = (jnp.arange(S)[None, :] < lengths[:, None]).astype(jnp.int32)[None]
    token_type_ids = (jnp.arange(S)[None, :] >= (S // 2)).astype(jnp.int32)
    token_type_ids = jnp.broadcast_to(token_type_ids, (N, S))[None]

    out = where_ranker_forward(params, input_ids, attention_mask, token_type_ids)
    out = jax.block_until_ready(out)

    ref = where_ranker_reference(params, input_ids, attention_mask, token_type_ids)
    assert out.shape == (1, N), out.shape
    max_err = float(jnp.max(jnp.abs(out - ref)))
    assert jnp.allclose(out, ref, atol=1e-5, rtol=1e-5), max_err

    print("KERNEL_OK")
</pallas_src>

<mosaic_0001>
module attributes {stable_mosaic.version = 11 : i64} {
  func.func @where_ranker_kernel(%arg0: i32, %arg1: memref<128x16xi32, #tpu.memory_space<vmem>>, %arg2: memref<128x16xi32, #tpu.memory_space<vmem>>, %arg3: memref<128x16xi32, #tpu.memory_space<vmem>>, %arg4: memref<128x128xf32, #tpu.memory_space<vmem>>, %arg5: memref<2x128xf32, #tpu.memory_space<vmem>>, %arg6: memref<16x128xf32, #tpu.memory_space<vmem>>, %arg7: memref<128x128xf32, #tpu.memory_space<vmem>>, %arg8: memref<1x128xf32, #tpu.memory_space<vmem>>, %arg9: memref<1x128xf32, #tpu.memory_space<vmem>>, %arg10: memref<1x1xf32, #tpu.memory_space<smem>>, %arg11: memref<1x128xf32, #tpu.memory_space<vmem>>) attributes {dimension_semantics = [#tpu.dimension_semantics<parallel>], iteration_bounds = array<i64: 2>, scalar_prefetch = 0 : i64, scratch_operands = 0 : i64, tpu.core_type = #tpu.core_type<tc>, window_params = [{transform_indices = @transform_0, window_bounds = array<i64: 128, 16>}, {transform_indices = @transform_1, window_bounds = array<i64: 128, 16>}, {transform_indices = @transform_2, window_bounds = array<i64: 128, 16>}, {pipeline_mode = #tpu.pipeline_mode<synchronous>, transform_indices = @transform_3, window_bounds = array<i64: 128, 128>}, {pipeline_mode = #tpu.pipeline_mode<synchronous>, transform_indices = @transform_4, window_bounds = array<i64: 2, 128>}, {pipeline_mode = #tpu.pipeline_mode<synchronous>, transform_indices = @transform_5, window_bounds = array<i64: 16, 128>}, {pipeline_mode = #tpu.pipeline_mode<synchronous>, transform_indices = @transform_6, window_bounds = array<i64: 128, 128>}, {pipeline_mode = #tpu.pipeline_mode<synchronous>, transform_indices = @transform_7, window_bounds = array<i64: 1, 128>}, {pipeline_mode = #tpu.pipeline_mode<synchronous>, transform_indices = @transform_8, window_bounds = array<i64: 1, 128>}, {transform_indices = @transform_9, window_bounds = array<i64: 1, 1>}, {transform_indices = @transform_10, window_bounds = array<i64: 1, 128>}]} {
    %c0 = arith.constant 0 : index
    %c0_0 = arith.constant 0 : index
    %0 = vector.load %arg3[%c0, %c0_0] : memref<128x16xi32, #tpu.memory_space<vmem>>, vector<128x16xi32>
    %1 = arith.sitofp %0 : vector<128x16xi32> to vector<128x16xf32>
    %cst = arith.constant dense<0.000000e+00> : vector<128xf32>
    %2 = vector.multi_reduction <add>, %1, %cst [1] : vector<128x16xf32> to vector<128xf32>
    %3 = vector.shape_cast %2 : vector<128xf32> to vector<128x1xf32>
    %cst_1 = arith.constant 1.000000e+00 : f32
    %4 = vector.broadcast %cst_1 : f32 to vector<128x1xf32>
    %5 = arith.maximumf %3, %4 : vector<128x1xf32>
    %c0_2 = arith.constant 0 : index
    %c0_3 = arith.constant 0 : index
    %6 = vector.load %arg1[%c0_2, %c0_3] : memref<128x16xi32, #tpu.memory_space<vmem>>, vector<128x16xi32>
    %7 = tpu.iota {dimensions = array<i32: 2>} : vector<128x16x128xi32>
    %8 = vector.shape_cast %6 : vector<128x16xi32> to vector<128x16x1xi32>
    %9 = vector.broadcast %8 : vector<128x16x1xi32> to vector<128x16x128xi32>
    %10 = arith.cmpi eq, %9, %7 : vector<128x16x128xi32>
    %11 = arith.extui %10 : vector<128x16x128xi1> to vector<128x16x128xi32>
    %12 = arith.sitofp %11 : vector<128x16x128xi32> to vector<128x16x128xf32>
    %13 = vector.shape_cast %1 : vector<128x16xf32> to vector<128x16x1xf32>
    %14 = vector.broadcast %13 : vector<128x16x1xf32> to vector<128x16x128xf32>
    %15 = arith.mulf %12, %14 : vector<128x16x128xf32>
    %cst_4 = arith.constant dense<0.000000e+00> : vector<128x128xf32>
    %16 = vector.multi_reduction <add>, %15, %cst_4 [1] : vector<128x16x128xf32> to vector<128x128xf32>
    %c0_5 = arith.constant 0 : index
    %c0_6 = arith.constant 0 : index
    %17 = vector.load %arg4[%c0_5, %c0_6] : memref<128x128xf32, #tpu.memory_space<vmem>>, vector<128x128xf32>
    %cst_7 = arith.constant dense<0.000000e+00> : vector<128x128xf32>
    %18 = tpu.matmul %16, %17, %cst_7 {dimension_numbers = #tpu.dot_dimension_numbers<[1], [0], [0], [1], [0, 0, 1, 1], [], []>, precision = #tpu.contract_precision<fp32>} : vector<128x128xf32>, vector<128x128xf32>, vector<128x128xf32> -> vector<128x128xf32>
    %c0_8 = arith.constant 0 : index
    %c0_9 = arith.constant 0 : index
    %19 = vector.load %arg6[%c0_8, %c0_9] : memref<16x128xf32, #tpu.memory_space<vmem>>, vector<16x128xf32>
    %cst_10 = arith.constant dense<0.000000e+00> : vector<128x128xf32>
    %20 = tpu.matmul %1, %19, %cst_10 {dimension_numbers = #tpu.dot_dimension_numbers<[1], [0], [0], [1], [0, 0, 1, 1], [], []>, precision = #tpu.contract_precision<fp32>} : vector<128x16xf32>, vector<16x128xf32>, vector<128x128xf32> -> vector<128x128xf32>
    %21 = arith.addf %18, %20 : vector<128x128xf32>
    %c0_11 = arith.constant 0 : index
    %c0_12 = arith.constant 0 : index
    %22 = vector.load %arg2[%c0_11, %c0_12] : memref<128x16xi32, #tpu.memory_space<vmem>>, vector<128x16xi32>
    %23 = arith.sitofp %22 : vector<128x16xi32> to vector<128x16xf32>
    %24 = arith.mulf %1, %23 : vector<128x16xf32>
    %cst_13 = arith.constant dense<0.000000e+00> : vector<128xf32>
    %25 = vector.multi_reduction <add>, %24, %cst_13 [1] : vector<128x16xf32> to vector<128xf32>
    %26 = vector.shape_cast %25 : vector<128xf32> to vector<128x1xf32>
    %27 = arith.subf %3, %26 : vector<128x1xf32>
    %c0_14 = arith.constant 0 : index
    %c0_15 = arith.constant 0 : index
    %28 = vector.load %arg5[%c0_14, %c0_15] : memref<2x128xf32, #tpu.memory_space<vmem>>, vector<1x128xf32>
    %29 = vector.broadcast %27 : vector<128x1xf32> to vector<128x128xf32>
    %30 = vector.broadcast %28 : vector<1x128xf32> to vector<128x128xf32>
    %31 = arith.mulf %29, %30 : vector<128x128xf32>
    %32 = arith.addf %21, %31 : vector<128x128xf32>
    %c1 = arith.constant 1 : index
    %c0_16 = arith.constant 0 : index
    %33 = vector.load %arg5[%c1, %c0_16] : memref<2x128xf32, #tpu.memory_space<vmem>>, vector<1x128xf32>
    %34 = vector.broadcast %26 : vector<128x1xf32> to vector<128x128xf32>
    %35 = vector.broadcast %33 : vector<1x128xf32> to vector<128x128xf32>
    %36 = arith.mulf %34, %35 : vector<128x128xf32>
    %37 = arith.addf %32, %36 : vector<128x128xf32>
    %38 = vector.broadcast %5 : vector<128x1xf32> to vector<128x128xf32>
    %39 = arith.divf %37, %38 : vector<128x128xf32>
    %c0_17 = arith.constant 0 : index
    %c0_18 = arith.constant 0 : index
    %40 = vector.load %arg7[%c0_17, %c0_18] : memref<128x128xf32, #tpu.memory_space<vmem>>, vector<128x128xf32>
    %cst_19 = arith.constant dense<0.000000e+00> : vector<128x128xf32>
    %41 = tpu.matmul %39, %40, %cst_19 {dimension_numbers = #tpu.dot_dimension_numbers<[1], [0], [0], [1], [0, 0, 1, 1], [], []>, precision = #tpu.contract_precision<fp32>} : vector<128x128xf32>, vector<128x128xf32>, vector<128x128xf32> -> vector<128x128xf32>
    %c0_20 = arith.constant 0 : index
    %c0_21 = arith.constant 0 : index
    %42 = vector.load %arg8[%c0_20, %c0_21] : memref<1x128xf32, #tpu.memory_space<vmem>>, vector<1x128xf32>
    %43 = vector.broadcast %42 : vector<1x128xf32> to vector<128x128xf32>
    %44 = arith.addf %41, %43 : vector<128x128xf32>
    %45 = math.tanh %44 : vector<128x128xf32>
    %c0_22 = arith.constant 0 : index
    %c0_23 = arith.constant 0 : index
    %46 = vector.load %arg9[%c0_22, %c0_23] : memref<1x128xf32, #tpu.memory_space<vmem>>, vector<1x128xf32>
    %cst_24 = arith.constant dense<0.000000e+00> : vector<1x128xf32>
    %47 = tpu.matmul %46, %45, %cst_24 {dimension_numbers = #tpu.dot_dimension_numbers<[1], [1], [0], [0], [0, 0, 1, 0], [], []>, precision = #tpu.contract_precision<fp32>} : vector<1x128xf32>, vector<128x128xf32>, vector<1x128xf32> -> vector<1x128xf32>
    %c0_25 = arith.constant 0 : index
    %c0_26 = arith.constant 0 : index
    %48 = memref.load %arg10[%c0_25, %c0_26] : memref<1x1xf32, #tpu.memory_space<smem>>
    %49 = vector.broadcast %48 : f32 to vector<1x128xf32>
    %50 = arith.addf %47, %49 : vector<1x128xf32>
    %51 = arith.negf %50 : vector<1x128xf32>
    %52 = math.exp %51 : vector<1x128xf32>
    %cst_27 = arith.constant 1.000000e+00 : f32
    %53 = vector.broadcast %cst_27 : f32 to vector<1x128xf32>
    %54 = arith.addf %53, %52 : vector<1x128xf32>
    %55 = arith.divf %53, %54 : vector<1x128xf32>
    %c0_28 = arith.constant 0 : index
    %c0_29 = arith.constant 0 : index
    %56 = vector.load %arg11[%c0_28, %c0_29] : memref<1x128xf32, #tpu.memory_space<vmem>>, vector<1x128xf32>
    tpu.vector_store %arg11[%c0_28, %c0_29], %55 {strides = array<i32>} : memref<1x128xf32, #tpu.memory_space<vmem>>, vector<1x128xf32>,
    return
  }
  func.func @transform_0(%arg0: i32) -> (i32, i32) {
    %c0_i32 = arith.constant 0 : i32
    %c0_i32_0 = arith.constant 0 : i32
    return %arg0, %c0_i32 : i32, i32
  }
  func.func @transform_1(%arg0: i32) -> (i32, i32) {
    %c0_i32 = arith.constant 0 : i32
    %c0_i32_0 = arith.constant 0 : i32
    return %arg0, %c0_i32 : i32, i32
  }
  func.func @transform_2(%arg0: i32) -> (i32, i32) {
    %c0_i32 = arith.constant 0 : i32
    %c0_i32_0 = arith.constant 0 : i32
    return %arg0, %c0_i32 : i32, i32
  }
  func.func @transform_3(%arg0: i32) -> (i32, i32) {
    %c0_i32 = arith.constant 0 : i32
    %c0_i32_0 = arith.constant 0 : i32
    %c0_i32_1 = arith.constant 0 : i32
    return %c0_i32, %c0_i32_0 : i32, i32
  }
  func.func @transform_4(%arg0: i32) -> (i32, i32) {
    %c0_i32 = arith.constant 0 : i32
    %c0_i32_0 = arith.constant 0 : i32
    %c0_i32_1 = arith.constant 0 : i32
    return %c0_i32, %c0_i32_0 : i32, i32
  }
  func.func @transform_5(%arg0: i32) -> (i32, i32) {
    %c0_i32 = arith.constant 0 : i32
    %c0_i32_0 = arith.constant 0 : i32
    %c0_i32_1 = arith.constant 0 : i32
    return %c0_i32, %c0_i32_0 : i32, i32
  }
  func.func @transform_6(%arg0: i32) -> (i32, i32) {
    %c0_i32 = arith.constant 0 : i32
    %c0_i32_0 = arith.constant 0 : i32
    %c0_i32_1 = arith.constant 0 : i32
    return %c0_i32, %c0_i32_0 : i32, i32
  }
  func.func @transform_7(%arg0: i32) -> (i32, i32) {
    %c0_i32 = arith.constant 0 : i32
    %c0_i32_0 = arith.constant 0 : i32
    %c0_i32_1 = arith.constant 0 : i32
    return %c0_i32, %c0_i32_0 : i32, i32
  }
  func.func @transform_8(%arg0: i32) -> (i32, i32) {
    %c0_i32 = arith.constant 0 : i32
    %c0_i32_0 = arith.constant 0 : i32
    %c0_i32_1 = arith.constant 0 : i32
    return %c0_i32, %c0_i32_0 : i32, i32
  }
  func.func @transform_9(%arg0: i32) -> (i32, i32) {
    %c0_i32 = arith.constant 0 : i32
    %c0_i32_0 = arith.constant 0 : i32
    %c0_i32_1 = arith.constant 0 : i32
    return %c0_i32, %c0_i32_0 : i32, i32
  }
  func.func @transform_10(%arg0: i32) -> (i32, i32) {
    %c0_i32 = arith.constant 0 : i32
    %c0_i32_0 = arith.constant 0 : i32
    return %c0_i32, %arg0 : i32, i32
  }
}

</mosaic_0001>

<bundles_post_ra>
// kernel: where_ranker_forward.1
= control target key start
LH: loop header
LB: loop body
LE: loop exit
PB: predicated region body
PF: predicated region fallthrough
CT: control target
= control target key end

     0   :  { %s15087_s0 = inlined_call_operand.vmem [shape: s32[256,16], index: 0, kind: input, shape index: {}]   ;;  %s15088_s1 = inlined_call_operand.vmem [shape: s32[256,16], index: 1, kind: input, shape index: {}]   ;;  %s15089_s2 = inlined_call_operand.vmem [shape: s32[256,16], index: 2, kind: input, shape index: {}]   ;;  %s15090_s3 = inlined_call_operand.vmem [shape: f32[128,128], index: 3, kind: input, shape index: {}]   ;;  %s15091_s4 = inlined_call_operand.vmem [shape: f32[2,128], index: 4, kind: input, shape index: {}]   ;;  %s15092_s5 = inlined_call_operand.vmem [shape: f32[16,128], index: 5, kind: input, shape index: {}]   ;;  %s15093_s6 = inlined_call_operand.vmem [shape: f32[128,128], index: 6, kind: input, shape index: {}]   ;;  %s15094_s7 = inlined_call_operand.vmem [shape: f32[1,128], index: 7, kind: input, shape index: {}]   ;;  %s15095_s8 = inlined_call_operand.vmem [shape: f32[1,128], index: 8, kind: input, shape index: {}]   ;;  %s15096_s9 = inlined_call_operand.<no memory space> [shape: f32[1,1], index: 9, kind: input, shape index: {}]   ;;  %s15097_s10 = inlined_call_operand.hbm [shape: f32[1,256], index: 10, kind: output, shape index: {}]  }
   0x1   :  { %15 = sst [smem:[#allocation2]] %s15096_s9 }
   0x2   :  { %16 = vsyncpa [#allocation4], 0 }
   0x3   :  { %18 = vsyncpa [#allocation4 + $0x1], 0  ;;  %s9965_s15 = smov 0   ;;  %s9967_s16 = smov 0  }
   0x4   :  { %s9969_s17 = smov 0   ;;  %s9971_s18 = smov 0  }
   0x5 LB: > { %s9986_s9 = sadd.s32 4294967295, %s9904_s18   ;;  %s9244_s19 = sadd.s32 4294967294, %s9904_s18   ;;  %s9904_s18 = sphi %s9971_s18, %s16390_s18   ;;  %s9900_s17 = sphi %s9969_s17, %s16389_s17   ;;  %s9896_s16 = sphi %s9967_s16, %s16388_s16   ;;  %s9892_s15 = sphi %s9965_s15, %s16387_s15  }
   0x6   : > { %s9990_s20 = sadd.s32 1, %s9904_s18   ;;  %s256_s21 = sadd.s32 1, %s9900_s17 }
   0x7   : > { %s253_s22 = ssub.s32 %s9904_s18, %s9990_s20  ;;  %p266_p0 = scmp.ne.s32.totalorder %s9900_s17, %s9896_s16 }
   0x8   : > { %p254_p1 = scmp.eq.s32.totalorder %s253_s22, 0  ;;  %p267_p2 = scmp.eq.s32.totalorder %s9986_s9, 1 }
   0x9   : > { %p272_p3 = scmp.ne.s32.totalorder %s9896_s16, %s9892_s15  ;;  %p273_p4 = scmp.eq.s32.totalorder %s9244_s19, 1 }
   0xa   : > { %s10001_s23 = scalar_select %p254_p1, %s9900_s17, %s256_s21  }
   0xb   : > { %p10003_p5 = por %p267_p2, %p266_p0  ;;  %p10007_p6 = por %p273_p4, %p272_p3 }
   0xc   : > { %p9247_p7 = scmp.ge.s32.totalorder %s9904_s18, 1  ;;  %p339_p8 = scmp.lt.s32.totalorder %s9904_s18, 3 }
   0xe   : > { %p340_p9 = pnand %p9247_p7, %p339_p8 }
  0x10   : > { %343 = sbr.rel (%p340_p9) target bundleno = 3524 (0xdc4), region = 60 }
  0x15   : > { %s9248_s26 = sshll.u32 %s9986_s9, 4  ;;  %vm15296_vm0 = vcmask 130048   ;;  %v15098_v23 = vlaneseq  ;;  %s8789_s19 = sld [smem:[#allocation2]] }
  0x16   : > { %p387_p10 = scmp.lt.s32.totalorder %s9248_s26, 31  ;;  %s384_s22 = sand.u32 1, %s9896_s16  }
  0x17   : > { %v10062_v25 = vshrl.u32 %v15098_v23, 7  ;;  %s385_s28 = scalar_lea.vmem [#allocation3], %s384_s22  ;;  %s9153_s11 = scalar_lea.sflag [#allocation4], %s384_s22 }
  0x18   : > { %s16392_s26 = smov (!%p387_p10, %s9248_s26), 31  ;;  %s9163_s29 = sshll.u32 %s385_s28, 4  ;;  %s9164_s29 = int_to_ptr.vmem [resolvable:$true] %s9163_s29 }
  0x19   : > { %s10014_s27 = sshll.u32 %s16392_s26, 3  ;;  %v10069_v28 = vadd.s32 8, %v10062_v25  ;;  %9557 = vset.pattern.permute.xlu1 %v10062_v25  ;;  %9559 = vset.pattern.permute.xlu0 %v10062_v25 }
  0x1a   : > { %s10020_s30 = scalar_lea.vmem %s15089_s2, %s10014_s27  ;;  %s10115_s13 = scalar_lea.vmem %s15087_s0, %s10014_s27 }
  0x1b   : > { %v408_v0 = vld [vmem:[%s10020_s30 + $0x20] sm:$0xff]  ;;  %v406_v1 = vld [vmem:[%s10020_s30 + $0x10] sm:$0xff]  ;;  %v409_v6 = vld [vmem:[%s10020_s30 + $0x28] sm:$0xff]  ;;  %9558 = vset.pattern.permute.xlu2 %v10069_v28  ;;  %s10968_s21 = scalar_lea.vmem %s15088_s1, %s10014_s27 }
  0x1c   : > { %v404_v2 = vld [vmem:[%s10020_s30] sm:$0xff]  ;;  %v10025_v3 = vcvt.s32.f32 %v408_v0  ;;  %v10027_v4 = vcvt.s32.f32 %v406_v1  ;;  %v407_v7 = vld [vmem:[%s10020_s30 + $0x18] sm:$0xff]  ;;  %v405_v11 = vld [vmem:[%s10020_s30 + $0x8] sm:$0xff]  ;;  %v10040_v12 = vcvt.s32.f32 %v409_v6 }
  0x1d   : > { %v10029_v5 = vcvt.s32.f32 %v404_v2  ;;  %v10042_v13 = vcvt.s32.f32 %v407_v7  ;;  %v10044_v14 = vcvt.s32.f32 %v405_v11  ;;  %v412_v18 = vld [vmem:[%s10020_s30 + $0x40] sm:$0xff]  ;;  %v411_v19 = vld [vmem:[%s10020_s30 + $0x38] sm:$0xff]  ;;  %v410_v20 = vld [vmem:[%s10020_s30 + $0x30] sm:$0xff] }
  0x1e   : > { %15315 = vst [vmem:[#allocation6_spill] sm:$0xff] %v10025_v3  ;;  %v449_v8 = vsel %vm15296_vm0, %v10025_v3, 0.0  ;;  %v443_v9 = vsel %vm15296_vm0, %v10027_v4, 0.0  ;;  %v452_v15 = vsel %vm15296_vm0, %v10040_v12, 0.0  ;;  %v10055_v21 = vcvt.s32.f32 %v412_v18  ;;  %v415_v30 = vld [vmem:[%s10020_s30 + $0x58] sm:$0xff]  ;;  %v414_v31 = vld [vmem:[%s10020_s30 + $0x50] sm:$0xff] }
  0x1f   : > { %15316 = vst [vmem:[#allocation7_spill] sm:$0xff] %v10029_v5  ;;  %v437_v10 = vsel %vm15296_vm0, %v10029_v5, 0.0  ;;  %450 = vadd.xlane.f32.xlu2 %v449_v8  ;;  %444 = vadd.xlane.f32.xlu1 %v443_v9  ;;  %v446_v16 = vsel %vm15296_vm0, %v10042_v13, 0.0  ;;  %v440_v17 = vsel %vm15296_vm0, %v10044_v14, 0.0  ;;  %v10057_v22 = vcvt.s32.f32 %v411_v19  ;;  %v413_v32 = vld [vmem:[%s10020_s30 + $0x48] sm:$0xff]  ;;  %v418_v39 = vld [vmem:[%s10020_s30 + $0x70] sm:$0xff] }
  0x20   : > { %438 = vadd.xlane.f32.xlu0 %v437_v10  ;;  %15317 = vst [vmem:[#allocation8_spill] sm:$0xff] %v10040_v12  ;;  %v10059_v24 = vcvt.s32.f32 %v410_v20  ;;  %v461_v26 = vsel %vm15296_vm0, %v10055_v21, 0.0  ;;  %v10079_v33 = vcvt.s32.f32 %v415_v30  ;;  %v10081_v34 = vcvt.s32.f32 %v414_v31  ;;  %v417_v40 = vld [vmem:[%s10020_s30 + $0x68] sm:$0xff]  ;;  %v416_v41 = vld [vmem:[%s10020_s30 + $0x60] sm:$0xff]  ;;  %v419_v48 = vld [vmem:[%s10020_s30 + $0x78] sm:$0xff] }
  0x21   : > { %15318 = vst [vmem:[#allocation9_spill] sm:$0xff] %v10042_v13  ;;  %v458_v27 = vsel %vm15296_vm0, %v10057_v22, 0.0  ;;  %v10083_v35 = vcvt.s32.f32 %v413_v32  ;;  %v10094_v42 = vcvt.s32.f32 %v418_v39  ;;  %v10096_v43 = vcvt.s32.f32 %v417_v40  ;;  %v10118_v51 = vld [vmem:[%s10115_s13] sm:$0xff]  ;;  %v10126_v57 = vld [vmem:[%s10115_s13 + $0x8] sm:$0xff]  ;;  %v10131_v60 = vld [vmem:[%s10115_s13 + $0x10] sm:$0xff] }
  0x22   : > { %15319 = vst [vmem:[#allocation10_spill] sm:$0xff] %v10044_v14  ;;  %v455_v29 = vsel %vm15296_vm0, %v10059_v24, 0.0  ;;  %v470_v36 = vsel %vm15296_vm0, %v10079_v33, 0.0  ;;  %v467_v37 = vsel %vm15296_vm0, %v10081_v34, 0.0  ;;  %v10098_v44 = vcvt.s32.f32 %v416_v41  ;;  %v10145_v0 = vld [vmem:[%s10115_s13 + $0x18] sm:$0xff]  ;;  %v10152_v6 = vld [vmem:[%s10115_s13 + $0x20] sm:$0xff] }
  0x23   : > { %15320 = vst [vmem:[#allocation11_spill] sm:$0xff] %v10055_v21  ;;  %v464_v38 = vsel %vm15296_vm0, %v10083_v35, 0.0  ;;  %v479_v45 = vsel %vm15296_vm0, %v10094_v42, 0.0  ;;  %v476_v46 = vsel %vm15296_vm0, %v10096_v43, 0.0  ;;  %v10107_v49 = vcvt.s32.f32 %v419_v48  ;;  %v10164_v10 = vld [vmem:[%s10115_s13 + $0x28] sm:$0xff]  ;;  %v10185_v20 = vld [vmem:[%s10115_s13 + $0x38] sm:$0xff] }
  0x24   : > { %15321 = vst [vmem:[#allocation12_spill] sm:$0xff] %v10057_v22  ;;  %v473_v47 = vsel %vm15296_vm0, %v10098_v44, 0.0  ;;  %v519_v52 = vperm.slane %v10118_v51, 0  ;;  %v532_v53 = vperm.slane %v10118_v51, 1  ;;  %v545_v54 = vperm.slane %v10118_v51, 2  ;;  %v10195_v30 = vld [vmem:[%s10115_s13 + $0x40] sm:$0xff] }
  0x25   : > { %15322 = vst [vmem:[#allocation13_spill] sm:$0xff] %v10059_v24  ;;  %v482_v50 = vsel %vm15296_vm0, %v10107_v49, 0.0  ;;  %v610_v55 = vperm.slane %v10118_v51, 7  ;;  %v558_v56 = vperm.slane %v10118_v51, 3  ;;  %v675_v58 = vperm.slane %v10126_v57, 4  ;;  %v10216_v40 = vld [vmem:[%s10115_s13 + $0x50] sm:$0xff] }
  0x26   : > { %15323 = vst [vmem:[#allocation14_spill] sm:$0xff] %v10079_v33  ;;  %v15146_v59 = vperm.slane %v10118_v51, 4  ;;  %v740_v61 = vperm.slane %v10131_v60, 1  ;;  %v805_v62 = vperm.slane %v10131_v60, 6  ;;  %v584_v63 = vperm.slane %v10118_v51, 5  ;;  %v10229_v48 = vld [vmem:[%s10115_s13 + $0x58] sm:$0xff] }
  0x27   : > { %453 = vadd.xlane.f32.xlu2 %v452_v15  ;;  %447 = vadd.xlane.f32.xlu1 %v446_v16  ;;  %15324 = vst [vmem:[#allocation15_spill] sm:$0xff] %v10081_v34  ;;  %v870_v1 = vperm.slane %v10145_v0, 3  ;;  %v597_v2 = vperm.slane %v10118_v51, 6  ;;  %v935_v7 = vperm.slane %v10152_v6, 0  ;;  %v1000_v8 = vperm.slane %v10152_v6, 5 }
  0x28   : > { %441 = vadd.xlane.f32.xlu0 %v440_v17  ;;  %15325 = vst [vmem:[#allocation16_spill] sm:$0xff] %v10083_v35  ;;  %v623_v9 = vperm.slane %v10126_v57, 0  ;;  %v1065_v11 = vperm.slane %v10164_v10, 2  ;;  %v15145_v15 = vperm.slane %v10126_v57, 1  ;;  %v15141_v16 = vperm.slane %v10164_v10, 7  ;;  %v10176_v17 = vld [vmem:[%s10115_s13 + $0x30] sm:$0xff] }
  0x29   : > { %15326 = vst [vmem:[#allocation17_spill] sm:$0xff] %v10094_v42  ;;  %v15133_v18 = vperm.slane %v10176_v17, 4  ;;  %v649_v19 = vperm.slane %v10126_v57, 2  ;;  %v15129_v31 = vperm.slane %v10195_v30, 3  ;;  %v688_v32 = vperm.slane %v10126_v57, 5 }
  0x2a   : > { %15327 = vst [vmem:[#allocation18_spill] sm:$0xff] %v10096_v43  ;;  %v15121_v41 = vperm.slane %v10216_v40, 2  ;;  %v15101_v23 = vperm.slane %v10044_v14, 1 }
  0x2b   : > { %15328 = vst [vmem:[#allocation19_spill] sm:$0xff] %v10098_v44 }
  0x2c   : > { %15329 = vst [vmem:[#allocation20_spill] sm:$0xff] %v10107_v49 }
  0x2f   : > { %462 = vadd.xlane.f32.xlu2 %v461_v26  ;;  %459 = vadd.xlane.f32.xlu1 %v458_v27  ;;  %v15132_v26 = vperm.slane %v10185_v20, 1  ;;  %v662_v27 = vperm.slane %v10126_v57, 3 }
  0x30   : > { %456 = vadd.xlane.f32.xlu0 %v455_v29  ;;  %v15130_v29 = vperm.slane %v10185_v20, 6 }
  0x37   : > { %471 = vadd.xlane.f32.xlu2 %v470_v36  ;;  %468 = vadd.xlane.f32.xlu1 %v467_v37  ;;  %v10204_v36 = vld [vmem:[%s10115_s13 + $0x48] sm:$0xff] }
  0x38   : > { %465 = vadd.xlane.f32.xlu0 %v464_v38  ;;  %v15124_v37 = vperm.slane %v10204_v36, 0  ;;  %v15144_v38 = vperm.slane %v10126_v57, 6  ;;  %v15123_v39 = vperm.slane %v10204_v36, 5 }
  0x3f   : > { %480 = vadd.xlane.f32.xlu2 %v479_v45  ;;  %477 = vadd.xlane.f32.xlu1 %v476_v46  ;;  %v714_v45 = vperm.slane %v10126_v57, 7  ;;  %v15120_v46 = vperm.slane %v10216_v40, 7 }
  0x40   : > { %474 = vadd.xlane.f32.xlu0 %v473_v47  ;;  %v727_v47 = vperm.slane %v10131_v60, 0 }
  0x48   : > { %483 = vadd.xlane.f32.xlu0 %v482_v50  ;;  %v15117_v50 = vperm.slane %v10229_v48, 4 }
  0x57   : > { %530 = vperm.xlu2 %9558, %v519_v52  }
  0x58   : > { %524 = vperm.xlu1 %9557, %v519_v52   ;;  %v10235_v52 = vld [vmem:[%s10115_s13 + $0x60] sm:$0xff] }
  0x5c   : > { %537 = vperm.xlu0 %9559, %v532_v53  }
  0x5f   : > { %543 = vperm.xlu2 %9558, %v532_v53   ;;  %v15113_v53 = vperm.slane %v10235_v52, 1 }
  0x60   : > { %550 = vperm.xlu1 %9557, %v545_v54  }
  0x64   : > { %615 = vperm.xlu0 %9559, %v610_v55  }
  0x67   : > { %556 = vperm.xlu2 %9558, %v545_v54   ;;  %v753_v54 = vperm.slane %v10131_v60, 2 }
  0x68   : > { %563 = vperm.xlu1 %9557, %v558_v56  }
  0x6c   : > { %680 = vperm.xlu0 %9559, %v675_v58  }
  0x6f   : > { %569 = vperm.xlu2 %9558, %v558_v56   ;;  %v15142_v56 = vperm.slane %v10131_v60, 3 }
  0x70   : > { %576 = vperm.xlu1 %9557, %v15146_v59  }
  0x74   : > { %745 = vperm.xlu0 %9559, %v740_v61  }
  0x77   : > { %9560 = vset.pattern.permute.xlu2 %v10062_v25 }
  0x78   : > { %9561 = vset.pattern.permute.xlu1 %v10069_v28 }
  0x7c   : > { %810 = vperm.xlu0 %9559, %v805_v62  }
  0x7f   : > { %589 = vperm.xlu2 %9560, %v584_v63  }
  0x80   : > { %595 = vperm.xlu1 %9561, %v584_v63  }
  0x84   : > { %875 = vperm.xlu0 %9559, %v870_v1  }
  0x87   : > { %602 = vperm.xlu2 %9560, %v597_v2  }
  0x88   : > { %608 = vperm.xlu1 %9561, %v597_v2  }
  0x8c   : > { %940 = vperm.xlu0 %9559, %v935_v7  }
  0x8f   : > { %9562 = vset.pattern.permute.xlu2 %v10069_v28 }
  0x90   : > { %9563 = vset.pattern.permute.xlu1 %v10062_v25 }
  0x94   : > { %1005 = vperm.xlu0 %9559, %v1000_v8  }
  0x97   : > { %621 = vperm.xlu2 %9562, %v610_v55   ;;  %v15112_v55 = vperm.slane %v10235_v52, 6 }
  0x98   : > { %628 = vperm.xlu1 %9563, %v623_v9  }
  0x9c   : > { %1070 = vperm.xlu0 %9559, %v1065_v11  }
  0x9f   : > { %634 = vperm.xlu2 %9562, %v623_v9   ;;  %v779_v9 = vperm.slane %v10131_v60, 4 }
  0xa0   : > { %641 = vperm.xlu1 %9563, %v15145_v15  }
  0xa4   : > { %1135 = vperm.xlu0 %9559, %v15141_v16  }
  0xa7   : > { %9564 = vset.pattern.permute.xlu2 %v10062_v25 }
  0xa8   : > { %9565 = vset.pattern.permute.xlu1 %v10069_v28 }
  0xac   : > { %1200 = vperm.xlu0 %9559, %v15133_v18  }
  0xaf   : > { %654 = vperm.xlu2 %9564, %v649_v19  }
  0xb0   : > { %660 = vperm.xlu1 %9565, %v649_v19  }
  0xb4   : > { %1265 = vperm.xlu0 %9559, %v15132_v26   ;;  %v10419_v26 = vpop.xlane.xlu1 %444 }
  0xb5   : > { %15343 = vst [vmem:[#allocation34_spill] sm:$0xff] %v10419_v26  ;;  %v15365_v26 = vperm.slane %v10145_v0, 0 }
  0xb7   : > { %667 = vperm.xlu2 %9564, %v662_v27  }
  0xb8   : > { %673 = vperm.xlu1 %9565, %v662_v27   ;;  %v792_v27 = vperm.slane %v10131_v60, 5 }
  0xbc   : > { %1330 = vperm.xlu0 %9559, %v15130_v29   ;;  %v10407_v29 = vpop.xlane.xlu2 %450 }
  0xbd   : > { %15341 = vst [vmem:[#allocation32_spill] sm:$0xff] %v10407_v29  ;;  %v1169_v29 = vperm.slane %v10176_v17, 2 }
  0xbf   : > { %9566 = vset.pattern.permute.xlu2 %v10069_v28 }
  0xc0   : > { %9567 = vset.pattern.permute.xlu1 %v10062_v25 }
  0xc4   : > { %1395 = vperm.xlu0 %9559, %v15129_v31   ;;  %v10421_v18 = vpop.xlane.xlu2 %453 }
  0xc5   : > { %15344 = vst [vmem:[#allocation35_spill] sm:$0xff] %v10421_v18  ;;  %v15363_v18 = vperm.slane %v10164_v10, 7 }
  0xc7   : > { %686 = vperm.xlu2 %9566, %v675_v58   ;;  %v10250_v58 = vld [vmem:[%s10115_s13 + $0x68] sm:$0xff] }
  0xc8   : > { %693 = vperm.xlu1 %9567, %v688_v32   ;;  %v15110_v63 = vperm.slane %v10250_v58, 3 }
  0xcc   : > { %1460 = vperm.xlu0 %9559, %v15124_v37  }
  0xcf   : > { %699 = vperm.xlu2 %9566, %v688_v32   ;;  %v10271_v32 = vld [vmem:[%s10115_s13 + $0x78] sm:$0xff] }
  0xd0   : > { %706 = vperm.xlu1 %9567, %v15144_v38  }
  0xd4   : > { %1525 = vperm.xlu0 %9559, %v15123_v39   ;;  %v15127_v39 = vperm.slane %v10081_v34, 4 }
  0xd7   : > { %9568 = vset.pattern.permute.xlu2 %v10062_v25 }
  0xd8   : > { %9569 = vset.pattern.permute.xlu1 %v10069_v28 }
  0xdc   : > { %1590 = vperm.xlu0 %9559, %v15121_v41  }
  0xdf   : > { %719 = vperm.xlu2 %9568, %v714_v45  }
  0xe0   : > { %725 = vperm.xlu1 %9569, %v714_v45   ;;  %v15102_v45 = vperm.slane %v10271_v32, 2 }
  0xe4   : > { %1655 = vperm.xlu0 %9559, %v15120_v46   ;;  %v974_v46 = vperm.slane %v10152_v6, 3 }
  0xe7   : > { %732 = vperm.xlu2 %9568, %v727_v47  }
  0xe8   : > { %738 = vperm.xlu1 %9569, %v727_v47   ;;  %v15099_v47 = vperm.slane %v10271_v32, 7 }
  0xec   : > { %1720 = vperm.xlu0 %9559, %v15117_v50  }
  0xef   : > { %9570 = vset.pattern.permute.xlu2 %v10069_v28 }
  0xf0   : > { %9571 = vset.pattern.permute.xlu1 %v10062_v25 }
  0xf4   : > { %1785 = vperm.xlu0 %9559, %v15113_v53  }
  0xf7   : > { %751 = vperm.xlu2 %9570, %v740_v61   ;;  %v10258_v61 = vld [vmem:[%s10115_s13 + $0x70] sm:$0xff] }
  0xf8   : > { %758 = vperm.xlu1 %9571, %v753_v54   ;;  %v15109_v2 = vperm.slane %v10258_v61, 0  ;;  %v15106_v19 = vperm.slane %v10258_v61, 5 }
  0xfc   : > { %1850 = vperm.xlu0 %9559, %v15112_v55   ;;  %v15116_v55 = vperm.slane %v10059_v24, 6 }
  0xff   : > { %764 = vperm.xlu2 %9570, %v753_v54   ;;  %v818_v54 = vperm.slane %v10131_v60, 7 }
 0x100   : > { %771 = vperm.xlu1 %9571, %v15142_v56  }
 0x104   : > { %1915 = vperm.xlu0 %9559, %v15110_v63  }
 0x107   : > { %9572 = vset.pattern.permute.xlu2 %v10062_v25 }
 0x108   : > { %9573 = vset.pattern.permute.xlu1 %v10069_v28 }
 0x10c   : > { %1980 = vperm.xlu0 %9559, %v15109_v2   ;;  %v909_v2 = vperm.slane %v10145_v0, 6 }
 0x10f   : > { %784 = vperm.xlu2 %9572, %v779_v9  }
 0x110   : > { %790 = vperm.xlu1 %9573, %v779_v9   ;;  %v15100_v9 = vperm.slane %v10029_v5, 4 }
 0x114   : > { %2045 = vperm.xlu0 %9559, %v15106_v19  }
 0x117   : > { %797 = vperm.xlu2 %9572, %v792_v27  }
 0x118   : > { %803 = vperm.xlu1 %9573, %v792_v27   ;;  %v15138_v27 = vperm.slane %v10145_v0, 0 }
 0x11c   : > { %2110 = vperm.xlu0 %9559, %v15102_v45   ;;  %v10304_v45 = vpop.xlane.xlu0 %438 }
 0x11d   : > { %15330 = vst [vmem:[#allocation21_spill] sm:$0xff] %v10304_v45  ;;  %v1156_v45 = vperm.slane %v10176_v17, 1 }
 0x11f   : > { %9574 = vset.pattern.permute.xlu2 %v10069_v28 }
 0x120   : > { %9575 = vset.pattern.permute.xlu1 %v10062_v25 }
 0x124   : > { %2175 = vperm.xlu0 %9559, %v15099_v47   ;;  %v844_v47 = vperm.slane %v10145_v0, 1 }
 0x127   : > { %816 = vperm.xlu2 %9574, %v805_v62   ;;  %v15103_v62 = vperm.slane %v10044_v14, 6 }
 0x128   : > { %823 = vperm.xlu1 %9575, %v818_v54  }
 0x12c   : > { %3008 = vperm.xlu0 %9559, %v15100_v9   ;;  %v857_v9 = vperm.slane %v10145_v0, 2 }
 0x12f   : > { %829 = vperm.xlu2 %9574, %v818_v54   ;;  %v15104_v54 = vperm.slane %v10027_v4, 3 }
 0x130   : > { %836 = vperm.xlu1 %9575, %v15138_v27   ;;  %v10431_v27 = vpop.xlane.xlu2 %462 }
 0x131   : > { %15347 = vst [vmem:[#allocation38_spill] sm:$0xff] %v10431_v27 }
 0x134   : > { %3073 = vperm.xlu0 %9559, %v15101_v23   ;;  %v15105_v23 = vperm.slane %v10042_v13, 0 }
 0x137   : > { %9576 = vset.pattern.permute.xlu2 %v10062_v25 }
 0x138   : > { %9577 = vset.pattern.permute.xlu1 %v10069_v28  ;;  %v10443_v56 = vpop.xlane.xlu2 %471 }
 0x139   : > { %15350 = vst [vmem:[#allocation41_spill] sm:$0xff] %v10443_v56  ;;  %v15358_v56 = vperm.slane %v10126_v57, 1 }
 0x13c   : > { %3138 = vperm.xlu0 %9559, %v15103_v62   ;;  %v10311_v62 = vpop.xlane.xlu0 %441 }
 0x13d   : > { %15331 = vst [vmem:[#allocation22_spill] sm:$0xff] %v10311_v62 }
 0x13f   : > { %849 = vperm.xlu2 %9576, %v844_v47  }
 0x140   : > { %855 = vperm.xlu1 %9577, %v844_v47   ;;  %v15107_v47 = vperm.slane %v10042_v13, 5  ;;  %v10455_v59 = vpop.xlane.xlu2 %480 }
 0x141   : > { %15353 = vst [vmem:[#allocation44_spill] sm:$0xff] %v10455_v59  ;;  %v1104_v59 = vperm.slane %v10164_v10, 5 }
 0x144   : > { %3203 = vperm.xlu0 %9559, %v15104_v54   ;;  %v15108_v54 = vperm.slane %v10025_v3, 2  ;;  %v10322_v19 = vpop.xlane.xlu0 %456 }
 0x145   : > { %15332 = vst [vmem:[#allocation23_spill] sm:$0xff] %v10322_v19 }
 0x147   : > { %862 = vperm.xlu2 %9576, %v857_v9  }
 0x148   : > { %868 = vperm.xlu1 %9577, %v857_v9   ;;  %v883_v9 = vperm.slane %v10145_v0, 4 }
 0x14c   : > { %3268 = vperm.xlu0 %9559, %v15105_v23   ;;  %v15137_v23 = vperm.slane %v10145_v0, 5 }
 0x14f   : > { %9578 = vset.pattern.permute.xlu2 %v10069_v28 }
 0x150   : > { %9579 = vset.pattern.permute.xlu1 %v10062_v25 }
 0x154   : > { %3333 = vperm.xlu0 %9559, %v15107_v47   ;;  %v15111_v47 = vperm.slane %v10025_v3, 7 }
 0x157   : > { %881 = vperm.xlu2 %9578, %v870_v1   ;;  %v10329_v1 = vpop.xlane.xlu0 %465 }
 0x158   : > { %888 = vperm.xlu1 %9579, %v883_v9   ;;  %15333 = vst [vmem:[#allocation24_spill] sm:$0xff] %v10329_v1 }
 0x15c   : > { %3398 = vperm.xlu0 %9559, %v15108_v54   ;;  %v15115_v54 = vperm.slane %v10040_v12, 4 }
 0x15f   : > { %894 = vperm.xlu2 %9578, %v883_v9   ;;  %v15114_v9 = vperm.slane %v10059_v24, 1  ;;  %v10338_v63 = vpop.xlane.xlu0 %474 }
 0x160   : > { %901 = vperm.xlu1 %9579, %v15137_v23   ;;  %15334 = vst [vmem:[#allocation25_spill] sm:$0xff] %v10338_v63  ;;  %v10429_v23 = vpop.xlane.xlu1 %447  ;;  %v10465_v63 = vpop.permute.xlu2 %530 }
 0x161   : > { %15346 = vst [vmem:[#allocation37_spill] sm:$0xff] %v10429_v23  ;;  %v15362_v23 = vperm.slane %v10131_v60, 3  ;;  %v15366_v60 = vperm.slane %v10145_v0, 5 }
 0x164   : > { %3463 = vperm.xlu0 %9559, %v15111_v47   ;;  %v922_v47 = vperm.slane %v10145_v0, 7  ;;  %v1182_v0 = vperm.slane %v10176_v17, 3 }
 0x167   : > { %9580 = vset.pattern.permute.xlu2 %v10062_v25  ;;  %v10344_v53 = vpop.xlane.xlu0 %483 }
 0x168   : > { %9581 = vset.pattern.permute.xlu1 %v10069_v28  ;;  %15335 = vst [vmem:[#allocation26_spill] sm:$0xff] %v10344_v53  ;;  %v10441_v16 = vpop.xlane.xlu1 %459  ;;  %v1091_v53 = vperm.slane %v10164_v10, 4 }
 0x169   : > { %15349 = vst [vmem:[#allocation40_spill] sm:$0xff] %v10441_v16 }
 0x16c   : > { %3528 = vperm.xlu0 %9559, %v15115_v54  }
 0x16f   : > { %914 = vperm.xlu2 %9580, %v909_v2   ;;  %v10354_v54 = vpop.permute.xlu0 %537 }
 0x170   : > { %920 = vperm.xlu1 %9581, %v909_v2   ;;  %v15118_v2 = vperm.slane %v10057_v22, 3  ;;  %v10453_v15 = vpop.xlane.xlu1 %468 }
 0x171   : > { %15352 = vst [vmem:[#allocation43_spill] sm:$0xff] %v10453_v15  ;;  %v10476_v15 = vpop.permute.xlu2 %543 }
 0x174   : > { %3593 = vperm.xlu0 %9559, %v15114_v9   ;;  %v948_v9 = vperm.slane %v10152_v6, 1 }
 0x177   : > { %927 = vperm.xlu2 %9580, %v922_v47   ;;  %v10362_v50 = vpop.permute.xlu0 %615 }
 0x178   : > { %933 = vperm.xlu1 %9581, %v922_v47   ;;  %v15119_v47 = vperm.slane %v10055_v21, 0 }
 0x17c   : > { %3658 = vperm.xlu0 %9559, %v15116_v55   ;;  %v15136_v55 = vperm.slane %v10152_v6, 2 }
 0x17f   : > { %9582 = vset.pattern.permute.xlu2 %v10069_v28 }
 0x180   : > { %9583 = vset.pattern.permute.xlu1 %v10062_v25 }
 0x184   : > { %3723 = vperm.xlu0 %9559, %v15118_v2   ;;  %v15122_v2 = vperm.slane %v10055_v21, 5 }
 0x187   : > { %946 = vperm.xlu2 %9582, %v935_v7   ;;  %v15126_v7 = vperm.slane %v10083_v35, 2 }
 0x188   : > { %953 = vperm.xlu1 %9583, %v948_v9  }
 0x18c   : > { %3788 = vperm.xlu0 %9559, %v15119_v47   ;;  %v10372_v47 = vpop.permute.xlu0 %680 }
 0x18d   : > { %15336 = vst [vmem:[#allocation27_spill] sm:$0xff] %v10372_v47  ;;  %v5816_v47 = vsel %vm15296_vm0, %v10081_v34, 0 }
 0x18f   : > { %959 = vperm.xlu2 %9582, %v948_v9   ;;  %v15125_v9 = vperm.slane %v10083_v35, 7 }
 0x190   : > { %966 = vperm.xlu1 %9583, %v15136_v55  }
 0x194   : > { %3853 = vperm.xlu0 %9559, %v15122_v2   ;;  %v10378_v41 = vpop.permute.xlu0 %745  ;;  %v987_v2 = vperm.slane %v10152_v6, 4 }
 0x195   : > { %15337 = vst [vmem:[#allocation28_spill] sm:$0xff] %v10378_v41 }
 0x197   : > { %9584 = vset.pattern.permute.xlu2 %v10062_v25 }
 0x198   : > { %9585 = vset.pattern.permute.xlu1 %v10069_v28 }
 0x19c   : > { %3918 = vperm.xlu0 %9559, %v15126_v7   ;;  %v10386_v37 = vpop.permute.xlu0 %810 }
 0x19d   : > { %15338 = vst [vmem:[#allocation29_spill] sm:$0xff] %v10386_v37  ;;  %v15170_v37 = vperm.slane %v10204_v36, 7 }
 0x19f   : > { %979 = vperm.xlu2 %9584, %v974_v46  }
 0x1a0   : > { %985 = vperm.xlu1 %9585, %v974_v46   ;;  %v15128_v46 = vperm.slane %v10079_v33, 1 }
 0x1a4   : > { %3983 = vperm.xlu0 %9559, %v15125_v9   ;;  %v1013_v9 = vperm.slane %v10152_v6, 6  ;;  %v10394_v7 = vpop.permute.xlu0 %875 }
 0x1a5   : > { %15339 = vst [vmem:[#allocation30_spill] sm:$0xff] %v10394_v7 }
 0x1a7   : > { %992 = vperm.xlu2 %9584, %v987_v2  }
 0x1a8   : > { %998 = vperm.xlu1 %9585, %v987_v2   ;;  %v15131_v2 = vperm.slane %v10079_v33, 6 }
 0x1ac   : > { %4048 = vperm.xlu0 %9559, %v15127_v39   ;;  %v15135_v39 = vperm.slane %v10152_v6, 7  ;;  %v10405_v31 = vpop.permute.xlu0 %940 }
 0x1ad   : > { %15340 = vst [vmem:[#allocation31_spill] sm:$0xff] %v10405_v31 }
 0x1af   : > { %9586 = vset.pattern.permute.xlu2 %v10069_v28 }
 0x1b0   : > { %9587 = vset.pattern.permute.xlu1 %v10062_v25 }
 0x1b4   : > { %4113 = vperm.xlu0 %9559, %v15128_v46   ;;  %v15134_v46 = vperm.slane %v10098_v44, 3 }
 0x1b7   : > { %1011 = vperm.xlu2 %9586, %v1000_v8   ;;  %v15139_v8 = vperm.slane %v10096_v43, 0 }
 0x1b8   : > { %1018 = vperm.xlu1 %9587, %v1013_v9  }
 0x1bc   : > { %4178 = vperm.xlu0 %9559, %v15131_v2   ;;  %v10414_v2 = vpop.permute.xlu0 %1005 }
 0x1bd   : > { %15342 = vst [vmem:[#allocation33_spill] sm:$0xff] %v10414_v2  ;;  %v1247_v2 = vperm.slane %v10185_v20, 0 }
 0x1bf   : > { %1024 = vperm.xlu2 %9586, %v1013_v9   ;;  %v1039_v9 = vperm.slane %v10164_v10, 0 }
 0x1c0   : > { %1031 = vperm.xlu1 %9587, %v15135_v39   ;;  %v1052_v39 = vperm.slane %v10164_v10, 1 }
 0x1c4   : > { %4243 = vperm.xlu0 %9559, %v15134_v46   ;;  %v15140_v46 = vperm.slane %v10096_v43, 5  ;;  %v10427_v55 = vpop.permute.xlu0 %1070 }
 0x1c5   : > { %15345 = vst [vmem:[#allocation36_spill] sm:$0xff] %v10427_v55 }
 0x1c7   : > { %9588 = vset.pattern.permute.xlu2 %v10062_v25 }
 0x1c8   : > { %9589 = vset.pattern.permute.xlu1 %v10069_v28 }
 0x1cc   : > { %4308 = vperm.xlu0 %9559, %v15139_v8   ;;  %v15143_v8 = vperm.slane %v10094_v42, 2 }
 0x1cf   : > { %1044 = vperm.xlu2 %9588, %v1039_v9  }
 0x1d0   : > { %1050 = vperm.xlu1 %9589, %v1039_v9   ;;  %v10436_v9 = vpop.permute.xlu0 %1135 }
 0x1d1   : > { %15348 = vst [vmem:[#allocation39_spill] sm:$0xff] %v10436_v9  ;;  %v15166_v9 = vperm.slane %v10195_v30, 0 }
 0x1d4   : > { %4373 = vperm.xlu0 %9559, %v15140_v46   ;;  %v15148_v46 = vperm.slane %v10094_v42, 7 }
 0x1d7   : > { %1057 = vperm.xlu2 %9588, %v1052_v39  }
 0x1d8   : > { %1063 = vperm.xlu1 %9589, %v1052_v39   ;;  %v1078_v39 = vperm.slane %v10164_v10, 3  ;;  %v10451_v38 = vpop.permute.xlu0 %1200 }
 0x1d9   : > { %15351 = vst [vmem:[#allocation42_spill] sm:$0xff] %v10451_v38 }
 0x1dc   : > { %4438 = vperm.xlu0 %9559, %v15143_v8   ;;  %v15151_v8 = vperm.slane %v10107_v49, 4 }
 0x1df   : > { %9590 = vset.pattern.permute.xlu2 %v10069_v28 }
 0x1e0   : > { %9591 = vset.pattern.permute.xlu1 %v10062_v25 }
 0x1e4   : > { %4503 = vperm.xlu0 %9559, %v15148_v46   ;;  %v10460_v46 = vpop.permute.xlu0 %1265 }
 0x1e5   : > { %15354 = vst [vmem:[#allocation45_spill] sm:$0xff] %v10460_v46 }
 0x1e7   : > { %1076 = vperm.xlu2 %9590, %v1065_v11   ;;  %v10463_v11 = vpop.xlane.xlu1 %477 }
 0x1e8   : > { %1083 = vperm.xlu1 %9591, %v1078_v39   ;;  %15355 = vst [vmem:[#allocation46_spill] sm:$0xff] %v10463_v11  ;;  %v1117_v11 = vperm.slane %v10164_v10, 6 }
 0x1ec   : > { %4568 = vperm.xlu0 %9559, %v15151_v8   ;;  %v15356_v8 = vperm.slane %v10118_v51, 4  ;;  %v10472_v1 = vpop.permute.xlu0 %1330  ;;  %v10485_v51 = vpop.permute.xlu2 %556 }
 0x1ed   : > { %15357 = vst [vmem:[#allocation47_spill] sm:$0xff] %v10472_v1 }
 0x1ef   : > { %1089 = vperm.xlu2 %9590, %v1078_v39   ;;  %v10474_v39 = vpop.permute.xlu1 %524 }
 0x1f0   : > { %1096 = vperm.xlu1 %9591, %v1091_v53  }
 0x1f4   : > { %9758 = vset.pattern.permute.xlu0 %v10069_v28  ;;  %v10481_v19 = vpop.permute.xlu0 %1395 }
 0x1f5   : > { %15359 = vst [vmem:[#allocation48_spill] sm:$0xff] %v10481_v19 }
 0x1f7   : > { %9592 = vset.pattern.permute.xlu2 %v10062_v25  ;;  %v10483_v16 = vpop.permute.xlu1 %550 }
 0x1f8   : > { %9593 = vset.pattern.permute.xlu1 %v10069_v28 }
 0x1fc   : > { %582 = vperm.xlu0 %9758, %v15356_v8   ;;  %v15360_v8 = vperm.slane %v10126_v57, 6 }
 0x1ff   : > { %1109 = vperm.xlu2 %9592, %v1104_v59   ;;  %v10493_v27 = vpop.permute.xlu1 %563 }
 0x200   : > { %1115 = vperm.xlu1 %9593, %v1104_v59   ;;  %v10491_v59 = vpop.permute.xlu0 %1460 }
 0x201   : > { %15361 = vst [vmem:[#allocation49_spill] sm:$0xff] %v10491_v59 }
 0x204   : > { %647 = vperm.xlu0 %9758, %v15358_v56   ;;  %v10495_v56 = vpop.permute.xlu2 %569 }
 0x207   : > { %1122 = vperm.xlu2 %9592, %v1117_v11  }
 0x208   : > { %1128 = vperm.xlu1 %9593, %v1117_v11   ;;  %v1143_v11 = vperm.slane %v10176_v17, 0  ;;  %v10502_v57 = vpop.permute.xlu0 %1525 }
 0x209   : > { %15364 = vst [vmem:[#allocation50_spill] sm:$0xff] %v10502_v57 }
 0x20c   : > { %712 = vperm.xlu0 %9758, %v15360_v8   ;;  %v10504_v8 = vpop.permute.xlu1 %576  ;;  %v10506_v62 = vpop.permute.xlu2 %589 }
 0x20f   : > { %9594 = vset.pattern.permute.xlu2 %v10069_v28 }
 0x210   : > { %9595 = vset.pattern.permute.xlu1 %v10062_v25  ;;  %v10515_v10 = vpop.permute.xlu0 %1590 }
 0x211   : > { %15367 = vst [vmem:[#allocation51_spill] sm:$0xff] %v10515_v10 }
 0x214   : > { %777 = vperm.xlu0 %9758, %v15362_v23   ;;  %v10511_v23 = vpop.permute.xlu1 %595 }
 0x217   : > { %1141 = vperm.xlu2 %9594, %v15363_v18   ;;  %v10517_v18 = vpop.permute.xlu2 %602 }
 0x218   : > { %1148 = vperm.xlu1 %9595, %v1143_v11   ;;  %v10528_v59 = vpop.permute.xlu0 %1655 }
 0x219   : > { %15369 = vst [vmem:[#allocation52_spill] sm:$0xff] %v10528_v59 }
 0x21c   : > { %842 = vperm.xlu0 %9758, %v15365_v26   ;;  %v15368_v26 = vperm.slane %v10152_v6, 2 }
 0x21f   : > { %1154 = vperm.xlu2 %9594, %v1143_v11   ;;  %v10524_v11 = vpop.permute.xlu1 %608  ;;  %v10526_v57 = vpop.permute.xlu2 %621 }
 0x220   : > { %1161 = vperm.xlu1 %9595, %v1156_v45  }
 0x224   : > { %907 = vperm.xlu0 %9758, %v15366_v60   ;;  %v15370_v60 = vperm.slane %v10152_v6, 7  ;;  %v1208_v6 = vperm.slane %v10176_v17, 5 }
 0x227   : > { %9596 = vset.pattern.permute.xlu2 %v10062_v25  ;;  %v10533_v10 = vpop.permute.xlu1 %628  ;;  %v10535_v19 = vpop.permute.xlu2 %634 }
 0x228   : > { %9597 = vset.pattern.permute.xlu1 %v10069_v28  ;;  %15371 = vst [vmem:[#allocation53_spill] sm:$0xff] %v10533_v10 }
 0x229   : > { %15372 = vst [vmem:[#allocation54_spill] sm:$0xff] %v10535_v19 }
 0x22c   : > { %972 = vperm.xlu0 %9758, %v15368_v26   ;;  %v10537_v26 = vpop.permute.xlu0 %1720 }
 0x22d   : > { %15373 = vst [vmem:[#allocation55_spill] sm:$0xff] %v10537_v26 }
 0x22f   : > { %1174 = vperm.xlu2 %9596, %v1169_v29   ;;  %v10540_v1 = vpop.permute.xlu1 %641  ;;  %v10542_v59 = vpop.permute.xlu2 %654 }
 0x230   : > { %1180 = vperm.xlu1 %9597, %v1169_v29   ;;  %15374 = vst [vmem:[#allocation56_spill] sm:$0xff] %v10540_v1 }
 0x231   : > { %15375 = vst [vmem:[#allocation57_spill] sm:$0xff] %v10542_v59 }
 0x234   : > { %1037 = vperm.xlu0 %9758, %v15370_v60   ;;  %v10545_v29 = vpop.permute.xlu0 %1785  ;;  %v15377_v60 = vperm.slane %v10176_v17, 4 }
 0x235   : > { %15376 = vst [vmem:[#allocation58_spill] sm:$0xff] %v10545_v29  ;;  %v1286_v29 = vperm.slane %v10185_v20, 3 }
 0x237   : > { %1187 = vperm.xlu2 %9596, %v1182_v0   ;;  %v10553_v26 = vpop.permute.xlu2 %667 }
 0x238   : > { %1193 = vperm.xlu1 %9597, %v1182_v0   ;;  %v10550_v0 = vpop.permute.xlu1 %660  ;;  %15379 = vst [vmem:[#allocation60_spill] sm:$0xff] %v10553_v26  ;;  %v5819_v26 = vsel %vm15296_vm0, %v10079_v33, 0 }
 0x239   : > { %15378 = vst [vmem:[#allocation59_spill] sm:$0xff] %v10550_v0  ;;  %v11425_v10 = vand.u32 4294901760, %v5819_v26 }
 0x23c   : > { %1102 = vperm.xlu0 %9758, %v1091_v53   ;;  %v1221_v53 = vperm.slane %v10176_v17, 6  ;;  %v10555_v46 = vpop.permute.xlu0 %1850 }
 0x23d   : > { %15380 = vst [vmem:[#allocation61_spill] sm:$0xff] %v10555_v46  ;;  %v15168_v46 = vperm.slane %v10195_v30, 5 }
 0x23f   : > { %9598 = vset.pattern.permute.xlu2 %v10069_v28  ;;  %v10560_v38 = vpop.permute.xlu2 %686 }
 0x240   : > { %9599 = vset.pattern.permute.xlu1 %v10062_v25  ;;  %15382 = vst [vmem:[#allocation63_spill] sm:$0xff] %v10560_v38 }
 0x244   : > { %1167 = vperm.xlu0 %9758, %v1156_v45   ;;  %v10558_v45 = vpop.permute.xlu1 %673 }
 0x245   : > { %15381 = vst [vmem:[#allocation62_spill] sm:$0xff] %v10558_v45 }
 0x247   : > { %1206 = vperm.xlu2 %9598, %v15377_v60   ;;  %v10562_v60 = vpop.permute.xlu0 %1915 }
 0x248   : > { %1213 = vperm.xlu1 %9599, %v1208_v6   ;;  %15383 = vst [vmem:[#allocation64_spill] sm:$0xff] %v10562_v60 }
 0x24c   : > { %1232 = vperm.xlu0 %9758, %v1221_v53   ;;  %v10567_v55 = vpop.permute.xlu1 %693 }
 0x24d   : > { %15384 = vst [vmem:[#allocation65_spill] sm:$0xff] %v10567_v55 }
 0x24f   : > { %1219 = vperm.xlu2 %9598, %v1208_v6   ;;  %v1234_v6 = vperm.slane %v10176_v17, 7  ;;  %v10575_v60 = vpop.permute.xlu0 %1980  ;;  %v15169_v17 = vperm.slane %v10204_v36, 2 }
 0x250   : > { %1226 = vperm.xlu1 %9599, %v1221_v53   ;;  %v10570_v53 = vpop.permute.xlu2 %699  ;;  %15386 = vst [vmem:[#allocation67_spill] sm:$0xff] %v10575_v60 }
 0x251   : > { %15385 = vst [vmem:[#allocation66_spill] sm:$0xff] %v10570_v53  ;;  %v15587_v53 = vperm.slane %v10271_v32, 2 }
 0x254   : > { %1297 = vperm.xlu0 %9758, %v1286_v29   ;;  %v10578_v31 = vpop.permute.xlu1 %706 }
 0x255   : > { %15387 = vst [vmem:[#allocation68_spill] sm:$0xff] %v10578_v31 }
 0x257   : > { %9600 = vset.pattern.permute.xlu2 %v10062_v25 }
 0x258   : > { %9601 = vset.pattern.permute.xlu1 %v10069_v28  ;;  %v10580_v7 = vpop.permute.xlu2 %719 }
 0x259   : > { %15388 = vst [vmem:[#allocation69_spill] sm:$0xff] %v10580_v7 }
 0x25c   : > { %1362 = vperm.xlu0 %9758, %v15166_v9   ;;  %v10585_v9 = vpop.permute.xlu0 %2045 }
 0x25d   : > { %15389 = vst [vmem:[#allocation70_spill] sm:$0xff] %v10585_v9 }
 0x25f   : > { %1239 = vperm.xlu2 %9600, %v1234_v6  }
 0x260   : > { %1245 = vperm.xlu1 %9601, %v1234_v6   ;;  %v10587_v6 = vpop.permute.xlu1 %725  ;;  %v10591_v60 = vpop.permute.xlu2 %732 }
 0x261   : > { %15390 = vst [vmem:[#allocation71_spill] sm:$0xff] %v10587_v6 }
 0x262   : > { %15391 = vst [vmem:[#allocation72_spill] sm:$0xff] %v10591_v60  ;;  %v15172_v60 = vperm.slane %v10216_v40, 4 }
 0x264   : > { %1427 = vperm.xlu0 %9758, %v15168_v46   ;;  %v10599_v46 = vpop.permute.xlu0 %2110 }
 0x265   : > { %15392 = vst [vmem:[#allocation73_spill] sm:$0xff] %v10599_v46  ;;  %v15173_v46 = vperm.slane %v10229_v48, 1 }
 0x267   : > { %1252 = vperm.xlu2 %9600, %v1247_v2  }
 0x268   : > { %1258 = vperm.xlu1 %9601, %v1247_v2   ;;  %v1273_v2 = vperm.slane %v10185_v20, 2  ;;  %v10601_v9 = vpop.permute.xlu1 %738  ;;  %v10603_v41 = vpop.permute.xlu2 %751 }
 0x269   : > { %15393 = vst [vmem:[#allocation74_spill] sm:$0xff] %v10601_v9 }
 0x26a   : > { %15394 = vst [vmem:[#allocation75_spill] sm:$0xff] %v10603_v41 }
 0x26c   : > { %1492 = vperm.xlu0 %9758, %v15169_v17   ;;  %v15395_v17 = vperm.slane %v10185_v20, 1 }
 0x26f   : > { %9602 = vset.pattern.permute.xlu2 %v10069_v28 }
 0x270   : > { %9603 = vset.pattern.permute.xlu1 %v10062_v25  ;;  %v10610_v6 = vpop.permute.xlu1 %758  ;;  %v10614_v7 = vpop.permute.xlu2 %764 }
 0x271   : > { %15396 = vst [vmem:[#allocation76_spill] sm:$0xff] %v10610_v6  ;;  %v1312_v6 = vperm.slane %v10185_v20, 5 }
 0x272   : > { %15398 = vst [vmem:[#allocation78_spill] sm:$0xff] %v10614_v7  ;;  %v15177_v7 = vperm.slane %v10250_v58, 0 }
 0x274   : > { %1557 = vperm.xlu0 %9758, %v15170_v37   ;;  %v10612_v37 = vpop.permute.xlu0 %2175 }
 0x275   : > { %15397 = vst [vmem:[#allocation77_spill] sm:$0xff] %v10612_v37 }
 0x277   : > { %1271 = vperm.xlu2 %9602, %v15395_v17  }
 0x278   : > { %1278 = vperm.xlu1 %9603, %v1273_v2   ;;  %v10620_v17 = vpop.permute.xlu1 %771  ;;  %v10622_v9 = vpop.permute.xlu2 %784 }
 0x279   : > { %15399 = vst [vmem:[#allocation79_spill] sm:$0xff] %v10620_v17 }
 0x27a   : > { %15400 = vst [vmem:[#allocation80_spill] sm:$0xff] %v10622_v9 }
 0x27c   : > { %1622 = vperm.xlu0 %9758, %v15172_v60   ;;  %v15174_v60 = vperm.slane %v10229_v48, 6  ;;  %v10626_v37 = vpop.permute.xlu0 %3008 }
 0x27f   : > { %1284 = vperm.xlu2 %9602, %v1273_v2   ;;  %v1299_v2 = vperm.slane %v10185_v20, 4 }
 0x280   : > { %1291 = vperm.xlu1 %9603, %v1286_v29   ;;  %v10631_v29 = vpop.permute.xlu1 %790  ;;  %v10634_v17 = vpop.permute.xlu2 %797 }
 0x281   : > { %15401 = vst [vmem:[#allocation81_spill] sm:$0xff] %v10631_v29  ;;  %v15179_v29 = vperm.slane %v10250_v58, 5 }
 0x282   : > { %15402 = vst [vmem:[#allocation82_spill] sm:$0xff] %v10634_v17  ;;  %v15181_v17 = vperm.slane %v10258_v61, 2 }
 0x284   : > { %1687 = vperm.xlu0 %9758, %v15173_v46   ;;  %v15176_v46 = vperm.slane %v10235_v52, 3  ;;  %v10636_v9 = vpop.permute.xlu0 %3073 }
 0x285   : > { %15403 = vst [vmem:[#allocation83_spill] sm:$0xff] %v10636_v9 }
 0x287   : > { %9604 = vset.pattern.permute.xlu2 %v10062_v25 }
 0x288   : > { %9605 = vset.pattern.permute.xlu1 %v10069_v28  ;;  %v10644_v41 = vpop.permute.xlu2 %816 }
 0x289   : > { %15405 = vst [vmem:[#allocation85_spill] sm:$0xff] %v10644_v41  ;;  %v1338_v41 = vperm.slane %v10185_v20, 7 }
 0x28c   : > { %1752 = vperm.xlu0 %9758, %v15174_v60   ;;  %v10642_v60 = vpop.permute.xlu1 %803 }
 0x28d   : > { %15404 = vst [vmem:[#allocation84_spill] sm:$0xff] %v10642_v60 }
 0x28f   : > { %1304 = vperm.xlu2 %9604, %v1299_v2  }
 0x290   : > { %1310 = vperm.xlu1 %9605, %v1299_v2   ;;  %v10648_v2 = vpop.permute.xlu0 %3138 }
 0x291   : > { %15406 = vst [vmem:[#allocation86_spill] sm:$0xff] %v10648_v2 }
 0x294   : > { %1817 = vperm.xlu0 %9758, %v15176_v46   ;;  %v10653_v46 = vpop.permute.xlu1 %823 }
 0x295   : > { %15407 = vst [vmem:[#allocation87_spill] sm:$0xff] %v10653_v46  ;;  %v15183_v46 = vperm.slane %v10258_v61, 7 }
 0x297   : > { %1317 = vperm.xlu2 %9604, %v1312_v6  }
 0x298   : > { %1323 = vperm.xlu1 %9605, %v1312_v6   ;;  %v10655_v6 = vpop.permute.xlu2 %829  ;;  %v10660_v60 = vpop.permute.xlu0 %3203 }
 0x299   : > { %15408 = vst [vmem:[#allocation88_spill] sm:$0xff] %v10655_v6 }
 0x29a   : > { %15409 = vst [vmem:[#allocation89_spill] sm:$0xff] %v10660_v60 }
 0x29c   : > { %1882 = vperm.xlu0 %9758, %v15177_v7   ;;  %v15410_v7 = vperm.slane %v10185_v20, 6  ;;  %v10665_v2 = vpop.permute.xlu1 %836 }
 0x29d   : > { %15411 = vst [vmem:[#allocation90_spill] sm:$0xff] %v10665_v2 }
 0x29f   : > { %9606 = vset.pattern.permute.xlu2 %v10069_v28 }
 0x2a0   : > { %9607 = vset.pattern.permute.xlu1 %v10062_v25  ;;  %v10667_v31 = vpop.permute.xlu2 %849  ;;  %v10674_v6 = vpop.permute.xlu0 %3268 }
 0x2a1   : > { %15412 = vst [vmem:[#allocation91_spill] sm:$0xff] %v10667_v31 }
 0x2a2   : > { %15414 = vst [vmem:[#allocation92_spill] sm:$0xff] %v10674_v6 }
 0x2a4   : > { %1947 = vperm.xlu0 %9758, %v15179_v29   ;;  %v15413_v29 = vperm.slane %v10195_v30, 0  ;;  %v10676_v20 = vpop.permute.xlu1 %855 }
 0x2a5   : > { %15415 = vst [vmem:[#allocation93_spill] sm:$0xff] %v10676_v20 }
 0x2a7   : > { %1336 = vperm.xlu2 %9606, %v15410_v7  }
 0x2a8   : > { %1343 = vperm.xlu1 %9607, %v1338_v41   ;;  %v10680_v7 = vpop.permute.xlu2 %862 }
 0x2a9   : > { %15416 = vst [vmem:[#allocation94_spill] sm:$0xff] %v10680_v7  ;;  %v1377_v7 = vperm.slane %v10195_v30, 2 }
 0x2ac   : > { %2012 = vperm.xlu0 %9758, %v15181_v17   ;;  %v10685_v17 = vpop.permute.xlu0 %3333  ;;  %v10690_v6 = vpop.permute.xlu1 %868 }
 0x2ad   : > { %15417 = vst [vmem:[#allocation95_spill] sm:$0xff] %v10685_v17 }
 0x2ae   : > { %15418 = vst [vmem:[#allocation96_spill] sm:$0xff] %v10690_v6 }
 0x2af   : > { %1349 = vperm.xlu2 %9606, %v1338_v41   ;;  %v15184_v41 = vperm.slane %v10271_v32, 4 }
 0x2b0   : > { %1356 = vperm.xlu1 %9607, %v15413_v29   ;;  %v1364_v29 = vperm.slane %v10195_v30, 1  ;;  %v10692_v2 = vpop.permute.xlu2 %881 }
 0x2b1   : > { %15419 = vst [vmem:[#allocation97_spill] sm:$0xff] %v10692_v2 }
 0x2b4   : > { %2077 = vperm.xlu0 %9758, %v15183_v46   ;;  %v15185_v46 = vperm.slane %v10029_v5, 1  ;;  %v10695_v20 = vpop.permute.xlu0 %3398  ;;  %v10700_v17 = vpop.permute.xlu1 %888 }
 0x2b5   : > { %15420 = vst [vmem:[#allocation98_spill] sm:$0xff] %v10695_v20 }
 0x2b6   : > { %15421 = vst [vmem:[#allocation99_spill] sm:$0xff] %v10700_v17 }
 0x2b7   : > { %9608 = vset.pattern.permute.xlu2 %v10062_v25 }
 0x2b8   : > { %9609 = vset.pattern.permute.xlu1 %v10069_v28  ;;  %v10702_v31 = vpop.permute.xlu2 %894 }
 0x2b9   : > { %15422 = vst [vmem:[#allocation100_spill] sm:$0xff] %v10702_v31  ;;  %v15189_v31 = vperm.slane %v10027_v4, 5 }
 0x2bc   : > { %2142 = vperm.xlu0 %9758, %v15184_v41   ;;  %v15186_v41 = vperm.slane %v10029_v5, 6  ;;  %v10710_v20 = vpop.permute.xlu1 %901 }
 0x2bd   : > { %15424 = vst [vmem:[#allocation102_spill] sm:$0xff] %v10710_v20  ;;  %v15188_v20 = vperm.slane %v10027_v4, 0 }
 0x2bf   : > { %1369 = vperm.xlu2 %9608, %v1364_v29  }
 0x2c0   : > { %1375 = vperm.xlu1 %9609, %v1364_v29   ;;  %v10707_v29 = vpop.permute.xlu0 %3463  ;;  %v10712_v6 = vpop.permute.xlu2 %914 }
 0x2c1   : > { %15423 = vst [vmem:[#allocation101_spill] sm:$0xff] %v10707_v29 }
 0x2c2   : > { %15425 = vst [vmem:[#allocation103_spill] sm:$0xff] %v10712_v6 }
 0x2c4   : > { %2975 = vperm.xlu0 %9758, %v15185_v46   ;;  %v15187_v46 = vperm.slane %v10044_v14, 3  ;;  %v10723_v29 = vpop.permute.xlu1 %920 }
 0x2c5   : > { %15428 = vst [vmem:[#allocation105_spill] sm:$0xff] %v10723_v29 }
 0x2c7   : > { %1382 = vperm.xlu2 %9608, %v1377_v7  }
 0x2c8   : > { %1388 = vperm.xlu1 %9609, %v1377_v7   ;;  %v1403_v7 = vperm.slane %v10195_v30, 4  ;;  %v10719_v17 = vpop.permute.xlu0 %3528  ;;  %v10726_v6 = vpop.permute.xlu2 %927 }
 0x2c9   : > { %15426 = vst [vmem:[#allocation104_spill] sm:$0xff] %v10719_v17 }
 0x2ca   : > { %15429 = vst [vmem:[#allocation106_spill] sm:$0xff] %v10726_v6  ;;  %v1429_v6 = vperm.slane %v10195_v30, 6 }
 0x2cc   : > { %3040 = vperm.xlu0 %9758, %v15186_v41   ;;  %v15427_v41 = vperm.slane %v10195_v30, 3  ;;  %v10735_v2 = vpop.permute.xlu1 %933 }
 0x2cd   : > { %15432 = vst [vmem:[#allocation108_spill] sm:$0xff] %v10735_v2 }
 0x2cf   : > { %9610 = vset.pattern.permute.xlu2 %v10069_v28 }
 0x2d0   : > { %9611 = vset.pattern.permute.xlu1 %v10062_v25  ;;  %v10733_v17 = vpop.permute.xlu0 %3593 }
 0x2d1   : > { %15431 = vst [vmem:[#allocation107_spill] sm:$0xff] %v10733_v17 }
 0x2d4   : > { %3105 = vperm.xlu0 %9758, %v15187_v46   ;;  %v15430_v46 = vperm.slane %v10195_v30, 5 }
 0x2d7   : > { %1401 = vperm.xlu2 %9610, %v15427_v41   ;;  %v10737_v41 = vpop.permute.xlu2 %946 }
 0x2d8   : > { %1408 = vperm.xlu1 %9611, %v1403_v7   ;;  %15433 = vst [vmem:[#allocation109_spill] sm:$0xff] %v10737_v41  ;;  %v1442_v41 = vperm.slane %v10195_v30, 7 }
 0x2dc   : > { %3170 = vperm.xlu0 %9758, %v15188_v20   ;;  %v10744_v20 = vpop.permute.xlu1 %953 }
 0x2dd   : > { %15434 = vst [vmem:[#allocation110_spill] sm:$0xff] %v10744_v20  ;;  %v15193_v20 = vperm.slane %v10025_v3, 4 }
 0x2df   : > { %1414 = vperm.xlu2 %9610, %v1403_v7   ;;  %v15190_v7 = vperm.slane %v10042_v13, 2  ;;  %v10749_v17 = vpop.permute.xlu2 %959 }
 0x2e0   : > { %1421 = vperm.xlu1 %9611, %v15430_v46   ;;  %v10746_v46 = vpop.permute.xlu0 %3658  ;;  %15436 = vst [vmem:[#allocation112_spill] sm:$0xff] %v10749_v17 }
 0x2e1   : > { %15435 = vst [vmem:[#allocation111_spill] sm:$0xff] %v10746_v46 }
 0x2e4   : > { %3235 = vperm.xlu0 %9758, %v15189_v31   ;;  %v15191_v31 = vperm.slane %v10042_v13, 7  ;;  %v10755_v2 = vpop.permute.xlu1 %966 }
 0x2e5   : > { %15437 = vst [vmem:[#allocation113_spill] sm:$0xff] %v10755_v2 }
 0x2e7   : > { %9612 = vset.pattern.permute.xlu2 %v10062_v25  ;;  %v10757_v29 = vpop.permute.xlu2 %979 }
 0x2e8   : > { %9613 = vset.pattern.permute.xlu1 %v10069_v28  ;;  %15438 = vst [vmem:[#allocation114_spill] sm:$0xff] %v10757_v29  ;;  %v10761_v46 = vpop.permute.xlu0 %3723 }
 0x2e9   : > { %15439 = vst [vmem:[#allocation115_spill] sm:$0xff] %v10761_v46 }
 0x2ec   : > { %3300 = vperm.xlu0 %9758, %v15190_v7   ;;  %v10764_v7 = vpop.permute.xlu1 %985 }
 0x2ed   : > { %15440 = vst [vmem:[#allocation116_spill] sm:$0xff] %v10764_v7 }
 0x2ef   : > { %1434 = vperm.xlu2 %9612, %v1429_v6  }
 0x2f0   : > { %1440 = vperm.xlu1 %9613, %v1429_v6   ;;  %v10768_v6 = vpop.permute.xlu2 %992  ;;  %v10770_v30 = vpop.permute.xlu0 %3788 }
 0x2f1   : > { %15441 = vst [vmem:[#allocation117_spill] sm:$0xff] %v10768_v6 }
 0x2f2   : > { %15442 = vst [vmem:[#allocation118_spill] sm:$0xff] %v10770_v30  ;;  %v15195_v30 = vperm.slane %v10040_v12, 6 }
 0x2f4   : > { %3365 = vperm.xlu0 %9758, %v15191_v31   ;;  %v15194_v31 = vperm.slane %v10040_v12, 1  ;;  %v10778_v46 = vpop.permute.xlu1 %998 }
 0x2f5   : > { %15443 = vst [vmem:[#allocation119_spill] sm:$0xff] %v10778_v46  ;;  %v15449_v46 = vperm.slane %v10204_v36, 2 }
 0x2f7   : > { %1447 = vperm.xlu2 %9612, %v1442_v41  }
 0x2f8   : > { %1453 = vperm.xlu1 %9613, %v1442_v41   ;;  %v1468_v41 = vperm.slane %v10204_v36, 1  ;;  %v10780_v7 = vpop.permute.xlu2 %1011  ;;  %v10785_v6 = vpop.permute.xlu0 %3853 }
 0x2f9   : > { %15444 = vst [vmem:[#allocation120_spill] sm:$0xff] %v10780_v7  ;;  %v15196_v7 = vperm.slane %v10059_v24, 3 }
 0x2fa   : > { %15446 = vst [vmem:[#allocation121_spill] sm:$0xff] %v10785_v6  ;;  %v1494_v6 = vperm.slane %v10204_v36, 3 }
 0x2fc   : > { %3430 = vperm.xlu0 %9758, %v15193_v20   ;;  %v15445_v20 = vperm.slane %v10204_v36, 0  ;;  %v10789_v2 = vpop.permute.xlu1 %1018 }
 0x2fd   : > { %15447 = vst [vmem:[#allocation122_spill] sm:$0xff] %v10789_v2 }
 0x2ff   : > { %9614 = vset.pattern.permute.xlu2 %v10069_v28 }
 0x300   : > { %9615 = vset.pattern.permute.xlu1 %v10062_v25  ;;  %v10796_v29 = vpop.permute.xlu0 %3918 }
 0x301   : > { %15450 = vst [vmem:[#allocation124_spill] sm:$0xff] %v10796_v29 }
 0x304   : > { %3495 = vperm.xlu0 %9758, %v15194_v31   ;;  %v10791_v31 = vpop.permute.xlu2 %1024 }
 0x305   : > { %15448 = vst [vmem:[#allocation123_spill] sm:$0xff] %v10791_v31 }
 0x307   : > { %1466 = vperm.xlu2 %9614, %v15445_v20   ;;  %v10801_v20 = vpop.permute.xlu1 %1031 }
 0x308   : > { %1473 = vperm.xlu1 %9615, %v1468_v41   ;;  %15451 = vst [vmem:[#allocation125_spill] sm:$0xff] %v10801_v20 }
 0x30c   : > { %3560 = vperm.xlu0 %9758, %v15195_v30   ;;  %v10803_v30 = vpop.permute.xlu2 %1044 }
 0x30d   : > { %15452 = vst [vmem:[#allocation126_spill] sm:$0xff] %v10803_v30  ;;  %v1507_v30 = vperm.slane %v10204_v36, 4 }
 0x30f   : > { %1479 = vperm.xlu2 %9614, %v1468_v41   ;;  %v15197_v41 = vperm.slane %v10057_v22, 0  ;;  %v10812_v29 = vpop.permute.xlu1 %1050 }
 0x310   : > { %1486 = vperm.xlu1 %9615, %v15449_v46   ;;  %v10810_v46 = vpop.permute.xlu0 %3983  ;;  %15454 = vst [vmem:[#allocation128_spill] sm:$0xff] %v10812_v29 }
 0x311   : > { %15453 = vst [vmem:[#allocation127_spill] sm:$0xff] %v10810_v46 }
 0x314   : > { %3625 = vperm.xlu0 %9758, %v15196_v7   ;;  %v15198_v7 = vperm.slane %v10057_v22, 5  ;;  %v10815_v2 = vpop.permute.xlu2 %1057 }
 0x315   : > { %15455 = vst [vmem:[#allocation129_spill] sm:$0xff] %v10815_v2 }
 0x317   : > { %9616 = vset.pattern.permute.xlu2 %v10062_v25  ;;  %v10823_v46 = vpop.permute.xlu1 %1063 }
 0x318   : > { %9617 = vset.pattern.permute.xlu1 %v10069_v28  ;;  %v10820_v31 = vpop.permute.xlu0 %4048  ;;  %15457 = vst [vmem:[#allocation131_spill] sm:$0xff] %v10823_v46  ;;  %v1533_v46 = vperm.slane %v10204_v36, 6 }
 0x319   : > { %15456 = vst [vmem:[#allocation130_spill] sm:$0xff] %v10820_v31 }
 0x31c   : > { %3690 = vperm.xlu0 %9758, %v15197_v41   ;;  %v15199_v41 = vperm.slane %v10055_v21, 2  ;;  %v10825_v20 = vpop.permute.xlu2 %1076 }
 0x31d   : > { %15458 = vst [vmem:[#allocation132_spill] sm:$0xff] %v10825_v20  ;;  %v15462_v20 = vperm.slane %v10204_v36, 5 }
 0x31f   : > { %1499 = vperm.xlu2 %9616, %v1494_v6   ;;  %v10834_v31 = vpop.permute.xlu1 %1083 }
 0x320   : > { %1505 = vperm.xlu1 %9617, %v1494_v6   ;;  %v15200_v6 = vperm.slane %v10055_v21, 7  ;;  %15460 = vst [vmem:[#allocation134_spill] sm:$0xff] %v10834_v31  ;;  %v15202_v31 = vperm.slane %v10081_v34, 1 }
 0x324   : > { %3755 = vperm.xlu0 %9758, %v15198_v7   ;;  %v10832_v7 = vpop.permute.xlu0 %4113 }
 0x325   : > { %15459 = vst [vmem:[#allocation133_spill] sm:$0xff] %v10832_v7 }
 0x327   : > { %1512 = vperm.xlu2 %9616, %v1507_v30   ;;  %v10846_v2 = vpop.permute.xlu1 %1096 }
 0x328   : > { %1518 = vperm.xlu1 %9617, %v1507_v30   ;;  %v10836_v30 = vpop.permute.xlu2 %1089  ;;  %15464 = vst [vmem:[#allocation137_spill] sm:$0xff] %v10846_v2 }
 0x329   : > { %15461 = vst [vmem:[#allocation135_spill] sm:$0xff] %v10836_v30 }
 0x32c   : > { %3820 = vperm.xlu0 %9758, %v15199_v41   ;;  %v15201_v41 = vperm.slane %v10083_v35, 4  ;;  %v10844_v29 = vpop.permute.xlu0 %4178 }
 0x32d   : > { %15463 = vst [vmem:[#allocation136_spill] sm:$0xff] %v10844_v29 }
 0x32f   : > { %9618 = vset.pattern.permute.xlu2 %v10069_v28  ;;  %v10855_v30 = vpop.permute.xlu1 %1115 }
 0x330   : > { %9619 = vset.pattern.permute.xlu1 %v10062_v25  ;;  %v10848_v7 = vpop.permute.xlu2 %1109  ;;  %15467 = vst [vmem:[#allocation139_spill] sm:$0xff] %v10855_v30  ;;  %v1572_v30 = vperm.slane %v10216_v40, 1 }
 0x331   : > { %15465 = vst [vmem:[#allocation138_spill] sm:$0xff] %v10848_v7 }
 0x334   : > { %3885 = vperm.xlu0 %9758, %v15200_v6   ;;  %v15466_v6 = vperm.slane %v10204_v36, 7  ;;  %v1559_v36 = vperm.slane %v10216_v40, 0 }
 0x337   : > { %1531 = vperm.xlu2 %9618, %v15462_v20   ;;  %v10859_v20 = vpop.permute.xlu0 %4243 }
 0x338   : > { %1538 = vperm.xlu1 %9619, %v1533_v46   ;;  %15468 = vst [vmem:[#allocation140_spill] sm:$0xff] %v10859_v20  ;;  %v10861_v29 = vpop.permute.xlu2 %1122  ;;  %v15206_v20 = vperm.slane %v10079_v33, 3 }
 0x339   : > { %15469 = vst [vmem:[#allocation141_spill] sm:$0xff] %v10861_v29 }
 0x33c   : > { %3950 = vperm.xlu0 %9758, %v15201_v41  }
 0x33f   : > { %1544 = vperm.xlu2 %9618, %v1533_v46   ;;  %v15205_v46 = vperm.slane %v10081_v34, 6 }
 0x340   : > { %1551 = vperm.xlu1 %9619, %v15466_v6   ;;  %v10869_v6 = vpop.permute.xlu1 %1128  ;;  %v10871_v41 = vpop.permute.xlu2 %1141 }
 0x341   : > { %15470 = vst [vmem:[#allocation142_spill] sm:$0xff] %v10869_v6 }
 0x342   : > { %15471 = vst [vmem:[#allocation143_spill] sm:$0xff] %v10871_v41  ;;  %v15207_v41 = vperm.slane %v10098_v44, 0 }
 0x344   : > { %4015 = vperm.xlu0 %9758, %v15202_v31   ;;  %v10873_v31 = vpop.permute.xlu0 %4308 }
 0x345   : > { %15472 = vst [vmem:[#allocation144_spill] sm:$0xff] %v10873_v31 }
 0x347   : > { %9620 = vset.pattern.permute.xlu2 %v10062_v25 }
 0x348   : > { %9621 = vset.pattern.permute.xlu1 %v10069_v28  ;;  %v10879_v29 = vpop.permute.xlu1 %1148 }
 0x349   : > { %15473 = vst [vmem:[#allocation145_spill] sm:$0xff] %v10879_v29 }
 0x34c   : > { %4080 = vperm.xlu0 %9758, %v15205_v46   ;;  %v10881_v46 = vpop.permute.xlu2 %1154  ;;  %v10884_v6 = vpop.permute.xlu0 %4373 }
 0x34d   : > { %15474 = vst [vmem:[#allocation146_spill] sm:$0xff] %v10881_v46  ;;  %v15479_v46 = vperm.slane %v10216_v40, 2 }
 0x34e   : > { %15475 = vst [vmem:[#allocation147_spill] sm:$0xff] %v10884_v6 }
 0x34f   : > { %1564 = vperm.xlu2 %9620, %v1559_v36  }
 0x350   : > { %1570 = vperm.xlu1 %9621, %v1559_v36   ;;  %v10889_v36 = vpop.permute.xlu1 %1161 }
 0x351   : > { %15476 = vst [vmem:[#allocation148_spill] sm:$0xff] %v10889_v36  ;;  %v15211_v36 = vperm.slane %v10096_v43, 2 }
 0x354   : > { %4145 = vperm.xlu0 %9758, %v15206_v20   ;;  %v10891_v31 = vpop.permute.xlu2 %1174  ;;  %v15208_v20 = vperm.slane %v10098_v44, 5  ;;  %v10895_v29 = vpop.permute.xlu0 %4438 }
 0x355   : > { %15477 = vst [vmem:[#allocation149_spill] sm:$0xff] %v10891_v31 }
 0x356   : > { %15478 = vst [vmem:[#allocation150_spill] sm:$0xff] %v10895_v29  ;;  %v15212_v29 = vperm.slane %v10096_v43, 7 }
 0x357   : > { %1577 = vperm.xlu2 %9620, %v1572_v30  }
 0x358   : > { %1583 = vperm.xlu1 %9621, %v1572_v30   ;;  %v9834_v30 = vld [vmem:[%s10115_s13 + $0x50] sm:$0xff] }
 0x359   : > { %v1598_v6 = vperm.slane %v9834_v30, 3 }
 0x35c   : > { %4210 = vperm.xlu0 %9758, %v15207_v41   ;;  %v10902_v41 = vpop.permute.xlu1 %1180  ;;  %v10905_v31 = vpop.permute.xlu2 %1187 }
 0x35d   : > { %15480 = vst [vmem:[#allocation151_spill] sm:$0xff] %v10902_v41  ;;  %v10909_v2 = vpop.permute.xlu0 %4503 }
 0x35e   : > { %15481 = vst [vmem:[#allocation152_spill] sm:$0xff] %v10905_v31 }
 0x35f   : > { %9622 = vset.pattern.permute.xlu2 %v10069_v28  ;;  %15482 = vst [vmem:[#allocation153_spill] sm:$0xff] %v10909_v2 }
 0x360   : > { %9623 = vset.pattern.permute.xlu1 %v10062_v25 }
 0x364   : > { %4275 = vperm.xlu0 %9758, %v15208_v20   ;;  %v15483_v20 = vperm.slane %v10216_v40, 4  ;;  %v10914_v7 = vpop.permute.xlu1 %1193 }
 0x365   : > { %15484 = vst [vmem:[#allocation154_spill] sm:$0xff] %v10914_v7  ;;  %v10921_v41 = vpop.permute.xlu0 %4568 }
 0x366   : > { %15486 = vst [vmem:[#allocation156_spill] sm:$0xff] %v10921_v41  ;;  %v1637_v41 = vperm.slane %v9834_v30, 6 }
 0x367   : > { %1596 = vperm.xlu2 %9622, %v15479_v46   ;;  %v10916_v46 = vpop.permute.xlu2 %1206 }
 0x368   : > { %1603 = vperm.xlu1 %9623, %v1598_v6   ;;  %15485 = vst [vmem:[#allocation155_spill] sm:$0xff] %v10916_v46 }
 0x36c   : > { %4340 = vperm.xlu0 %9758, %v15211_v36   ;;  %v10925_v36 = vpop.permute.xlu1 %1213 }
 0x36d   : > { %15487 = vst [vmem:[#allocation157_spill] sm:$0xff] %v10925_v36  ;;  %v10932_v46 = vpop.permute.xlu0 %582  ;;  %v15215_v36 = vperm.slane %v10107_v49, 6 }
 0x36f   : > { %1609 = vperm.xlu2 %9622, %v1598_v6   ;;  %v15213_v6 = vperm.slane %v10094_v42, 4  ;;  %v10927_v2 = vpop.permute.xlu2 %1219 }
 0x370   : > { %1616 = vperm.xlu1 %9623, %v15483_v20   ;;  %v1624_v20 = vperm.slane %v9834_v30, 5  ;;  %15488 = vst [vmem:[#allocation158_spill] sm:$0xff] %v10927_v2 }
 0x374   : > { %4405 = vperm.xlu0 %9758, %v15212_v29   ;;  %v15214_v29 = vperm.slane %v10107_v49, 1  ;;  %v10934_v7 = vpop.permute.xlu1 %1226 }
 0x375   : > { %15489 = vst [vmem:[#allocation159_spill] sm:$0xff] %v10934_v7  ;;  %v15496_v7 = vperm.slane %v10216_v40, 7 }
 0x377   : > { %9624 = vset.pattern.permute.xlu2 %v10062_v25  ;;  %v10936_v31 = vpop.permute.xlu2 %1239 }
 0x378   : > { %9625 = vset.pattern.permute.xlu1 %v10069_v28  ;;  %15490 = vst [vmem:[#allocation160_spill] sm:$0xff] %v10936_v31  ;;  %v9835_v31 = vld [vmem:[%s10115_s13 + $0x58] sm:$0xff] }
 0x379   : > { %v1702_v60 = vperm.slane %v9835_v31, 3 }
 0x37c   : > { %4470 = vperm.xlu0 %9758, %v15213_v6   ;;  %v10941_v6 = vpop.permute.xlu0 %647 }
 0x37d   : > { %15491 = vst [vmem:[#allocation161_spill] sm:$0xff] %v10941_v6 }
 0x37f   : > { %1629 = vperm.xlu2 %9624, %v1624_v20   ;;  %v10947_v30 = vpop.permute.xlu2 %1252 }
 0x380   : > { %1635 = vperm.xlu1 %9625, %v1624_v20   ;;  %v10943_v20 = vpop.permute.xlu1 %1245  ;;  %15493 = vst [vmem:[#allocation163_spill] sm:$0xff] %v10947_v30  ;;  %v15499_v30 = vperm.slane %v10229_v48, 1 }
 0x381   : > { %15492 = vst [vmem:[#allocation162_spill] sm:$0xff] %v10943_v20 }
 0x384   : > { %4535 = vperm.xlu0 %9758, %v15214_v29   ;;  %v1663_v29 = vperm.slane %v9835_v31, 0  ;;  %v10983_v9 = vpop.permute.xlu0 %712 }
 0x385   : > { %15504 = vst [vmem:[#allocation172_spill] sm:$0xff] %v10983_v9 }
 0x387   : > { %1642 = vperm.xlu2 %9624, %v1637_v41  }
 0x388   : > { %1648 = vperm.xlu1 %9625, %v1637_v41   ;;  %v10952_v2 = vpop.permute.xlu1 %1258  ;;  %v10954_v41 = vpop.permute.xlu2 %1271 }
 0x389   : > { %15494 = vst [vmem:[#allocation164_spill] sm:$0xff] %v10952_v2 }
 0x38a   : > { %15495 = vst [vmem:[#allocation165_spill] sm:$0xff] %v10954_v41 }
 0x38c   : > { %4600 = vperm.xlu0 %9758, %v15215_v36  }
 0x38f   : > { %9626 = vset.pattern.permute.xlu2 %v10069_v28 }
 0x390   : > { %9627 = vset.pattern.permute.xlu1 %v10062_v25  ;;  %v10958_v20 = vpop.permute.xlu1 %1278  ;;  %v10960_v36 = vpop.permute.xlu2 %1284 }
 0x391   : > { %15497 = vst [vmem:[#allocation166_spill] sm:$0xff] %v10958_v20 }
 0x392   : > { %15498 = vst [vmem:[#allocation167_spill] sm:$0xff] %v10960_v36 }
 0x397   : > { %1661 = vperm.xlu2 %9626, %v15496_v7   ;;  %v1689_v7 = vperm.slane %v9835_v31, 2 }
 0x398   : > { %1668 = vperm.xlu1 %9627, %v1663_v29   ;;  %v10971_v2 = vpop.permute.xlu1 %1291  ;;  %v10973_v40 = vpop.permute.xlu2 %1304 }
 0x399   : > { %15500 = vst [vmem:[#allocation168_spill] sm:$0xff] %v10971_v2 }
 0x39a   : > { %15501 = vst [vmem:[#allocation169_spill] sm:$0xff] %v10973_v40 }
 0x39f   : > { %1674 = vperm.xlu2 %9626, %v1663_v29   ;;  %v7528_v29 = vld [vmem:[%s10968_s21 + $0x10] sm:$0xff] }
 0x3a0   : > { %1681 = vperm.xlu1 %9627, %v15499_v30   ;;  %v7544_v20 = vcvt.s32.f32 %v7528_v29  ;;  %v10978_v36 = vpop.permute.xlu1 %1310  ;;  %v10980_v41 = vpop.permute.xlu2 %1317 }
 0x3a1   : > { %15502 = vst [vmem:[#allocation170_spill] sm:$0xff] %v10978_v36 }
 0x3a2   : > { %v7560_v30 = vmul.f32 %v7544_v20, %v10027_v4  ;;  %15503 = vst [vmem:[#allocation171_spill] sm:$0xff] %v10980_v41 }
 0x3a4   : > { %v7580_v17 = vsel %vm15296_vm0, %v7560_v30, 0.0  ;;  %v15509_v30 = vperm.slane %v10229_v48, 4 }
 0x3a7   : > { %9628 = vset.pattern.permute.xlu2 %v10062_v25 }
 0x3a8   : > { %9629 = vset.pattern.permute.xlu1 %v10069_v28  ;;  %v10985_v2 = vpop.permute.xlu1 %1323  ;;  %v10987_v40 = vpop.permute.xlu2 %1336 }
 0x3a9   : > { %15505 = vst [vmem:[#allocation173_spill] sm:$0xff] %v10985_v2 }
 0x3aa   : > { %15506 = vst [vmem:[#allocation174_spill] sm:$0xff] %v10987_v40  ;;  %v15512_v40 = vperm.slane %v10229_v48, 6 }
 0x3af   : > { %1694 = vperm.xlu2 %9628, %v1689_v7  }
 0x3b0   : > { %1700 = vperm.xlu1 %9629, %v1689_v7   ;;  %v10991_v20 = vpop.permute.xlu1 %1343  ;;  %v10993_v29 = vpop.permute.xlu2 %1349  ;;  %v1728_v7 = vperm.slane %v9835_v31, 5 }
 0x3b1   : > { %15507 = vst [vmem:[#allocation175_spill] sm:$0xff] %v10991_v20  ;;  %v1754_v20 = vperm.slane %v9835_v31, 7 }
 0x3b2   : > { %15508 = vst [vmem:[#allocation176_spill] sm:$0xff] %v10993_v29 }
 0x3b6   : > { %7581 = vadd.xlane.f32.xlu0 %v7580_v17 }
 0x3b7   : > { %1707 = vperm.xlu2 %9628, %v1702_v60  }
 0x3b8   : > { %1713 = vperm.xlu1 %9629, %v1702_v60   ;;  %v10997_v17 = vpop.permute.xlu1 %1356  ;;  %v10999_v60 = vpop.permute.xlu2 %1369 }
 0x3b9   : > { %15510 = vst [vmem:[#allocation177_spill] sm:$0xff] %v10997_v17  ;;  %v9836_v17 = vld [vmem:[%s10115_s13 + $0x60] sm:$0xff] }
 0x3ba   : > { %15511 = vst [vmem:[#allocation178_spill] sm:$0xff] %v10999_v60  ;;  %v1793_v31 = vperm.slane %v9836_v17, 2 }
 0x3bf   : > { %9630 = vset.pattern.permute.xlu2 %v10069_v28 }
 0x3c0   : > { %9631 = vset.pattern.permute.xlu1 %v10062_v25  ;;  %v11003_v2 = vpop.permute.xlu1 %1375  ;;  %v11005_v36 = vpop.permute.xlu2 %1382 }
 0x3c1   : > { %15513 = vst [vmem:[#allocation179_spill] sm:$0xff] %v11003_v2 }
 0x3c2   : > { %15514 = vst [vmem:[#allocation180_spill] sm:$0xff] %v11005_v36 }
 0x3c7   : > { %1726 = vperm.xlu2 %9630, %v15509_v30  }
 0x3c8   : > { %1733 = vperm.xlu1 %9631, %v1728_v7   ;;  %v11009_v29 = vpop.permute.xlu1 %1388  ;;  %v11011_v30 = vpop.permute.xlu2 %1401 }
 0x3c9   : > { %15515 = vst [vmem:[#allocation181_spill] sm:$0xff] %v11009_v29 }
 0x3ca   : > { %15516 = vst [vmem:[#allocation182_spill] sm:$0xff] %v11011_v30  ;;  %v15521_v30 = vperm.slane %v10235_v52, 1 }
 0x3cf   : > { %1739 = vperm.xlu2 %9630, %v1728_v7   ;;  %v1767_v7 = vperm.slane %v9836_v17, 0 }
 0x3d0   : > { %1746 = vperm.xlu1 %9631, %v15512_v40   ;;  %v11014_v60 = vpop.permute.xlu1 %1408  ;;  %v11016_v48 = vpop.permute.xlu2 %1414 }
 0x3d1   : > { %15517 = vst [vmem:[#allocation183_spill] sm:$0xff] %v11014_v60 }
 0x3d2   : > { %15518 = vst [vmem:[#allocation184_spill] sm:$0xff] %v11016_v48 }
 0x3d7   : > { %9632 = vset.pattern.permute.xlu2 %v10062_v25 }
 0x3d8   : > { %9633 = vset.pattern.permute.xlu1 %v10069_v28  ;;  %v11019_v40 = vpop.permute.xlu1 %1421  ;;  %v11021_v2 = vpop.permute.xlu2 %1434 }
 0x3d9   : > { %15519 = vst [vmem:[#allocation185_spill] sm:$0xff] %v11019_v40 }
 0x3da   : > { %15520 = vst [vmem:[#allocation186_spill] sm:$0xff] %v11021_v2 }
 0x3df   : > { %1759 = vperm.xlu2 %9632, %v1754_v20  }
 0x3e0   : > { %1765 = vperm.xlu1 %9633, %v1754_v20   ;;  %v11026_v20 = vpop.permute.xlu1 %1440  ;;  %v11028_v60 = vpop.permute.xlu2 %1447 }
 0x3e1   : > { %15522 = vst [vmem:[#allocation187_spill] sm:$0xff] %v11026_v20 }
 0x3e2   : > { %15523 = vst [vmem:[#allocation188_spill] sm:$0xff] %v11028_v60  ;;  %v1832_v60 = vperm.slane %v9836_v17, 5 }
 0x3e7   : > { %1772 = vperm.xlu2 %9632, %v1767_v7  }
 0x3e8   : > { %1778 = vperm.xlu1 %9633, %v1767_v7   ;;  %v15524_v7 = vperm.slane %v10235_v52, 3  ;;  %v11032_v48 = vpop.permute.xlu1 %1453  ;;  %v11034_v40 = vpop.permute.xlu2 %1466 }
 0x3e9   : > { %15525 = vst [vmem:[#allocation189_spill] sm:$0xff] %v11032_v48 }
 0x3ea   : > { %15526 = vst [vmem:[#allocation190_spill] sm:$0xff] %v11034_v40 }
 0x3ef   : > { %9634 = vset.pattern.permute.xlu2 %v10069_v28 }
 0x3f0   : > { %9635 = vset.pattern.permute.xlu1 %v10062_v25  ;;  %v11038_v2 = vpop.permute.xlu1 %1473  ;;  %v11040_v29 = vpop.permute.xlu2 %1479 }
 0x3f1   : > { %15527 = vst [vmem:[#allocation191_spill] sm:$0xff] %v11038_v2  ;;  %v1858_v2 = vperm.slane %v9836_v17, 7 }
 0x3f2   : > { %15528 = vst [vmem:[#allocation192_spill] sm:$0xff] %v11040_v29 }
 0x3f7   : > { %1791 = vperm.xlu2 %9634, %v15521_v30   ;;  %v1819_v30 = vperm.slane %v9836_v17, 4 }
 0x3f8   : > { %1798 = vperm.xlu1 %9635, %v1793_v31   ;;  %v11044_v20 = vpop.permute.xlu2 %1499 }
 0x3f9   : > { %15530 = vst [vmem:[#allocation194_spill] sm:$0xff] %v11044_v20 }
 0x3ff   : > { %1804 = vperm.xlu2 %9634, %v1793_v31   ;;  %v11042_v31 = vpop.permute.xlu1 %1486 }
 0x400   : > { %1811 = vperm.xlu1 %9635, %v15524_v7   ;;  %15529 = vst [vmem:[#allocation193_spill] sm:$0xff] %v11042_v31  ;;  %v11048_v40 = vpop.permute.xlu2 %1512  ;;  %v15535_v31 = vperm.slane %v10235_v52, 6 }
 0x401   : > { %15532 = vst [vmem:[#allocation196_spill] sm:$0xff] %v11048_v40 }
 0x407   : > { %9636 = vset.pattern.permute.xlu2 %v10062_v25  ;;  %v11046_v7 = vpop.permute.xlu1 %1505 }
 0x408   : > { %9637 = vset.pattern.permute.xlu1 %v10069_v28  ;;  %15531 = vst [vmem:[#allocation195_spill] sm:$0xff] %v11046_v7  ;;  %v15538_v7 = vperm.slane %v10250_v58, 0 }
 0x40f   : > { %1824 = vperm.xlu2 %9636, %v1819_v30   ;;  %v11052_v29 = vpop.permute.xlu1 %1518 }
 0x410   : > { %1830 = vperm.xlu1 %9637, %v1819_v30   ;;  %15533 = vst [vmem:[#allocation197_spill] sm:$0xff] %v11052_v29  ;;  %v11054_v30 = vpop.permute.xlu2 %1531 }
 0x411   : > { %15534 = vst [vmem:[#allocation198_spill] sm:$0xff] %v11054_v30  ;;  %v9837_v30 = vld [vmem:[%s10115_s13 + $0x68] sm:$0xff] }
 0x412   : > { %v1884_v52 = vperm.slane %v9837_v30, 1  ;;  %v1923_v29 = vperm.slane %v9837_v30, 4 }
 0x417   : > { %1837 = vperm.xlu2 %9636, %v1832_v60   ;;  %v11058_v20 = vpop.permute.xlu1 %1538 }
 0x418   : > { %1843 = vperm.xlu1 %9637, %v1832_v60   ;;  %15536 = vst [vmem:[#allocation199_spill] sm:$0xff] %v11058_v20  ;;  %v11060_v60 = vpop.permute.xlu2 %1544  ;;  %v1897_v20 = vperm.slane %v9837_v30, 2 }
 0x419   : > { %15537 = vst [vmem:[#allocation200_spill] sm:$0xff] %v11060_v60 }
 0x41f   : > { %9638 = vset.pattern.permute.xlu2 %v10069_v28  ;;  %v11065_v40 = vpop.permute.xlu1 %1551 }
 0x420   : > { %9639 = vset.pattern.permute.xlu1 %v10062_v25  ;;  %15539 = vst [vmem:[#allocation201_spill] sm:$0xff] %v11065_v40  ;;  %v11067_v17 = vpop.permute.xlu2 %1564 }
 0x421   : > { %15540 = vst [vmem:[#allocation202_spill] sm:$0xff] %v11067_v17 }
 0x427   : > { %1856 = vperm.xlu2 %9638, %v15535_v31   ;;  %v11071_v31 = vpop.permute.xlu1 %1570 }
 0x428   : > { %1863 = vperm.xlu1 %9639, %v1858_v2   ;;  %15541 = vst [vmem:[#allocation203_spill] sm:$0xff] %v11071_v31 }
 0x42f   : > { %1869 = vperm.xlu2 %9638, %v1858_v2   ;;  %v11073_v2 = vpop.permute.xlu2 %1577 }
 0x430   : > { %1876 = vperm.xlu1 %9639, %v15538_v7   ;;  %15542 = vst [vmem:[#allocation204_spill] sm:$0xff] %v11073_v2  ;;  %v11075_v7 = vpop.permute.xlu1 %1583 }
 0x431   : > { %15543 = vst [vmem:[#allocation205_spill] sm:$0xff] %v11075_v7 }
 0x437   : > { %9640 = vset.pattern.permute.xlu2 %v10062_v25  ;;  %v11077_v60 = vpop.permute.xlu2 %1596 }
 0x438   : > { %9641 = vset.pattern.permute.xlu1 %v10069_v28  ;;  %15544 = vst [vmem:[#allocation206_spill] sm:$0xff] %v11077_v60  ;;  %v11081_v17 = vpop.permute.xlu1 %1603  ;;  %v15550_v60 = vperm.slane %v10250_v58, 5 }
 0x439   : > { %15545 = vst [vmem:[#allocation207_spill] sm:$0xff] %v11081_v17  ;;  %v1949_v17 = vperm.slane %v9837_v30, 6 }
 0x43f   : > { %1889 = vperm.xlu2 %9640, %v1884_v52   ;;  %v11083_v40 = vpop.permute.xlu2 %1609 }
 0x440   : > { %1895 = vperm.xlu1 %9641, %v1884_v52   ;;  %15546 = vst [vmem:[#allocation208_spill] sm:$0xff] %v11083_v40  ;;  %v15547_v52 = vperm.slane %v10250_v58, 3  ;;  %v11087_v31 = vpop.permute.xlu1 %1616 }
 0x441   : > { %15548 = vst [vmem:[#allocation209_spill] sm:$0xff] %v11087_v31 }
 0x447   : > { %1902 = vperm.xlu2 %9640, %v1897_v20  }
 0x448   : > { %1908 = vperm.xlu1 %9641, %v1897_v20   ;;  %v11089_v20 = vpop.permute.xlu2 %1629  ;;  %v11093_v2 = vpop.permute.xlu1 %1635 }
 0x449   : > { %15549 = vst [vmem:[#allocation210_spill] sm:$0xff] %v11089_v20 }
 0x44a   : > { %15551 = vst [vmem:[#allocation211_spill] sm:$0xff] %v11093_v2 }
 0x44f   : > { %9642 = vset.pattern.permute.xlu2 %v10069_v28 }
 0x450   : > { %9643 = vset.pattern.permute.xlu1 %v10062_v25  ;;  %v11095_v7 = vpop.permute.xlu2 %1642 }
 0x451   : > { %15552 = vst [vmem:[#allocation212_spill] sm:$0xff] %v11095_v7 }
 0x457   : > { %1921 = vperm.xlu2 %9642, %v15547_v52   ;;  %v11099_v52 = vpop.permute.xlu1 %1648 }
 0x458   : > { %1928 = vperm.xlu1 %9643, %v1923_v29   ;;  %15553 = vst [vmem:[#allocation213_spill] sm:$0xff] %v11099_v52  ;;  %v11101_v40 = vpop.permute.xlu2 %1661  ;;  %v9838_v52 = vld [vmem:[%s10115_s13 + $0x70] sm:$0xff] }
 0x459   : > { %15554 = vst [vmem:[#allocation214_spill] sm:$0xff] %v11101_v40  ;;  %v1988_v7 = vperm.slane %v9838_v52, 1  ;;  %v15559_v40 = vperm.slane %v10258_v61, 0 }
 0x45f   : > { %1934 = vperm.xlu2 %9642, %v1923_v29   ;;  %v1962_v29 = vperm.slane %v9837_v30, 7  ;;  %v11103_v31 = vpop.permute.xlu1 %1668 }
 0x460   : > { %1941 = vperm.xlu1 %9643, %v15550_v60   ;;  %15555 = vst [vmem:[#allocation215_spill] sm:$0xff] %v11103_v31  ;;  %v11105_v58 = vpop.permute.xlu2 %1674 }
 0x461   : > { %15556 = vst [vmem:[#allocation216_spill] sm:$0xff] %v11105_v58 }
 0x467   : > { %9644 = vset.pattern.permute.xlu2 %v10062_v25  ;;  %v11108_v60 = vpop.permute.xlu1 %1681 }
 0x468   : > { %9645 = vset.pattern.permute.xlu1 %v10069_v28  ;;  %15557 = vst [vmem:[#allocation217_spill] sm:$0xff] %v11108_v60  ;;  %v11110_v2 = vpop.permute.xlu2 %1694 }
 0x469   : > { %15558 = vst [vmem:[#allocation218_spill] sm:$0xff] %v11110_v2 }
 0x46f   : > { %1954 = vperm.xlu2 %9644, %v1949_v17   ;;  %v11116_v30 = vpop.permute.xlu1 %1700 }
 0x470   : > { %1960 = vperm.xlu1 %9645, %v1949_v17   ;;  %15560 = vst [vmem:[#allocation219_spill] sm:$0xff] %v11116_v30  ;;  %v11118_v17 = vpop.permute.xlu2 %1707  ;;  %v2027_v30 = vperm.slane %v9838_v52, 4 }
 0x471   : > { %15561 = vst [vmem:[#allocation220_spill] sm:$0xff] %v11118_v17 }
 0x477   : > { %1967 = vperm.xlu2 %9644, %v1962_v29   ;;  %v11122_v31 = vpop.permute.xlu1 %1713 }
 0x478   : > { %1973 = vperm.xlu1 %9645, %v1962_v29   ;;  %v15562_v29 = vperm.slane %v10258_v61, 2  ;;  %15563 = vst [vmem:[#allocation221_spill] sm:$0xff] %v11122_v31  ;;  %v11124_v60 = vpop.permute.xlu2 %1726 }
 0x479   : > { %15564 = vst [vmem:[#allocation222_spill] sm:$0xff] %v11124_v60 }
 0x47f   : > { %9646 = vset.pattern.permute.xlu2 %v10069_v28  ;;  %v11128_v2 = vpop.permute.xlu1 %1733 }
 0x480   : > { %9647 = vset.pattern.permute.xlu1 %v10062_v25  ;;  %15565 = vst [vmem:[#allocation223_spill] sm:$0xff] %v11128_v2  ;;  %v11130_v58 = vpop.permute.xlu2 %1739  ;;  %v2053_v2 = vperm.slane %v9838_v52, 6 }
 0x481   : > { %15566 = vst [vmem:[#allocation224_spill] sm:$0xff] %v11130_v58 }
 0x487   : > { %1986 = vperm.xlu2 %9646, %v15559_v40   ;;  %v2014_v40 = vperm.slane %v9838_v52, 3 }
 0x488   : > { %1993 = vperm.xlu1 %9647, %v1988_v7   ;;  %v11134_v17 = vpop.permute.xlu2 %1759 }
 0x489   : > { %15568 = vst [vmem:[#allocation226_spill] sm:$0xff] %v11134_v17 }
 0x48f   : > { %1999 = vperm.xlu2 %9646, %v1988_v7   ;;  %v11132_v7 = vpop.permute.xlu1 %1746 }
 0x490   : > { %2006 = vperm.xlu1 %9647, %v15562_v29   ;;  %15567 = vst [vmem:[#allocation225_spill] sm:$0xff] %v11132_v7  ;;  %v11138_v60 = vpop.permute.xlu2 %1772  ;;  %v15573_v7 = vperm.slane %v10258_v61, 5 }
 0x491   : > { %15570 = vst [vmem:[#allocation228_spill] sm:$0xff] %v11138_v60  ;;  %v15576_v60 = vperm.slane %v10258_v61, 7 }
 0x497   : > { %9648 = vset.pattern.permute.xlu2 %v10062_v25  ;;  %v11136_v29 = vpop.permute.xlu1 %1765 }
 0x498   : > { %9649 = vset.pattern.permute.xlu1 %v10069_v28  ;;  %15569 = vst [vmem:[#allocation227_spill] sm:$0xff] %v11136_v29 }
 0x49f   : > { %2019 = vperm.xlu2 %9648, %v2014_v40   ;;  %v11142_v58 = vpop.permute.xlu1 %1778 }
 0x4a0   : > { %2025 = vperm.xlu1 %9649, %v2014_v40   ;;  %15571 = vst [vmem:[#allocation229_spill] sm:$0xff] %v11142_v58  ;;  %v11144_v40 = vpop.permute.xlu2 %1791  ;;  %v11161_v58 = vld [vmem:[%s10115_s13 + $0x78] sm:$0xff] }
 0x4a1   : > { %15572 = vst [vmem:[#allocation230_spill] sm:$0xff] %v11144_v40  ;;  %v2092_v61 = vperm.slane %v11161_v58, 1  ;;  %v2118_v55 = vperm.slane %v11161_v58, 3 }
 0x4a7   : > { %2032 = vperm.xlu2 %9648, %v2027_v30   ;;  %v11148_v17 = vpop.permute.xlu1 %1798 }
 0x4a8   : > { %2038 = vperm.xlu1 %9649, %v2027_v30   ;;  %15574 = vst [vmem:[#allocation231_spill] sm:$0xff] %v11148_v17  ;;  %v11150_v30 = vpop.permute.xlu2 %1804 }
 0x4a9   : > { %15575 = vst [vmem:[#allocation232_spill] sm:$0xff] %v11150_v30  ;;  %v5784_v30 = vld [vmem:[%s15092_s5 + $0x8] sm:$0xff] }
 0x4aa   : > { %v5847_v40 = vand.u32 4294901760, %v5784_v30 }
 0x4ac   : > { %5848 = vmatpush.msra.mxu0 %v5847_v40  ;;  %9513 = vmatpush.msra.mxu2 %v5847_v40 }
 0x4af   : > { %9650 = vset.pattern.permute.xlu2 %v10069_v28  ;;  %v11155_v29 = vpop.permute.xlu1 %1811 }
 0x4b0   : > { %9651 = vset.pattern.permute.xlu1 %v10062_v25  ;;  %15577 = vst [vmem:[#allocation233_spill] sm:$0xff] %v11155_v29  ;;  %v11157_v52 = vpop.permute.xlu2 %1824 }
 0x4b1   : > { %15578 = vst [vmem:[#allocation234_spill] sm:$0xff] %v11157_v52 }
 0x4b7   : > { %2051 = vperm.xlu2 %9650, %v15573_v7   ;;  %v2079_v7 = vperm.slane %v11161_v58, 0  ;;  %v11164_v17 = vpop.permute.xlu1 %1830 }
 0x4b8   : > { %2058 = vperm.xlu1 %9651, %v2053_v2   ;;  %15579 = vst [vmem:[#allocation235_spill] sm:$0xff] %v11164_v17  ;;  %v5783_v17 = vld [vmem:[%s15092_s5] sm:$0xff] }
 0x4bf   : > { %2064 = vperm.xlu2 %9650, %v2053_v2   ;;  %v11166_v2 = vpop.permute.xlu2 %1837  ;;  %v11171_v29 = vpop.permute.xlu1 %1843 }
 0x4c0   : > { %2071 = vperm.xlu1 %9651, %v15576_v60   ;;  %15580 = vst [vmem:[#allocation236_spill] sm:$0xff] %v11166_v2  ;;  %v11169_v60 = vpop.permute.xlu0 %777 }
 0x4c1   : > { %15581 = vst [vmem:[#allocation237_spill] sm:$0xff] %v11169_v60 }
 0x4c2   : > { %15582 = vst [vmem:[#allocation238_spill] sm:$0xff] %v11171_v29 }
 0x4c7   : > { %9652 = vset.pattern.permute.xlu2 %v10062_v25  ;;  %v11173_v52 = vpop.permute.xlu2 %1856  ;;  %v11192_v20 = vpop.permute.xlu1 %1863 }
 0x4c8   : > { %9653 = vset.pattern.permute.xlu1 %v10069_v28  ;;  %15583 = vst [vmem:[#allocation239_spill] sm:$0xff] %v11173_v52  ;;  %v5995_v52 = vsub.f32 %v5784_v30, %v5847_v40  ;;  %v11187_v29 = vpop.permute.xlu0 %842 }
 0x4c9   : > { %15584 = vst [vmem:[#allocation240_spill] sm:$0xff] %v11187_v29 }
 0x4ca   : > { %15585 = vst [vmem:[#allocation241_spill] sm:$0xff] %v11192_v20  ;;  %v5996_v48 = vand.u32 4294901760, %v5995_v52 }
 0x4cc   : > { %v5997_v9 = vsub.f32 %v5995_v52, %v5996_v48 }
 0x4ce   : > { %v5998_v29 = vand.u32 4294901760, %v5997_v9 }
 0x4cf   : > { %2084 = vperm.xlu2 %9652, %v2079_v7   ;;  %v11195_v60 = vpop.permute.xlu2 %1869 }
 0x4d0   : > { %2090 = vperm.xlu1 %9653, %v2079_v7   ;;  %v5786_v7 = vsel %vm15296_vm0, %v10029_v5, 0  ;;  %15586 = vst [vmem:[#allocation242_spill] sm:$0xff] %v11195_v60  ;;  %5999 = vmatpush.msra.mxu1 %v5998_v29  ;;  %v11210_v9 = vpop.permute.xlu0 %907 }
 0x4d1   : > { %v11184_v2 = vand.u32 4294901760, %v5786_v7  ;;  %9515 = vmatpush.msra.mxu3 %v5998_v29  ;;  %15588 = vst [vmem:[#allocation243_spill] sm:$0xff] %v11210_v9  ;;  %v5792_v29 = vsel %vm15296_vm0, %v10027_v4, 0 }
 0x4d3   : > { %v11190_v31 = vsub.f32 %v5786_v7, %v11184_v2 }
 0x4d5   : > { %v15227_v41 = vand.u32 4294901760, %v11190_v31 }
 0x4d7   : > { %2097 = vperm.xlu2 %9652, %v2092_v61   ;;  %v5854_v7 = vsub.f32 %v11190_v31, %v15227_v41 }
 0x4d8   : > { %2103 = vperm.xlu1 %9653, %v2092_v61   ;;  %v5849_v61 = vand.u32 4294901760, %v5783_v17  ;;  %v11234_v41 = vpop.permute.xlu0 %972 }
 0x4d9   : > { %v5855_v60 = vand.u32 4294901760, %v5854_v7  ;;  %v11223_v7 = vand.u32 4294901760, %v5792_v29  ;;  %15593 = vst [vmem:[#allocation247_spill] sm:$0xff] %v11234_v41 }
 0x4da   : > { %5850 = vmatpush.msra.mxu0 %v5849_v61  ;;  %v6001_v36 = vsub.f32 %v5783_v17, %v5849_v61  ;;  %9514 = vmatpush.msra.mxu2 %v5849_v61  ;;  %v5789_v17 = vsel %vm15296_vm0, %v10044_v14, 0 }
 0x4db   : > { %v11205_v45 = vand.u32 4294901760, %v5789_v17  ;;  %5856 = vmatmul.f32.vlgmr.msra.gmra.mxu0 %v5855_v60 }
 0x4dc   : > { %v6002_v30 = vand.u32 4294901760, %v6001_v36  ;;  %6304 = vmatpush.msrb.mxu0 %v5996_v48  ;;  %6087 = vmatpush.msrb.mxu2 %v5995_v52 }
 0x4dd   : > { %v11208_v52 = vsub.f32 %v5789_v17, %v11205_v45  ;;  %v15591_v17 = vperm.slane %v10271_v32, 4 }
 0x4de   : > { %v6003_v20 = vsub.f32 %v6001_v36, %v6002_v30  ;;  %6308 = vmatpush.msrb.mxu0 %v6002_v30  ;;  %6090 = vmatpush.msrb.mxu2 %v6001_v36  ;;  %v11216_v30 = vpop.permute.xlu2 %1889 }
 0x4df   : > { %9654 = vset.pattern.permute.xlu2 %v10069_v28  ;;  %v15226_v36 = vand.u32 4294901760, %v11208_v52  ;;  %15590 = vst [vmem:[#allocation245_spill] sm:$0xff] %v11216_v30 }
 0x4e0   : > { %9655 = vset.pattern.permute.xlu1 %v10062_v25  ;;  %v6004_v48 = vand.u32 4294901760, %v6003_v20  ;;  %v11262_v30 = vpop.permute.xlu0 %1037 }
 0x4e1   : > { %v5862_v20 = vsub.f32 %v11208_v52, %v15226_v36  ;;  %15597 = vst [vmem:[#allocation251_spill] sm:$0xff] %v11262_v30 }
 0x4e2   : > { %6005 = vmatpush.msra.mxu1 %v6004_v48  ;;  %9516 = vmatpush.msra.mxu3 %v6004_v48  ;;  %v11228_v48 = vsub.f32 %v5792_v29, %v11223_v7 }
 0x4e3   : > { %6007 = vmatmul.f32.vlgmr.msra.gmra.mxu1 %v11184_v2  ;;  %v5863_v60 = vand.u32 4294901760, %v5862_v20  ;;  %v5795_v20 = vsel %vm15296_vm0, %v10042_v13, 0 }
 0x4e4   : > { %6187 = vmatpush.msrb.mxu3 %v5847_v40  ;;  %6389 = vmatpush.msrb.mxu1 %v5847_v40  ;;  %v15228_v40 = vand.u32 4294901760, %v11228_v48 }
 0x4e5   : > { %5864 = vmatmul.f32.gmra.mxu0 %v5863_v60  ;;  %v11244_v60 = vand.u32 4294901760, %v5795_v20 }
 0x4e6   : > { %6189 = vmatpush.msrb.mxu3 %v5849_v61  ;;  %6391 = vmatpush.msrb.mxu1 %v5849_v61  ;;  %v11239_v61 = vpop.permute.xlu2 %1902 }
 0x4e7   : > { %2116 = vperm.xlu2 %9654, %v15587_v53   ;;  %v11214_v53 = vpop.permute.xlu1 %1876  ;;  %15594 = vst [vmem:[#allocation248_spill] sm:$0xff] %v11239_v61 }
 0x4e8   : > { %2123 = vperm.xlu1 %9655, %v2118_v55   ;;  %15589 = vst [vmem:[#allocation244_spill] sm:$0xff] %v11214_v53 }
 0x4eb   : > { %6011 = vmatmul.f32.gmra.mxu1 %v11205_v45 }
 0x4ef   : > { %2129 = vperm.xlu2 %9654, %v2118_v55   ;;  %v11232_v36 = vpop.permute.xlu1 %1895  ;;  %v5870_v55 = vsub.f32 %v11228_v48, %v15228_v40 }
 0x4f0   : > { %2136 = vperm.xlu1 %9655, %v15591_v17   ;;  %15592 = vst [vmem:[#allocation246_spill] sm:$0xff] %v11232_v36  ;;  %v11248_v17 = vsub.f32 %v5795_v20, %v11244_v60  ;;  %v2144_v36 = vperm.slane %v11161_v58, 5 }
 0x4f1   : > { %v5871_v29 = vand.u32 4294901760, %v5870_v55  ;;  %v11258_v55 = vpop.permute.xlu2 %1921 }
 0x4f2   : > { %v15229_v40 = vand.u32 4294901760, %v11248_v17  ;;  %15596 = vst [vmem:[#allocation250_spill] sm:$0xff] %v11258_v55 }
 0x4f3   : > { %5872 = vmatmul.f32.gmra.mxu0 %v5871_v29  ;;  %6015 = vmatmul.f32.gmra.mxu1 %v11223_v7  ;;  %v5798_v29 = vsel %vm15296_vm0, %v10025_v3, 0 }
 0x4f4   : > { %v5878_v53 = vsub.f32 %v11248_v17, %v15229_v40  ;;  %v11264_v41 = vand.u32 4294901760, %v5798_v29  ;;  %v2157_v40 = vperm.slane %v11161_v58, 6  ;;  %v11283_v58 = vpop.permute.xlu0 %1102 }
 0x4f5   : > { %15600 = vst [vmem:[#allocation254_spill] sm:$0xff] %v11283_v58 }
 0x4f6   : > { %v5879_v20 = vand.u32 4294901760, %v5878_v53  ;;  %v11267_v9 = vsub.f32 %v5798_v29, %v11264_v41  ;;  %v5801_v53 = vsel %vm15296_vm0, %v10040_v12, 0 }
 0x4f7   : > { %9656 = vset.pattern.permute.xlu2 %v10062_v25  ;;  %v11256_v61 = vpop.permute.xlu1 %1908 }
 0x4f8   : > { %9657 = vset.pattern.permute.xlu1 %v10069_v28  ;;  %15595 = vst [vmem:[#allocation249_spill] sm:$0xff] %v11256_v61  ;;  %v15232_v55 = vand.u32 4294901760, %v11267_v9 }
 0x4f9   : > { %v11281_v29 = vpop.permute.xlu2 %1934 }
 0x4fa   : > { %v5886_v61 = vsub.f32 %v11267_v9, %v15232_v55  ;;  %15599 = vst [vmem:[#allocation253_spill] sm:$0xff] %v11281_v29 }
 0x4fb   : > { %5880 = vmatmul.f32.gmra.mxu0 %v5879_v20  ;;  %6019 = vmatmul.f32.gmra.mxu1 %v11244_v60  ;;  %v11279_v20 = vand.u32 4294901760, %v5801_v53 }
 0x4fc   : > { %v11306_v12 = vpop.permute.xlu0 %1167 }
 0x4fd   : > { %v11286_v3 = vsub.f32 %v5801_v53, %v11279_v20  ;;  %15603 = vst [vmem:[#allocation257_spill] sm:$0xff] %v11306_v12 }
 0x4ff   : > { %2149 = vperm.xlu2 %9656, %v2144_v36   ;;  %v11275_v30 = vpop.permute.xlu1 %1928  ;;  %v15235_v55 = vand.u32 4294901760, %v11286_v3 }
 0x500   : > { %2155 = vperm.xlu1 %9657, %v2144_v36   ;;  %15598 = vst [vmem:[#allocation252_spill] sm:$0xff] %v11275_v30  ;;  %v5887_v36 = vand.u32 4294901760, %v5886_v61  ;;  %v5804_v61 = vsel %vm15296_vm0, %v10059_v24, 0 }
 0x501   : > { %v5894_v30 = vsub.f32 %v11286_v3, %v15235_v55  ;;  %v11296_v29 = vand.u32 4294901760, %v5804_v61  ;;  %v11300_v53 = vpop.permute.xlu2 %1954 }
 0x502   : > { %15602 = vst [vmem:[#allocation256_spill] sm:$0xff] %v11300_v53  ;;  %v5807_v53 = vsel %vm15296_vm0, %v10057_v22, 0 }
 0x503   : > { %5888 = vmatmul.f32.gmra.mxu0 %v5887_v36  ;;  %6023 = vmatmul.f32.gmra.mxu1 %v11264_v41  ;;  %v11304_v58 = vsub.f32 %v5804_v61, %v11296_v29  ;;  %v11318_v24 = vand.u32 4294901760, %v5807_v53 }
 0x504   : > { %v11329_v22 = vpop.permute.xlu0 %1232 }
 0x505   : > { %v15240_v55 = vand.u32 4294901760, %v11304_v58  ;;  %v11323_v13 = vsub.f32 %v5807_v53, %v11318_v24  ;;  %15607 = vst [vmem:[#allocation260_spill] sm:$0xff] %v11329_v22  ;;  %v15608_v53 = vperm.slane %v10029_v5, 1 }
 0x507   : > { %2162 = vperm.xlu2 %9656, %v2157_v40   ;;  %v11298_v36 = vpop.permute.xlu1 %1941 }
 0x508   : > { %2168 = vperm.xlu1 %9657, %v2157_v40   ;;  %v5895_v40 = vand.u32 4294901760, %v5894_v30  ;;  %15601 = vst [vmem:[#allocation255_spill] sm:$0xff] %v11298_v36  ;;  %v2951_v30 = vperm.slane %v10029_v5, 0  ;;  %v5902_v36 = vsub.f32 %v11304_v58, %v15240_v55  ;;  %v15243_v55 = vand.u32 4294901760, %v11323_v13 }
 0x509   : > { %v11325_v38 = vpop.permute.xlu2 %1967 }
 0x50a   : > { %v5903_v61 = vand.u32 4294901760, %v5902_v36  ;;  %15606 = vst [vmem:[#allocation259_spill] sm:$0xff] %v11325_v38  ;;  %v5810_v36 = vsel %vm15296_vm0, %v10055_v21, 0 }
 0x50b   : > { %5896 = vmatmul.f32.gmra.mxu0 %v5895_v40  ;;  %6027 = vmatmul.f32.gmra.mxu1 %v11279_v20  ;;  %v15604_v40 = vperm.slane %v10271_v32, 7  ;;  %v5910_v32 = vsub.f32 %v11323_v13, %v15243_v55  ;;  %v5822_v55 = vsel %vm15296_vm0, %v10098_v44, 0 }
 0x50f   : > { %9658 = vset.pattern.permute.xlu2 %v10069_v28  ;;  %v11320_v12 = vpop.permute.xlu1 %1960 }
 0x510   : > { %9659 = vset.pattern.permute.xlu1 %v10062_v25  ;;  %15605 = vst [vmem:[#allocation258_spill] sm:$0xff] %v11320_v12 }
 0x511   : > { %v11345_v22 = vpop.permute.xlu2 %1986 }
 0x512   : > { %15610 = vst [vmem:[#allocation262_spill] sm:$0xff] %v11345_v22 }
 0x513   : > { %5904 = vmatmul.f32.gmra.mxu0 %v5903_v61  ;;  %6031 = vmatmul.f32.gmra.mxu1 %v11296_v29  ;;  %v11336_v61 = vand.u32 4294901760, %v5810_v36 }
 0x515   : > { %v11341_v38 = vsub.f32 %v5810_v36, %v11336_v61  ;;  %v5813_v36 = vsel %vm15296_vm0, %v10083_v35, 0 }
 0x516   : > { %v11365_v21 = vand.u32 4294901760, %v5813_v36 }
 0x517   : > { %2181 = vperm.xlu2 %9658, %v15604_v40   ;;  %v5911_v40 = vand.u32 4294901760, %v5910_v32  ;;  %v11343_v12 = vpop.permute.xlu1 %1973  ;;  %v11351_v32 = vand.u32 4294901760, %v5822_v55 }
 0x518   : > { %2956 = vperm.xlu1 %9659, %v2951_v30   ;;  %15609 = vst [vmem:[#allocation261_spill] sm:$0xff] %v11343_v12  ;;  %v11370_v44 = vsub.f32 %v5813_v36, %v11365_v21 }
 0x519   : > { %6055 = vmatmul.f32.vlgmr.msra.gmra.mxu3 %v11351_v32  ;;  %v11363_v12 = vsub.f32 %v5822_v55, %v11351_v32  ;;  %v11380_v35 = vpop.permute.xlu2 %1999 }
 0x51a   : > { %15613 = vst [vmem:[#allocation265_spill] sm:$0xff] %v11380_v35  ;;  %v11394_v35 = vand.u32 4294901760, %v5816_v47 }
 0x51b   : > { %5912 = vmatmul.f32.gmra.mxu0 %v5911_v40  ;;  %6035 = vmatmul.f32.gmra.mxu1 %v11318_v24 }
 0x51c   : > { %v11403_v34 = vsub.f32 %v5816_v47, %v11394_v35 }
 0x51f   : > { %2962 = vperm.xlu2 %9658, %v2951_v30   ;;  %v15246_v30 = vand.u32 4294901760, %v11341_v38  ;;  %v11372_v0 = vpop.permute.xlu1 %1993 }
 0x520   : > { %2969 = vperm.xlu1 %9659, %v15608_v53   ;;  %v11359_v53 = vpop.permute.xlu0 %1297  ;;  %15612 = vst [vmem:[#allocation264_spill] sm:$0xff] %v11372_v0 }
 0x521   : > { %v5918_v40 = vsub.f32 %v11341_v38, %v15246_v30  ;;  %15611 = vst [vmem:[#allocation263_spill] sm:$0xff] %v11359_v53  ;;  %v15253_v30 = vand.u32 4294901760, %v11363_v12  ;;  %v2977_v53 = vperm.slane %v10029_v5, 2 }
 0x523   : > { %v5919_v22 = vand.u32 4294901760, %v5918_v40  ;;  %6039 = vmatmul.f32.gmra.mxu1 %v11336_v61  ;;  %v5950_v55 = vsub.f32 %v11363_v12, %v15253_v30  ;;  %v15256_v40 = vand.u32 4294901760, %v11370_v44 }
 0x525   : > { %5920 = vmatmul.f32.gmra.mxu0 %v5919_v22  ;;  %v5825_v22 = vsel %vm15296_vm0, %v10096_v43, 0  ;;  %v5951_v1 = vand.u32 4294901760, %v5950_v55  ;;  %v5926_v0 = vsub.f32 %v11370_v44, %v15256_v40  ;;  %v5828_v55 = vsel %vm15296_vm0, %v10094_v42, 0 }
 0x526   : > { %v11384_v36 = vand.u32 4294901760, %v5825_v22 }
 0x527   : > { %9660 = vset.pattern.permute.xlu2 %v10062_v25  ;;  %5952 = vmatmul.f32.vlgmr.msra.gmra.mxu2 %v5951_v1  ;;  %v5927_v30 = vand.u32 4294901760, %v5926_v0  ;;  %v2990_v1 = vperm.slane %v10029_v5, 3  ;;  %v11413_v42 = vpop.permute.xlu1 %2006 }
 0x528   : > { %9661 = vset.pattern.permute.xlu1 %v10069_v28  ;;  %v11392_v6 = vsub.f32 %v5825_v22, %v11384_v36  ;;  %6059 = vmatmul.f32.gmra.mxu3 %v11384_v36  ;;  %v11399_v43 = vpop.permute.xlu0 %1362  ;;  %v15262_v22 = vand.u32 4294901760, %v11403_v34  ;;  %15615 = vst [vmem:[#allocation267_spill] sm:$0xff] %v11413_v42  ;;  %v11430_v42 = vsub.f32 %v5819_v26, %v11425_v10 }
 0x529   : > { %15614 = vst [vmem:[#allocation266_spill] sm:$0xff] %v11399_v43 }
 0x52a   : > { %v15261_v40 = vand.u32 4294901760, %v11392_v6  ;;  %v5934_v47 = vsub.f32 %v11403_v34, %v15262_v22 }
 0x52b   : > { %6043 = vmatmul.f32.gmra.mxu1 %v11365_v21 }
 0x52c   : > { %v5958_v0 = vsub.f32 %v11392_v6, %v15261_v40  ;;  %v5935_v59 = vand.u32 4294901760, %v5934_v47 }
 0x52d   : > { %5928 = vmatmul.f32.gmra.mxu0 %v5927_v30  ;;  %v11415_v30 = vpop.permute.xlu2 %2019 }
 0x52e   : > { %15616 = vst [vmem:[#allocation268_spill] sm:$0xff] %v11415_v30  ;;  %v5959_v43 = vand.u32 4294901760, %v5958_v0 }
 0x52f   : > { %2982 = vperm.xlu2 %9660, %v2977_v53   ;;  %v11441_v47 = vpop.permute.xlu1 %2025 }
 0x530   : > { %2988 = vperm.xlu1 %9661, %v2977_v53   ;;  %v11410_v53 = vand.u32 4294901760, %v5828_v55  ;;  %5960 = vmatmul.f32.gmra.mxu2 %v5959_v43  ;;  %v11432_v22 = vpop.permute.xlu0 %1427  ;;  %15618 = vst [vmem:[#allocation270_spill] sm:$0xff] %v11441_v47  ;;  %v3016_v47 = vperm.slane %v10029_v5, 5 }
 0x531   : > { %15617 = vst [vmem:[#allocation269_spill] sm:$0xff] %v11432_v22 }
 0x532   : > { %v11423_v40 = vsub.f32 %v5828_v55, %v11410_v53  ;;  %6063 = vmatmul.f32.gmra.mxu3 %v11410_v53  ;;  %v5831_v55 = vsel %vm15296_vm0, %v10107_v49, 0  ;;  %v15623_v49 = vperm.slane %v10029_v5, 4 }
 0x533   : > { %6047 = vmatmul.f32.gmra.mxu1 %v11394_v35 }
 0x534   : > { %v15265_v0 = vand.u32 4294901760, %v11423_v40 }
 0x535   : > { %5936 = vmatmul.f32.gmra.mxu0 %v5935_v59  ;;  %v11443_v59 = vand.u32 4294901760, %v5831_v55  ;;  %v11448_v33 = vpop.permute.xlu2 %2032 }
 0x536   : > { %v5966_v43 = vsub.f32 %v11423_v40, %v15265_v0  ;;  %15619 = vst [vmem:[#allocation271_spill] sm:$0xff] %v11448_v33 }
 0x537   : > { %2995 = vperm.xlu2 %9660, %v2990_v1   ;;  %v11452_v22 = vsub.f32 %v5831_v55, %v11443_v59  ;;  %v11464_v55 = vpop.permute.xlu1 %2038 }
 0x538   : > { %3001 = vperm.xlu1 %9661, %v2990_v1   ;;  %v15266_v1 = vand.u32 4294901760, %v11430_v42  ;;  %v5967_v30 = vand.u32 4294901760, %v5966_v43  ;;  %15621 = vst [vmem:[#allocation273_spill] sm:$0xff] %v11464_v55 }
 0x539   : > { %v15269_v43 = vand.u32 4294901760, %v11452_v22 }
 0x53a   : > { %v5942_v26 = vsub.f32 %v11430_v42, %v15266_v1  ;;  %5968 = vmatmul.f32.gmra.mxu2 %v5967_v30  ;;  %6067 = vmatmul.f32.gmra.mxu3 %v11443_v59  ;;  %v11462_v30 = vpop.permute.xlu0 %1492 }
 0x53b   : > { %6051 = vmatmul.f32.gmra.mxu1 %v11425_v10  ;;  %v5974_v1 = vsub.f32 %v11452_v22, %v15269_v43  ;;  %15620 = vst [vmem:[#allocation272_spill] sm:$0xff] %v11462_v30 }
 0x53c   : > { %v5943_v0 = vand.u32 4294901760, %v5942_v26 }
 0x53d   : > { %v5975_v26 = vand.u32 4294901760, %v5974_v1  ;;  %v11466_v33 = vpop.permute.xlu2 %2051 }
 0x53e   : > { %5944 = vmatmul.f32.gmra.mxu0 %v5943_v0  ;;  %15622 = vst [vmem:[#allocation274_spill] sm:$0xff] %v11466_v33  ;;  %v15624_v0 = vand.u32 4294901760, %v11190_v31 }
 0x53f   : > { %9662 = vset.pattern.permute.xlu2 %v10069_v28  ;;  %v11474_v43 = vpop.permute.xlu1 %2058 }
 0x540   : > { %9663 = vset.pattern.permute.xlu1 %v10062_v25  ;;  %15625 = vst [vmem:[#allocation275_spill] sm:$0xff] %v11474_v43 }
 0x542   : > { %5976 = vmatmul.f32.gmra.mxu2 %v5975_v26  ;;  %6193 = vmatmul.f32.vlgmr.msrb.gmra.mxu3 %v15624_v0  ;;  %v11476_v30 = vpop.permute.xlu0 %1557  ;;  %v15629_v26 = vand.u32 4294901760, %v11208_v52 }
 0x543   : > { %6393 = vmatmul.f32.vlgmr.msrb.gmra.mxu1 %v11184_v2  ;;  %15626 = vst [vmem:[#allocation276_spill] sm:$0xff] %v11476_v30 }
 0x545   : > { %v11479_v1 = vpop.permute.xlu2 %2064 }
 0x546   : > { %6310 = vmatmul.f32.vlgmr.msrb.gmra.mxu0 %v11184_v2  ;;  %15627 = vst [vmem:[#allocation277_spill] sm:$0xff] %v11479_v1 }
 0x547   : > { %3014 = vperm.xlu2 %9662, %v15623_v49   ;;  %v15628_v49 = vperm.slane %v10029_v5, 6  ;;  %v11489_v2 = vpop.permute.xlu1 %2071 }
 0x548   : > { %3021 = vperm.xlu1 %9663, %v3016_v47   ;;  %15630 = vst [vmem:[#allocation278_spill] sm:$0xff] %v11489_v2 }
 0x54a   : > { %6093 = vmatmul.f32.vlgmr.msrb.gmra.mxu2 %v11190_v31  ;;  %6199 = vmatmul.f32.gmra.mxu3 %v15629_v26  ;;  %v15632_v31 = vand.u32 4294901760, %v11228_v48  ;;  %v11496_v0 = vpop.permute.xlu0 %1622 }
 0x54b   : > { %6397 = vmatmul.f32.gmra.mxu1 %v11205_v45  ;;  %15633 = vst [vmem:[#allocation280_spill] sm:$0xff] %v11496_v0 }
 0x54e   : > { %6314 = vmatmul.f32.gmra.mxu0 %v11205_v45 }
 0x54f   : > { %3027 = vperm.xlu2 %9662, %v3016_v47   ;;  %v11491_v47 = vpop.permute.xlu2 %2084  ;;  %v11502_v45 = vpop.permute.xlu1 %2090 }
 0x550   : > { %3034 = vperm.xlu1 %9663, %v15628_v49   ;;  %15631 = vst [vmem:[#allocation279_spill] sm:$0xff] %v11491_v47  ;;  %v3042_v49 = vperm.slane %v10029_v5, 7  ;;  %v3055_v47 = vperm.slane %v10044_v14, 0 }
 0x551   : > { %15634 = vst [vmem:[#allocation281_spill] sm:$0xff] %v11502_v45 }
 0x552   : > { %6098 = vmatmul.f32.gmra.mxu2 %v11208_v52  ;;  %6205 = vmatmul.f32.gmra.mxu3 %v15632_v31  ;;  %v15635_v52 = vand.u32 4294901760, %v11248_v17  ;;  %v11509_v31 = vpop.permute.xlu0 %1687 }
 0x553   : > { %6401 = vmatmul.f32.gmra.mxu1 %v11223_v7  ;;  %15637 = vst [vmem:[#allocation283_spill] sm:$0xff] %v11509_v31 }
 0x556   : > { %6318 = vmatmul.f32.gmra.mxu0 %v11223_v7  ;;  %v15638_v7 = vand.u32 4294901760, %v11267_v9 }
 0x557   : > { %9664 = vset.pattern.permute.xlu2 %v10062_v25  ;;  %v11507_v26 = vpop.permute.xlu2 %2097 }
 0x558   : > { %9665 = vset.pattern.permute.xlu1 %v10069_v28  ;;  %15636 = vst [vmem:[#allocation282_spill] sm:$0xff] %v11507_v26  ;;  %v11524_v45 = vpop.f32.mrf.mxu0 }
 0x559   : > { %15642 = vst [vmem:[#allocation287_spill] sm:$0xff] %v11524_v45  ;;  %v15648_v45 = vperm.slane %v10044_v14, 1 }
 0x55a   : > { %6103 = vmatmul.f32.gmra.mxu2 %v11228_v48  ;;  %6211 = vmatmul.f32.gmra.mxu3 %v15635_v52  ;;  %v11517_v48 = vpop.permute.xlu1 %2103  ;;  %v11522_v52 = vpop.permute.xlu0 %1752 }
 0x55b   : > { %6405 = vmatmul.f32.gmra.mxu1 %v11244_v60  ;;  %15639 = vst [vmem:[#allocation284_spill] sm:$0xff] %v11517_v48 }
 0x55c   : > { %15641 = vst [vmem:[#allocation286_spill] sm:$0xff] %v11522_v52 }
 0x55e   : > { %6322 = vmatmul.f32.gmra.mxu0 %v11244_v60 }
 0x55f   : > { %3047 = vperm.xlu2 %9664, %v3042_v49  }
 0x560   : > { %3053 = vperm.xlu1 %9665, %v3042_v49   ;;  %v11519_v49 = vpop.permute.xlu2 %2116  ;;  %v11526_v60 = vpop.f32.mrf.mxu1 }
 0x561   : > { %15640 = vst [vmem:[#allocation285_spill] sm:$0xff] %v11519_v49  ;;  %v15649_v49 = vand.u32 4294901760, %v11304_v58 }
 0x562   : > { %6108 = vmatmul.f32.gmra.mxu2 %v11248_v17  ;;  %6217 = vmatmul.f32.gmra.mxu3 %v15638_v7  ;;  %15643 = vst [vmem:[#allocation288_spill] sm:$0xff] %v11526_v60  ;;  %v15644_v17 = vand.u32 4294901760, %v11286_v3  ;;  %v3081_v7 = vperm.slane %v10044_v14, 2  ;;  %v11540_v60 = vpop.permute.xlu0 %1817 }
 0x563   : > { %6409 = vmatmul.f32.gmra.mxu1 %v11264_v41  ;;  %15647 = vst [vmem:[#allocation291_spill] sm:$0xff] %v11540_v60 }
 0x566   : > { %6326 = vmatmul.f32.gmra.mxu0 %v11264_v41 }
 0x567   : > { %3060 = vperm.xlu2 %9664, %v3055_v47  }
 0x568   : > { %3066 = vperm.xlu1 %9665, %v3055_v47   ;;  %v11534_v47 = vpop.permute.xlu1 %2123  ;;  %v11537_v41 = vpop.permute.xlu2 %2129 }
 0x569   : > { %15645 = vst [vmem:[#allocation289_spill] sm:$0xff] %v11534_v47 }
 0x56a   : > { %6113 = vmatmul.f32.gmra.mxu2 %v11267_v9  ;;  %6223 = vmatmul.f32.gmra.mxu3 %v15644_v17  ;;  %15646 = vst [vmem:[#allocation290_spill] sm:$0xff] %v11537_v41  ;;  %v5865_v9 = vpop.f32.mrf.mxu0  ;;  %v6012_v17 = vpop.f32.mrf.mxu1 }
 0x56b   : > { %6413 = vmatmul.f32.gmra.mxu1 %v11279_v20  ;;  %v11547_v47 = vadd.f32 %v6012_v17, %v5865_v9 }
 0x56d   : > { %15650 = vst [vmem:[#allocation292_spill] sm:$0xff] %v11547_v47 }
 0x56e   : > { %6330 = vmatmul.f32.gmra.mxu0 %v11279_v20 }
 0x56f   : > { %9666 = vset.pattern.permute.xlu2 %v10069_v28 }
 0x570   : > { %9667 = vset.pattern.permute.xlu1 %v10062_v25  ;;  %v11551_v20 = vpop.permute.xlu1 %2136  ;;  %v11553_v41 = vpop.permute.xlu2 %2149 }
 0x571   : > { %15651 = vst [vmem:[#allocation293_spill] sm:$0xff] %v11551_v20  ;;  %v5779_v20 = vld [vmem:[%s15090_s3 + $0x60] sm:$0xff] }
 0x572   : > { %6118 = vmatmul.f32.gmra.mxu2 %v11286_v3  ;;  %6229 = vmatmul.f32.gmra.mxu3 %v15649_v49  ;;  %15652 = vst [vmem:[#allocation294_spill] sm:$0xff] %v11553_v41  ;;  %v15653_v3 = vperm.slane %v10044_v14, 3  ;;  %v11560_v49 = vpop.permute.xlu0 %1882  ;;  %v5873_v9 = vpop.f32.mrf.mxu0 }
 0x573   : > { %6417 = vmatmul.f32.gmra.mxu1 %v11296_v29  ;;  %15655 = vst [vmem:[#allocation295_spill] sm:$0xff] %v11560_v49  ;;  %v6016_v17 = vpop.f32.mrf.mxu1 }
 0x576   : > { %6334 = vmatmul.f32.gmra.mxu0 %v11296_v29  ;;  %v11563_v29 = vadd.f32 %v6016_v17, %v5873_v9  ;;  %v3120_v17 = vperm.slane %v10044_v14, 5 }
 0x577   : > { %3079 = vperm.xlu2 %9666, %v15648_v45   ;;  %v15654_v45 = vand.u32 4294901760, %v11323_v13 }
 0x578   : > { %3086 = vperm.xlu1 %9667, %v3081_v7   ;;  %15656 = vst [vmem:[#allocation296_spill] sm:$0xff] %v11563_v29  ;;  %v11566_v47 = vpop.permute.xlu1 %2155 }
 0x579   : > { %15657 = vst [vmem:[#allocation297_spill] sm:$0xff] %v11566_v47 }
 0x57a   : > { %6123 = vmatmul.f32.gmra.mxu2 %v11304_v58  ;;  %6235 = vmatmul.f32.gmra.mxu3 %v15654_v45  ;;  %v11570_v58 = vpop.permute.xlu2 %2162 }
 0x57b   : > { %6421 = vmatmul.f32.gmra.mxu1 %v11318_v24  ;;  %15658 = vst [vmem:[#allocation298_spill] sm:$0xff] %v11570_v58 }
 0x57e   : > { %6338 = vmatmul.f32.gmra.mxu0 %v11318_v24  ;;  %v11578_v24 = vpop.permute.xlu0 %1947 }
 0x57f   : > { %3092 = vperm.xlu2 %9666, %v3081_v7   ;;  %v15659_v7 = vand.u32 4294901760, %v11341_v38  ;;  %15660 = vst [vmem:[#allocation299_spill] sm:$0xff] %v11578_v24  ;;  %v15281_v24 = vmov 0.0  }
 0x580   : > { %3099 = vperm.xlu1 %9667, %v15653_v3   ;;  %v3107_v3 = vperm.slane %v10044_v14, 4  ;;  %v11580_v45 = vpop.permute.xlu1 %2168 }
 0x581   : > { %15661 = vst [vmem:[#allocation300_spill] sm:$0xff] %v11580_v45 }
 0x582   : > { %6128 = vmatmul.f32.gmra.mxu2 %v11323_v13  ;;  %6241 = vmatmul.f32.gmra.mxu3 %v15659_v7  ;;  %v15662_v13 = vand.u32 4294901760, %v11370_v44  ;;  %v11586_v9 = vpop.permute.xlu2 %2181 }
 0x583   : > { %6425 = vmatmul.f32.gmra.mxu1 %v11336_v61  ;;  %15663 = vst [vmem:[#allocation301_spill] sm:$0xff] %v11586_v9 }
 0x586   : > { %6342 = vmatmul.f32.gmra.mxu0 %v11336_v61  ;;  %v11590_v61 = vpop.permute.xlu0 %2012 }
 0x587   : > { %9668 = vset.pattern.permute.xlu2 %v10062_v25  ;;  %15664 = vst [vmem:[#allocation302_spill] sm:$0xff] %v11590_v61  ;;  %v5776_v61 = vld [vmem:[%s15090_s3 + $0x48] sm:$0xff] }
 0x588   : > { %9669 = vset.pattern.permute.xlu1 %v10069_v28 }
 0x58a   : > { %6133 = vmatmul.f32.gmra.mxu2 %v11341_v38  ;;  %6247 = vmatmul.f32.gmra.mxu3 %v15662_v13  ;;  %v11592_v7 = vpop.permute.xlu1 %2956  ;;  %v15665_v38 = vand.u32 4294901760, %v11403_v34 }
 0x58b   : > { %6429 = vmatmul.f32.gmra.mxu1 %v11365_v21 }
 0x58e   : > { %6346 = vmatmul.f32.gmra.mxu0 %v11365_v21  ;;  %v5782_v21 = vld [vmem:[%s15090_s3 + $0x78] sm:$0xff] }
 0x58f   : > { %3112 = vperm.xlu2 %9668, %v3107_v3   ;;  %v11604_v13 = vand.u32 4294901760, %v5782_v21 }
 0x590   : > { %3118 = vperm.xlu1 %9669, %v3107_v3   ;;  %v11599_v3 = vpop.permute.xlu2 %2962 }
 0x591   : > { %v11619_v29 = vsub.f32 %v5782_v21, %v11604_v13  ;;  %7172 = vmatpush.msra.mxu1 %v11604_v13  ;;  %6721 = vmatpush.msra.mxu2 %v11604_v13  ;;  %v15668_v21 = vlaneseq }
 0x592   : > { %6138 = vmatmul.f32.gmra.mxu2 %v11370_v44  ;;  %6253 = vmatmul.f32.gmra.mxu3 %v15665_v38  ;;  %v5781_v44 = vld [vmem:[%s15090_s3 + $0x70] sm:$0xff]  ;;  %v11613_v38 = vpop.permute.xlu1 %2969 }
 0x593   : > { %6433 = vmatmul.f32.gmra.mxu1 %v11394_v35  ;;  %v11621_v9 = vand.u32 4294901760, %v5781_v44  ;;  %v15276_v47 = vand.u32 4294901760, %v11619_v29  ;;  %7044 = vmatpush.msra.mxu0 %v11619_v29  ;;  %v11637_v45 = vand.u32 127, %v15668_v21  ;;  %v5778_v21 = vld [vmem:[%s15090_s3 + $0x58] sm:$0xff] }
 0x594   : > { %v11675_v1 = vand.u32 4294901760, %v5778_v21 }
 0x595   : > { %v11630_v58 = vsub.f32 %v5781_v44, %v11621_v9  ;;  %v6884_v26 = vsub.f32 %v11619_v29, %v15276_v47  ;;  %7174 = vmatpush.msra.mxu1 %v11621_v9  ;;  %6723 = vmatpush.msra.mxu2 %v11621_v9  ;;  %vm2184_vm1 = vcmp.eq.s32.totalorder %v10465_v63, %v11637_v45 }
 0x596   : > { %6350 = vmatmul.f32.gmra.mxu0 %v11394_v35  ;;  %v15667_v35 = vand.u32 4294901760, %v11430_v42  ;;  %15672 = vst [vmem:[#allocation306_spill] sm:$0xff] %v11675_v1  ;;  %vm2186_vm2 = vcmp.eq.s32.totalorder %v10476_v15, %v11637_v45  ;;  %vm2183_vm3 = vcmp.eq.s32.totalorder %v10474_v39, %v11637_v45  ;;  %vm2188_vm4 = vcmp.eq.s32.totalorder %v10485_v51, %v11637_v45 }
 0x597   : > { %3125 = vperm.xlu2 %9668, %v3120_v17   ;;  %v15277_v48 = vand.u32 4294901760, %v11630_v58  ;;  %7047 = vmatpush.msra.mxu0 %v11630_v58  ;;  %v6885_v44 = vand.u32 4294901760, %v6884_v26  ;;  %v11720_v63 = vsel %vm2186_vm2, 1.0, %v15281_v24  ;;  %vm2190_vm5 = vcmp.eq.s32.totalorder %v10495_v56, %v11637_v45 }
 0x598   : > { %3131 = vperm.xlu1 %9669, %v3120_v17   ;;  %v11611_v17 = vpop.permute.xlu0 %2077  ;;  %v11643_v41 = vpop.permute.xlu2 %2982  ;;  %vm2187_vm6 = vcmp.eq.s32.totalorder %v10483_v16, %v11637_v45  ;;  %v11751_v15 = vsel %vm2183_vm3, 1.0, %v15281_v24  ;;  %vm2189_vm7 = vcmp.eq.s32.totalorder %v10493_v27, %v11637_v45  ;;  %vm2193_vm8 = vcmp.eq.s32.totalorder %v10506_v62, %v11637_v45  ;;  %v5772_v16 = vld [vmem:[%s15090_s3 + $0x28] sm:$0xff] }
 0x599   : > { %15666 = vst [vmem:[#allocation303_spill] sm:$0xff] %v11611_v17  ;;  %v6890_v47 = vsub.f32 %v11630_v58, %v15277_v48  ;;  %v5777_v48 = vld [vmem:[%s15090_s3 + $0x50] sm:$0xff]  ;;  %6886 = vmatpush.msra.mxu3 %v6885_v44  ;;  %v11707_v44 = vsub.f32 %v5778_v21, %v11675_v1  ;;  %v15683_v39 = vperm.slane %v10044_v14, 7  ;;  %vm2191_vm9 = vcmp.eq.s32.totalorder %v10504_v8, %v11637_v45 }
 0x59a   : > { %6143 = vmatmul.f32.gmra.mxu2 %v11403_v34  ;;  %6259 = vmatmul.f32.gmra.mxu3 %v15667_v35  ;;  %v5780_v34 = vld [vmem:[%s15090_s3 + $0x68] sm:$0xff]  ;;  %vm2185_vm10 = vcmp.eq.s32.totalorder %v10354_v54, %v11637_v45  ;;  %vm2195_vm11 = vcmp.eq.s32.totalorder %v10517_v18, %v11637_v45  ;;  %vm2194_vm12 = vcmp.eq.s32.totalorder %v10511_v23, %v11637_v45  ;;  %vm6585_vm2 = vcmask 1041409  }
 0x59b   : > { %v11633_v35 = vand.u32 4294901760, %v5780_v34  ;;  %6437 = vmatmul.f32.gmra.mxu1 %v11425_v10  ;;  %v6891_v43 = vand.u32 4294901760, %v6890_v47  ;;  %v11704_v47 = vsel %vm2184_vm1, 1.0, %v15281_v24  ;;  %15678 = vst [vmem:[#allocation309_spill] sm:$0xff] %v11707_v44  ;;  %v15680_v49 = vand.u32 4294901760, %v11707_v44 }
 0x59c   : > { %vm2196_vm13 = vcmp.eq.s32.totalorder %v10524_v11, %v11637_v45  ;;  %vm2192_vm14 = vcmp.eq.s32.totalorder %v10932_v46, %v11637_v45  ;;  %vm2197_vm15 = vcmp.eq.s32.totalorder %v10362_v50, %v11637_v45  ;;  %vm2198_vm1 = vcmp.eq.s32.totalorder %v10526_v57, %v11637_v45 }
 0x59d   : > { %v11651_v5 = vsub.f32 %v5780_v34, %v11633_v35  ;;  %7176 = vmatpush.msra.mxu1 %v11633_v35  ;;  %v15670_v34 = vperm.slane %v10044_v14, 6  ;;  %6892 = vmatpush.msra.mxu3 %v6891_v43  ;;  %vm6587_vm3 = vcmask 1042434  }
 0x59e   : > { %6354 = vmatmul.f32.gmra.mxu0 %v11425_v10  ;;  %v11655_v10 = vand.u32 4294901760, %v5779_v20  ;;  %6725 = vmatpush.msra.mxu2 %v11633_v35 }
 0x59f   : > { %9670 = vset.pattern.permute.xlu2 %v10069_v28  ;;  %15669 = vst [vmem:[#allocation304_spill] sm:$0xff] %v11651_v5  ;;  %7050 = vmatpush.msra.mxu0 %v11651_v5  ;;  %v15676_v17 = vand.u32 4294901760, %v11651_v5 }
 0x5a0   : > { %9671 = vset.pattern.permute.xlu1 %v10062_v25  ;;  %v11673_v26 = vsub.f32 %v5779_v20, %v11655_v10  ;;  %v11688_v20 = vand.u32 4294901760, %v5777_v48  ;;  %7178 = vmatpush.msra.mxu1 %v11655_v10 }
 0x5a1   : > { %v6896_v2 = vsub.f32 %v11651_v5, %v15676_v17  ;;  %6727 = vmatpush.msra.mxu2 %v11655_v10 }
 0x5a2   : > { %6148 = vmatmul.f32.gmra.mxu2 %v11430_v42  ;;  %15671 = vst [vmem:[#allocation305_spill] sm:$0xff] %v11673_v26  ;;  %v11682_v33 = vpop.permute.xlu1 %2988  ;;  %v15674_v42 = vand.u32 4294901760, %v11363_v12  ;;  %v15279_v55 = vand.u32 4294901760, %v11673_v26  ;;  %7053 = vmatpush.msra.mxu0 %v11673_v26  ;;  %v11711_v17 = vsub.f32 %v5777_v48, %v11688_v20 }
 0x5a3   : > { %15675 = vst [vmem:[#allocation307_spill] sm:$0xff] %v11688_v20  ;;  %6441 = vmatmul.f32.gmra.mxu1 %v11351_v32  ;;  %v6897_v21 = vand.u32 4294901760, %v6896_v2  ;;  %6729 = vmatpush.msra.mxu2 %v11675_v1 }
 0x5a4   : > { %6265 = vmatmul.f32.gmra.mxu3 %v15674_v42  ;;  %15679 = vst [vmem:[#allocation310_spill] sm:$0xff] %v11711_v17  ;;  %v6902_v48 = vsub.f32 %v11673_v26, %v15279_v55  ;;  %v5775_v42 = vld [vmem:[%s15090_s3 + $0x40] sm:$0xff]  ;;  %7056 = vmatpush.msra.mxu0 %v11707_v44  ;;  %v5774_v55 = vld [vmem:[%s15090_s3 + $0x38] sm:$0xff] }
 0x5a5   : > { %6898 = vmatpush.msra.mxu3 %v6897_v21  ;;  %7180 = vmatpush.msra.mxu1 %v11675_v1  ;;  %v11742_v2 = vand.u32 4294901760, %v5775_v42  ;;  %v6908_v21 = vsub.f32 %v11707_v44, %v15680_v49 }
 0x5a6   : > { %6358 = vmatmul.f32.gmra.mxu0 %v11351_v32  ;;  %v11735_v32 = vand.u32 4294901760, %v5776_v61  ;;  %v6903_v43 = vand.u32 4294901760, %v6902_v48  ;;  %v15681_v48 = vand.u32 4294901760, %v11711_v17  ;;  %6731 = vmatpush.msra.mxu2 %v11688_v20 }
 0x5a7   : > { %3144 = vperm.xlu2 %9670, %v15670_v34   ;;  %v15673_v34 = vperm.slane %v10044_v14, 7  ;;  %7059 = vmatpush.msra.mxu0 %v11711_v17  ;;  %v11773_v49 = vsub.f32 %v5775_v42, %v11742_v2  ;;  %v6909_v24 = vand.u32 4294901760, %v6908_v21  ;;  %v15686_v42 = vmov 0.0  }
 0x5a8   : > { %v6914_v60 = vsub.f32 %v11711_v17, %v15681_v48  ;;  %v11762_v52 = vsub.f32 %v5776_v61, %v11735_v32  ;;  %6904 = vmatpush.msra.mxu3 %v6903_v43  ;;  %v11775_v48 = vand.u32 4294901760, %v5774_v55  ;;  %v15685_v61 = vperm.slane %v10027_v4, 0  ;;  %v5773_v43 = vld [vmem:[%s15090_s3 + $0x30] sm:$0xff]  ;;  %7182 = vmatpush.msra.mxu1 %v11688_v20 }
 0x5a9   : > { %3151 = vperm.xlu1 %9671, %v15673_v34   ;;  %v11698_v34 = vpop.permute.xlu0 %2142  ;;  %15684 = vst [vmem:[#allocation312_spill] sm:$0xff] %v11773_v49  ;;  %v15687_v21 = vand.u32 4294901760, %v11392_v6  ;;  %v11813_v51 = vsel %vm2189_vm7, 1.0, %v15686_v42  ;;  %v11831_v27 = vsel %vm2191_vm9, 1.0, %v15686_v42  ;;  %v15689_v30 = vand.u32 4294901760, %v11773_v49  ;;  %6733 = vmatpush.msra.mxu2 %v11735_v32 }
 0x5aa   : > { %15677 = vst [vmem:[#allocation308_spill] sm:$0xff] %v11698_v34  ;;  %v11753_v34 = vpop.permute.xlu2 %2995  ;;  %6153 = vmatmul.f32.gmra.mxu2 %v11363_v12  ;;  %v6915_v31 = vand.u32 4294901760, %v6914_v60  ;;  %v15285_v0 = vand.u32 4294901760, %v11762_v52  ;;  %v11796_v12 = vsel %vm2188_vm4, 1.0, %v15686_v42  ;;  %v11802_v60 = vsel %vm2190_vm5, 1.0, %v15686_v42  ;;  %6910 = vmatpush.msra.mxu3 %v6909_v24 }
 0x5ab   : > { %15682 = vst [vmem:[#allocation311_spill] sm:$0xff] %v11762_v52  ;;  %v11823_v14 = vsub.f32 %v5774_v55, %v11775_v48  ;;  %v11837_v24 = vsel %vm2193_vm8, 1.0, %v15686_v42  ;;  %6445 = vmatmul.f32.gmra.mxu1 %v11384_v36  ;;  %7062 = vmatpush.msra.mxu0 %v11762_v52  ;;  %v11841_v55 = vand.u32 4294901760, %v5773_v43  ;;  %v6926_v19 = vsub.f32 %v11773_v49, %v15689_v30 }
 0x5ac   : > { %6271 = vmatmul.f32.gmra.mxu3 %v15687_v21  ;;  %v6920_v56 = vsub.f32 %v11762_v52, %v15285_v0  ;;  %v5771_v0 = vld [vmem:[%s15090_s3 + $0x20] sm:$0xff]  ;;  %7184 = vmatpush.msra.mxu1 %v11735_v32  ;;  %v9256_v5 = vsel %vm2185_vm10, 1.0, %v15686_v42  ;;  %v15691_v20 = vand.u32 4294901760, %v11423_v40  ;;  %v9263_v18 = vsel %vm2192_vm14, 1.0, %v15686_v42 }
 0x5ad   : > { %15688 = vst [vmem:[#allocation313_spill] sm:$0xff] %v11823_v14  ;;  %6916 = vmatpush.msra.mxu3 %v6915_v31  ;;  %7065 = vmatpush.msra.mxu0 %v11773_v49  ;;  %v11862_v30 = vsub.f32 %v5773_v43, %v11841_v55  ;;  %v11864_v31 = vand.u32 4294901760, %v5771_v0  ;;  %v6927_v52 = vand.u32 4294901760, %v6926_v19  ;;  %v15690_v17 = vand.u32 4294901760, %v11823_v14 }
 0x5ae   : > { %6362 = vmatmul.f32.gmra.mxu0 %v11384_v36  ;;  %v6921_v8 = vand.u32 4294901760, %v6920_v56  ;;  %v11851_v36 = vand.u32 4294901760, %v5772_v16  ;;  %v5770_v56 = vld [vmem:[%s15090_s3 + $0x18] sm:$0xff]  ;;  %v4616_v19 = vmul.f32 %v11704_v47, %v11599_v3  ;;  %v4617_v1 = vmul.f32 %v9256_v5, %v11613_v38  ;;  %7186 = vmatpush.msra.mxu1 %v11742_v2 }
 0x5af   : > { %3157 = vperm.xlu2 %9670, %v15683_v39   ;;  %v9258_v39 = vsel %vm2187_vm6, 1.0, %v15686_v42  ;;  %v6932_v44 = vsub.f32 %v11823_v14, %v15690_v17  ;;  %v11878_v43 = vand.u32 4294901760, %v5770_v56  ;;  %v11889_v17 = vsub.f32 %v5771_v0, %v11864_v31  ;;  %7068 = vmatpush.msra.mxu0 %v11823_v14 }
 0x5b0   : > { %6922 = vmatpush.msra.mxu3 %v6921_v8  ;;  %v11876_v49 = vsub.f32 %v5772_v16, %v11851_v36  ;;  %v5769_v16 = vld [vmem:[%s15090_s3 + $0x10] sm:$0xff]  ;;  %v4619_v0 = vmul.f32 %v9258_v39, %v11643_v41  ;;  %v4620_v39 = vmul.f32 %v11796_v12, %v11682_v33  ;;  %7188 = vmatpush.msra.mxu1 %v11775_v48  ;;  %vm6589_vm4 = vcmask 1043459  }
 0x5b1   : > { %3164 = vperm.xlu1 %9671, %v15685_v61   ;;  %v11815_v61 = vpop.permute.xlu1 %3001  ;;  %v2976_v21 = vpop.permute.xlu0 %2975  ;;  %v11899_v8 = vand.u32 4294901760, %v5769_v16  ;;  %v15694_v5 = vand.u32 4294901760, %v11889_v17  ;;  %7071 = vmatpush.msra.mxu0 %v11862_v30  ;;  %vm6591_vm5 = vcmask 1044484   ;;  %vm6593_vm6 = vcmask 1045509  }
 0x5b2   : > { %v11869_v62 = vpop.permute.xlu2 %3014  ;;  %v4618_v26 = vmul.f32 %v11720_v63, %v2976_v21  ;;  %6928 = vmatpush.msra.mxu3 %v6927_v52  ;;  %v6933_v63 = vand.u32 4294901760, %v6932_v44  ;;  %v11897_v21 = vsub.f32 %v5770_v56, %v11878_v43  ;;  %6158 = vmatmul.f32.gmra.mxu2 %v11392_v6  ;;  %v15692_v52 = vand.u32 4294901760, %v11862_v30  ;;  %v5768_v56 = vld [vmem:[%s15090_s3 + $0x8] sm:$0xff] }
 0x5b3   : > { %v15693_v6 = vand.u32 4294901760, %v11876_v49  ;;  %v11921_v47 = vsub.f32 %v5769_v16, %v11899_v8  ;;  %v6950_v38 = vsub.f32 %v11889_v17, %v15694_v5  ;;  %6449 = vmatmul.f32.gmra.mxu1 %v11410_v53  ;;  %v4622_v5 = vmul.f32 %v11802_v60, %v11815_v61  ;;  %6735 = vmatpush.msra.mxu2 %v11742_v2 }
 0x5b4   : > { %6277 = vmatmul.f32.gmra.mxu3 %v15691_v20  ;;  %v6938_v44 = vsub.f32 %v11862_v30, %v15692_v52  ;;  %v15295_v20 = vand.u32 4294901760, %v11897_v21  ;;  %v3172_v52 = vperm.slane %v10027_v4, 1  ;;  %v4621_v60 = vmul.f32 %v11813_v51, %v11753_v34  ;;  %7074 = vmatpush.msra.mxu0 %v11876_v49 }
 0x5b5   : > { %6934 = vmatpush.msra.mxu3 %v6933_v63  ;;  %v6944_v41 = vsub.f32 %v11876_v49, %v15693_v6  ;;  %v5767_v63 = vld [vmem:[%s15090_s3] sm:$0xff]  ;;  %v6961_v16 = vand.u32 4294901760, %v11921_v47  ;;  %v4615_v6 = vmul.f32 %v11751_v15, %v11592_v7  ;;  %v9267_v61 = vsel %vm2196_vm13, 1.0, %v15686_v42  ;;  %7190 = vmatpush.msra.mxu1 %v11841_v55 }
 0x5b6   : > { %6366 = vmatmul.f32.gmra.mxu0 %v11410_v53  ;;  %v6939_v54 = vand.u32 4294901760, %v6938_v44  ;;  %v6956_v12 = vsub.f32 %v11897_v21, %v15295_v20  ;;  %v11940_v44 = vand.u32 4294901760, %v5768_v56  ;;  %v6951_v53 = vand.u32 4294901760, %v6950_v38  ;;  %6737 = vmatpush.msra.mxu2 %v11775_v48 }
 0x5b7   : > { %9672 = vset.pattern.permute.xlu2 %v10062_v25  ;;  %v6945_v33 = vand.u32 4294901760, %v6944_v41  ;;  %v11947_v14 = vand.u32 4294901760, %v5767_v63  ;;  %v4878_v41 = vadd.f32 %v4618_v26, %v4617_v1  ;;  %v9266_v20 = vsel %vm2195_vm11, 1.0, %v15686_v42  ;;  %7077 = vmatpush.msra.mxu0 %v11889_v17 }
 0x5b8   : > { %6940 = vmatpush.msra.mxu3 %v6939_v54  ;;  %v6962_v7 = vsub.f32 %v11921_v47, %v6961_v16  ;;  %v11959_v15 = vsub.f32 %v5768_v56, %v11940_v44  ;;  %v6957_v1 = vand.u32 4294901760, %v6956_v12  ;;  %v4885_v54 = vadd.f32 %v4620_v39, %v4619_v0  ;;  %7192 = vmatpush.msra.mxu1 %v11851_v36 }
 0x5b9   : > { %9673 = vset.pattern.permute.xlu1 %v10069_v28  ;;  %v11968_v26 = vsub.f32 %v5767_v63, %v11947_v14  ;;  %v9265_v34 = vsel %vm2194_vm12, 1.0, %v15686_v42  ;;  %v3041_v51 = vpop.permute.xlu0 %3040  ;;  %v4871_v38 = vadd.f32 %v4616_v19, %v4615_v6  ;;  %v4892_v63 = vadd.f32 %v4622_v5, %v4621_v60  ;;  %6739 = vmatpush.msra.mxu2 %v11841_v55 }
 0x5ba   : > { %v3022_v3 = vpop.permute.xlu1 %3021  ;;  %6946 = vmatpush.msra.mxu3 %v6945_v33  ;;  %v3028_v56 = vpop.permute.xlu2 %3027  ;;  %v6967_v46 = vand.u32 4294901760, %v11959_v15  ;;  %v4879_v0 = vrot.slane %v4878_v41, 4  ;;  %v4624_v39 = vmul.f32 %v9263_v18, %v11869_v62  ;;  %6163 = vmatmul.f32.gmra.mxu2 %v11423_v40  ;;  %v6963_v12 = vand.u32 4294901760, %v6962_v7 }
 0x5bb   : > { %v4625_v33 = vmul.f32 %v11837_v24, %v3022_v3  ;;  %v6973_v11 = vand.u32 4294901760, %v11968_v26  ;;  %v4626_v24 = vmul.f32 %v9265_v34, %v3028_v56  ;;  %v3185_v6 = vperm.slane %v10027_v4, 2  ;;  %7080 = vmatpush.msra.mxu0 %v11897_v21  ;;  %7194 = vmatpush.msra.mxu1 %v11864_v31 }
 0x5bc   : > { %6952 = vmatpush.msra.mxu3 %v6951_v53  ;;  %v6968_v19 = vsub.f32 %v11959_v15, %v6967_v46  ;;  %v4623_v40 = vmul.f32 %v11831_v27, %v10626_v37  ;;  %v4628_v5 = vmul.f32 %v9267_v61, %v3041_v51  ;;  %v4886_v53 = vrot.slane %v4885_v54, 4  ;;  %v12005_v61 = vpop.f32.mrf.mxu1  ;;  %6453 = vmatmul.f32.gmra.mxu1 %v11443_v59 }
 0x5bd   : > { %v6974_v62 = vsub.f32 %v11968_v26, %v6973_v11  ;;  %v4872_v7 = vrot.slane %v4871_v38, 4  ;;  %v4893_v60 = vrot.slane %v4892_v63, 4  ;;  %v4906_v18 = vadd.f32 %v4626_v24, %v4625_v33  ;;  %15697 = vst [vmem:[#allocation315_spill] sm:$0xff] %v12005_v61  ;;  %6741 = vmatpush.msra.mxu2 %v11851_v36  ;;  %7083 = vmatpush.msra.mxu0 %v11921_v47  ;;  %v15726_v47 = vld [vmem:[#allocation57_spill] sm:$0xff] }
 0x5be   : > { %6958 = vmatpush.msra.mxu3 %v6957_v1  ;;  %v6969_v1 = vand.u32 4294901760, %v6968_v19  ;;  %v4899_v56 = vadd.f32 %v4624_v39, %v4623_v40  ;;  %v4880_v37 = vadd.f32 %v4879_v0, %v4878_v41  ;;  %v4887_v51 = vadd.f32 %v4886_v53, %v4885_v54  ;;  %7196 = vmatpush.msra.mxu1 %v11878_v43 }
 0x5bf   : > { %3177 = vperm.xlu2 %9672, %v3172_v52   ;;  %v6975_v27 = vand.u32 4294901760, %v6974_v62  ;;  %v4873_v33 = vadd.f32 %v4872_v7, %v4871_v38  ;;  %6743 = vmatpush.msra.mxu2 %v11864_v31  ;;  %v9268_v19 = vsel %vm2197_vm15, 1.0, %v15686_v42  ;;  %v9269_v7 = vsel %vm2198_vm1, 1.0, %v15686_v42 }
 0x5c0   : > { %6964 = vmatpush.msra.mxu3 %v6963_v12  ;;  %v4900_v39 = vrot.slane %v4899_v56, 4  ;;  %v4881_v41 = vrot.slane %v4880_v37, 2  ;;  %7086 = vmatpush.msra.mxu0 %v11959_v15  ;;  %vm6595_vm7 = vcmask 1046534   ;;  %vm15297_vm8 = vcmask 1047559   ;;  %v15730_v15 = vld [vmem:[#allocation56_spill] sm:$0xff] }
 0x5c1   : > { %3183 = vperm.xlu1 %9673, %v3172_v52   ;;  %v15695_v52 = vand.u32 4294901760, %v11452_v22  ;;  %7198 = vmatpush.msra.mxu1 %v11899_v8  ;;  %v4874_v54 = vrot.slane %v4873_v33, 2  ;;  %vm2203_vm11 = vcmp.eq.s32.totalorder %v15726_v47, %v11637_v45  ;;  %vm2201_vm15 = vcmp.eq.s32.totalorder %v15730_v15, %v11637_v45 }
 0x5c2   : > { %v3035_v23 = vpop.permute.xlu1 %3034  ;;  %6970 = vmatpush.msra.mxu3 %v6969_v1  ;;  %6168 = vmatmul.f32.gmra.mxu2 %v11452_v22  ;;  %v4901_v0 = vadd.f32 %v4900_v39, %v4899_v56  ;;  %v4882_v24 = vadd.f32 %v4881_v41, %v4880_v37  ;;  %v3048_v22 = vpop.permute.xlu2 %3047 }
 0x5c3   : > { %6283 = vmatmul.f32.gmra.mxu3 %v15695_v52  ;;  %v4627_v3 = vmul.f32 %v9266_v20, %v3035_v23  ;;  %v11999_v20 = vpop.f32.mrf.mxu0  ;;  %6370 = vmatmul.f32.gmra.mxu0 %v11443_v59  ;;  %v4894_v23 = vadd.f32 %v4893_v60, %v4892_v63  ;;  %v4907_v52 = vrot.slane %v4906_v18, 4  ;;  %v4888_v59 = vrot.slane %v4887_v51, 2 }
 0x5c4   : > { %15696 = vst [vmem:[#allocation314_spill] sm:$0xff] %v11999_v20  ;;  %6976 = vmatpush.msra.mxu3 %v6975_v27  ;;  %6745 = vmatpush.msra.mxu2 %v11878_v43  ;;  %v4629_v62 = vmul.f32 %v9268_v19, %v3048_v22 }
 0x5c5   : > { %v4913_v34 = vadd.f32 %v4628_v5, %v4627_v3  ;;  %v4895_v38 = vrot.slane %v4894_v23, 2  ;;  %v4908_v63 = vadd.f32 %v4907_v52, %v4906_v18  ;;  %7089 = vmatpush.msra.mxu0 %v11968_v26  ;;  %7200 = vmatpush.msra.mxu1 %v11940_v44  ;;  %v4889_v3 = vadd.f32 %v4888_v59, %v4887_v51  ;;  %v15701_v59 = vld [vmem:[#allocation306_spill] sm:$0xff]  ;;  %v15731_v26 = vld [vmem:[#allocation59_spill] sm:$0xff] }
 0x5c6   : > { %7430 = vmatpush.msrb.mxu3 %v11604_v13  ;;  %6747 = vmatpush.msra.mxu2 %v11899_v8  ;;  %v4875_v13 = vadd.f32 %v4874_v54, %v4873_v33  ;;  %v4902_v5 = vrot.slane %v4901_v0, 2  ;;  %v4883_v18 = vrot.slane %v4882_v24, 1  ;;  %v15698_v33 = vand.u32 4294901760, %v11619_v29 }
 0x5c7   : > { %3190 = vperm.xlu2 %9672, %v3185_v6   ;;  %v4914_v12 = vrot.slane %v4913_v34, 4  ;;  %v4909_v40 = vrot.slane %v4908_v63, 2  ;;  %7202 = vmatpush.msra.mxu1 %v11947_v14  ;;  %v4890_v56 = vrot.slane %v4889_v3, 1  ;;  %vm2204_vm1 = vcmp.eq.s32.totalorder %v15731_v26, %v11637_v45 }
 0x5c8   : > { %7432 = vmatpush.msrb.mxu3 %v11621_v9  ;;  %6749 = vmatpush.msra.mxu2 %v11940_v44  ;;  %v4876_v9 = vrot.slane %v4875_v13, 1  ;;  %v4903_v57 = vadd.f32 %v4902_v5, %v4901_v0  ;;  %v4884_v52 = vadd.f32 %v4883_v18, %v4882_v24  ;;  %v15704_v24 = vld [vmem:[#allocation307_spill] sm:$0xff] }
 0x5c9   : > { %3196 = vperm.xlu1 %9673, %v3185_v6   ;;  %v4915_v50 = vadd.f32 %v4914_v12, %v4913_v34  ;;  %v4896_v6 = vadd.f32 %v4895_v38, %v4894_v23  ;;  %v3211_v34 = vperm.slane %v10027_v4, 4  ;;  %v4910_v27 = vadd.f32 %v4909_v40, %v4908_v63  ;;  %v15702_v63 = vld [vmem:[#allocation304_spill] sm:$0xff] }
 0x5ca   : > { %7434 = vmatpush.msrb.mxu3 %v11633_v35  ;;  %6751 = vmatpush.msra.mxu2 %v11947_v14  ;;  %v15699_v35 = vperm.slane %v10027_v4, 3  ;;  %v15700_v12 = vand.u32 4294901760, %v11630_v58  ;;  %v4891_v41 = vadd.f32 %v4890_v56, %v4889_v3  ;;  %v4877_v29 = vadd.f32 %v4876_v9, %v4875_v13  ;;  %v12054_v5 = vpop.permute.xlu2 %3060  ;;  %v15709_v9 = vld [vmem:[#allocation310_spill] sm:$0xff] }
 0x5cb   : > { %v4916_v53 = vrot.slane %v4915_v50, 2  ;;  %v4897_v37 = vrot.slane %v4896_v6, 1  ;;  %v4911_v38 = vrot.slane %v4910_v27, 1  ;;  %v15703_v0 = vand.u32 4294901760, %v15702_v63 }
 0x5cc   : > { %7303 = vmatpush.msrb.mxu2 %v15698_v33  ;;  %7436 = vmatpush.msrb.mxu3 %v11655_v10  ;;  %v4904_v19 = vrot.slane %v4903_v57, 1  ;;  %v6586_v58 = vsel %vm6585_vm2, %v4884_v52, %v4877_v29  ;;  %v15714_v52 = vld [vmem:[#allocation312_spill] sm:$0xff]  ;;  %v3237_v63 = vperm.slane %v10027_v4, 6 }
 0x5cd   : > { %v4917_v23 = vadd.f32 %v4916_v53, %v4915_v50  ;;  %v4898_v54 = vadd.f32 %v4897_v37, %v4896_v6  ;;  %v6588_v40 = vsel %vm6587_vm3, %v4891_v41, %v6586_v58  ;;  %v4912_v6 = vadd.f32 %v4911_v38, %v4910_v27  ;;  %v12090_v38 = vpop.f32.mrf.mxu1 }
 0x5ce   : > { %7307 = vmatpush.msrb.mxu2 %v15700_v12  ;;  %7438 = vmatpush.msrb.mxu3 %v15701_v59  ;;  %v4905_v18 = vadd.f32 %v4904_v19, %v4903_v57  ;;  %v15711_v37 = vperm.slane %v10027_v4, 5  ;;  %v15712_v57 = vld [vmem:[#allocation311_spill] sm:$0xff]  ;;  %v15716_v12 = vld [vmem:[#allocation313_spill] sm:$0xff]  ;;  %15720 = vst [vmem:[#allocation304_spill] sm:$0xff] %v12090_v38  ;;  %v15722_v19 = vand.u32 4294901760, %v11889_v17  ;;  %v9274_v58 = vsel %vm2203_vm11, 1.0, %v15686_v42 }
 0x5cf   : > { %9674 = vset.pattern.permute.xlu2 %v10069_v28  ;;  %v4918_v50 = vrot.slane %v4917_v23, 1  ;;  %v6590_v13 = vsel %vm6589_vm4, %v4898_v54, %v6588_v40  ;;  %v15717_v41 = vand.u32 4294901760, %v15716_v12  ;;  %v15719_v54 = vand.u32 4294901760, %v11862_v30  ;;  %v15737_v12 = vld [vmem:[#allocation65_spill] sm:$0xff] }
 0x5d0   : > { %7311 = vmatpush.msrb.mxu2 %v15703_v0  ;;  %7440 = vmatpush.msrb.mxu3 %v15704_v24  ;;  %v6592_v27 = vsel %vm6591_vm5, %v4905_v18, %v6590_v13 }
 0x5d1   : > { %9675 = vset.pattern.permute.xlu1 %v10062_v25  ;;  %v6594_v33 = vsel %vm6593_vm6, %v4912_v6, %v6592_v27 }
 0x5d2   : > { %v3054_v60 = vpop.permute.xlu1 %3053  ;;  %7442 = vmatpush.msrb.mxu3 %v11735_v32  ;;  %v15710_v32 = vand.u32 4294901760, %v15709_v9 }
 0x5d3   : > { %v4630_v1 = vmul.f32 %v9269_v7, %v3054_v60  ;;  %v15707_v7 = vld [vmem:[#allocation309_spill] sm:$0xff] }
 0x5d4   : > { %v15708_v60 = vand.u32 4294901760, %v15707_v7  ;;  %7444 = vmatpush.msrb.mxu3 %v11742_v2  ;;  %v9275_v7 = vsel %vm2204_vm1, 1.0, %v15686_v42 }
 0x5d5   : > { %v4920_v51 = vadd.f32 %v4630_v1, %v4629_v62  ;;  %v15705_v62 = vld [vmem:[#allocation305_spill] sm:$0xff]  ;;  %v4919_v1 = vadd.f32 %v4918_v50, %v4917_v23  ;;  %v15713_v23 = vand.u32 4294901760, %v15712_v57  ;;  %v15723_v50 = vand.u32 4294901760, %v11897_v21 }
 0x5d6   : > { %v15706_v3 = vand.u32 4294901760, %v15705_v62  ;;  %7446 = vmatpush.msrb.mxu3 %v11775_v48  ;;  %v12076_v48 = vpop.permute.xlu2 %3079  ;;  %v15725_v21 = vld [vmem:[#allocation53_spill] sm:$0xff]  ;;  %v15733_v62 = vld [vmem:[#allocation62_spill] sm:$0xff] }
 0x5d7   : > { %v4921_v39 = vrot.slane %v4920_v51, 4  ;;  %3209 = vperm.xlu2 %9674, %v15699_v35   ;;  %v6596_v2 = vsel %vm6595_vm7, %v4919_v1, %v6594_v33  ;;  %vm2199_vm10 = vcmp.eq.s32.totalorder %v15725_v21, %v11637_v45  ;;  %v15734_v1 = vld [vmem:[#allocation66_spill] sm:$0xff] }
 0x5d8   : > { %7315 = vmatpush.msrb.mxu2 %v15706_v3  ;;  %7448 = vmatpush.msrb.mxu3 %v11841_v55  ;;  %v12084_v55 = vpop.f32.mrf.mxu0 }
 0x5d9   : > { %3216 = vperm.xlu1 %9675, %v3211_v34   ;;  %v4922_v10 = vadd.f32 %v4921_v39, %v4920_v51  ;;  %v15715_v39 = vand.u32 4294901760, %v15714_v52  ;;  %15718 = vst [vmem:[#allocation306_spill] sm:$0xff] %v12084_v55 }
 0x5da   : > { %7319 = vmatpush.msrb.mxu2 %v15708_v60  ;;  %7450 = vmatpush.msrb.mxu3 %v11851_v36  ;;  %v3067_v29 = vpop.permute.xlu1 %3066 }
 0x5db   : > { %v4923_v22 = vrot.slane %v4922_v10, 2 }
 0x5dc   : > { %7323 = vmatpush.msrb.mxu2 %v15710_v32  ;;  %7452 = vmatpush.msrb.mxu3 %v11864_v31  ;;  %v15721_v31 = vand.u32 4294901760, %v11876_v49  ;;  %v3250_v49 = vperm.slane %v10027_v4, 7  ;;  %v15727_v4 = vld [vmem:[#allocation60_spill] sm:$0xff] }
 0x5dd   : > { %v4924_v53 = vadd.f32 %v4923_v22, %v4922_v10  ;;  %vm2205_vm12 = vcmp.eq.s32.totalorder %v15727_v4, %v11637_v45 }
 0x5de   : > { %7327 = vmatpush.msrb.mxu2 %v15713_v23  ;;  %7454 = vmatpush.msrb.mxu3 %v11878_v43  ;;  %v3093_v30 = vpop.permute.xlu2 %3092  ;;  %v9276_v13 = vsel %vm2205_vm12, 1.0, %v15686_v42 }
 0x5df   : > { %v4925_v56 = vrot.slane %v4924_v53, 1  ;;  %3222 = vperm.xlu2 %9674, %v3211_v34  }
 0x5e0   : > { %7331 = vmatpush.msrb.mxu2 %v15715_v39  ;;  %7456 = vmatpush.msrb.mxu3 %v11899_v8  ;;  %v15724_v8 = vld [vmem:[#allocation54_spill] sm:$0xff] }
 0x5e1   : > { %3229 = vperm.xlu1 %9675, %v15711_v37   ;;  %v4926_v51 = vadd.f32 %v4925_v56, %v4924_v53  ;;  %vm2200_vm9 = vcmp.eq.s32.totalorder %v15724_v8, %v11637_v45  ;;  %v9272_v53 = vsel %vm2201_vm15, 1.0, %v15686_v42  ;;  %v3106_v56 = vpop.permute.xlu0 %3105  ;;  %v15735_v37 = vld [vmem:[#allocation9_spill] sm:$0xff] }
 0x5e2   : > { %7335 = vmatpush.msrb.mxu2 %v15717_v41  ;;  %7458 = vmatpush.msrb.mxu3 %v11940_v44  ;;  %v15729_v44 = vld [vmem:[#allocation27_spill] sm:$0xff]  ;;  %v9271_v24 = vsel %vm2200_vm9, 1.0, %v15686_v42  ;;  %vm2210_vm9 = vcmp.eq.s32.totalorder %v15734_v1, %v11637_v45  ;;  %v3276_v27 = vperm.slane %v15735_v37, 1 }
 0x5e3   : > { %v6598_v34 = vsel %vm15297_vm8, %v4926_v51, %v6596_v2  ;;  %vm2207_vm14 = vcmp.eq.s32.totalorder %v15729_v44, %v11637_v45  ;;  %vm2206_vm8 = vcmp.eq.s32.totalorder %v15733_v62, %v11637_v45  ;;  %v4632_v40 = vmul.f32 %v9271_v24, %v3067_v29  ;;  %v15736_v51 = vld [vmem:[#allocation172_spill] sm:$0xff]  ;;  %v15738_v41 = vld [vmem:[#allocation83_spill] sm:$0xff]  ;;  %v15741_v44 = vld [vmem:[#allocation86_spill] sm:$0xff] }
 0x5e4   : > { %v12073_v35 = vand.u32 4294901760, %v6598_v34  ;;  %7339 = vmatpush.msrb.mxu2 %v15719_v54  ;;  %7460 = vmatpush.msrb.mxu3 %v11947_v14  ;;  %v9278_v60 = vsel %vm2207_vm14, 1.0, %v15686_v42  ;;  %v9277_v33 = vsel %vm2206_vm8, 1.0, %v15686_v42  ;;  %v4636_v2 = vmul.f32 %v9275_v7, %v3093_v30 }
 0x5e5   : > { %v15739_v29 = vperm.slane %v15735_v37, 0  ;;  %v15742_v62 = vperm.slane %v15735_v37, 2 }
 0x5e6   : > { %v6753_v59 = vsub.f32 %v6598_v34, %v12073_v35  ;;  %6978 = vmatmul.f32.vlgmr.msra.gmra.mxu3 %v12073_v35  ;;  %7343 = vmatpush.msrb.mxu2 %v15721_v31  ;;  %v9281_v31 = vsel %vm2210_vm9, 1.0, %v15686_v42 }
 0x5e7   : > { %9676 = vset.pattern.permute.xlu2 %v10062_v25 }
 0x5e8   : > { %7092 = vmatmul.f32.vlgmr.msra.gmra.mxu0 %v6753_v59  ;;  %v6754_v36 = vand.u32 4294901760, %v6753_v59  ;;  %7347 = vmatpush.msrb.mxu2 %v15722_v19 }
 0x5e9   : > { %9677 = vset.pattern.permute.xlu1 %v10069_v28  ;;  %v3113_v17 = vpop.permute.xlu2 %3112 }
 0x5ea   : > { %7206 = vmatmul.f32.vlgmr.msra.gmra.mxu1 %v6754_v36  ;;  %v6755_v10 = vsub.f32 %v6753_v59, %v6754_v36  ;;  %v3087_v43 = vpop.permute.xlu1 %3086  ;;  %7351 = vmatpush.msrb.mxu2 %v15723_v50  ;;  %v4639_v52 = vmul.f32 %v9278_v60, %v3113_v17  ;;  %v4638_v59 = vmul.f32 %v9277_v33, %v3106_v56 }
 0x5eb   : > { %v4635_v32 = vmul.f32 %v9274_v58, %v3087_v43 }
 0x5ec   : > { %v6756_v0 = vand.u32 4294901760, %v6755_v10  ;;  %7355 = vmatpush.msrb.mxu2 %v6961_v16  ;;  %v15728_v16 = vld [vmem:[#allocation161_spill] sm:$0xff] }
 0x5ed   : > { %vm2202_vm13 = vcmp.eq.s32.totalorder %v15728_v16, %v11637_v45  ;;  %v4941_v36 = vadd.f32 %v4636_v2, %v4635_v32  ;;  %v15744_v32 = vld [vmem:[#allocation71_spill] sm:$0xff] }
 0x5ee   : > { %6757 = vmatmul.f32.vlgmr.msra.gmra.mxu2 %v6756_v0  ;;  %v9273_v3 = vsel %vm2202_vm13, 1.0, %v15686_v42  ;;  %v15740_v0 = vld [vmem:[#allocation68_spill] sm:$0xff]  ;;  %vm2214_vm12 = vcmp.eq.s32.totalorder %v15744_v32, %v11637_v45  ;;  %vm15745_vm13 = vcmask 1047559   ;;  %v3341_v32 = vperm.slane %v15735_v37, 6 }
 0x5ef   : > { %3242 = vperm.xlu2 %9676, %v3237_v63   ;;  %7359 = vmatpush.msrb.mxu2 %v6967_v46  ;;  %v15732_v46 = vld [vmem:[#allocation63_spill] sm:$0xff]  ;;  %v4634_v57 = vmul.f32 %v9273_v3, %v12076_v48  ;;  %vm2211_vm8 = vcmp.eq.s32.totalorder %v15740_v0, %v11637_v45 }
 0x5f0   : > { %vm2208_vm0 = vcmp.eq.s32.totalorder %v15732_v46, %v11637_v45  ;;  %v9282_v21 = vsel %vm2211_vm8, 1.0, %v15686_v42 }
 0x5f1   : > { %3248 = vperm.xlu1 %9677, %v3237_v63   ;;  %7363 = vmatpush.msrb.mxu2 %v6973_v11  ;;  %v9270_v11 = vsel %vm2199_vm10, 1.0, %v15686_v42  ;;  %v3126_v22 = vpop.permute.xlu2 %3125  ;;  %v9279_v18 = vsel %vm2208_vm0, 1.0, %v15686_v42  ;;  %vm2212_vm10 = vcmp.eq.s32.totalorder %v15736_v51, %v11637_v45  ;;  %vm2209_vm0 = vcmp.eq.s32.totalorder %v15737_v12, %v11637_v45 }
 0x5f2   : > { %v3100_v14 = vpop.permute.xlu1 %3099  ;;  %v4631_v9 = vmul.f32 %v9270_v11, %v12054_v5  ;;  %v4633_v5 = vmul.f32 %v9272_v53, %v15738_v41  ;;  %v9283_v48 = vsel %vm2212_vm10, 1.0, %v15686_v42  ;;  %v9280_v30 = vsel %vm2209_vm0, 1.0, %v15686_v42 }
 0x5f3   : > { %v4637_v23 = vmul.f32 %v9276_v13, %v3100_v14  ;;  %v4942_v14 = vrot.slane %v4941_v36, 4  ;;  %v4643_v15 = vmul.f32 %v9282_v21, %v15741_v44  ;;  %v3315_v44 = vperm.slane %v15735_v37, 4 }
 0x5f4   : > { %v4927_v34 = vadd.f32 %v4632_v40, %v4631_v9  ;;  %v4934_v54 = vadd.f32 %v4634_v57, %v4633_v5  ;;  %v15743_v9 = vld [vmem:[#allocation69_spill] sm:$0xff] }
 0x5f5   : > { %v4948_v10 = vadd.f32 %v4638_v59, %v4637_v23  ;;  %v4943_v24 = vadd.f32 %v4942_v14, %v4941_v36  ;;  %vm2213_vm11 = vcmp.eq.s32.totalorder %v15743_v9, %v11637_v45  ;;  %v3302_v36 = vperm.slane %v15735_v37, 3 }
 0x5f6   : > { %v4928_v19 = vrot.slane %v4927_v34, 4  ;;  %v4935_v47 = vrot.slane %v4934_v54, 4  ;;  %v9284_v12 = vsel %vm2213_vm11, 1.0, %v15686_v42 }
 0x5f7   : > { %3255 = vperm.xlu2 %9676, %v3250_v49   ;;  %v4949_v4 = vrot.slane %v4948_v10, 4  ;;  %v4944_v53 = vrot.slane %v4943_v24, 2 }
 0x5f8   : > { %v4929_v26 = vadd.f32 %v4928_v19, %v4927_v34 }
 0x5f9   : > { %3261 = vperm.xlu1 %9677, %v3250_v49   ;;  %v4641_v49 = vmul.f32 %v9280_v30, %v3126_v22  ;;  %v4936_v22 = vadd.f32 %v4935_v47, %v4934_v54  ;;  %v4950_v3 = vadd.f32 %v4949_v4, %v4948_v10  ;;  %v4945_v51 = vadd.f32 %v4944_v53, %v4943_v24 }
 0x5fa   : > { %v4930_v40 = vrot.slane %v4929_v26, 2 }
 0x5fb   : > { %v4937_v60 = vrot.slane %v4936_v22, 2  ;;  %v4946_v54 = vrot.slane %v4945_v51, 1 }
 0x5fc   : > { %v4931_v1 = vadd.f32 %v4930_v40, %v4929_v26 }
 0x5fd   : > { %v4938_v23 = vadd.f32 %v4937_v60, %v4936_v22 }
 0x5fe   : > { %v4932_v34 = vrot.slane %v4931_v1, 1 }
 0x5ff   : > { %9678 = vset.pattern.permute.xlu2 %v10069_v28 }
 0x600   : > { %v4933_v19 = vadd.f32 %v4932_v34, %v4931_v1  ;;  %v15750_v34 = vld [vmem:[#allocation6_spill] sm:$0xff] }
 0x601   : > { %9679 = vset.pattern.permute.xlu1 %v10062_v25  ;;  %v3145_v63 = vpop.permute.xlu2 %3144 }
 0x602   : > { %v3119_v6 = vpop.permute.xlu1 %3118  ;;  %v4644_v8 = vmul.f32 %v9283_v48, %v3145_v63  ;;  %v4939_v48 = vrot.slane %v4938_v23, 1 }
 0x603   : > { %v4640_v39 = vmul.f32 %v9279_v18, %v3119_v6  ;;  %v4951_v18 = vrot.slane %v4950_v3, 2 }
 0x604   : > { %v4969_v58 = vadd.f32 %v4644_v8, %v4643_v15 }
 0x605   : > { %v4955_v43 = vadd.f32 %v4640_v39, %v4639_v52  ;;  %v4952_v2 = vadd.f32 %v4951_v18, %v4950_v3  ;;  %v9285_v39 = vsel %vm2214_vm12, 1.0, %v15686_v42  ;;  %v12196_v18 = vpop.f32.mrf.mxu1 }
 0x606   : > { %v4970_v7 = vrot.slane %v4969_v58, 4  ;;  %15747 = vst [vmem:[#allocation305_spill] sm:$0xff] %v12196_v18 }
 0x607   : > { %3274 = vperm.xlu2 %9678, %v15739_v29   ;;  %v4956_v46 = vrot.slane %v4955_v43, 4  ;;  %v4953_v63 = vrot.slane %v4952_v2, 1 }
 0x608   : > { %v4971_v33 = vadd.f32 %v4970_v7, %v4969_v58  ;;  %v12193_v7 = vpop.f32.mrf.mxu0 }
 0x609   : > { %3281 = vperm.xlu1 %9679, %v3276_v27   ;;  %v4957_v13 = vadd.f32 %v4956_v46, %v4955_v43  ;;  %v3158_v57 = vpop.permute.xlu2 %3157  ;;  %v4954_v14 = vadd.f32 %v4953_v63, %v4952_v2  ;;  %15746 = vst [vmem:[#allocation307_spill] sm:$0xff] %v12193_v7  ;;  %v15756_v63 = vld [vmem:[#allocation76_spill] sm:$0xff] }
 0x60a   : > { %v3132_v50 = vpop.permute.xlu1 %3131  ;;  %v4646_v5 = vmul.f32 %v9285_v39, %v3158_v57  ;;  %v4972_v10 = vrot.slane %v4971_v33, 2  ;;  %v15749_v57 = vperm.slane %v15735_v37, 7  ;;  %v15751_v39 = vld [vmem:[#allocation28_spill] sm:$0xff]  ;;  %vm2219_vm0 = vcmp.eq.s32.totalorder %v15756_v63, %v11637_v45 }
 0x60b   : > { %v4642_v17 = vmul.f32 %v9281_v31, %v3132_v50  ;;  %v4958_v56 = vrot.slane %v4957_v13, 2  ;;  %v4947_v50 = vadd.f32 %v4946_v54, %v4945_v51  ;;  %vm2217_vm14 = vcmp.eq.s32.totalorder %v15751_v39, %v11637_v45  ;;  %v15754_v54 = vld [vmem:[#allocation78_spill] sm:$0xff] }
 0x60c   : > { %vm2220_vm9 = vcmp.eq.s32.totalorder %v15754_v54, %v11637_v45  ;;  %v7532_v54 = vld [vmem:[%s10968_s21 + $0x30] sm:$0xff] }
 0x60d   : > { %v4962_v16 = vadd.f32 %v4642_v17, %v4641_v49  ;;  %v4959_v52 = vadd.f32 %v4958_v56, %v4957_v13  ;;  %v4973_v49 = vadd.f32 %v4972_v10, %v4971_v33  ;;  %v4940_v17 = vadd.f32 %v4939_v48, %v4938_v23  ;;  %v15755_v48 = vld [vmem:[#allocation74_spill] sm:$0xff] }
 0x60e   : > { %vm2216_vm10 = vcmp.eq.s32.totalorder %v15755_v48, %v11637_v45  ;;  %v7548_v48 = vcvt.s32.f32 %v7532_v54 }
 0x60f   : > { %v4963_v11 = vrot.slane %v4962_v16, 4  ;;  %3287 = vperm.xlu2 %9678, %v3276_v27   ;;  %v4960_v0 = vrot.slane %v4959_v52, 1  ;;  %v6599_v47 = vsel %vm6585_vm2, %v4940_v17, %v4933_v19  ;;  %v4974_v26 = vrot.slane %v4973_v49, 1  ;;  %v15757_v19 = vld [vmem:[#allocation237_spill] sm:$0xff] }
 0x610   : > { %v6600_v15 = vsel %vm6587_vm3, %v4947_v50, %v6599_v47  ;;  %vm2222_vm8 = vcmp.eq.s32.totalorder %v15757_v19, %v11637_v45  ;;  %v3380_v50 = vperm.slane %v15750_v34, 1  ;;  %v9287_v47 = vsel %vm2216_vm10, 1.0, %v15686_v42 }
 0x611   : > { %3294 = vperm.xlu1 %9679, %v15742_v62   ;;  %v4964_v6 = vadd.f32 %v4963_v11, %v4962_v16  ;;  %v4961_v21 = vadd.f32 %v4960_v0, %v4959_v52  ;;  %v6601_v46 = vsel %vm6589_vm4, %v4954_v14, %v6600_v15  ;;  %v4975_v22 = vadd.f32 %v4974_v26, %v4973_v49  ;;  %v15758_v49 = vld [vmem:[#allocation80_spill] sm:$0xff] }
 0x612   : > { %v3367_v52 = vperm.slane %v15750_v34, 0  ;;  %vm2223_vm11 = vcmp.eq.s32.totalorder %v15758_v49, %v11637_v45  ;;  %v9293_v15 = vsel %vm2222_vm8, 1.0, %v15686_v42  ;;  %vm15767_vm10 = vcmask 130048  }
 0x613   : > { %v4965_v27 = vrot.slane %v4964_v6, 2  ;;  %v6602_v24 = vsel %vm6591_vm5, %v4961_v21, %v6601_v46  ;;  %v15760_v21 = vld [vmem:[#allocation81_spill] sm:$0xff] }
 0x615   : > { %v4966_v59 = vadd.f32 %v4965_v27, %v4964_v6  ;;  %v15748_v27 = vperm.slane %v15735_v37, 5 }
 0x617   : > { %9680 = vset.pattern.permute.xlu2 %v10062_v25  ;;  %v4967_v30 = vrot.slane %v4966_v59, 1 }
 0x619   : > { %9681 = vset.pattern.permute.xlu1 %v10069_v28  ;;  %v4968_v4 = vadd.f32 %v4967_v30, %v4966_v59  ;;  %v3178_v51 = vpop.permute.xlu2 %3177  ;;  %v3171_v59 = vpop.permute.xlu0 %3170 }
 0x61b   : > { %v3152_v41 = vpop.permute.xlu1 %3151  ;;  %v6603_v62 = vsel %vm6593_vm6, %v4968_v4, %v6602_v24  ;;  %v9290_v4 = vsel %vm2219_vm0, 1.0, %v15686_v42  ;;  %v15761_v24 = vld [vmem:[#allocation79_spill] sm:$0xff] }
 0x61c   : > { %v4645_v29 = vmul.f32 %v9284_v12, %v3152_v41  ;;  %v6604_v40 = vsel %vm6595_vm7, %v4975_v22, %v6603_v62  ;;  %v9294_v62 = vsel %vm2223_vm11, 1.0, %v15686_v42  ;;  %vm15772_vm11 = vmmov %vm15767_vm10 }
 0x61e   : > { %v4976_v31 = vadd.f32 %v4646_v5, %v4645_v29  ;;  %v15752_v5 = vld [vmem:[#allocation75_spill] sm:$0xff]  ;;  %v9288_v29 = vsel %vm2217_vm14, 1.0, %v15686_v42  ;;  %vm2221_vm14 = vcmp.eq.s32.totalorder %v15761_v24, %v11637_v45 }
 0x61f   : > { %3307 = vperm.xlu2 %9680, %v3302_v36   ;;  %vm2218_vm15 = vcmp.eq.s32.totalorder %v15752_v5, %v11637_v45 }
 0x620   : > { %v4977_v43 = vrot.slane %v4976_v31, 4  ;;  %v9289_v10 = vsel %vm2218_vm15, 1.0, %v15686_v42 }
 0x621   : > { %3313 = vperm.xlu1 %9681, %v3302_v36   ;;  %v3191_v23 = vpop.permute.xlu2 %3190  ;;  %v15753_v36 = vld [vmem:[#allocation72_spill] sm:$0xff]  ;;  %v3236_v22 = vpop.permute.xlu0 %3235 }
 0x622   : > { %v4978_v8 = vadd.f32 %v4977_v43, %v4976_v31  ;;  %vm2215_vm1 = vcmp.eq.s32.totalorder %v15753_v36, %v11637_v45  ;;  %v4649_v31 = vmul.f32 %v9288_v29, %v3178_v51  ;;  %v9291_v43 = vsel %vm2220_vm9, 1.0, %v15686_v42 }
 0x623   : > { %v3165_v1 = vpop.permute.xlu1 %3164  ;;  %v9286_v30 = vsel %vm2215_vm1, 1.0, %v15686_v42 }
 0x624   : > { %v4979_v16 = vrot.slane %v4978_v8, 2  ;;  %v4647_v17 = vmul.f32 %v9286_v30, %v3165_v1 }
 0x626   : > { %v4980_v11 = vadd.f32 %v4979_v16, %v4978_v8  ;;  %v15759_v8 = vld [vmem:[#allocation82_spill] sm:$0xff]  ;;  %v4648_v16 = vmul.f32 %v9287_v47, %v3171_v59 }
 0x627   : > { %3320 = vperm.xlu2 %9680, %v3315_v44   ;;  %vm2225_vm12 = vcmp.eq.s32.totalorder %v15759_v8, %v11637_v45 }
 0x628   : > { %v4981_v58 = vrot.slane %v4980_v11, 1 }
 0x629   : > { %3326 = vperm.xlu1 %9681, %v3315_v44   ;;  %v4651_v44 = vmul.f32 %v9290_v4, %v3191_v23 }
 0x62a   : > { %v4982_v3 = vadd.f32 %v4981_v58, %v4980_v11  ;;  %v15762_v58 = vld [vmem:[#allocation84_spill] sm:$0xff] }
 0x62b   : > { %vm2226_vm15 = vcmp.eq.s32.totalorder %v15762_v58, %v11637_v45  ;;  %v7535_v58 = vld [vmem:[%s10968_s21 + $0x48] sm:$0xff] }
 0x62c   : > { %v6605_v13 = vsel %vm15745_vm13, %v4982_v3, %v6604_v40  ;;  %vm2224_vm13 = vcmp.eq.s32.totalorder %v15760_v21, %v11637_v45  ;;  %v4983_v3 = vadd.f32 %v4648_v16, %v4647_v17 }
 0x62d   : > { %v12188_v6 = vand.u32 4294901760, %v6605_v13  ;;  %v9295_v1 = vsel %vm2224_vm13, 1.0, %v15686_v42  ;;  %vm15777_vm13 = vcmask 1047559  }
 0x62f   : > { %6982 = vmatmul.f32.gmra.mxu3 %v12188_v6  ;;  %v6761_v53 = vsub.f32 %v6605_v13, %v12188_v6  ;;  %9682 = vset.pattern.permute.xlu2 %v10069_v28 }
 0x631   : > { %9683 = vset.pattern.permute.xlu1 %v10062_v25  ;;  %7097 = vmatmul.f32.gmra.mxu0 %v6761_v53  ;;  %v6762_v60 = vand.u32 4294901760, %v6761_v53  ;;  %v3210_v12 = vpop.permute.xlu2 %3209 }
 0x633   : > { %7212 = vmatmul.f32.gmra.mxu1 %v6762_v60  ;;  %v6763_v56 = vsub.f32 %v6761_v53, %v6762_v60  ;;  %v3184_v33 = vpop.permute.xlu1 %3183  ;;  %v9296_v53 = vsel %vm2225_vm12, 1.0, %v15686_v42  ;;  %v4654_v60 = vmul.f32 %v9293_v15, %v3210_v12  ;;  %v3406_v15 = vperm.slane %v15750_v34, 3  ;;  %vm15775_vm12 = vmmov %vm15767_vm10 }
 0x634   : > { %v4650_v0 = vmul.f32 %v9289_v10, %v3184_v33  ;;  %v15763_v33 = vld [vmem:[#allocation29_spill] sm:$0xff] }
 0x635   : > { %v6764_v9 = vand.u32 4294901760, %v6763_v56  ;;  %vm2227_vm1 = vcmp.eq.s32.totalorder %v15763_v33, %v11637_v45  ;;  %v15765_v10 = vld [vmem:[#allocation85_spill] sm:$0xff] }
 0x636   : > { %v4990_v26 = vadd.f32 %v4650_v0, %v4649_v31  ;;  %v9298_v29 = vsel %vm2227_vm1, 1.0, %v15686_v42  ;;  %vm2228_vm9 = vcmp.eq.s32.totalorder %v15765_v10, %v11637_v45 }
 0x637   : > { %6765 = vmatmul.f32.gmra.mxu2 %v6764_v9  ;;  %3339 = vperm.xlu2 %9682, %v15748_v27   ;;  %v9292_v9 = vsel %vm2221_vm14, 1.0, %v15686_v42  ;;  %vm15778_vm14 = vmmov %vm15767_vm10 }
 0x638   : > { %v4991_v27 = vrot.slane %v4990_v26, 4 }
 0x639   : > { %3346 = vperm.xlu1 %9683, %v3341_v32   ;;  %v3223_v46 = vpop.permute.xlu2 %3222 }
 0x63a   : > { %v4656_v51 = vmul.f32 %v9295_v1, %v3223_v46  ;;  %v4992_v59 = vadd.f32 %v4991_v27, %v4990_v26 }
 0x63b   : > { %v3197_v2 = vpop.permute.xlu1 %3196 }
 0x63c   : > { %v4652_v14 = vmul.f32 %v9291_v43, %v3197_v2  ;;  %v4993_v17 = vrot.slane %v4992_v59, 2 }
 0x63e   : > { %v4997_v40 = vadd.f32 %v4652_v14, %v4651_v44  ;;  %v9299_v14 = vsel %vm2228_vm9, 1.0, %v15686_v42  ;;  %v4994_v24 = vadd.f32 %v4993_v17, %v4992_v59 }
 0x63f   : > { %3352 = vperm.xlu2 %9682, %v3341_v32   ;;  %v9297_v32 = vsel %vm2226_vm15, 1.0, %v15686_v42 }
 0x640   : > { %v4658_v2 = vmul.f32 %v9297_v32, %v3236_v22  ;;  %v4998_v39 = vrot.slane %v4997_v40, 4  ;;  %v15769_v22 = vld [vmem:[#allocation87_spill] sm:$0xff] }
 0x641   : > { %3359 = vperm.xlu1 %9683, %v15749_v57   ;;  %v15764_v57 = vld [vmem:[#allocation89_spill] sm:$0xff]  ;;  %vm2229_vm8 = vcmp.eq.s32.totalorder %v15769_v22, %v11637_v45 }
 0x642   : > { %v4653_v23 = vmul.f32 %v9292_v9, %v15764_v57  ;;  %v4999_v31 = vadd.f32 %v4998_v39, %v4997_v40  ;;  %v15770_v40 = vperm.slane %v15750_v34, 2  ;;  %v4995_v57 = vrot.slane %v4994_v24, 1 }
 0x644   : > { %v5000_v16 = vrot.slane %v4999_v31, 2 }
 0x647   : > { %9684 = vset.pattern.permute.xlu2 %v10062_v25 }
 0x649   : > { %9685 = vset.pattern.permute.xlu1 %v10069_v28  ;;  %v3243_v36 = vpop.permute.xlu2 %3242 }
 0x64a   : > { %v4659_v30 = vmul.f32 %v9298_v29, %v3243_v36 }
 0x64b   : > { %v3217_v41 = vpop.permute.xlu1 %3216 }
 0x64c   : > { %v4655_v13 = vmul.f32 %v9294_v62, %v3217_v41  ;;  %v5004_v41 = vadd.f32 %v4654_v60, %v4653_v23  ;;  %v15768_v62 = vld [vmem:[#allocation88_spill] sm:$0xff]  ;;  %v5001_v60 = vadd.f32 %v5000_v16, %v4999_v31  ;;  %v9300_v23 = vsel %vm2229_vm8, 1.0, %v15686_v42  ;;  %v7538_v31 = vld [vmem:[%s10968_s21 + $0x60] sm:$0xff] }
 0x64d   : > { %vm2230_vm0 = vcmp.eq.s32.totalorder %v15768_v62, %v11637_v45 }
 0x64e   : > { %v5011_v12 = vadd.f32 %v4656_v51, %v4655_v13  ;;  %v5005_v19 = vrot.slane %v5004_v41, 4  ;;  %v7551_v13 = vcvt.s32.f32 %v7535_v58  ;;  %v15771_v51 = vld [vmem:[#allocation16_spill] sm:$0xff]  ;;  %v5002_v29 = vrot.slane %v5001_v60, 1 }
 0x64f   : > { %3372 = vperm.xlu2 %9684, %v3367_v52  }
 0x650   : > { %v5012_v0 = vrot.slane %v5011_v12, 4  ;;  %v5006_v26 = vadd.f32 %v5005_v19, %v5004_v41  ;;  %v7567_v33 = vmul.f32 %v7551_v13, %v15771_v51 }
 0x651   : > { %3378 = vperm.xlu1 %9685, %v3367_v52   ;;  %v4984_v52 = vrot.slane %v4983_v3, 4 }
 0x652   : > { %v5013_v44 = vadd.f32 %v5012_v0, %v5011_v12  ;;  %v5007_v9 = vrot.slane %v5006_v26, 2  ;;  %v4996_v0 = vadd.f32 %v4995_v57, %v4994_v24 }
 0x653   : > { %v3230_v11 = vpop.permute.xlu1 %3229  ;;  %v4985_v63 = vadd.f32 %v4984_v52, %v4983_v3 }
 0x654   : > { %v4657_v56 = vmul.f32 %v9296_v53, %v3230_v11  ;;  %v5014_v1 = vrot.slane %v5013_v44, 2  ;;  %v5008_v54 = vadd.f32 %v5007_v9, %v5006_v26 }
 0x655   : > { %v4986_v4 = vrot.slane %v4985_v63, 2 }
 0x656   : > { %v5018_v5 = vadd.f32 %v4658_v2, %v4657_v56  ;;  %v3256_v56 = vpop.permute.xlu2 %3255  ;;  %v9301_v2 = vsel %vm2230_vm0, 1.0, %v15686_v42  ;;  %v5015_v36 = vadd.f32 %v5014_v1, %v5013_v44 }
 0x657   : > { %3385 = vperm.xlu2 %9684, %v3380_v50   ;;  %v4987_v53 = vadd.f32 %v4986_v4, %v4985_v63  ;;  %v4661_v39 = vmul.f32 %v9300_v23, %v3256_v56  ;;  %v15774_v4 = vld [vmem:[#allocation19_spill] sm:$0xff] }
 0x658   : > { %v5019_v43 = vrot.slane %v5018_v5, 4  ;;  %v5016_v17 = vrot.slane %v5015_v36, 1 }
 0x659   : > { %3391 = vperm.xlu1 %9685, %v3380_v50   ;;  %v15766_v50 = vld [vmem:[#allocation13_spill] sm:$0xff]  ;;  %v4988_v59 = vrot.slane %v4987_v53, 1 }
 0x65a   : > { %v7564_v49 = vmul.f32 %v7548_v48, %v15766_v50  ;;  %v5020_v46 = vadd.f32 %v5019_v43, %v5018_v5  ;;  %v7601_v5 = vsel %vm15772_vm11, %v7567_v33, 0.0  ;;  %v5017_v24 = vadd.f32 %v5016_v17, %v5015_v36  ;;  %v15783_v17 = vld [vmem:[#allocation30_spill] sm:$0xff] }
 0x65b   : > { %v4989_v43 = vadd.f32 %v4988_v59, %v4987_v53  ;;  %vm2237_vm1 = vcmp.eq.s32.totalorder %v15783_v17, %v11637_v45 }
 0x65c   : > { %v7592_v47 = vsel %vm15767_vm10, %v7564_v49, 0.0  ;;  %v5021_v32 = vrot.slane %v5020_v46, 2  ;;  %v5003_v49 = vadd.f32 %v5002_v29, %v5001_v60  ;;  %v12300_v29 = vpop.f32.mrf.mxu1 }
 0x65d   : > { %7593 = vadd.xlane.f32.xlu0 %v7592_v47  ;;  %v6606_v26 = vsel %vm6585_vm2, %v4996_v0, %v4989_v43  ;;  %15780 = vst [vmem:[#allocation310_spill] sm:$0xff] %v12300_v29  ;;  %v15782_v43 = vld [vmem:[#allocation91_spill] sm:$0xff] }
 0x65e   : > { %v5022_v10 = vadd.f32 %v5021_v32, %v5020_v46  ;;  %v15776_v32 = vld [vmem:[#allocation20_spill] sm:$0xff]  ;;  %vm2233_vm15 = vcmp.eq.s32.totalorder %v15782_v43, %v11637_v45 }
 0x65f   : > { %9686 = vset.pattern.permute.xlu2 %v10069_v28 }
 0x661   : > { %9687 = vset.pattern.permute.xlu1 %v10062_v25  ;;  %v3275_v33 = vpop.permute.xlu2 %3274 }
 0x663   : > { %v3249_v8 = vpop.permute.xlu1 %3248 }
 0x664   : > { %v4660_v21 = vmul.f32 %v9299_v14, %v3249_v8  ;;  %v15773_v14 = vperm.slane %v15750_v34, 4  ;;  %v5009_v8 = vrot.slane %v5008_v54, 1 }
 0x665   : > { %7602 = vadd.xlane.f32.xlu0 %v7601_v5 }
 0x666   : > { %v5025_v11 = vadd.f32 %v4660_v21, %v4659_v30  ;;  %v7554_v30 = vcvt.s32.f32 %v7538_v31  ;;  %v5023_v21 = vrot.slane %v5022_v10, 1  ;;  %v5010_v58 = vadd.f32 %v5009_v8, %v5008_v54 }
 0x667   : > { %3404 = vperm.xlu2 %9686, %v15770_v40   ;;  %v7541_v40 = vld [vmem:[%s10968_s21 + $0x78] sm:$0xff]  ;;  %v3445_v54 = vperm.slane %v15750_v34, 6  ;;  %v15785_v8 = vperm.slane %v15750_v34, 7 }
 0x668   : > { %v5026_v3 = vrot.slane %v5025_v11, 4  ;;  %v7570_v16 = vmul.f32 %v7554_v30, %v15774_v4  ;;  %v5024_v62 = vadd.f32 %v5023_v21, %v5022_v10  ;;  %v7557_v60 = vcvt.s32.f32 %v7541_v40  ;;  %v15786_v21 = vld [vmem:[#allocation94_spill] sm:$0xff] }
 0x669   : > { %3411 = vperm.xlu1 %9687, %v3406_v15   ;;  %v3288_v10 = vpop.permute.xlu2 %3287  ;;  %vm2235_vm10 = vcmp.eq.s32.totalorder %v15786_v21, %v11637_v45 }
 0x66a   : > { %v5027_v27 = vadd.f32 %v5026_v3, %v5025_v11  ;;  %v7610_v11 = vsel %vm15775_vm12, %v7570_v16, 0.0  ;;  %v15788_v16 = vld [vmem:[#allocation97_spill] sm:$0xff] }
 0x66b   : > { %v3262_v52 = vpop.permute.xlu1 %3261  ;;  %vm2238_vm8 = vcmp.eq.s32.totalorder %v15788_v16, %v11637_v45 }
 0x66c   : > { %v5028_v12 = vrot.slane %v5027_v27, 2  ;;  %v4662_v41 = vmul.f32 %v9301_v2, %v3262_v52  ;;  %v3432_v2 = vperm.slane %v15750_v34, 5  ;;  %v9309_v40 = vsel %vm2238_vm8, 1.0, %v15686_v42 }
 0x66d   : > { %7611 = vadd.xlane.f32.xlu0 %v7610_v11  ;;  %v15791_v11 = vld [vmem:[#allocation90_spill] sm:$0xff] }
 0x66e   : > { %v5032_v48 = vadd.f32 %v4662_v41, %v4661_v39  ;;  %v5029_v63 = vadd.f32 %v5028_v12, %v5027_v27  ;;  %v7573_v27 = vmul.f32 %v7557_v60, %v15776_v32  ;;  %v12298_v41 = vpop.f32.mrf.mxu0  ;;  %v15792_v60 = vld [vmem:[#allocation99_spill] sm:$0xff] }
 0x66f   : > { %3417 = vperm.xlu2 %9686, %v3406_v15   ;;  %v6607_v15 = vsel %vm6587_vm3, %v5003_v49, %v6606_v26  ;;  %15779 = vst [vmem:[#allocation309_spill] sm:$0xff] %v12298_v41  ;;  %v15790_v26 = vld [vmem:[#allocation96_spill] sm:$0xff] }
 0x670   : > { %v5033_v19 = vrot.slane %v5032_v48, 4  ;;  %v5030_v44 = vrot.slane %v5029_v63, 1  ;;  %v6608_v13 = vsel %vm6589_vm4, %v5010_v58, %v6607_v15  ;;  %v7619_v52 = vsel %vm15778_vm14, %v7573_v27, 0.0  ;;  %v15793_v27 = vld [vmem:[#allocation243_spill] sm:$0xff] }
 0x671   : > { %3424 = vperm.xlu1 %9687, %v15773_v14   ;;  %v6609_v1 = vsel %vm6591_vm5, %v5017_v24, %v6608_v13  ;;  %v15784_v14 = vld [vmem:[#allocation240_spill] sm:$0xff]  ;;  %vm2236_vm12 = vcmp.eq.s32.totalorder %v15790_v26, %v11637_v45  ;;  %v9308_v24 = vsel %vm2237_vm1, 1.0, %v15686_v42  ;;  %vm2239_vm14 = vcmp.eq.s32.totalorder %v15792_v60, %v11637_v45  ;;  %v15797_v26 = vld [vmem:[#allocation95_spill] sm:$0xff] }
 0x672   : > { %v5034_v47 = vadd.f32 %v5033_v19, %v5032_v48  ;;  %v5031_v3 = vadd.f32 %v5030_v44, %v5029_v63  ;;  %v6610_v9 = vsel %vm6593_vm6, %v5024_v62, %v6609_v1  ;;  %v15781_v19 = vld [vmem:[#allocation8_spill] sm:$0xff]  ;;  %vm2232_vm9 = vcmp.eq.s32.totalorder %v15784_v14, %v11637_v45  ;;  %v3301_v62 = vpop.permute.xlu0 %3300 }
 0x673   : > { %v3471_v30 = vperm.slane %v15781_v19, 0  ;;  %v15789_v44 = vld [vmem:[#allocation100_spill] sm:$0xff]  ;;  %v9303_v15 = vsel %vm2232_vm9, 1.0, %v15686_v42  ;;  %v9307_v1 = vsel %vm2236_vm12, 1.0, %v15686_v42  ;;  %v15796_v43 = vperm.slane %v15781_v19, 1 }
 0x674   : > { %v5035_v46 = vrot.slane %v5034_v47, 2  ;;  %v6611_v57 = vsel %vm6595_vm7, %v5031_v3, %v6610_v9  ;;  %vm2240_vm11 = vcmp.eq.s32.totalorder %v15789_v44, %v11637_v45  ;;  %v9306_v3 = vsel %vm2235_vm10, 1.0, %v15686_v42 }
 0x675   : > { %7620 = vadd.xlane.f32.xlu0 %v7619_v52  ;;  %v9311_v13 = vsel %vm2240_vm11, 1.0, %v15686_v42  ;;  %vm15802_vm11 = vcmask 1047559  }
 0x676   : > { %v5036_v22 = vadd.f32 %v5035_v46, %v5034_v47  ;;  %v15787_v47 = vld [vmem:[#allocation93_spill] sm:$0xff]  ;;  %v9304_v46 = vsel %vm2233_vm15, 1.0, %v15686_v42  ;;  %vm2242_vm15 = vcmp.eq.s32.totalorder %v15793_v27, %v11637_v45 }
 0x677   : > { %9688 = vset.pattern.permute.xlu2 %v10062_v25  ;;  %vm2234_vm0 = vcmp.eq.s32.totalorder %v15787_v47, %v11637_v45 }
 0x678   : > { %v5037_v53 = vrot.slane %v5036_v22, 1 }
 0x679   : > { %9689 = vset.pattern.permute.xlu1 %v10069_v28  ;;  %v3308_v31 = vpop.permute.xlu2 %3307 }
 0x67a   : > { %v5038_v56 = vadd.f32 %v5037_v53, %v5036_v22  ;;  %v9305_v22 = vsel %vm2234_vm0, 1.0, %v15686_v42 }
 0x67b   : > { %v3282_v5 = vpop.permute.xlu1 %3281 }
 0x67c   : > { %v6612_v23 = vsel %vm15777_vm13, %v5038_v56, %v6611_v57  ;;  %vm2231_vm13 = vcmp.eq.s32.totalorder %v15791_v11, %v11637_v45  ;;  %v4665_v58 = vmul.f32 %v9304_v46, %v3282_v5  ;;  %v4666_v56 = vmul.f32 %v9305_v22, %v3288_v10  ;;  %v15795_v10 = vld [vmem:[#allocation102_spill] sm:$0xff] }
 0x67d   : > { %v12294_v39 = vand.u32 4294901760, %v6612_v23  ;;  %v4664_v57 = vmul.f32 %v9303_v15, %v3275_v33  ;;  %v9302_v52 = vsel %vm2231_vm13, 1.0, %v15686_v42  ;;  %vm2241_vm1 = vcmp.eq.s32.totalorder %v15795_v10, %v11637_v45  ;;  %v15801_v10 = vld [vmem:[#allocation106_spill] sm:$0xff] }
 0x67e   : > { %v5046_v5 = vadd.f32 %v4666_v56, %v4665_v58  ;;  %v15799_v58 = vld [vmem:[#allocation105_spill] sm:$0xff]  ;;  %vm2245_vm8 = vcmp.eq.s32.totalorder %v15801_v10, %v11637_v45 }
 0x67f   : > { %6986 = vmatmul.f32.gmra.mxu3 %v12294_v39  ;;  %v6769_v12 = vsub.f32 %v6612_v23, %v12294_v39  ;;  %3437 = vperm.xlu2 %9688, %v3432_v2   ;;  %v4669_v23 = vmul.f32 %v9308_v24, %v3308_v31  ;;  %v15798_v24 = vld [vmem:[#allocation103_spill] sm:$0xff]  ;;  %vm2244_vm10 = vcmp.eq.s32.totalorder %v15799_v58, %v11637_v45 }
 0x680   : > { %v5047_v21 = vrot.slane %v5046_v5, 4  ;;  %vm2243_vm9 = vcmp.eq.s32.totalorder %v15798_v24, %v11637_v45  ;;  %v9315_v60 = vsel %vm2244_vm10, 1.0, %v15686_v42 }
 0x681   : > { %3443 = vperm.xlu1 %9689, %v3432_v2   ;;  %7102 = vmatmul.f32.gmra.mxu0 %v6769_v12  ;;  %v6770_v59 = vand.u32 4294901760, %v6769_v12  ;;  %v3321_v49 = vpop.permute.xlu2 %3320  ;;  %v9314_v56 = vsel %vm2243_vm9, 1.0, %v15686_v42 }
 0x683   : > { %7218 = vmatmul.f32.gmra.mxu1 %v6770_v59  ;;  %v6771_v36 = vsub.f32 %v6769_v12, %v6770_v59  ;;  %v3295_v63 = vpop.permute.xlu1 %3294  ;;  %v4668_v12 = vmul.f32 %v9307_v1, %v3301_v62 }
 0x684   : > { %v4667_v9 = vmul.f32 %v9306_v3, %v3295_v63  ;;  %v9310_v63 = vsel %vm2239_vm14, 1.0, %v15686_v42 }
 0x685   : > { %v6772_v48 = vand.u32 4294901760, %v6771_v36  ;;  %v4671_v33 = vmul.f32 %v9310_v63, %v3321_v49  ;;  %v3366_v63 = vpop.permute.xlu0 %3365 }
 0x686   : > { %v5053_v31 = vadd.f32 %v4668_v12, %v4667_v9 }
 0x687   : > { %6773 = vmatmul.f32.gmra.mxu2 %v6772_v48  ;;  %3450 = vperm.xlu2 %9688, %v3445_v54  }
 0x688   : > { %v5054_v44 = vrot.slane %v5053_v31, 4 }
 0x689   : > { %3456 = vperm.xlu1 %9689, %v3445_v54   ;;  %v15794_v54 = vld [vmem:[#allocation92_spill] sm:$0xff] }
 0x68a   : > { %v4663_v48 = vmul.f32 %v9302_v52, %v15794_v54  ;;  %v5055_v22 = vadd.f32 %v5054_v44, %v5053_v31  ;;  %v9316_v44 = vsel %vm2245_vm8, 1.0, %v15686_v42 }
 0x68c   : > { %v5039_v17 = vadd.f32 %v4664_v57, %v4663_v48  ;;  %v5056_v52 = vrot.slane %v5055_v22, 2 }
 0x68e   : > { %v5040_v11 = vrot.slane %v5039_v17, 4 }
 0x68f   : > { %9690 = vset.pattern.permute.xlu2 %v10069_v28 }
 0x691   : > { %9691 = vset.pattern.permute.xlu1 %v10062_v25  ;;  %v3340_v59 = vpop.permute.xlu2 %3339 }
 0x693   : > { %v3314_v0 = vpop.permute.xlu1 %3313 }
 0x694   : > { %v4670_v2 = vmul.f32 %v9309_v40, %v3314_v0  ;;  %v9313_v0 = vsel %vm2242_vm15, 1.0, %v15686_v42  ;;  %v5041_v40 = vadd.f32 %v5040_v11, %v5039_v17 }
 0x695   : > { %v4674_v16 = vmul.f32 %v9313_v0, %v3340_v59  ;;  %v5057_v0 = vadd.f32 %v5056_v52, %v5055_v22 }
 0x696   : > { %v5060_v14 = vadd.f32 %v4670_v2, %v4669_v23  ;;  %v3497_v2 = vperm.slane %v15781_v19, 2  ;;  %v5042_v12 = vrot.slane %v5041_v40, 2 }
 0x697   : > { %3469 = vperm.xlu2 %9690, %v15785_v8   ;;  %v9312_v8 = vsel %vm2241_vm1, 1.0, %v15686_v42 }
 0x698   : > { %v4673_v46 = vmul.f32 %v9312_v8, %v15797_v26  ;;  %v5061_v15 = vrot.slane %v5060_v14, 4  ;;  %v5043_v17 = vadd.f32 %v5042_v12, %v5041_v40 }
 0x699   : > { %3476 = vperm.xlu1 %9691, %v3471_v30   ;;  %v3353_v3 = vpop.permute.xlu2 %3352 }
 0x69a   : > { %v5074_v62 = vadd.f32 %v4674_v16, %v4673_v46  ;;  %v4676_v57 = vmul.f32 %v9315_v60, %v3353_v3  ;;  %v5044_v24 = vrot.slane %v5043_v17, 1 }
 0x69b   : > { %v3327_v53 = vpop.permute.xlu1 %3326 }
 0x69c   : > { %v4672_v36 = vmul.f32 %v9311_v13, %v3327_v53  ;;  %v5062_v13 = vadd.f32 %v5061_v15, %v5060_v14  ;;  %v5075_v27 = vrot.slane %v5074_v62, 4 }
 0x69e   : > { %v5067_v47 = vadd.f32 %v4672_v36, %v4671_v33  ;;  %v15800_v36 = vld [vmem:[#allocation108_spill] sm:$0xff]  ;;  %v5076_v33 = vadd.f32 %v5075_v27, %v5074_v62 }
 0x69f   : > { %3482 = vperm.xlu2 %9690, %v3471_v30   ;;  %v5048_v30 = vadd.f32 %v5047_v21, %v5046_v5  ;;  %v5063_v5 = vrot.slane %v5062_v13, 2  ;;  %vm2246_vm0 = vcmp.eq.s32.totalorder %v15800_v36, %v11637_v45 }
 0x6a0   : > { %v5068_v49 = vrot.slane %v5067_v47, 4  ;;  %v5077_v46 = vrot.slane %v5076_v33, 2 }
 0x6a1   : > { %3489 = vperm.xlu1 %9691, %v15796_v43   ;;  %v5049_v53 = vrot.slane %v5048_v30, 2  ;;  %v9317_v43 = vsel %vm2246_vm0, 1.0, %v15686_v42  ;;  %v5064_v14 = vadd.f32 %v5063_v5, %v5062_v13 }
 0x6a2   : > { %v5069_v1 = vadd.f32 %v5068_v49, %v5067_v47  ;;  %v4678_v21 = vmul.f32 %v9317_v43, %v3366_v63  ;;  %v5058_v49 = vrot.slane %v5057_v0, 1  ;;  %v5078_v13 = vadd.f32 %v5077_v46, %v5076_v33 }
 0x6a3   : > { %v5050_v54 = vadd.f32 %v5049_v53, %v5048_v30  ;;  %v3510_v30 = vperm.slane %v15781_v19, 3  ;;  %v5065_v58 = vrot.slane %v5064_v14, 1 }
 0x6a4   : > { %v5070_v48 = vrot.slane %v5069_v1, 2  ;;  %v5059_v60 = vadd.f32 %v5058_v49, %v5057_v0  ;;  %v15806_v49 = vperm.slane %v15781_v19, 6 }
 0x6a5   : > { %v5051_v47 = vrot.slane %v5050_v54, 1 }
 0x6a6   : > { %v5071_v16 = vadd.f32 %v5070_v48, %v5069_v1  ;;  %v5045_v1 = vadd.f32 %v5044_v24, %v5043_v17 }
 0x6a7   : > { %9692 = vset.pattern.permute.xlu2 %v10062_v25  ;;  %v5052_v40 = vadd.f32 %v5051_v47, %v5050_v54  ;;  %v15803_v47 = vperm.slane %v15781_v19, 4 }
 0x6a8   : > { %v5072_v22 = vrot.slane %v5071_v16, 1 }
 0x6a9   : > { %9693 = vset.pattern.permute.xlu1 %v10069_v28  ;;  %v3373_v52 = vpop.permute.xlu2 %3372 }
 0x6aa   : > { %v5073_v27 = vadd.f32 %v5072_v22, %v5071_v16  ;;  %v12383_v16 = vpop.f32.mrf.mxu0 }
 0x6ab   : > { %v3347_v9 = vpop.permute.xlu1 %3346  ;;  %15804 = vst [vmem:[#allocation311_spill] sm:$0xff] %v12383_v16 }
 0x6ac   : > { %v4675_v23 = vmul.f32 %v9314_v56, %v3347_v9  ;;  %v5066_v56 = vadd.f32 %v5065_v58, %v5064_v14  ;;  %v3536_v14 = vperm.slane %v15781_v19, 5 }
 0x6ae   : > { %v5081_v59 = vadd.f32 %v4676_v57, %v4675_v23  ;;  %v6613_v23 = vsel %vm6585_vm2, %v5052_v40, %v5045_v1  ;;  %v15807_v40 = vld [vmem:[#allocation31_spill] sm:$0xff] }
 0x6af   : > { %3502 = vperm.xlu2 %9692, %v3497_v2   ;;  %v6614_v5 = vsel %vm6587_vm3, %v5059_v60, %v6613_v23  ;;  %vm2247_vm12 = vcmp.eq.s32.totalorder %v15807_v40, %v11637_v45  ;;  %v15810_v60 = vld [vmem:[#allocation110_spill] sm:$0xff]  ;;  %v15811_v1 = vld [vmem:[#allocation247_spill] sm:$0xff] }
 0x6b0   : > { %v5082_v31 = vrot.slane %v5081_v59, 4  ;;  %vm2249_vm15 = vcmp.eq.s32.totalorder %v15810_v60, %v11637_v45  ;;  %vm2252_vm1 = vcmp.eq.s32.totalorder %v15811_v1, %v11637_v45  ;;  %v15818_v40 = vld [vmem:[#allocation98_spill] sm:$0xff] }
 0x6b1   : > { %3508 = vperm.xlu1 %9693, %v3497_v2   ;;  %v5079_v2 = vrot.slane %v5078_v13, 1 }
 0x6b2   : > { %v5083_v8 = vadd.f32 %v5082_v31, %v5081_v59  ;;  %v6615_v59 = vsel %vm6589_vm4, %v5066_v56, %v6614_v5  ;;  %v9318_v56 = vsel %vm2247_vm12, 1.0, %v15686_v42  ;;  %v15814_v5 = vld [vmem:[#allocation117_spill] sm:$0xff] }
 0x6b3   : > { %v3360_v26 = vpop.permute.xlu1 %3359  ;;  %v6616_v54 = vsel %vm6591_vm5, %v5073_v27, %v6615_v59  ;;  %v5080_v10 = vadd.f32 %v5079_v2, %v5078_v13  ;;  %v15808_v13 = vld [vmem:[#allocation112_spill] sm:$0xff]  ;;  %v3575_v27 = vperm.slane %v15766_v50, 0  ;;  %vm2255_vm0 = vcmp.eq.s32.totalorder %v15814_v5, %v11637_v45 }
 0x6b4   : > { %v5084_v11 = vrot.slane %v5083_v8, 2  ;;  %v4677_v15 = vmul.f32 %v9316_v44, %v3360_v26  ;;  %v12385_v26 = vpop.f32.mrf.mxu1  ;;  %vm2250_vm13 = vcmp.eq.s32.totalorder %v15808_v13, %v11637_v45  ;;  %v15815_v59 = vld [vmem:[#allocation116_spill] sm:$0xff] }
 0x6b5   : > { %v6617_v31 = vsel %vm6593_vm6, %v5080_v10, %v6616_v54  ;;  %15805 = vst [vmem:[#allocation312_spill] sm:$0xff] %v12385_v26  ;;  %vm2254_vm8 = vcmp.eq.s32.totalorder %v15815_v59, %v11637_v45  ;;  %v4679_v54 = vmul.f32 %v9318_v56, %v3373_v52  ;;  %v9323_v10 = vsel %vm2252_vm1, 1.0, %v15686_v42 }
 0x6b6   : > { %v5088_v62 = vadd.f32 %v4678_v21, %v4677_v15  ;;  %v5085_v3 = vadd.f32 %v5084_v11, %v5083_v8  ;;  %v3386_v8 = vpop.permute.xlu2 %3385 }
 0x6b7   : > { %3515 = vperm.xlu2 %9692, %v3510_v30  }
 0x6b8   : > { %v5089_v53 = vrot.slane %v5088_v62, 4  ;;  %v5086_v57 = vrot.slane %v5085_v3, 1 }
 0x6b9   : > { %3521 = vperm.xlu1 %9693, %v3510_v30  }
 0x6ba   : > { %v5090_v9 = vadd.f32 %v5089_v53, %v5088_v62  ;;  %v5087_v48 = vadd.f32 %v5086_v57, %v5085_v3  ;;  %v3562_v62 = vperm.slane %v15781_v19, 7  ;;  %v15809_v53 = vld [vmem:[#allocation109_spill] sm:$0xff]  ;;  %v15812_v57 = vld [vmem:[#allocation114_spill] sm:$0xff] }
 0x6bb   : > { %vm2248_vm14 = vcmp.eq.s32.totalorder %v15809_v53, %v11637_v45  ;;  %vm2253_vm9 = vcmp.eq.s32.totalorder %v15812_v57, %v11637_v45  ;;  %v15819_v53 = vld [vmem:[#allocation125_spill] sm:$0xff] }
 0x6bc   : > { %v5091_v12 = vrot.slane %v5090_v9, 2  ;;  %v6618_v0 = vsel %vm6595_vm7, %v5087_v48, %v6617_v31  ;;  %v9319_v23 = vsel %vm2248_vm14, 1.0, %v15686_v42  ;;  %v15816_v31 = vld [vmem:[#allocation119_spill] sm:$0xff] }
 0x6be   : > { %v5092_v36 = vadd.f32 %v5091_v12, %v5090_v9  ;;  %v9321_v9 = vsel %vm2250_vm13, 1.0, %v15686_v42  ;;  %v15813_v12 = vld [vmem:[#allocation113_spill] sm:$0xff]  ;;  %vm2261_vm13 = vcmp.eq.s32.totalorder %v15819_v53, %v11637_v45 }
 0x6bf   : > { %9694 = vset.pattern.permute.xlu2 %v10069_v28  ;;  %vm2251_vm10 = vcmp.eq.s32.totalorder %v15813_v12, %v11637_v45 }
 0x6c0   : > { %v5093_v63 = vrot.slane %v5092_v36, 1 }
 0x6c1   : > { %9695 = vset.pattern.permute.xlu1 %v10062_v25  ;;  %v3405_v30 = vpop.permute.xlu2 %3404 }
 0x6c2   : > { %v5094_v33 = vadd.f32 %v5093_v63, %v5092_v36  ;;  %v9320_v36 = vsel %vm2249_vm15, 1.0, %v15686_v42  ;;  %v4684_v52 = vmul.f32 %v9323_v10, %v3405_v30  ;;  %v15820_v30 = vld [vmem:[#allocation251_spill] sm:$0xff]  ;;  %v15822_v10 = vld [vmem:[#allocation101_spill] sm:$0xff] }
 0x6c3   : > { %v3379_v46 = vpop.permute.xlu1 %3378  ;;  %v4681_v48 = vmul.f32 %v9320_v36, %v3386_v8  ;;  %v9325_v8 = vsel %vm2254_vm8, 1.0, %v15686_v42  ;;  %vm2262_vm14 = vcmp.eq.s32.totalorder %v15820_v30, %v11637_v45 }
 0x6c4   : > { %v6619_v43 = vsel %vm15802_vm11, %v5094_v33, %v6618_v0  ;;  %v4680_v63 = vmul.f32 %v9319_v23, %v3379_v46  ;;  %vm2256_vm11 = vcmp.eq.s32.totalorder %v15816_v31, %v11637_v45  ;;  %v9324_v0 = vsel %vm2253_vm9, 1.0, %v15686_v42 }
 0x6c5   : > { %v12376_v17 = vand.u32 4294901760, %v6619_v43  ;;  %v9332_v23 = vsel %vm2261_vm13, 1.0, %v15686_v42 }
 0x6c7   : > { %6990 = vmatmul.f32.gmra.mxu3 %v12376_v17  ;;  %v6777_v21 = vsub.f32 %v6619_v43, %v12376_v17  ;;  %3534 = vperm.xlu2 %9694, %v15803_v47   ;;  %v9322_v43 = vsel %vm2251_vm10, 1.0, %v15686_v42  ;;  %vm15827_vm10 = vcmask 1047559  }
 0x6c9   : > { %3541 = vperm.xlu1 %9695, %v3536_v14   ;;  %7107 = vmatmul.f32.gmra.mxu0 %v6777_v21  ;;  %v6778_v44 = vand.u32 4294901760, %v6777_v21  ;;  %v3418_v58 = vpop.permute.xlu2 %3417 }
 0x6cb   : > { %7224 = vmatmul.f32.gmra.mxu1 %v6778_v44  ;;  %v6779_v11 = vsub.f32 %v6777_v21, %v6778_v44  ;;  %v3392_v24 = vpop.permute.xlu1 %3391  ;;  %v9326_v44 = vsel %vm2255_vm0, 1.0, %v15686_v42 }
 0x6cc   : > { %v4682_v2 = vmul.f32 %v9321_v9, %v3392_v24  ;;  %v4686_v24 = vmul.f32 %v9325_v8, %v3418_v58  ;;  %v15821_v58 = vld [vmem:[#allocation120_spill] sm:$0xff] }
 0x6cd   : > { %v6780_v15 = vand.u32 4294901760, %v6779_v11  ;;  %vm2258_vm15 = vcmp.eq.s32.totalorder %v15821_v58, %v11637_v45 }
 0x6ce   : > { %v5102_v21 = vadd.f32 %v4682_v2, %v4681_v48  ;;  %v9333_v2 = vsel %vm2262_vm14, 1.0, %v15686_v42 }
 0x6cf   : > { %6781 = vmatmul.f32.gmra.mxu2 %v6780_v15  ;;  %3547 = vperm.xlu2 %9694, %v3536_v14   ;;  %v3431_v14 = vpop.permute.xlu0 %3430  ;;  %v9327_v15 = vsel %vm2256_vm11, 1.0, %v15686_v42 }
 0x6d0   : > { %v4688_v13 = vmul.f32 %v9327_v15, %v3431_v14  ;;  %v5103_v60 = vrot.slane %v5102_v21, 4 }
 0x6d1   : > { %3554 = vperm.xlu1 %9695, %v15806_v49   ;;  %v5095_v49 = vadd.f32 %v4680_v63, %v4679_v54  ;;  %v4693_v63 = vmul.f32 %v9332_v23, %v15822_v10 }
 0x6d2   : > { %v5104_v12 = vadd.f32 %v5103_v60, %v5102_v21  ;;  %v3601_v21 = vperm.slane %v15766_v50, 2 }
 0x6d7   : > { %9696 = vset.pattern.permute.xlu2 %v10062_v25 }
 0x6d9   : > { %9697 = vset.pattern.permute.xlu1 %v10069_v28  ;;  %v3438_v3 = vpop.permute.xlu2 %3437 }
 0x6db   : > { %v3412_v22 = vpop.permute.xlu1 %3411 }
 0x6dc   : > { %v4685_v47 = vmul.f32 %v9324_v0, %v3412_v22  ;;  %v4683_v22 = vmul.f32 %v9322_v43, %v15818_v40  ;;  %v9329_v0 = vsel %vm2258_vm15, 1.0, %v15686_v42 }
 0x6de   : > { %v5116_v1 = vadd.f32 %v4686_v24, %v4685_v47  ;;  %v5109_v56 = vadd.f32 %v4684_v52, %v4683_v22  ;;  %v5105_v47 = vrot.slane %v5104_v12, 2  ;;  %v15825_v22 = vperm.slane %v15766_v50, 1 }
 0x6df   : > { %3567 = vperm.xlu2 %9696, %v3562_v62  }
 0x6e0   : > { %v5117_v5 = vrot.slane %v5116_v1, 4  ;;  %v5110_v59 = vrot.slane %v5109_v56, 4 }
 0x6e1   : > { %3573 = vperm.xlu1 %9697, %v3562_v62   ;;  %v3451_v46 = vpop.permute.xlu2 %3450  ;;  %v15817_v62 = vld [vmem:[#allocation33_spill] sm:$0xff] }
 0x6e2   : > { %vm2257_vm12 = vcmp.eq.s32.totalorder %v15817_v62, %v11637_v45  ;;  %v5111_v8 = vadd.f32 %v5110_v59, %v5109_v56  ;;  %v15823_v62 = vld [vmem:[#allocation123_spill] sm:$0xff] }
 0x6e3   : > { %v3425_v33 = vpop.permute.xlu1 %3424  ;;  %v9328_v57 = vsel %vm2257_vm12, 1.0, %v15686_v42  ;;  %vm2260_vm1 = vcmp.eq.s32.totalorder %v15823_v62, %v11637_v45 }
 0x6e4   : > { %v4687_v11 = vmul.f32 %v9326_v44, %v3425_v33  ;;  %v4689_v36 = vmul.f32 %v9328_v57, %v3438_v3  ;;  %v5118_v44 = vadd.f32 %v5117_v5, %v5116_v1  ;;  %v5112_v30 = vrot.slane %v5111_v8, 2 }
 0x6e5   : > { %v9331_v57 = vsel %vm2260_vm1, 1.0, %v15686_v42 }
 0x6e6   : > { %v5123_v9 = vadd.f32 %v4688_v13, %v4687_v11  ;;  %v5106_v13 = vadd.f32 %v5105_v47, %v5104_v12  ;;  %v5119_v53 = vrot.slane %v5118_v44, 2 }
 0x6e7   : > { %3580 = vperm.xlu2 %9696, %v3575_v27  }
 0x6e8   : > { %v5124_v54 = vrot.slane %v5123_v9, 4  ;;  %v5107_v59 = vrot.slane %v5106_v13, 1 }
 0x6e9   : > { %3586 = vperm.xlu1 %9697, %v3575_v27   ;;  %v5096_v27 = vrot.slane %v5095_v49, 4 }
 0x6ea   : > { %v5125_v11 = vadd.f32 %v5124_v54, %v5123_v9  ;;  %v5113_v54 = vadd.f32 %v5112_v30, %v5111_v8 }
 0x6eb   : > { %v5097_v33 = vadd.f32 %v5096_v27, %v5095_v49  ;;  %v15824_v49 = vld [vmem:[#allocation122_spill] sm:$0xff] }
 0x6ec   : > { %vm2259_vm9 = vcmp.eq.s32.totalorder %v15824_v49, %v11637_v45  ;;  %v5126_v60 = vrot.slane %v5125_v11, 2  ;;  %v5114_v47 = vrot.slane %v5113_v54, 1 }
 0x6ed   : > { %v5098_v24 = vrot.slane %v5097_v33, 2  ;;  %v9330_v9 = vsel %vm2259_vm9, 1.0, %v15686_v42 }
 0x6ee   : > { %v4691_v23 = vmul.f32 %v9330_v9, %v3451_v46  ;;  %v5115_v62 = vadd.f32 %v5114_v47, %v5113_v54  ;;  %v12471_v54 = vpop.f32.mrf.mxu1  ;;  %v15832_v47 = vperm.slane %v15766_v50, 6 }
 0x6ef   : > { %9698 = vset.pattern.permute.xlu2 %v10069_v28  ;;  %v5099_v56 = vadd.f32 %v5098_v24, %v5097_v33  ;;  %v5108_v33 = vadd.f32 %v5107_v59, %v5106_v13  ;;  %v12469_v59 = vpop.f32.mrf.mxu0  ;;  %15830 = vst [vmem:[#allocation53_spill] sm:$0xff] %v12471_v54 }
 0x6f0   : > { %15829 = vst [vmem:[#allocation54_spill] sm:$0xff] %v12469_v59  ;;  %v15947_v59 = vld [vmem:[#allocation124_spill] sm:$0xff] }
 0x6f1   : > { %9699 = vset.pattern.permute.xlu1 %v10062_v25  ;;  %v3470_v48 = vpop.permute.xlu2 %3469  ;;  %v5100_v10 = vrot.slane %v5099_v56, 1 }
 0x6f2   : > { %v4694_v31 = vmul.f32 %v9333_v2, %v3470_v48  ;;  %v5127_v48 = vadd.f32 %v5126_v60, %v5125_v11 }
 0x6f3   : > { %v3444_v43 = vpop.permute.xlu1 %3443 }
 0x6f4   : > { %v4690_v14 = vmul.f32 %v9329_v0, %v3444_v43  ;;  %v5144_v52 = vadd.f32 %v4694_v31, %v4693_v63 }
 0x6f6   : > { %v5130_v15 = vadd.f32 %v4690_v14, %v4689_v36  ;;  %v5145_v3 = vrot.slane %v5144_v52, 4  ;;  %v5120_v36 = vadd.f32 %v5119_v53, %v5118_v44  ;;  %v15826_v14 = vperm.slane %v15766_v50, 3 }
 0x6f7   : > { %3599 = vperm.xlu2 %9698, %v15825_v22  }
 0x6f8   : > { %v5131_v40 = vrot.slane %v5130_v15, 4  ;;  %v5146_v27 = vadd.f32 %v5145_v3, %v5144_v52  ;;  %v5121_v43 = vrot.slane %v5120_v36, 1  ;;  %v5128_v52 = vrot.slane %v5127_v48, 1 }
 0x6f9   : > { %3606 = vperm.xlu1 %9699, %v3601_v21  }
 0x6fa   : > { %v5132_v1 = vadd.f32 %v5131_v40, %v5130_v15  ;;  %v5147_v63 = vrot.slane %v5146_v27, 2  ;;  %v5101_v15 = vadd.f32 %v5100_v10, %v5099_v56  ;;  %v5122_v11 = vadd.f32 %v5121_v43, %v5120_v36 }
 0x6fb   : > { %v3457_v58 = vpop.permute.xlu1 %3456  ;;  %v5129_v49 = vadd.f32 %v5128_v52, %v5127_v48  ;;  %v3640_v48 = vperm.slane %v15766_v50, 5 }
 0x6fc   : > { %v5133_v2 = vrot.slane %v5132_v1, 2  ;;  %v4692_v5 = vmul.f32 %v9331_v57, %v3457_v58  ;;  %v5148_v24 = vadd.f32 %v5147_v63, %v5146_v27  ;;  %v6620_v8 = vsel %vm6585_vm2, %v5108_v33, %v5101_v15  ;;  %v15833_v15 = vld [vmem:[#allocation12_spill] sm:$0xff] }
 0x6fd   : > { %v6621_v13 = vsel %vm6587_vm3, %v5115_v62, %v6620_v8  ;;  %v3627_v27 = vperm.slane %v15766_v50, 4  ;;  %v15836_v8 = vld [vmem:[#allocation126_spill] sm:$0xff]  ;;  %v15837_v62 = vld [vmem:[#allocation129_spill] sm:$0xff] }
 0x6fe   : > { %v5137_v12 = vadd.f32 %v4692_v5, %v4691_v23  ;;  %v5134_v31 = vadd.f32 %v5133_v2, %v5132_v1  ;;  %v5149_v22 = vrot.slane %v5148_v24, 1  ;;  %v6622_v30 = vsel %vm6589_vm4, %v5122_v11, %v6621_v13  ;;  %v12465_v2 = vpop.f32.mrf.mxu3 }
 0x6ff   : > { %3612 = vperm.xlu2 %9698, %v3601_v21   ;;  %v6623_v60 = vsel %vm6591_vm5, %v5129_v49, %v6622_v30  ;;  %15828 = vst [vmem:[#allocation313_spill] sm:$0xff] %v12465_v2  ;;  %vm2263_vm8 = vcmp.eq.s32.totalorder %v15836_v8, %v11637_v45  ;;  %vm2265_vm11 = vcmp.eq.s32.totalorder %v15837_v62, %v11637_v45  ;;  %v15839_v49 = vld [vmem:[#allocation132_spill] sm:$0xff]  ;;  %v15842_v30 = vld [vmem:[#allocation134_spill] sm:$0xff]  ;;  %v15845_v8 = vld [vmem:[#allocation137_spill] sm:$0xff] }
 0x700   : > { %v5138_v0 = vrot.slane %v5137_v12, 4  ;;  %v5135_v3 = vrot.slane %v5134_v31, 1  ;;  %v5150_v56 = vadd.f32 %v5149_v22, %v5148_v24  ;;  %v15834_v24 = vperm.slane %v15833_v15, 0  ;;  %v15840_v22 = vld [vmem:[#allocation131_spill] sm:$0xff] }
 0x701   : > { %3619 = vperm.xlu1 %9699, %v15826_v14   ;;  %v3666_v14 = vperm.slane %v15766_v50, 7  ;;  %v15838_v50 = vld [vmem:[#allocation128_spill] sm:$0xff]  ;;  %vm2268_vm13 = vcmp.eq.s32.totalorder %v15839_v49, %v11637_v45  ;;  %vm2266_vm14 = vcmp.eq.s32.totalorder %v15840_v22, %v11637_v45  ;;  %vm2269_vm1 = vcmp.eq.s32.totalorder %v15842_v30, %v11637_v45  ;;  %v15847_v62 = vld [vmem:[#allocation139_spill] sm:$0xff] }
 0x702   : > { %v5139_v46 = vadd.f32 %v5138_v0, %v5137_v12  ;;  %v5136_v21 = vadd.f32 %v5135_v3, %v5134_v31  ;;  %v12474_v31 = vpop.f32.mrf.mxu2  ;;  %v3483_v0 = vpop.permute.xlu2 %3482  ;;  %vm2264_vm12 = vcmp.eq.s32.totalorder %v15838_v50, %v11637_v45  ;;  %v15848_v50 = vld [vmem:[#allocation142_spill] sm:$0xff] }
 0x703   : > { %15831 = vst [vmem:[#allocation57_spill] sm:$0xff] %v12474_v31 }
 0x704   : > { %v5140_v44 = vrot.slane %v5139_v46, 2  ;;  %v6624_v9 = vsel %vm6593_vm6, %v5136_v21, %v6623_v60  ;;  %v15841_v21 = vld [vmem:[#allocation135_spill] sm:$0xff]  ;;  %v9335_v60 = vsel %vm2264_vm12, 1.0, %v15686_v42  ;;  %vm2276_vm12 = vcmp.eq.s32.totalorder %v15848_v50, %v11637_v45 }
 0x705   : > { %vm2270_vm15 = vcmp.eq.s32.totalorder %v15841_v21, %v11637_v45 }
 0x706   : > { %v5141_v40 = vadd.f32 %v5140_v44, %v5139_v46  ;;  %v15835_v44 = vld [vmem:[#allocation36_spill] sm:$0xff] }
 0x707   : > { %9700 = vset.pattern.permute.xlu2 %v10062_v25  ;;  %vm2267_vm0 = vcmp.eq.s32.totalorder %v15835_v44, %v11637_v45 }
 0x708   : > { %v5142_v53 = vrot.slane %v5141_v40, 1  ;;  %v9338_v13 = vsel %vm2267_vm0, 1.0, %v15686_v42  ;;  %vm2271_vm0 = vcmp.eq.s32.totalorder %v15845_v8, %v11637_v45 }
 0x709   : > { %9701 = vset.pattern.permute.xlu1 %v10069_v28  ;;  %v9342_v21 = vsel %vm2271_vm0, 1.0, %v15686_v42 }
 0x70a   : > { %v5143_v1 = vadd.f32 %v5142_v53, %v5141_v40  ;;  %v3503_v43 = vpop.permute.xlu2 %3502  ;;  %v3496_v40 = vpop.permute.xlu0 %3495  ;;  %v9334_v53 = vsel %vm2263_vm8, 1.0, %v15686_v42 }
 0x70b   : > { %v3477_v63 = vpop.permute.xlu1 %3476 }
 0x70c   : > { %v6625_v57 = vsel %vm6595_vm7, %v5143_v1, %v6624_v9  ;;  %v9336_v1 = vsel %vm2265_vm11, 1.0, %v15686_v42  ;;  %vm2274_vm11 = vcmp.eq.s32.totalorder %v15847_v62, %v11637_v45 }
 0x70d   : > { %v6626_v58 = vsel %vm15827_vm10, %v5150_v56, %v6625_v57  ;;  %v9339_v56 = vsel %vm2268_vm13, 1.0, %v15686_v42 }
 0x70e   : > { %v12463_v23 = vand.u32 4294901760, %v6626_v58 }
 0x70f   : > { %3632 = vperm.xlu2 %9700, %v3627_v27  }
 0x710   : > { %6994 = vmatmul.f32.gmra.mxu3 %v12463_v23  ;;  %v6785_v5 = vsub.f32 %v6626_v58, %v12463_v23  ;;  %v9341_v58 = vsel %vm2270_vm15, 1.0, %v15686_v42  ;;  %vm15854_vm15 = vcmask 1047559  }
 0x711   : > { %3638 = vperm.xlu1 %9701, %v3627_v27   ;;  %v9337_v27 = vsel %vm2266_vm14, 1.0, %v15686_v42 }
 0x712   : > { %7112 = vmatmul.f32.gmra.mxu0 %v6785_v5  ;;  %v6786_v36 = vand.u32 4294901760, %v6785_v5  ;;  %v3516_v46 = vpop.permute.xlu2 %3515 }
 0x713   : > { %v3490_v33 = vpop.permute.xlu1 %3489 }
 0x714   : > { %7230 = vmatmul.f32.gmra.mxu1 %v6786_v36  ;;  %v6787_v12 = vsub.f32 %v6785_v5, %v6786_v36  ;;  %v4697_v57 = vmul.f32 %v9336_v1, %v3490_v33  ;;  %v3692_v5 = vperm.slane %v15833_v15, 1  ;;  %v15843_v36 = vld [vmem:[#allocation138_spill] sm:$0xff]  ;;  %v15846_v33 = vld [vmem:[#allocation141_spill] sm:$0xff] }
 0x715   : > { %vm2273_vm9 = vcmp.eq.s32.totalorder %v15843_v36, %v11637_v45  ;;  %vm2275_vm8 = vcmp.eq.s32.totalorder %v15846_v33, %v11637_v45  ;;  %v3705_v36 = vperm.slane %v15833_v15, 2 }
 0x716   : > { %v6788_v10 = vand.u32 4294901760, %v6787_v12  ;;  %v4699_v12 = vmul.f32 %v9338_v13, %v3503_v43  ;;  %v9344_v22 = vsel %vm2273_vm9, 1.0, %v15686_v42  ;;  %v3561_v13 = vpop.permute.xlu0 %3560 }
 0x717   : > { %3645 = vperm.xlu2 %9700, %v3640_v48  }
 0x718   : > { %6789 = vmatmul.f32.gmra.mxu2 %v6788_v10 }
 0x719   : > { %3651 = vperm.xlu1 %9701, %v3640_v48   ;;  %v15844_v48 = vld [vmem:[#allocation254_spill] sm:$0xff] }
 0x71a   : > { %vm2272_vm10 = vcmp.eq.s32.totalorder %v15844_v48, %v11637_v45 }
 0x71b   : > { %v9343_v43 = vsel %vm2272_vm10, 1.0, %v15686_v42 }
 0x71f   : > { %9702 = vset.pattern.permute.xlu2 %v10069_v28 }
 0x721   : > { %9703 = vset.pattern.permute.xlu1 %v10062_v25  ;;  %v3535_v11 = vpop.permute.xlu2 %3534 }
 0x723   : > { %v3509_v52 = vpop.permute.xlu1 %3508 }
 0x724   : > { %v4700_v10 = vmul.f32 %v9339_v56, %v3509_v52  ;;  %v4696_v52 = vmul.f32 %v9335_v60, %v3483_v0  ;;  %v9347_v56 = vsel %vm2276_vm12, 1.0, %v15686_v42  ;;  %v4704_v0 = vmul.f32 %v9343_v43, %v3535_v11 }
 0x725   : > { %v9346_v60 = vsel %vm2275_vm8, 1.0, %v15686_v42 }
 0x727   : > { %3664 = vperm.xlu2 %9702, %v15832_v47   ;;  %v4695_v47 = vmul.f32 %v9334_v53, %v3477_v63 }
 0x729   : > { %3671 = vperm.xlu1 %9703, %v3666_v14   ;;  %v5151_v53 = vadd.f32 %v4696_v52, %v4695_v47 }
 0x72b   : > { %v3522_v3 = vpop.permute.xlu1 %3521 }
 0x72c   : > { %v4702_v44 = vmul.f32 %v9341_v58, %v3522_v3  ;;  %v3548_v3 = vpop.permute.xlu2 %3547 }
 0x72f   : > { %3677 = vperm.xlu2 %9702, %v3666_v14   ;;  %v4698_v14 = vmul.f32 %v9337_v27, %v3496_v40  ;;  %v5165_v40 = vadd.f32 %v4700_v10, %v4699_v12  ;;  %v4708_v12 = vmul.f32 %v9347_v56, %v3561_v13  ;;  %v5152_v10 = vrot.slane %v5151_v53, 4 }
 0x731   : > { %3684 = vperm.xlu1 %9703, %v15834_v24   ;;  %v9340_v24 = vsel %vm2269_vm1, 1.0, %v15686_v42  ;;  %v5158_v63 = vadd.f32 %v4698_v14, %v4697_v57  ;;  %v5166_v11 = vrot.slane %v5165_v40, 4  ;;  %v5153_v33 = vadd.f32 %v5152_v10, %v5151_v53 }
 0x732   : > { %v4701_v49 = vmul.f32 %v9340_v24, %v3516_v46  ;;  %v9345_v46 = vsel %vm2274_vm11, 1.0, %v15686_v42 }
 0x733   : > { %v5159_v57 = vrot.slane %v5158_v63, 4  ;;  %v4706_v58 = vmul.f32 %v9345_v46, %v3548_v3  ;;  %v5167_v62 = vadd.f32 %v5166_v11, %v5165_v40 }
 0x734   : > { %v5172_v30 = vadd.f32 %v4702_v44, %v4701_v49 }
 0x735   : > { %v5160_v8 = vadd.f32 %v5159_v57, %v5158_v63  ;;  %v5168_v46 = vrot.slane %v5167_v62, 2  ;;  %v15851_v63 = vld [vmem:[#allocation143_spill] sm:$0xff] }
 0x736   : > { %v5173_v14 = vrot.slane %v5172_v30, 4  ;;  %vm2278_vm14 = vcmp.eq.s32.totalorder %v15851_v63, %v11637_v45 }
 0x737   : > { %9704 = vset.pattern.permute.xlu2 %v10062_v25  ;;  %v5161_v3 = vrot.slane %v5160_v8, 2  ;;  %v5169_v53 = vadd.f32 %v5168_v46, %v5167_v62 }
 0x738   : > { %v5174_v50 = vadd.f32 %v5173_v14, %v5172_v30 }
 0x739   : > { %9705 = vset.pattern.permute.xlu1 %v10069_v28  ;;  %v5162_v40 = vadd.f32 %v5161_v3, %v5160_v8  ;;  %v5170_v14 = vrot.slane %v5169_v53, 1  ;;  %v15852_v3 = vperm.slane %v15833_v15, 3 }
 0x73a   : > { %v5175_v13 = vrot.slane %v5174_v50, 2 }
 0x73b   : > { %v3542_v9 = vpop.permute.xlu1 %3541  ;;  %v5171_v46 = vadd.f32 %v5170_v14, %v5169_v53 }
 0x73c   : > { %v4705_v1 = vmul.f32 %v9344_v22, %v3542_v9  ;;  %v15849_v9 = vld [vmem:[#allocation104_spill] sm:$0xff]  ;;  %v3568_v22 = vpop.permute.xlu2 %3567 }
 0x73d   : > { %v4703_v48 = vmul.f32 %v9342_v21, %v15849_v9  ;;  %v5154_v21 = vrot.slane %v5153_v33, 2  ;;  %v9349_v9 = vsel %vm2278_vm14, 1.0, %v15686_v42 }
 0x73e   : > { %v5186_v47 = vadd.f32 %v4706_v58, %v4705_v1  ;;  %v15850_v1 = vld [vmem:[#allocation39_spill] sm:$0xff] }
 0x73f   : > { %3697 = vperm.xlu2 %9704, %v3692_v5   ;;  %v5179_v24 = vadd.f32 %v4704_v0, %v4703_v48  ;;  %vm2277_vm13 = vcmp.eq.s32.totalorder %v15850_v1, %v11637_v45  ;;  %v5155_v30 = vadd.f32 %v5154_v21, %v5153_v33  ;;  %v5176_v0 = vadd.f32 %v5175_v13, %v5174_v50 }
 0x740   : > { %v5187_v43 = vrot.slane %v5186_v47, 4 }
 0x741   : > { %3703 = vperm.xlu1 %9705, %v3692_v5   ;;  %v5180_v52 = vrot.slane %v5179_v24, 4 }
 0x742   : > { %v5188_v56 = vadd.f32 %v5187_v43, %v5186_v47  ;;  %v3731_v47 = vperm.slane %v15833_v15, 4 }
 0x743   : > { %v3555_v27 = vpop.permute.xlu1 %3554 }
 0x744   : > { %v4707_v5 = vmul.f32 %v9346_v60, %v3555_v27  ;;  %v5181_v60 = vadd.f32 %v5180_v52, %v5179_v24  ;;  %v5189_v57 = vrot.slane %v5188_v56, 2  ;;  %v5156_v24 = vrot.slane %v5155_v30, 1  ;;  %v12548_v62 = vpop.permute.xlu2 %3580 }
 0x746   : > { %v5193_v44 = vadd.f32 %v4708_v12, %v4707_v5  ;;  %v5182_v58 = vrot.slane %v5181_v60, 2  ;;  %v9348_v5 = vsel %vm2277_vm13, 1.0, %v15686_v42  ;;  %v5163_v12 = vrot.slane %v5162_v40, 1 }
 0x747   : > { %3710 = vperm.xlu2 %9704, %v3705_v36   ;;  %v4709_v11 = vmul.f32 %v9348_v5, %v3568_v22  ;;  %v5190_v8 = vadd.f32 %v5189_v57, %v5188_v56  ;;  %v5157_v22 = vadd.f32 %v5156_v24, %v5155_v30  ;;  %v15853_v30 = vperm.slane %v15833_v15, 5 }
 0x748   : > { %v5194_v49 = vrot.slane %v5193_v44, 4  ;;  %v5183_v50 = vadd.f32 %v5182_v58, %v5181_v60  ;;  %v5164_v52 = vadd.f32 %v5163_v12, %v5162_v40 }
 0x749   : > { %3716 = vperm.xlu1 %9705, %v3705_v36   ;;  %v5191_v13 = vrot.slane %v5190_v8, 1 }
 0x74a   : > { %v5195_v27 = vadd.f32 %v5194_v49, %v5193_v44  ;;  %v5177_v44 = vrot.slane %v5176_v0, 1  ;;  %v5184_v63 = vrot.slane %v5183_v50, 1  ;;  %v6627_v56 = vsel %vm6585_vm2, %v5164_v52, %v5157_v22  ;;  %v12571_v52 = vpop.f32.mrf.mxu1 }
 0x74b   : > { %15857 = vst [vmem:[#allocation27_spill] sm:$0xff] %v12571_v52  ;;  %v15905_v52 = vperm.slane %v15771_v51, 4 }
 0x74c   : > { %v5196_v36 = vrot.slane %v5195_v27, 2  ;;  %v5178_v21 = vadd.f32 %v5177_v44, %v5176_v0 }
 0x74e   : > { %v5197_v43 = vadd.f32 %v5196_v36, %v5195_v27  ;;  %v5192_v27 = vadd.f32 %v5191_v13, %v5190_v8  ;;  %v5185_v36 = vadd.f32 %v5184_v63, %v5183_v50  ;;  %v12563_v8 = vpop.f32.mrf.mxu3  ;;  %v12568_v50 = vpop.f32.mrf.mxu0  ;;  %v15860_v63 = vld [vmem:[#allocation257_spill] sm:$0xff] }
 0x74f   : > { %9706 = vset.pattern.permute.xlu2 %v10069_v28  ;;  %15855 = vst [vmem:[#allocation60_spill] sm:$0xff] %v12563_v8  ;;  %vm2282_vm9 = vcmp.eq.s32.totalorder %v15860_v63, %v11637_v45 }
 0x750   : > { %v5198_v5 = vrot.slane %v5197_v43, 1  ;;  %15856 = vst [vmem:[#allocation161_spill] sm:$0xff] %v12568_v50 }
 0x751   : > { %9707 = vset.pattern.permute.xlu1 %v10062_v25  ;;  %v3600_v40 = vpop.permute.xlu2 %3599 }
 0x753   : > { %v3574_v48 = vpop.permute.xlu1 %3573 }
 0x754   : > { %v4710_v10 = vmul.f32 %v9349_v9, %v3574_v48  ;;  %v6628_v9 = vsel %vm6587_vm3, %v5171_v46, %v6627_v56  ;;  %v5199_v48 = vadd.f32 %v5198_v5, %v5197_v43  ;;  %v3770_v5 = vperm.slane %v15833_v15, 7  ;;  %v15861_v56 = vld [vmem:[#allocation149_spill] sm:$0xff] }
 0x755   : > { %v6629_v60 = vsel %vm6589_vm4, %v5178_v21, %v6628_v9  ;;  %v12574_v21 = vpop.f32.mrf.mxu2  ;;  %vm2283_vm10 = vcmp.eq.s32.totalorder %v15861_v56, %v11637_v45  ;;  %v15863_v9 = vld [vmem:[#allocation148_spill] sm:$0xff]  ;;  %v15867_v56 = vld [vmem:[#allocation107_spill] sm:$0xff] }
 0x756   : > { %v5200_v33 = vadd.f32 %v4710_v10, %v4709_v11  ;;  %v6630_v0 = vsel %vm6591_vm5, %v5185_v36, %v6629_v60  ;;  %15858 = vst [vmem:[#allocation56_spill] sm:$0xff] %v12574_v21  ;;  %vm2281_vm8 = vcmp.eq.s32.totalorder %v15863_v9, %v11637_v45  ;;  %v15864_v60 = vld [vmem:[#allocation152_spill] sm:$0xff]  ;;  %v15874_v21 = vld [vmem:[#allocation158_spill] sm:$0xff] }
 0x757   : > { %3729 = vperm.xlu2 %9706, %v15852_v3   ;;  %v6631_v11 = vsel %vm6593_vm6, %v5192_v27, %v6630_v0  ;;  %v3757_v3 = vperm.slane %v15833_v15, 6  ;;  %vm2285_vm11 = vcmp.eq.s32.totalorder %v15864_v60, %v11637_v45  ;;  %v15865_v27 = vld [vmem:[#allocation151_spill] sm:$0xff]  ;;  %v9354_v0 = vsel %vm2283_vm10, 1.0, %v15686_v42  ;;  %v15868_v60 = vld [vmem:[#allocation260_spill] sm:$0xff] }
 0x758   : > { %v5201_v49 = vrot.slane %v5200_v33, 4  ;;  %v6632_v10 = vsel %vm6595_vm7, %v5199_v48, %v6631_v11  ;;  %vm2284_vm12 = vcmp.eq.s32.totalorder %v15865_v27, %v11637_v45  ;;  %v3626_v11 = vpop.permute.xlu0 %3625  ;;  %vm2292_vm14 = vcmp.eq.s32.totalorder %v15868_v60, %v11637_v45  ;;  %v15870_v27 = vld [vmem:[#allocation42_spill] sm:$0xff] }
 0x759   : > { %3736 = vperm.xlu1 %9707, %v3731_v47   ;;  %vm2290_vm10 = vcmp.eq.s32.totalorder %v15874_v21, %v11637_v45 }
 0x75a   : > { %v5202_v1 = vadd.f32 %v5201_v49, %v5200_v33  ;;  %v3613_v33 = vpop.permute.xlu2 %3612 }
 0x75b   : > { %v3587_v24 = vpop.permute.xlu1 %3586 }
 0x75c   : > { %v5203_v57 = vrot.slane %v5202_v1, 2 }
 0x75e   : > { %v5204_v58 = vadd.f32 %v5203_v57, %v5202_v1  ;;  %v15859_v1 = vld [vmem:[#allocation146_spill] sm:$0xff]  ;;  %v15862_v57 = vld [vmem:[#allocation145_spill] sm:$0xff] }
 0x75f   : > { %3742 = vperm.xlu2 %9706, %v3731_v47   ;;  %vm2280_vm1 = vcmp.eq.s32.totalorder %v15859_v1, %v11637_v45  ;;  %vm2279_vm0 = vcmp.eq.s32.totalorder %v15862_v57, %v11637_v45 }
 0x760   : > { %v5205_v53 = vrot.slane %v5204_v58, 1  ;;  %v9351_v36 = vsel %vm2280_vm1, 1.0, %v15686_v42  ;;  %vm2287_vm1 = vcmp.eq.s32.totalorder %v15870_v27, %v11637_v45 }
 0x761   : > { %3749 = vperm.xlu1 %9707, %v15853_v30   ;;  %v4712_v30 = vmul.f32 %v9351_v36, %v3587_v24  ;;  %v9355_v24 = vsel %vm2284_vm12, 1.0, %v15686_v42  ;;  %v15871_v36 = vld [vmem:[#allocation155_spill] sm:$0xff]  ;;  %vm15880_vm12 = vcmask 1047559  }
 0x762   : > { %v5206_v12 = vadd.f32 %v5205_v53, %v5204_v58  ;;  %v9353_v58 = vsel %vm2282_vm9, 1.0, %v15686_v42  ;;  %v15866_v53 = vld [vmem:[#allocation154_spill] sm:$0xff]  ;;  %v4716_v63 = vmul.f32 %v9355_v24, %v3613_v33  ;;  %vm2288_vm9 = vcmp.eq.s32.totalorder %v15871_v36, %v11637_v45 }
 0x763   : > { %vm2286_vm13 = vcmp.eq.s32.totalorder %v15866_v53, %v11637_v45  ;;  %v9363_v33 = vsel %vm2292_vm14, 1.0, %v15686_v42 }
 0x764   : > { %v6633_v14 = vsel %vm15854_vm15, %v5206_v12, %v6632_v10  ;;  %v9352_v12 = vsel %vm2281_vm8, 1.0, %v15686_v42  ;;  %v9350_v10 = vsel %vm2279_vm0, 1.0, %v15686_v42  ;;  %v9357_v1 = vsel %vm2286_vm13, 1.0, %v15686_v42 }
 0x765   : > { %v12561_v44 = vand.u32 4294901760, %v6633_v14  ;;  %v4713_v57 = vmul.f32 %v9352_v12, %v15867_v56  ;;  %v4718_v9 = vmul.f32 %v9357_v1, %v3626_v11 }
 0x767   : > { %6998 = vmatmul.f32.gmra.mxu3 %v12561_v44  ;;  %v6793_v47 = vsub.f32 %v6633_v14, %v12561_v44  ;;  %9708 = vset.pattern.permute.xlu2 %v10062_v25 }
 0x769   : > { %9709 = vset.pattern.permute.xlu1 %v10069_v28  ;;  %7117 = vmatmul.f32.gmra.mxu0 %v6793_v47  ;;  %v6794_v43 = vand.u32 4294901760, %v6793_v47  ;;  %v3633_v13 = vpop.permute.xlu2 %3632 }
 0x76b   : > { %7236 = vmatmul.f32.gmra.mxu1 %v6794_v43  ;;  %v6795_v49 = vsub.f32 %v6793_v47, %v6794_v43  ;;  %v3607_v46 = vpop.permute.xlu1 %3606  ;;  %v9356_v47 = vsel %vm2285_vm11, 1.0, %v15686_v42  ;;  %v4711_v43 = vmul.f32 %v9350_v10, %v12548_v62  ;;  %v15869_v62 = vld [vmem:[#allocation159_spill] sm:$0xff] }
 0x76c   : > { %v4715_v14 = vmul.f32 %v9354_v0, %v3607_v46  ;;  %vm2291_vm15 = vcmp.eq.s32.totalorder %v15869_v62, %v11637_v45  ;;  %v15872_v10 = vld [vmem:[#allocation111_spill] sm:$0xff] }
 0x76d   : > { %v6796_v22 = vand.u32 4294901760, %v6795_v49  ;;  %v4714_v49 = vmul.f32 %v9353_v58, %v3600_v40  ;;  %v5207_v46 = vadd.f32 %v4712_v30, %v4711_v43 }
 0x76e   : > { %v5221_v40 = vadd.f32 %v4716_v63, %v4715_v14 }
 0x76f   : > { %6797 = vmatmul.f32.gmra.mxu2 %v6796_v22  ;;  %3762 = vperm.xlu2 %9708, %v3757_v3   ;;  %v5208_v53 = vrot.slane %v5207_v46, 4 }
 0x770   : > { %v5222_v30 = vrot.slane %v5221_v40, 4 }
 0x771   : > { %3768 = vperm.xlu1 %9709, %v3757_v3   ;;  %v3646_v3 = vpop.permute.xlu2 %3645 }
 0x772   : > { %v5223_v56 = vadd.f32 %v5222_v30, %v5221_v40 }
 0x773   : > { %v3620_v48 = vpop.permute.xlu1 %3619 }
 0x774   : > { %v4717_v22 = vmul.f32 %v9356_v47, %v3620_v48  ;;  %v9362_v48 = vsel %vm2291_vm15, 1.0, %v15686_v42  ;;  %v9358_v47 = vsel %vm2287_vm1, 1.0, %v15686_v42 }
 0x775   : > { %v4723_v14 = vmul.f32 %v9362_v48, %v15872_v10  ;;  %v4719_v1 = vmul.f32 %v9358_v47, %v3633_v13  ;;  %v15875_v48 = vld [vmem:[#allocation157_spill] sm:$0xff]  ;;  %v5224_v13 = vrot.slane %v5223_v56, 2 }
 0x776   : > { %v5228_v58 = vadd.f32 %v4718_v9, %v4717_v22  ;;  %v5209_v22 = vadd.f32 %v5208_v53, %v5207_v46  ;;  %v15873_v9 = vld [vmem:[#allocation11_spill] sm:$0xff]  ;;  %vm2289_vm0 = vcmp.eq.s32.totalorder %v15875_v48, %v11637_v45 }
 0x777   : > { %3775 = vperm.xlu2 %9708, %v3770_v5   ;;  %v3796_v60 = vperm.slane %v15873_v9, 1  ;;  %v15876_v46 = vperm.slane %v15873_v9, 0 }
 0x778   : > { %v5229_v12 = vrot.slane %v5228_v58, 4 }
 0x779   : > { %3781 = vperm.xlu1 %9709, %v3770_v5   ;;  %v5214_v5 = vadd.f32 %v4714_v49, %v4713_v57  ;;  %v9359_v49 = vsel %vm2288_vm9, 1.0, %v15686_v42 }
 0x77a   : > { %v5230_v27 = vadd.f32 %v5229_v12, %v5228_v58 }
 0x77b   : > { %v5215_v0 = vrot.slane %v5214_v5, 4 }
 0x77c   : > { %v5231_v53 = vrot.slane %v5230_v27, 2 }
 0x77d   : > { %v5216_v62 = vadd.f32 %v5215_v0, %v5214_v5  ;;  %v9360_v5 = vsel %vm2289_vm0, 1.0, %v15686_v42  ;;  %v9361_v0 = vsel %vm2290_vm10, 1.0, %v15686_v42 }
 0x77e   : > { %v4721_v10 = vmul.f32 %v9360_v5, %v3646_v3 }
 0x77f   : > { %9710 = vset.pattern.permute.xlu2 %v10069_v28  ;;  %v5217_v40 = vrot.slane %v5216_v62, 2 }
 0x781   : > { %9711 = vset.pattern.permute.xlu1 %v10062_v25  ;;  %v3665_v11 = vpop.permute.xlu2 %3664 }
 0x782   : > { %v4724_v43 = vmul.f32 %v9363_v33, %v3665_v11  ;;  %v5210_v33 = vrot.slane %v5209_v22, 2 }
 0x783   : > { %v3639_v24 = vpop.permute.xlu1 %3638 }
 0x784   : > { %v4720_v63 = vmul.f32 %v9359_v49, %v3639_v24  ;;  %v5249_v57 = vadd.f32 %v4724_v43, %v4723_v14  ;;  %v5211_v21 = vadd.f32 %v5210_v33, %v5209_v22  ;;  %v5225_v43 = vadd.f32 %v5224_v13, %v5223_v56 }
 0x785   : > { %v5218_v49 = vadd.f32 %v5217_v40, %v5216_v62  ;;  %v5232_v24 = vadd.f32 %v5231_v53, %v5230_v27 }
 0x786   : > { %v5235_v36 = vadd.f32 %v4720_v63, %v4719_v1  ;;  %v5250_v8 = vrot.slane %v5249_v57, 4 }
 0x787   : > { %3794 = vperm.xlu2 %9710, %v15876_v46   ;;  %v5212_v46 = vrot.slane %v5211_v21, 1 }
 0x788   : > { %v5236_v11 = vrot.slane %v5235_v36, 4  ;;  %v5251_v58 = vadd.f32 %v5250_v8, %v5249_v57  ;;  %v5219_v8 = vrot.slane %v5218_v49, 1  ;;  %v5233_v57 = vrot.slane %v5232_v24, 1 }
 0x789   : > { %3801 = vperm.xlu1 %9711, %v3796_v60   ;;  %v5213_v33 = vadd.f32 %v5212_v46, %v5211_v21 }
 0x78a   : > { %v5237_v30 = vadd.f32 %v5236_v11, %v5235_v36  ;;  %v5252_v63 = vrot.slane %v5251_v58, 2  ;;  %v5226_v36 = vrot.slane %v5225_v43, 1  ;;  %v15877_v11 = vperm.slane %v15873_v9, 2 }
 0x78b   : > { %v3652_v12 = vpop.permute.xlu1 %3651  ;;  %v5220_v62 = vadd.f32 %v5219_v8, %v5218_v49  ;;  %v5234_v27 = vadd.f32 %v5233_v57, %v5232_v24 }
 0x78c   : > { %v5238_v14 = vrot.slane %v5237_v30, 2  ;;  %v4722_v47 = vmul.f32 %v9361_v0, %v3652_v12  ;;  %v5253_v22 = vadd.f32 %v5252_v63, %v5251_v58  ;;  %v5227_v56 = vadd.f32 %v5226_v36, %v5225_v43  ;;  %v3678_v58 = vpop.permute.xlu2 %3677 }
 0x78d   : > { %v6634_v0 = vsel %vm6585_vm2, %v5220_v62, %v5213_v33  ;;  %v3822_v63 = vperm.slane %v15873_v9, 3 }
 0x78e   : > { %v5242_v1 = vadd.f32 %v4722_v47, %v4721_v10  ;;  %v5239_v48 = vadd.f32 %v5238_v14, %v5237_v30  ;;  %v5254_v40 = vrot.slane %v5253_v22, 1  ;;  %v15878_v30 = vld [vmem:[#allocation160_spill] sm:$0xff] }
 0x78f   : > { %3807 = vperm.xlu2 %9710, %v3796_v60   ;;  %vm2293_vm8 = vcmp.eq.s32.totalorder %v15878_v30, %v11637_v45  ;;  %v15879_v60 = vld [vmem:[#allocation162_spill] sm:$0xff]  ;;  %v12659_v30 = vpop.f32.mrf.mxu1 }
 0x790   : > { %v5243_v2 = vrot.slane %v5242_v1, 4  ;;  %v5240_v3 = vrot.slane %v5239_v48, 1  ;;  %vm2294_vm11 = vcmp.eq.s32.totalorder %v15879_v60, %v11637_v45  ;;  %v5255_v10 = vadd.f32 %v5254_v40, %v5253_v22  ;;  %v12656_v40 = vpop.f32.mrf.mxu0  ;;  %15883 = vst [vmem:[#allocation62_spill] sm:$0xff] %v12659_v30 }
 0x791   : > { %3814 = vperm.xlu1 %9711, %v15877_v11   ;;  %v9365_v47 = vsel %vm2294_vm11, 1.0, %v15686_v42  ;;  %v9364_v43 = vsel %vm2293_vm8, 1.0, %v15686_v42  ;;  %v3835_v22 = vperm.slane %v15873_v9, 4  ;;  %15882 = vst [vmem:[#allocation63_spill] sm:$0xff] %v12656_v40 }
 0x792   : > { %v5244_v31 = vadd.f32 %v5243_v2, %v5242_v1  ;;  %v5241_v53 = vadd.f32 %v5240_v3, %v5239_v48  ;;  %v6635_v2 = vsel %vm6587_vm3, %v5227_v56, %v6634_v0  ;;  %v4726_v24 = vmul.f32 %v9365_v47, %v3678_v58  ;;  %v12662_v58 = vpop.f32.mrf.mxu2 }
 0x793   : > { %15884 = vst [vmem:[#allocation66_spill] sm:$0xff] %v12662_v58 }
 0x794   : > { %v5245_v5 = vrot.slane %v5244_v31, 2 }
 0x796   : > { %v5246_v13 = vadd.f32 %v5245_v5, %v5244_v31  ;;  %v6636_v31 = vsel %vm6589_vm4, %v5234_v27, %v6635_v2  ;;  %v12651_v27 = vpop.f32.mrf.mxu3  ;;  %v3861_v2 = vperm.slane %v15873_v9, 6 }
 0x797   : > { %9712 = vset.pattern.permute.xlu2 %v10062_v25  ;;  %v6637_v14 = vsel %vm6591_vm5, %v5241_v53, %v6636_v31  ;;  %15881 = vst [vmem:[#allocation59_spill] sm:$0xff] %v12651_v27 }
 0x798   : > { %v5247_v12 = vrot.slane %v5246_v13, 1 }
 0x799   : > { %9713 = vset.pattern.permute.xlu1 %v10069_v28  ;;  %v3698_v31 = vpop.permute.xlu2 %3697 }
 0x79a   : > { %v5248_v21 = vadd.f32 %v5247_v12, %v5246_v13 }
 0x79b   : > { %v3672_v49 = vpop.permute.xlu1 %3671 }
 0x79c   : > { %v4725_v1 = vmul.f32 %v9364_v43, %v3672_v49  ;;  %v6638_v48 = vsel %vm6593_vm6, %v5248_v21, %v6637_v14  ;;  %v15885_v21 = vperm.slane %v15873_v9, 5  ;;  %v15886_v14 = vperm.slane %v15873_v9, 7 }
 0x79d   : > { %v6639_v46 = vsel %vm6595_vm7, %v5255_v10, %v6638_v48  ;;  %v15887_v48 = vld [vmem:[#allocation163_spill] sm:$0xff] }
 0x79e   : > { %v5256_v36 = vadd.f32 %v4726_v24, %v4725_v1  ;;  %v3887_v24 = vperm.slane %v15771_v51, 0  ;;  %vm2295_vm13 = vcmp.eq.s32.totalorder %v15887_v48, %v11637_v45 }
 0x79f   : > { %3827 = vperm.xlu2 %9712, %v3822_v63  }
 0x7a0   : > { %v5257_v11 = vrot.slane %v5256_v36, 4 }
 0x7a1   : > { %3833 = vperm.xlu1 %9713, %v3822_v63   ;;  %v3711_v47 = vpop.permute.xlu2 %3710  ;;  %v3691_v63 = vpop.permute.xlu0 %3690 }
 0x7a2   : > { %v5258_v8 = vadd.f32 %v5257_v11, %v5256_v36  ;;  %v15889_v36 = vld [vmem:[#allocation167_spill] sm:$0xff]  ;;  %v15890_v11 = vld [vmem:[#allocation45_spill] sm:$0xff] }
 0x7a3   : > { %v3685_v60 = vpop.permute.xlu1 %3684  ;;  %vm2300_vm15 = vcmp.eq.s32.totalorder %v15889_v36, %v11637_v45  ;;  %vm2297_vm1 = vcmp.eq.s32.totalorder %v15890_v11, %v11637_v45  ;;  %v15897_v36 = vld [vmem:[#allocation170_spill] sm:$0xff] }
 0x7a4   : > { %v5259_v57 = vrot.slane %v5258_v8, 2 }
 0x7a6   : > { %v5260_v3 = vadd.f32 %v5259_v57, %v5258_v8  ;;  %v15891_v8 = vld [vmem:[#allocation166_spill] sm:$0xff]  ;;  %v15892_v57 = vld [vmem:[#allocation263_spill] sm:$0xff] }
 0x7a7   : > { %3840 = vperm.xlu2 %9712, %v3835_v22   ;;  %vm2299_vm9 = vcmp.eq.s32.totalorder %v15891_v8, %v11637_v45  ;;  %vm2302_vm10 = vcmp.eq.s32.totalorder %v15892_v57, %v11637_v45 }
 0x7a8   : > { %v5261_v33 = vrot.slane %v5260_v3, 1 }
 0x7a9   : > { %3846 = vperm.xlu1 %9713, %v3835_v22   ;;  %v9366_v22 = vsel %vm2295_vm13, 1.0, %v15686_v42  ;;  %vm2304_vm13 = vcmp.eq.s32.totalorder %v15897_v36, %v11637_v45  ;;  %v3756_v57 = vpop.permute.xlu0 %3755 }
 0x7aa   : > { %v5262_v5 = vadd.f32 %v5261_v33, %v5260_v3  ;;  %v15893_v33 = vld [vmem:[#allocation164_spill] sm:$0xff]  ;;  %v4727_v48 = vmul.f32 %v9366_v22, %v3685_v60 }
 0x7ab   : > { %vm2296_vm0 = vcmp.eq.s32.totalorder %v15893_v33, %v11637_v45 }
 0x7ac   : > { %v6640_v56 = vsel %vm15880_vm12, %v5262_v5, %v6639_v46  ;;  %v15888_v46 = vld [vmem:[#allocation165_spill] sm:$0xff]  ;;  %v9367_v11 = vsel %vm2296_vm0, 1.0, %v15686_v42  ;;  %vm15906_vm0 = vcmask 1047559  }
 0x7ad   : > { %v12649_v62 = vand.u32 4294901760, %v6640_v56  ;;  %vm2298_vm14 = vcmp.eq.s32.totalorder %v15888_v46, %v11637_v45  ;;  %v9373_v46 = vsel %vm2302_vm10, 1.0, %v15686_v42  ;;  %v4728_v33 = vmul.f32 %v9367_v11, %v3691_v63  ;;  %v15899_v11 = vld [vmem:[#allocation115_spill] sm:$0xff] }
 0x7ae   : > { %v9369_v3 = vsel %vm2298_vm14, 1.0, %v15686_v42 }
 0x7af   : > { %7002 = vmatmul.f32.gmra.mxu3 %v12649_v62  ;;  %v6801_v13 = vsub.f32 %v6640_v56, %v12649_v62  ;;  %9714 = vset.pattern.permute.xlu2 %v10069_v28 }
 0x7b1   : > { %9715 = vset.pattern.permute.xlu1 %v10062_v25  ;;  %7122 = vmatmul.f32.gmra.mxu0 %v6801_v13  ;;  %v6802_v53 = vand.u32 4294901760, %v6801_v13  ;;  %v3730_v49 = vpop.permute.xlu2 %3729 }
 0x7b2   : > { %v4734_v63 = vmul.f32 %v9373_v46, %v3730_v49  ;;  %v15900_v49 = vld [vmem:[#allocation47_spill] sm:$0xff]  ;;  %v15901_v46 = vld [vmem:[#allocation174_spill] sm:$0xff] }
 0x7b3   : > { %7242 = vmatmul.f32.gmra.mxu1 %v6802_v53  ;;  %v6803_v0 = vsub.f32 %v6801_v13, %v6802_v53  ;;  %v3704_v10 = vpop.permute.xlu1 %3703  ;;  %v9371_v13 = vsel %vm2300_vm15, 1.0, %v15686_v42  ;;  %v3900_v53 = vperm.slane %v15771_v51, 1  ;;  %vm2307_vm15 = vcmp.eq.s32.totalorder %v15900_v49, %v11637_v45 }
 0x7b4   : > { %v4730_v5 = vmul.f32 %v9369_v3, %v3704_v10  ;;  %v15898_v3 = vld [vmem:[#allocation173_spill] sm:$0xff] }
 0x7b5   : > { %v6804_v12 = vand.u32 4294901760, %v6803_v0  ;;  %v15894_v0 = vld [vmem:[#allocation169_spill] sm:$0xff]  ;;  %vm2306_vm14 = vcmp.eq.s32.totalorder %v15898_v3, %v11637_v45 }
 0x7b6   : > { %vm2303_vm8 = vcmp.eq.s32.totalorder %v15894_v0, %v11637_v45 }
 0x7b7   : > { %6805 = vmatmul.f32.gmra.mxu2 %v6804_v12  ;;  %3859 = vperm.xlu2 %9714, %v15885_v21   ;;  %v9368_v12 = vsel %vm2297_vm1, 1.0, %v15686_v42  ;;  %v9374_v60 = vsel %vm2303_vm8, 1.0, %v15686_v42  ;;  %vm2308_vm1 = vcmp.eq.s32.totalorder %v15901_v46, %v11637_v45 }
 0x7b8   : > { %v4729_v10 = vmul.f32 %v9368_v12, %v3698_v31 }
 0x7b9   : > { %3866 = vperm.xlu1 %9715, %v3861_v2   ;;  %v3743_v56 = vpop.permute.xlu2 %3742 }
 0x7bb   : > { %v3717_v43 = vpop.permute.xlu1 %3716 }
 0x7bc   : > { %v4732_v21 = vmul.f32 %v9371_v13, %v3717_v43  ;;  %v5270_v13 = vadd.f32 %v4730_v5, %v4729_v10  ;;  %v9375_v5 = vsel %vm2304_vm13, 1.0, %v15686_v42 }
 0x7bd   : > { %v4736_v10 = vmul.f32 %v9375_v5, %v3743_v56 }
 0x7bf   : > { %3872 = vperm.xlu2 %9714, %v3861_v2   ;;  %v9370_v2 = vsel %vm2299_vm9, 1.0, %v15686_v42 }
 0x7c0   : > { %v4731_v8 = vmul.f32 %v9370_v2, %v3711_v47  ;;  %v5263_v2 = vadd.f32 %v4728_v33, %v4727_v48 }
 0x7c1   : > { %3879 = vperm.xlu1 %9715, %v15886_v14   ;;  %v15895_v14 = vld [vmem:[#allocation168_spill] sm:$0xff] }
 0x7c2   : > { %vm2301_vm11 = vcmp.eq.s32.totalorder %v15895_v14, %v11637_v45  ;;  %v5277_v22 = vadd.f32 %v4732_v21, %v4731_v8  ;;  %v9377_v14 = vsel %vm2306_vm14, 1.0, %v15686_v42  ;;  %v5271_v8 = vrot.slane %v5270_v13, 4 }
 0x7c3   : > { %v9372_v31 = vsel %vm2301_vm11, 1.0, %v15686_v42  ;;  %v5264_v27 = vrot.slane %v5263_v2, 4 }
 0x7c4   : > { %v4733_v21 = vmul.f32 %v9372_v31, %v15899_v11  ;;  %v5272_v36 = vadd.f32 %v5271_v8, %v5270_v13  ;;  %v3926_v13 = vperm.slane %v15771_v51, 3 }
 0x7c5   : > { %v5265_v33 = vadd.f32 %v5264_v27, %v5263_v2  ;;  %v15902_v27 = vld [vmem:[#allocation176_spill] sm:$0xff]  ;;  %v15903_v2 = vld [vmem:[#allocation175_spill] sm:$0xff] }
 0x7c6   : > { %v5273_v5 = vrot.slane %v5272_v36, 2  ;;  %vm2310_vm9 = vcmp.eq.s32.totalorder %v15902_v27, %v11637_v45  ;;  %vm2309_vm10 = vcmp.eq.s32.totalorder %v15903_v2, %v11637_v45 }
 0x7c7   : > { %9716 = vset.pattern.permute.xlu2 %v10062_v25 }
 0x7c8   : > { %v5274_v49 = vadd.f32 %v5273_v5, %v5272_v36 }
 0x7c9   : > { %9717 = vset.pattern.permute.xlu1 %v10069_v28  ;;  %v3763_v3 = vpop.permute.xlu2 %3762 }
 0x7cb   : > { %v3737_v1 = vpop.permute.xlu1 %3736 }
 0x7cc   : > { %v4735_v12 = vmul.f32 %v9374_v60, %v3737_v1  ;;  %v4738_v1 = vmul.f32 %v9377_v14, %v3756_v57  ;;  %v5278_v60 = vrot.slane %v5277_v22, 4 }
 0x7ce   : > { %v5279_v56 = vadd.f32 %v5278_v60, %v5277_v22 }
 0x7cf   : > { %3892 = vperm.xlu2 %9716, %v3887_v24  }
 0x7d1   : > { %3898 = vperm.xlu1 %9717, %v3887_v24   ;;  %v15896_v24 = vld [vmem:[#allocation171_spill] sm:$0xff] }
 0x7d2   : > { %vm2305_vm12 = vcmp.eq.s32.totalorder %v15896_v24, %v11637_v45  ;;  %v5291_v24 = vadd.f32 %v4736_v10, %v4735_v12  ;;  %v9378_v12 = vsel %vm2307_vm15, 1.0, %v15686_v42  ;;  %v5280_v10 = vrot.slane %v5279_v56, 2 }
 0x7d3   : > { %v3750_v43 = vpop.permute.xlu1 %3749  ;;  %v9376_v47 = vsel %vm2305_vm12, 1.0, %v15686_v42 }
 0x7d4   : > { %v4737_v0 = vmul.f32 %v9376_v47, %v3750_v43  ;;  %v5292_v43 = vrot.slane %v5291_v24, 4  ;;  %v9379_v47 = vsel %vm2308_vm1, 1.0, %v15686_v42 }
 0x7d6   : > { %v5298_v48 = vadd.f32 %v4738_v1, %v4737_v0  ;;  %v4739_v0 = vmul.f32 %v9378_v12, %v3763_v3  ;;  %v5293_v11 = vadd.f32 %v5292_v43, %v5291_v24  ;;  %v3776_v1 = vpop.permute.xlu2 %3775  ;;  %v15904_v3 = vperm.slane %v15771_v51, 2 }
 0x7d7   : > { %3905 = vperm.xlu2 %9716, %v3900_v53   ;;  %v5281_v12 = vadd.f32 %v5280_v10, %v5279_v56 }
 0x7d8   : > { %v5299_v57 = vrot.slane %v5298_v48, 4  ;;  %v5294_v24 = vrot.slane %v5293_v11, 2 }
 0x7d9   : > { %3911 = vperm.xlu1 %9717, %v3900_v53   ;;  %v5284_v53 = vadd.f32 %v4734_v63, %v4733_v21  ;;  %v5266_v21 = vrot.slane %v5265_v33, 2  ;;  %v5282_v5 = vrot.slane %v5281_v12, 1 }
 0x7da   : > { %v5300_v8 = vadd.f32 %v5299_v57, %v5298_v48  ;;  %v9380_v48 = vsel %vm2309_vm10, 1.0, %v15686_v42  ;;  %v9381_v57 = vsel %vm2310_vm9, 1.0, %v15686_v42  ;;  %v5295_v2 = vadd.f32 %v5294_v24, %v5293_v11 }
 0x7db   : > { %v5285_v31 = vrot.slane %v5284_v53, 4  ;;  %v5267_v43 = vadd.f32 %v5266_v21, %v5265_v33 }
 0x7dc   : > { %v5296_v40 = vrot.slane %v5295_v2, 1 }
 0x7dd   : > { %v5286_v22 = vadd.f32 %v5285_v31, %v5284_v53  ;;  %v5301_v53 = vrot.slane %v5300_v8, 2  ;;  %v5268_v58 = vrot.slane %v5267_v43, 1 }
 0x7df   : > { %9718 = vset.pattern.permute.xlu2 %v10069_v28  ;;  %v5302_v56 = vadd.f32 %v5301_v53, %v5300_v8 }
 0x7e1   : > { %9719 = vset.pattern.permute.xlu1 %v10062_v25  ;;  %v12738_v10 = vpop.permute.xlu2 %3794 }
 0x7e3   : > { %v3769_v63 = vpop.permute.xlu1 %3768 }
 0x7e4   : > { %v4740_v14 = vmul.f32 %v9379_v47, %v3769_v63  ;;  %v5287_v47 = vrot.slane %v5286_v22, 2 }
 0x7e6   : > { %v5305_v60 = vadd.f32 %v4740_v14, %v4739_v0  ;;  %v5275_v0 = vrot.slane %v5274_v49, 1  ;;  %v4741_v14 = vmul.f32 %v9380_v48, %v3776_v1  ;;  %v5269_v1 = vadd.f32 %v5268_v58, %v5267_v43 }
 0x7e7   : > { %3924 = vperm.xlu2 %9718, %v15904_v3   ;;  %v5288_v3 = vadd.f32 %v5287_v47, %v5286_v22  ;;  %v5297_v47 = vadd.f32 %v5296_v40, %v5295_v2  ;;  %v12754_v2 = vpop.f32.mrf.mxu3 }
 0x7e8   : > { %v5306_v46 = vrot.slane %v5305_v60, 4  ;;  %v5276_v30 = vadd.f32 %v5275_v0, %v5274_v49  ;;  %15907 = vst [vmem:[#allocation9_spill] sm:$0xff] %v12754_v2  ;;  %v15924_v2 = vld [vmem:[#allocation184_spill] sm:$0xff] }
 0x7e9   : > { %3931 = vperm.xlu1 %9719, %v3926_v13   ;;  %v5289_v48 = vrot.slane %v5288_v3, 1  ;;  %v3808_v0 = vpop.permute.xlu2 %3807 }
 0x7ea   : > { %v5307_v31 = vadd.f32 %v5306_v46, %v5305_v60  ;;  %v5283_v46 = vadd.f32 %v5282_v5, %v5281_v12  ;;  %v6641_v22 = vsel %vm6585_vm2, %v5276_v30, %v5269_v1  ;;  %v3965_v1 = vperm.slane %v15771_v51, 6 }
 0x7eb   : > { %v3782_v63 = vpop.permute.xlu1 %3781  ;;  %v5290_v53 = vadd.f32 %v5289_v48, %v5288_v3  ;;  %v15910_v48 = vld [vmem:[#allocation266_spill] sm:$0xff] }
 0x7ec   : > { %v5308_v27 = vrot.slane %v5307_v31, 2  ;;  %v4742_v36 = vmul.f32 %v9381_v57, %v3782_v63  ;;  %v5303_v57 = vrot.slane %v5302_v56, 1  ;;  %v6642_v24 = vsel %vm6587_vm3, %v5283_v46, %v6641_v22  ;;  %v15913_v22 = vld [vmem:[#allocation177_spill] sm:$0xff] }
 0x7ed   : > { %v6643_v12 = vsel %vm6589_vm4, %v5290_v53, %v6642_v24  ;;  %vm2312_vm8 = vcmp.eq.s32.totalorder %v15910_v48, %v11637_v45  ;;  %vm2311_vm13 = vcmp.eq.s32.totalorder %v15913_v22, %v11637_v45  ;;  %v12773_v24 = vpop.f32.mrf.mxu2  ;;  %v15918_v48 = vld [vmem:[#allocation118_spill] sm:$0xff] }
 0x7ee   : > { %v5312_v33 = vadd.f32 %v4742_v36, %v4741_v14  ;;  %v5309_v21 = vadd.f32 %v5308_v27, %v5307_v31  ;;  %v5304_v49 = vadd.f32 %v5303_v57, %v5302_v56  ;;  %v3952_v27 = vperm.slane %v15771_v51, 5  ;;  %v15911_v57 = vld [vmem:[#allocation178_spill] sm:$0xff]  ;;  %15915 = vst [vmem:[#allocation83_spill] sm:$0xff] %v12773_v24 }
 0x7ef   : > { %3937 = vperm.xlu2 %9718, %v3926_v13   ;;  %vm2313_vm11 = vcmp.eq.s32.totalorder %v15911_v57, %v11637_v45  ;;  %v9383_v53 = vsel %vm2312_vm8, 1.0, %v15686_v42  ;;  %v15919_v57 = vld [vmem:[#allocation185_spill] sm:$0xff]  ;;  %vm2320_vm8 = vcmp.eq.s32.totalorder %v15924_v2, %v11637_v45 }
 0x7f0   : > { %v5313_v60 = vrot.slane %v5312_v33, 4  ;;  %v5310_v11 = vrot.slane %v5309_v21, 1  ;;  %vm2321_vm9 = vcmp.eq.s32.totalorder %v15919_v57, %v11637_v45 }
 0x7f1   : > { %3944 = vperm.xlu1 %9719, %v15905_v52   ;;  %v6644_v52 = vsel %vm6591_vm5, %v5297_v47, %v6643_v12 }
 0x7f2   : > { %v5314_v63 = vadd.f32 %v5313_v60, %v5312_v33  ;;  %v5311_v13 = vadd.f32 %v5310_v11, %v5309_v21  ;;  %v6645_v30 = vsel %vm6593_vm6, %v5304_v49, %v6644_v52  ;;  %v12758_v33 = vpop.f32.mrf.mxu0  ;;  %v12760_v60 = vpop.f32.mrf.mxu1  ;;  %v15912_v11 = vld [vmem:[#allocation180_spill] sm:$0xff]  ;;  %v15916_v49 = vld [vmem:[#allocation181_spill] sm:$0xff]  ;;  %v9382_v52 = vsel %vm2311_vm13, 1.0, %v15686_v42 }
 0x7f3   : > { %15908 = vst [vmem:[#allocation172_spill] sm:$0xff] %v12758_v33  ;;  %vm2315_vm12 = vcmp.eq.s32.totalorder %v15912_v11, %v11637_v45  ;;  %vm2316_vm15 = vcmp.eq.s32.totalorder %v15916_v49, %v11637_v45  ;;  %v15920_v11 = vld [vmem:[#allocation182_spill] sm:$0xff] }
 0x7f4   : > { %v5315_v8 = vrot.slane %v5314_v63, 2  ;;  %v6646_v43 = vsel %vm6595_vm7, %v5311_v13, %v6645_v30  ;;  %15909 = vst [vmem:[#allocation65_spill] sm:$0xff] %v12760_v60  ;;  %v3821_v13 = vpop.permute.xlu0 %3820  ;;  %vm2318_vm10 = vcmp.eq.s32.totalorder %v15920_v11, %v11637_v45 }
 0x7f6   : > { %v5316_v31 = vadd.f32 %v5315_v8, %v5314_v63  ;;  %v15914_v8 = vld [vmem:[#allocation179_spill] sm:$0xff] }
 0x7f7   : > { %9720 = vset.pattern.permute.xlu2 %v10062_v25  ;;  %vm2314_vm14 = vcmp.eq.s32.totalorder %v15914_v8, %v11637_v45  ;;  %v15921_v8 = vld [vmem:[#allocation48_spill] sm:$0xff] }
 0x7f8   : > { %v5317_v14 = vrot.slane %v5316_v31, 1 }
 0x7f9   : > { %9721 = vset.pattern.permute.xlu1 %v10069_v28  ;;  %v3828_v56 = vpop.permute.xlu2 %3827 }
 0x7fa   : > { %v5318_v58 = vadd.f32 %v5317_v14, %v5316_v31  ;;  %v9384_v31 = vsel %vm2313_vm11, 1.0, %v15686_v42  ;;  %v9386_v14 = vsel %vm2315_vm12, 1.0, %v15686_v42 }
 0x7fb   : > { %v3802_v36 = vpop.permute.xlu1 %3801 }
 0x7fc   : > { %v6647_v40 = vsel %vm15906_vm0, %v5318_v58, %v6646_v43  ;;  %v4745_v12 = vmul.f32 %v9384_v31, %v3802_v36  ;;  %v9385_v58 = vsel %vm2314_vm14, 1.0, %v15686_v42  ;;  %v4743_v36 = vmul.f32 %v9382_v52, %v15918_v48 }
 0x7fd   : > { %v12752_v5 = vand.u32 4294901760, %v6647_v40  ;;  %vm2317_vm0 = vcmp.eq.s32.totalorder %v15921_v8, %v11637_v45  ;;  %v9389_v31 = vsel %vm2318_vm10, 1.0, %v15686_v42 }
 0x7fe   : > { %v9388_v52 = vsel %vm2317_vm0, 1.0, %v15686_v42 }
 0x7ff   : > { %7006 = vmatmul.f32.gmra.mxu3 %v12752_v5  ;;  %v6809_v3 = vsub.f32 %v6647_v40, %v12752_v5  ;;  %3957 = vperm.xlu2 %9720, %v3952_v27   ;;  %v9387_v40 = vsel %vm2316_vm15, 1.0, %v15686_v42 }
 0x801   : > { %3963 = vperm.xlu1 %9721, %v3952_v27   ;;  %7127 = vmatmul.f32.gmra.mxu0 %v6809_v3  ;;  %v6810_v21 = vand.u32 4294901760, %v6809_v3  ;;  %v3841_v30 = vpop.permute.xlu2 %3840  ;;  %v4744_v27 = vmul.f32 %v9383_v53, %v12738_v10 }
 0x803   : > { %7248 = vmatmul.f32.gmra.mxu1 %v6810_v21  ;;  %v6811_v46 = vsub.f32 %v6809_v3, %v6810_v21  ;;  %v3815_v47 = vpop.permute.xlu1 %3814  ;;  %v4746_v3 = vmul.f32 %v9385_v58, %v3808_v0  ;;  %v4748_v21 = vmul.f32 %v9387_v40, %v3821_v13  ;;  %v5319_v22 = vadd.f32 %v4744_v27, %v4743_v36  ;;  %v15922_v13 = vld [vmem:[#allocation121_spill] sm:$0xff] }
 0x804   : > { %v4747_v43 = vmul.f32 %v9386_v14, %v3815_v47  ;;  %v9392_v0 = vsel %vm2321_vm9, 1.0, %v15686_v42  ;;  %v4749_v40 = vmul.f32 %v9388_v52, %v3828_v56 }
 0x805   : > { %v6812_v63 = vand.u32 4294901760, %v6811_v46  ;;  %v15917_v46 = vld [vmem:[#allocation269_spill] sm:$0xff]  ;;  %v5320_v14 = vrot.slane %v5319_v22, 4 }
 0x806   : > { %vm2322_vm1 = vcmp.eq.s32.totalorder %v15917_v46, %v11637_v45  ;;  %v15923_v46 = vld [vmem:[#allocation15_spill] sm:$0xff] }
 0x807   : > { %6813 = vmatmul.f32.gmra.mxu2 %v6812_v63  ;;  %3970 = vperm.xlu2 %9720, %v3965_v1   ;;  %v5333_v63 = vadd.f32 %v4748_v21, %v4747_v43  ;;  %v9393_v10 = vsel %vm2322_vm1, 1.0, %v15686_v42  ;;  %v3991_v48 = vperm.slane %v15923_v46, 0  ;;  %v5321_v11 = vadd.f32 %v5320_v14, %v5319_v22 }
 0x808   : > { %v9391_v22 = vsel %vm2320_vm8, 1.0, %v15686_v42  ;;  %vm15932_vm1 = vcmask 1047559  }
 0x809   : > { %3976 = vperm.xlu1 %9721, %v3965_v1   ;;  %v5326_v1 = vadd.f32 %v4746_v3, %v4745_v12  ;;  %v5334_v53 = vrot.slane %v5333_v63, 4  ;;  %v4753_v12 = vmul.f32 %v9392_v0, %v15922_v13  ;;  %v15925_v0 = vld [vmem:[#allocation183_spill] sm:$0xff] }
 0x80a   : > { %vm2319_vm11 = vcmp.eq.s32.totalorder %v15925_v0, %v11637_v45 }
 0x80b   : > { %v5327_v47 = vrot.slane %v5326_v1, 4  ;;  %v5335_v36 = vadd.f32 %v5334_v53, %v5333_v63  ;;  %v9390_v63 = vsel %vm2319_vm11, 1.0, %v15686_v42 }
 0x80d   : > { %v5328_v3 = vadd.f32 %v5327_v47, %v5326_v1  ;;  %v5336_v1 = vrot.slane %v5335_v36, 2 }
 0x80f   : > { %9722 = vset.pattern.permute.xlu2 %v10069_v28  ;;  %v5329_v56 = vrot.slane %v5328_v3, 2 }
 0x811   : > { %9723 = vset.pattern.permute.xlu1 %v10062_v25  ;;  %v3860_v49 = vpop.permute.xlu2 %3859  ;;  %v5330_v52 = vadd.f32 %v5329_v56, %v5328_v3 }
 0x812   : > { %v4754_v58 = vmul.f32 %v9393_v10, %v3860_v49  ;;  %v15926_v10 = vperm.slane %v15771_v51, 7  ;;  %v5322_v49 = vrot.slane %v5321_v11, 2 }
 0x813   : > { %v3834_v43 = vpop.permute.xlu1 %3833 }
 0x814   : > { %v4750_v27 = vmul.f32 %v9389_v31, %v3834_v43  ;;  %v5354_v21 = vadd.f32 %v4754_v58, %v4753_v12  ;;  %v4751_v12 = vmul.f32 %v9390_v63, %v3841_v30  ;;  %v5337_v58 = vadd.f32 %v5336_v1, %v5335_v36  ;;  %v15928_v1 = vld [vmem:[#allocation186_spill] sm:$0xff] }
 0x815   : > { %vm2323_vm12 = vcmp.eq.s32.totalorder %v15928_v1, %v11637_v45 }
 0x816   : > { %v5340_v57 = vadd.f32 %v4750_v27, %v4749_v40  ;;  %v5355_v8 = vrot.slane %v5354_v21, 4  ;;  %v5323_v40 = vadd.f32 %v5322_v49, %v5321_v11 }
 0x817   : > { %3989 = vperm.xlu2 %9722, %v15926_v10   ;;  %v5331_v10 = vrot.slane %v5330_v52, 1 }
 0x818   : > { %v5341_v13 = vrot.slane %v5340_v57, 4  ;;  %v5356_v53 = vadd.f32 %v5355_v8, %v5354_v21  ;;  %v5324_v8 = vrot.slane %v5323_v40, 1 }
 0x819   : > { %3996 = vperm.xlu1 %9723, %v3991_v48   ;;  %v5332_v63 = vadd.f32 %v5331_v10, %v5330_v52  ;;  %v9394_v52 = vsel %vm2323_vm12, 1.0, %v15686_v42 }
 0x81a   : > { %v5342_v47 = vadd.f32 %v5341_v13, %v5340_v57  ;;  %v5357_v51 = vrot.slane %v5356_v53, 2  ;;  %v15927_v57 = vperm.slane %v15923_v46, 1  ;;  %v5338_v13 = vrot.slane %v5337_v58, 1 }
 0x81b   : > { %v3847_v31 = vpop.permute.xlu1 %3846  ;;  %v5325_v36 = vadd.f32 %v5324_v8, %v5323_v40 }
 0x81c   : > { %v5343_v2 = vrot.slane %v5342_v47, 2  ;;  %v4752_v14 = vmul.f32 %v9391_v22, %v3847_v31  ;;  %v5358_v24 = vadd.f32 %v5357_v51, %v5356_v53  ;;  %v5339_v22 = vadd.f32 %v5338_v13, %v5337_v58  ;;  %v3873_v53 = vpop.permute.xlu2 %3872 }
 0x81d   : > { %v6648_v49 = vsel %vm6585_vm2, %v5332_v63, %v5325_v36 }
 0x81e   : > { %v5347_v43 = vadd.f32 %v4752_v14, %v4751_v12  ;;  %v5344_v27 = vadd.f32 %v5343_v2, %v5342_v47  ;;  %v5359_v56 = vrot.slane %v5358_v24, 1  ;;  %v6649_v31 = vsel %vm6587_vm3, %v5339_v22, %v6648_v49 }
 0x81f   : > { %4002 = vperm.xlu2 %9722, %v3991_v48   ;;  %v15929_v48 = vld [vmem:[#allocation187_spill] sm:$0xff] }
 0x820   : > { %v5348_v0 = vrot.slane %v5347_v43, 4  ;;  %v5345_v60 = vrot.slane %v5344_v27, 1  ;;  %vm2324_vm13 = vcmp.eq.s32.totalorder %v15929_v48, %v11637_v45  ;;  %v5360_v2 = vadd.f32 %v5359_v56, %v5358_v24  ;;  %v15931_v24 = vld [vmem:[#allocation189_spill] sm:$0xff] }
 0x821   : > { %4009 = vperm.xlu1 %9723, %v15927_v57   ;;  %v9395_v14 = vsel %vm2324_vm13, 1.0, %v15686_v42  ;;  %v15930_v57 = vld [vmem:[#allocation188_spill] sm:$0xff]  ;;  %vm2326_vm15 = vcmp.eq.s32.totalorder %v15931_v24, %v11637_v45  ;;  %v15933_v24 = vperm.slane %v15923_v46, 4 }
 0x822   : > { %v5349_v21 = vadd.f32 %v5348_v0, %v5347_v43  ;;  %v5346_v11 = vadd.f32 %v5345_v60, %v5344_v27  ;;  %v4756_v43 = vmul.f32 %v9395_v14, %v3873_v53  ;;  %v4017_v27 = vperm.slane %v15923_v46, 2 }
 0x823   : > { %vm2325_vm14 = vcmp.eq.s32.totalorder %v15930_v57, %v11637_v45 }
 0x824   : > { %v5350_v30 = vrot.slane %v5349_v21, 2  ;;  %v6650_v60 = vsel %vm6589_vm4, %v5346_v11, %v6649_v31  ;;  %v9396_v63 = vsel %vm2325_vm14, 1.0, %v15686_v42  ;;  %v4030_v11 = vperm.slane %v15923_v46, 3 }
 0x826   : > { %v5351_v3 = vadd.f32 %v5350_v30, %v5349_v21  ;;  %v3886_v21 = vpop.permute.xlu0 %3885  ;;  %v9397_v30 = vsel %vm2326_vm15, 1.0, %v15686_v42 }
 0x827   : > { %9724 = vset.pattern.permute.xlu2 %v10062_v25 }
 0x828   : > { %v5352_v47 = vrot.slane %v5351_v3, 1 }
 0x829   : > { %9725 = vset.pattern.permute.xlu1 %v10069_v28  ;;  %v12832_v31 = vpop.permute.xlu2 %3892 }
 0x82a   : > { %v5353_v12 = vadd.f32 %v5352_v47, %v5351_v3  ;;  %v4758_v3 = vmul.f32 %v9397_v30, %v3886_v21  ;;  %v12849_v21 = vpop.f32.mrf.mxu1 }
 0x82b   : > { %v3867_v58 = vpop.permute.xlu1 %3866  ;;  %15934 = vst [vmem:[#allocation68_spill] sm:$0xff] %v12849_v21 }
 0x82c   : > { %v6651_v40 = vsel %vm6591_vm5, %v5353_v12, %v6650_v60  ;;  %v4755_v51 = vmul.f32 %v9394_v52, %v3867_v58 }
 0x82d   : > { %v6652_v0 = vsel %vm6593_vm6, %v5360_v2, %v6651_v40 }
 0x82e   : > { %v5361_v10 = vadd.f32 %v4756_v43, %v4755_v51  ;;  %v4056_v51 = vperm.slane %v15923_v46, 5 }
 0x82f   : > { %4022 = vperm.xlu2 %9724, %v4017_v27  }
 0x830   : > { %v5362_v13 = vrot.slane %v5361_v10, 4 }
 0x831   : > { %4028 = vperm.xlu1 %9725, %v4017_v27   ;;  %v3906_v27 = vpop.permute.xlu2 %3905 }
 0x832   : > { %v5363_v8 = vadd.f32 %v5362_v13, %v5361_v10  ;;  %v12841_v10 = vpop.f32.mrf.mxu3  ;;  %v12847_v13 = vpop.f32.mrf.mxu0 }
 0x833   : > { %v3880_v22 = vpop.permute.xlu1 %3879 }
 0x834   : > { %v5364_v36 = vrot.slane %v5363_v8, 2  ;;  %v4757_v56 = vmul.f32 %v9396_v63, %v3880_v22 }
 0x836   : > { %v5368_v1 = vadd.f32 %v4758_v3, %v4757_v56  ;;  %v5365_v48 = vadd.f32 %v5364_v36, %v5363_v8  ;;  %v12851_v3 = vpop.f32.mrf.mxu2  ;;  %v15935_v36 = vperm.slane %v15923_v46, 6 }
 0x837   : > { %4035 = vperm.xlu2 %9724, %v4030_v11  }
 0x838   : > { %v5369_v47 = vrot.slane %v5368_v1, 4  ;;  %v5366_v53 = vrot.slane %v5365_v48, 1 }
 0x839   : > { %4041 = vperm.xlu1 %9725, %v4030_v11  }
 0x83a   : > { %v5370_v49 = vadd.f32 %v5369_v47, %v5368_v1  ;;  %v5367_v60 = vadd.f32 %v5366_v53, %v5365_v48  ;;  %v4082_v1 = vperm.slane %v15923_v46, 7  ;;  %v15937_v53 = vld [vmem:[#allocation190_spill] sm:$0xff] }
 0x83b   : > { %vm2328_vm10 = vcmp.eq.s32.totalorder %v15937_v53, %v11637_v45 }
 0x83c   : > { %v5371_v12 = vrot.slane %v5370_v49, 2  ;;  %v6653_v58 = vsel %vm6595_vm7, %v5367_v60, %v6652_v0 }
 0x83e   : > { %v5372_v2 = vadd.f32 %v5371_v12, %v5370_v49  ;;  %v15936_v49 = vld [vmem:[#allocation192_spill] sm:$0xff]  ;;  %v15938_v12 = vld [vmem:[#allocation191_spill] sm:$0xff] }
 0x83f   : > { %9726 = vset.pattern.permute.xlu2 %v10069_v28  ;;  %vm2330_vm9 = vcmp.eq.s32.totalorder %v15936_v49, %v11637_v45  ;;  %vm2329_vm0 = vcmp.eq.s32.totalorder %v15938_v12, %v11637_v45  ;;  %v15946_v12 = vld [vmem:[#allocation197_spill] sm:$0xff] }
 0x840   : > { %v5373_v14 = vrot.slane %v5372_v2, 1  ;;  %v9401_v60 = vsel %vm2330_vm9, 1.0, %v15686_v42 }
 0x841   : > { %9727 = vset.pattern.permute.xlu1 %v10062_v25  ;;  %v3925_v22 = vpop.permute.xlu2 %3924 }
 0x842   : > { %v5374_v52 = vadd.f32 %v5373_v14, %v5372_v2  ;;  %v15939_v2 = vld [vmem:[#allocation272_spill] sm:$0xff]  ;;  %v15940_v14 = vld [vmem:[#allocation14_spill] sm:$0xff] }
 0x843   : > { %v3899_v8 = vpop.permute.xlu1 %3898  ;;  %vm2332_vm8 = vcmp.eq.s32.totalorder %v15939_v2, %v11637_v45 }
 0x844   : > { %v6654_v43 = vsel %vm15932_vm1, %v5374_v52, %v6653_v58  ;;  %v4095_v52 = vperm.slane %v15940_v14, 0  ;;  %v15941_v58 = vld [vmem:[#allocation49_spill] sm:$0xff]  ;;  %vm2336_vm1 = vcmp.eq.s32.totalorder %v15946_v12, %v11637_v45 }
 0x845   : > { %v12838_v40 = vand.u32 4294901760, %v6654_v43  ;;  %vm2327_vm11 = vcmp.eq.s32.totalorder %v15941_v58, %v11637_v45  ;;  %v9407_v33 = vsel %vm2336_vm1, 1.0, %v15686_v42 }
 0x847   : > { %7010 = vmatmul.f32.gmra.mxu3 %v12838_v40  ;;  %v6817_v57 = vsub.f32 %v6654_v43, %v12838_v40  ;;  %4054 = vperm.xlu2 %9726, %v15933_v24   ;;  %v15942_v43 = vld [vmem:[#allocation194_spill] sm:$0xff]  ;;  %v15944_v24 = vld [vmem:[#allocation193_spill] sm:$0xff] }
 0x848   : > { %vm2333_vm12 = vcmp.eq.s32.totalorder %v15942_v43, %v11637_v45  ;;  %vm2331_vm14 = vcmp.eq.s32.totalorder %v15944_v24, %v11637_v45  ;;  %v3951_v43 = vpop.permute.xlu0 %3950 }
 0x849   : > { %4061 = vperm.xlu1 %9727, %v4056_v51   ;;  %7132 = vmatmul.f32.gmra.mxu0 %v6817_v57  ;;  %v6818_v0 = vand.u32 4294901760, %v6817_v57  ;;  %v3938_v11 = vpop.permute.xlu2 %3937  ;;  %v9404_v2 = vsel %vm2333_vm12, 1.0, %v15686_v42  ;;  %v9402_v58 = vsel %vm2331_vm14, 1.0, %v15686_v42  ;;  %v4768_v16 = vmul.f32 %v9407_v33, %v3951_v43 }
 0x84a   : > { %v4763_v26 = vmul.f32 %v9402_v58, %v15947_v59 }
 0x84b   : > { %7254 = vmatmul.f32.gmra.mxu1 %v6818_v0  ;;  %v6819_v30 = vsub.f32 %v6817_v57, %v6818_v0  ;;  %v3912_v56 = vpop.permute.xlu1 %3911  ;;  %v9400_v0 = vsel %vm2329_vm0, 1.0, %v15686_v42 }
 0x84c   : > { %v4762_v57 = vmul.f32 %v9401_v60, %v3912_v56  ;;  %v9398_v56 = vsel %vm2327_vm11, 1.0, %v15686_v42 }
 0x84d   : > { %v6820_v63 = vand.u32 4294901760, %v6819_v30  ;;  %v9399_v30 = vsel %vm2328_vm10, 1.0, %v15686_v42 }
 0x84e   : > { %v4760_v49 = vmul.f32 %v9399_v30, %v3899_v8 }
 0x84f   : > { %6821 = vmatmul.f32.gmra.mxu2 %v6820_v63  ;;  %4067 = vperm.xlu2 %9726, %v4056_v51   ;;  %v15943_v51 = vld [vmem:[#allocation196_spill] sm:$0xff]  ;;  %v15945_v63 = vld [vmem:[#allocation195_spill] sm:$0xff] }
 0x850   : > { %vm2335_vm13 = vcmp.eq.s32.totalorder %v15943_v51, %v11637_v45  ;;  %vm2334_vm15 = vcmp.eq.s32.totalorder %v15945_v63, %v11637_v45  ;;  %v4759_v51 = vmul.f32 %v9398_v56, %v12832_v31  ;;  %v15948_v31 = vld [vmem:[#allocation276_spill] sm:$0xff] }
 0x851   : > { %4074 = vperm.xlu1 %9727, %v15935_v36   ;;  %v4761_v36 = vmul.f32 %v9400_v0, %v3906_v27  ;;  %v9406_v60 = vsel %vm2335_vm13, 1.0, %v15686_v42  ;;  %v9405_v0 = vsel %vm2334_vm15, 1.0, %v15686_v42  ;;  %vm2342_vm9 = vcmp.eq.s32.totalorder %v15948_v31, %v11637_v45 }
 0x852   : > { %v5375_v50 = vadd.f32 %v4760_v49, %v4759_v51  ;;  %v4766_v54 = vmul.f32 %v9405_v0, %v3938_v11  ;;  %v15951_v49 = vld [vmem:[#allocation50_spill] sm:$0xff]  ;;  %v9413_v33 = vsel %vm2342_vm9, 1.0, %v15686_v42  ;;  %vm15957_vm13 = vcmask 1047559  }
 0x853   : > { %v5382_v27 = vadd.f32 %v4762_v57, %v4761_v36  ;;  %v15950_v36 = vld [vmem:[#allocation198_spill] sm:$0xff] }
 0x854   : > { %vm2338_vm0 = vcmp.eq.s32.totalorder %v15950_v36, %v11637_v45 }
 0x855   : > { %v9409_v56 = vsel %vm2338_vm0, 1.0, %v15686_v42 }
 0x857   : > { %9728 = vset.pattern.permute.xlu2 %v10062_v25 }
 0x859   : > { %9729 = vset.pattern.permute.xlu1 %v10069_v28  ;;  %v12858_v47 = vpop.permute.xlu2 %3957 }
 0x85b   : > { %v3932_v48 = vpop.permute.xlu1 %3931 }
 0x85c   : > { %v4765_v24 = vmul.f32 %v9404_v2, %v3932_v48  ;;  %v15949_v48 = vld [vmem:[#allocation201_spill] sm:$0xff]  ;;  %v15952_v2 = vld [vmem:[#allocation127_spill] sm:$0xff] }
 0x85d   : > { %vm2341_vm10 = vcmp.eq.s32.totalorder %v15949_v48, %v11637_v45  ;;  %v4121_v48 = vperm.slane %v15940_v14, 2 }
 0x85e   : > { %v9412_v59 = vsel %vm2341_vm10, 1.0, %v15686_v42 }
 0x85f   : > { %4087 = vperm.xlu2 %9728, %v4082_v1  }
 0x861   : > { %4093 = vperm.xlu1 %9729, %v4082_v1   ;;  %v9403_v1 = vsel %vm2332_vm8, 1.0, %v15686_v42  ;;  %v3971_v30 = vpop.permute.xlu2 %3970  ;;  %vm2337_vm8 = vcmp.eq.s32.totalorder %v15951_v49, %v11637_v45 }
 0x862   : > { %v4764_v8 = vmul.f32 %v9403_v1, %v3925_v22  ;;  %v5383_v22 = vrot.slane %v5382_v27, 4  ;;  %v5376_v1 = vrot.slane %v5375_v50, 4  ;;  %v9408_v43 = vsel %vm2337_vm8, 1.0, %v15686_v42 }
 0x863   : > { %v3945_v53 = vpop.permute.xlu1 %3944 }
 0x864   : > { %v4767_v12 = vmul.f32 %v9406_v60, %v3945_v53  ;;  %v5389_v57 = vadd.f32 %v4764_v8, %v4763_v26  ;;  %v5384_v11 = vadd.f32 %v5383_v22, %v5382_v27  ;;  %v4773_v60 = vmul.f32 %v9412_v59, %v15952_v2  ;;  %v15953_v59 = vld [vmem:[#allocation200_spill] sm:$0xff] }
 0x865   : > { %v5377_v58 = vadd.f32 %v5376_v1, %v5375_v50  ;;  %v4769_v8 = vmul.f32 %v9408_v43, %v12858_v47  ;;  %vm2340_vm11 = vcmp.eq.s32.totalorder %v15953_v59, %v11637_v45  ;;  %v15954_v50 = vld [vmem:[#allocation199_spill] sm:$0xff]  ;;  %v15955_v47 = vperm.slane %v15940_v14, 1 }
 0x866   : > { %v5403_v63 = vadd.f32 %v4768_v16, %v4767_v12  ;;  %v5385_v12 = vrot.slane %v5384_v11, 2  ;;  %vm2339_vm12 = vcmp.eq.s32.totalorder %v15954_v50, %v11637_v45 }
 0x867   : > { %4100 = vperm.xlu2 %9728, %v4095_v52   ;;  %v5378_v29 = vrot.slane %v5377_v58, 2 }
 0x868   : > { %v5404_v26 = vrot.slane %v5403_v63, 4 }
 0x869   : > { %4106 = vperm.xlu1 %9729, %v4095_v52   ;;  %v5396_v52 = vadd.f32 %v4766_v54, %v4765_v24  ;;  %v5390_v54 = vrot.slane %v5389_v57, 4 }
 0x86a   : > { %v5405_v36 = vadd.f32 %v5404_v26, %v5403_v63  ;;  %v5379_v63 = vadd.f32 %v5378_v29, %v5377_v58 }
 0x86b   : > { %v5397_v53 = vrot.slane %v5396_v52, 4  ;;  %v5391_v22 = vadd.f32 %v5390_v54, %v5389_v57  ;;  %v9410_v54 = vsel %vm2339_vm12, 1.0, %v15686_v42 }
 0x86d   : > { %v5398_v27 = vadd.f32 %v5397_v53, %v5396_v52  ;;  %v5392_v53 = vrot.slane %v5391_v22, 2 }
 0x86f   : > { %9730 = vset.pattern.permute.xlu2 %v10069_v28  ;;  %v5399_v52 = vrot.slane %v5398_v27, 2 }
 0x871   : > { %9731 = vset.pattern.permute.xlu1 %v10062_v25  ;;  %v3990_v16 = vpop.permute.xlu2 %3989 }
 0x872   : > { %v4774_v51 = vmul.f32 %v9413_v33, %v3990_v16  ;;  %v5386_v33 = vadd.f32 %v5385_v12, %v5384_v11  ;;  %v5406_v16 = vrot.slane %v5405_v36, 2  ;;  %v5380_v12 = vrot.slane %v5379_v63, 1 }
 0x873   : > { %v3964_v24 = vpop.permute.xlu1 %3963 }
 0x874   : > { %v4770_v0 = vmul.f32 %v9409_v56, %v3964_v24  ;;  %v5424_v31 = vadd.f32 %v4774_v51, %v4773_v60  ;;  %v9411_v56 = vsel %vm2340_vm11, 1.0, %v15686_v42  ;;  %v4771_v60 = vmul.f32 %v9410_v54, %v3971_v30 }
 0x875   : > { %v5387_v24 = vrot.slane %v5386_v33, 1  ;;  %v5407_v59 = vadd.f32 %v5406_v16, %v5405_v36 }
 0x876   : > { %v5410_v49 = vadd.f32 %v4770_v0, %v4769_v8  ;;  %v5425_v41 = vrot.slane %v5424_v31, 4  ;;  %v5400_v8 = vadd.f32 %v5399_v52, %v5398_v27  ;;  %v5393_v0 = vadd.f32 %v5392_v53, %v5391_v22 }
 0x877   : > { %4119 = vperm.xlu2 %9730, %v15955_v47   ;;  %v5388_v29 = vadd.f32 %v5387_v24, %v5386_v33 }
 0x878   : > { %v5411_v1 = vrot.slane %v5410_v49, 4  ;;  %v5426_v26 = vadd.f32 %v5425_v41, %v5424_v31  ;;  %v5401_v58 = vrot.slane %v5400_v8, 1  ;;  %v15956_v41 = vperm.slane %v15940_v14, 3 }
 0x879   : > { %4126 = vperm.xlu1 %9731, %v4121_v48   ;;  %v5394_v31 = vrot.slane %v5393_v0, 1 }
 0x87a   : > { %v5412_v57 = vadd.f32 %v5411_v1, %v5410_v49  ;;  %v5427_v50 = vrot.slane %v5426_v26, 2  ;;  %v5408_v49 = vrot.slane %v5407_v59, 1  ;;  %v5381_v1 = vadd.f32 %v5380_v12, %v5379_v63  ;;  %v12939_v12 = vpop.f32.mrf.mxu0 }
 0x87b   : > { %v3977_v2 = vpop.permute.xlu1 %3976  ;;  %v5402_v36 = vadd.f32 %v5401_v58, %v5400_v8  ;;  %v5395_v52 = vadd.f32 %v5394_v31, %v5393_v0  ;;  %15958 = vst [vmem:[#allocation86_spill] sm:$0xff] %v12939_v12 }
 0x87c   : > { %v5413_v43 = vrot.slane %v5412_v57, 2  ;;  %v4772_v51 = vmul.f32 %v9411_v56, %v3977_v2  ;;  %v5428_v54 = vadd.f32 %v5427_v50, %v5426_v26  ;;  %v6655_v22 = vsel %vm6585_vm2, %v5388_v29, %v5381_v1 }
 0x87d   : > { %v5409_v53 = vadd.f32 %v5408_v49, %v5407_v59  ;;  %v6656_v33 = vsel %vm6587_vm3, %v5395_v52, %v6655_v22  ;;  %v12935_v59 = vpop.f32.mrf.mxu3  ;;  %v4160_v29 = vperm.slane %v15940_v14, 5  ;;  %v12944_v49 = vpop.f32.mrf.mxu2  ;;  %v15961_v52 = vperm.slane %v15774_v4, 0 }
 0x87e   : > { %v5417_v11 = vadd.f32 %v4772_v51, %v4771_v60  ;;  %v5414_v47 = vadd.f32 %v5413_v43, %v5412_v57  ;;  %v5429_v57 = vrot.slane %v5428_v54, 1  ;;  %v6657_v60 = vsel %vm6589_vm4, %v5402_v36, %v6656_v33  ;;  %v15964_v33 = vld [vmem:[#allocation204_spill] sm:$0xff] }
 0x87f   : > { %4132 = vperm.xlu2 %9730, %v4121_v48   ;;  %v4147_v51 = vperm.slane %v15940_v14, 4  ;;  %vm2345_vm1 = vcmp.eq.s32.totalorder %v15964_v33, %v11637_v45 }
 0x880   : > { %v5418_v18 = vrot.slane %v5417_v11, 4  ;;  %v5415_v56 = vrot.slane %v5414_v47, 1  ;;  %v5430_v26 = vadd.f32 %v5429_v57, %v5428_v54 }
 0x881   : > { %4139 = vperm.xlu1 %9731, %v15956_v41  }
 0x882   : > { %v5419_v30 = vadd.f32 %v5418_v18, %v5417_v11  ;;  %v5416_v48 = vadd.f32 %v5415_v56, %v5414_v47  ;;  %v6658_v18 = vsel %vm6591_vm5, %v5409_v53, %v6657_v60  ;;  %v12941_v47 = vpop.f32.mrf.mxu1  ;;  %v4186_v56 = vperm.slane %v15940_v14, 7  ;;  %v15966_v60 = vld [vmem:[#allocation203_spill] sm:$0xff] }
 0x883   : > { %15959 = vst [vmem:[#allocation69_spill] sm:$0xff] %v12941_v47  ;;  %vm2344_vm10 = vcmp.eq.s32.totalorder %v15966_v60, %v11637_v45 }
 0x884   : > { %v5420_v27 = vrot.slane %v5419_v30, 2  ;;  %v6659_v43 = vsel %vm6593_vm6, %v5416_v48, %v6658_v18  ;;  %v15963_v48 = vld [vmem:[#allocation202_spill] sm:$0xff]  ;;  %v15967_v18 = vld [vmem:[#allocation208_spill] sm:$0xff] }
 0x885   : > { %vm2343_vm15 = vcmp.eq.s32.totalorder %v15963_v48, %v11637_v45  ;;  %vm2350_vm0 = vcmp.eq.s32.totalorder %v15967_v18, %v11637_v45 }
 0x886   : > { %v5421_v16 = vadd.f32 %v5420_v27, %v5419_v30  ;;  %v4003_v30 = vpop.permute.xlu2 %4002  ;;  %v15960_v27 = vperm.slane %v15940_v14, 6 }
 0x887   : > { %9732 = vset.pattern.permute.xlu2 %v10062_v25 }
 0x888   : > { %v5422_v2 = vrot.slane %v5421_v16, 1 }
 0x889   : > { %9733 = vset.pattern.permute.xlu1 %v10069_v28 }
 0x88a   : > { %v5423_v63 = vadd.f32 %v5422_v2, %v5421_v16  ;;  %v15962_v16 = vld [vmem:[#allocation205_spill] sm:$0xff]  ;;  %v15965_v2 = vld [vmem:[#allocation206_spill] sm:$0xff] }
 0x88b   : > { %v3997_v31 = vpop.permute.xlu1 %3996  ;;  %vm2346_vm14 = vcmp.eq.s32.totalorder %v15962_v16, %v11637_v45  ;;  %vm2348_vm9 = vcmp.eq.s32.totalorder %v15965_v2, %v11637_v45  ;;  %v15971_v16 = vld [vmem:[#allocation210_spill] sm:$0xff]  ;;  %v15972_v2 = vld [vmem:[#allocation209_spill] sm:$0xff] }
 0x88c   : > { %v6660_v24 = vsel %vm6595_vm7, %v5423_v63, %v6659_v43  ;;  %v15968_v63 = vld [vmem:[#allocation51_spill] sm:$0xff]  ;;  %v9417_v43 = vsel %vm2346_vm14, 1.0, %v15686_v42  ;;  %vm2351_vm14 = vcmp.eq.s32.totalorder %v15972_v2, %v11637_v45 }
 0x88d   : > { %v6661_v8 = vsel %vm15957_vm13, %v5430_v26, %v6660_v24  ;;  %vm2347_vm8 = vcmp.eq.s32.totalorder %v15968_v63, %v11637_v45  ;;  %v4016_v26 = vpop.permute.xlu0 %4015  ;;  %v15970_v24 = vld [vmem:[#allocation280_spill] sm:$0xff]  ;;  %vm2353_vm13 = vcmp.eq.s32.totalorder %v15971_v16, %v11637_v45 }
 0x88e   : > { %v12933_v0 = vand.u32 4294901760, %v6661_v8  ;;  %v4023_v54 = vpop.permute.xlu2 %4022  ;;  %vm2352_vm12 = vcmp.eq.s32.totalorder %v15970_v24, %v11637_v45  ;;  %v9418_v60 = vsel %vm2347_vm8, 1.0, %v15686_v42  ;;  %vm15981_vm8 = vcmask 1047559  }
 0x88f   : > { %4152 = vperm.xlu2 %9732, %v4147_v51   ;;  %v9423_v63 = vsel %vm2352_vm12, 1.0, %v15686_v42 }
 0x890   : > { %7014 = vmatmul.f32.gmra.mxu3 %v12933_v0  ;;  %v6825_v11 = vsub.f32 %v6661_v8, %v12933_v0  ;;  %v9414_v8 = vsel %vm2343_vm15, 1.0, %v15686_v42 }
 0x891   : > { %4158 = vperm.xlu1 %9733, %v4147_v51   ;;  %v15969_v51 = vld [vmem:[#allocation207_spill] sm:$0xff] }
 0x892   : > { %7137 = vmatmul.f32.gmra.mxu0 %v6825_v11  ;;  %v6826_v50 = vand.u32 4294901760, %v6825_v11  ;;  %vm2349_vm11 = vcmp.eq.s32.totalorder %v15969_v51, %v11637_v45  ;;  %v15973_v51 = vld [vmem:[#allocation212_spill] sm:$0xff] }
 0x893   : > { %v4010_v1 = vpop.permute.xlu1 %4009  ;;  %v9420_v48 = vsel %vm2349_vm11, 1.0, %v15686_v42  ;;  %vm2355_vm15 = vcmp.eq.s32.totalorder %v15973_v51, %v11637_v45 }
 0x894   : > { %7260 = vmatmul.f32.gmra.mxu1 %v6826_v50  ;;  %v6827_v58 = vsub.f32 %v6825_v11, %v6826_v50  ;;  %v9416_v11 = vsel %vm2345_vm1, 1.0, %v15686_v42  ;;  %v9419_v50 = vsel %vm2348_vm9, 1.0, %v15686_v42 }
 0x895   : > { %v4081_v16 = vpop.permute.xlu0 %4080 }
 0x896   : > { %v6828_v41 = vand.u32 4294901760, %v6827_v58  ;;  %v4036_v36 = vpop.permute.xlu2 %4035  ;;  %v9415_v58 = vsel %vm2344_vm10, 1.0, %v15686_v42 }
 0x897   : > { %4165 = vperm.xlu2 %9732, %v4160_v29  }
 0x898   : > { %6829 = vmatmul.f32.gmra.mxu2 %v6828_v41  ;;  %v4777_v41 = vmul.f32 %v9416_v11, %v4010_v1  ;;  %v4775_v1 = vmul.f32 %v9414_v8, %v3997_v31  ;;  %v4776_v11 = vmul.f32 %v9415_v58, %v4003_v30  ;;  %v9422_v31 = vsel %vm2351_vm14, 1.0, %v15686_v42 }
 0x899   : > { %4171 = vperm.xlu1 %9733, %v4160_v29  }
 0x89f   : > { %9734 = vset.pattern.permute.xlu2 %v10069_v28 }
 0x8a1   : > { %9735 = vset.pattern.permute.xlu1 %v10062_v25  ;;  %v4055_v57 = vpop.permute.xlu2 %4054 }
 0x8a3   : > { %v4029_v22 = vpop.permute.xlu1 %4028 }
 0x8a4   : > { %v4780_v33 = vmul.f32 %v9419_v50, %v4029_v22  ;;  %v4779_v22 = vmul.f32 %v9418_v60, %v4023_v54  ;;  %v4781_v50 = vmul.f32 %v9420_v48, %v4036_v36  ;;  %v5431_v54 = vadd.f32 %v4776_v11, %v4775_v1 }
 0x8a5   : > { %v4225_v1 = vperm.slane %v15774_v4, 2 }
 0x8a7   : > { %4184 = vperm.xlu2 %9734, %v15960_v27   ;;  %v4212_v27 = vperm.slane %v15774_v4, 1 }
 0x8a9   : > { %4191 = vperm.xlu1 %9735, %v4186_v56   ;;  %v4068_v8 = vpop.permute.xlu2 %4067 }
 0x8ab   : > { %v4042_v53 = vpop.permute.xlu1 %4041 }
 0x8af   : > { %4197 = vperm.xlu2 %9734, %v4186_v56   ;;  %v9421_v56 = vsel %vm2350_vm0, 1.0, %v15686_v42 }
 0x8b0   : > { %v4782_v18 = vmul.f32 %v9421_v56, %v4042_v53  ;;  %v5445_v53 = vadd.f32 %v4780_v33, %v4779_v22  ;;  %v9424_v56 = vsel %vm2353_vm13, 1.0, %v15686_v42  ;;  %v5432_v22 = vrot.slane %v5431_v54, 4 }
 0x8b1   : > { %4204 = vperm.xlu1 %9735, %v15961_v52   ;;  %v4778_v52 = vmul.f32 %v9417_v43, %v4016_v26  ;;  %v15974_v26 = vld [vmem:[#allocation211_spill] sm:$0xff]  ;;  %v15975_v43 = vld [vmem:[#allocation213_spill] sm:$0xff] }
 0x8b2   : > { %vm2354_vm1 = vcmp.eq.s32.totalorder %v15974_v26, %v11637_v45  ;;  %vm2356_vm9 = vcmp.eq.s32.totalorder %v15975_v43, %v11637_v45  ;;  %v5452_v36 = vadd.f32 %v4782_v18, %v4781_v50  ;;  %v15976_v18 = vld [vmem:[#allocation130_spill] sm:$0xff]  ;;  %v5446_v43 = vrot.slane %v5445_v53, 4 }
 0x8b3   : > { %v5438_v2 = vadd.f32 %v4778_v52, %v4777_v41  ;;  %v9427_v30 = vsel %vm2356_vm9, 1.0, %v15686_v42  ;;  %v4784_v41 = vmul.f32 %v9423_v63, %v4055_v57  ;;  %v9425_v24 = vsel %vm2354_vm1, 1.0, %v15686_v42 }
 0x8b4   : > { %v9426_v52 = vsel %vm2355_vm15, 1.0, %v15686_v42  ;;  %v4788_v57 = vmul.f32 %v9427_v30, %v4081_v16  ;;  %v5453_v11 = vrot.slane %v5452_v36, 4  ;;  %v5447_v51 = vadd.f32 %v5446_v43, %v5445_v53 }
 0x8b5   : > { %v5439_v33 = vrot.slane %v5438_v2, 4  ;;  %v5433_v7 = vadd.f32 %v5432_v22, %v5431_v54 }
 0x8b6   : > { %v5454_v38 = vadd.f32 %v5453_v11, %v5452_v36  ;;  %v5448_v47 = vrot.slane %v5447_v51, 2 }
 0x8b7   : > { %9736 = vset.pattern.permute.xlu2 %v10062_v25 }
 0x8b8   : > { %v5455_v30 = vrot.slane %v5454_v38, 2  ;;  %v5449_v54 = vadd.f32 %v5448_v47, %v5447_v51 }
 0x8b9   : > { %9737 = vset.pattern.permute.xlu1 %v10069_v28 }
 0x8ba   : > { %v5450_v11 = vrot.slane %v5449_v54, 1 }
 0x8bb   : > { %v4062_v29 = vpop.permute.xlu1 %4061 }
 0x8bc   : > { %v4785_v58 = vmul.f32 %v9424_v56, %v4062_v29  ;;  %v4783_v29 = vmul.f32 %v9422_v31, %v15976_v18  ;;  %v5440_v56 = vadd.f32 %v5439_v33, %v5438_v2  ;;  %v5434_v31 = vrot.slane %v5433_v7, 2  ;;  %v15978_v2 = vld [vmem:[#allocation214_spill] sm:$0xff] }
 0x8bd   : > { %vm2358_vm0 = vcmp.eq.s32.totalorder %v15978_v2, %v11637_v45 }
 0x8be   : > { %v5459_v50 = vadd.f32 %v4784_v41, %v4783_v29  ;;  %v5435_v36 = vadd.f32 %v5434_v31, %v5433_v7  ;;  %v5456_v41 = vadd.f32 %v5455_v30, %v5454_v38  ;;  %v5451_v31 = vadd.f32 %v5450_v11, %v5449_v54 }
 0x8bf   : > { %4217 = vperm.xlu2 %9736, %v4212_v27  }
 0x8c0   : > { %v5457_v47 = vrot.slane %v5456_v41, 1 }
 0x8c1   : > { %4223 = vperm.xlu1 %9737, %v4212_v27   ;;  %v4786_v27 = vmul.f32 %v9425_v24, %v4068_v8  ;;  %v5460_v8 = vrot.slane %v5459_v50, 4 }
 0x8c2   : > { %v5458_v30 = vadd.f32 %v5457_v47, %v5456_v41 }
 0x8c3   : > { %v4075_v48 = vpop.permute.xlu1 %4074  ;;  %v5466_v26 = vadd.f32 %v4786_v27, %v4785_v58  ;;  %v5461_v18 = vadd.f32 %v5460_v8, %v5459_v50  ;;  %v15977_v58 = vld [vmem:[#allocation52_spill] sm:$0xff]  ;;  %v5436_v50 = vrot.slane %v5435_v36, 1 }
 0x8c4   : > { %v4787_v60 = vmul.f32 %v9426_v52, %v4075_v48  ;;  %v5441_v52 = vrot.slane %v5440_v56, 2  ;;  %v4088_v48 = vpop.permute.xlu2 %4087  ;;  %vm2357_vm10 = vcmp.eq.s32.totalorder %v15977_v58, %v11637_v45 }
 0x8c5   : > { %v5467_v55 = vrot.slane %v5466_v26, 4  ;;  %v5462_v27 = vrot.slane %v5461_v18, 2 }
 0x8c6   : > { %v5473_v63 = vadd.f32 %v4788_v57, %v4787_v60  ;;  %v5442_v53 = vadd.f32 %v5441_v52, %v5440_v56  ;;  %v15979_v52 = vperm.slane %v15774_v4, 3 }
 0x8c7   : > { %4230 = vperm.xlu2 %9736, %v4225_v1   ;;  %v5468_v16 = vadd.f32 %v5467_v55, %v5466_v26  ;;  %v9428_v55 = vsel %vm2357_vm10, 1.0, %v15686_v42  ;;  %v4251_v26 = vperm.slane %v15774_v4, 4  ;;  %v5463_v7 = vadd.f32 %v5462_v27, %v5461_v18 }
 0x8c8   : > { %v5474_v24 = vrot.slane %v5473_v63, 4  ;;  %v5443_v57 = vrot.slane %v5442_v53, 1  ;;  %v4789_v43 = vmul.f32 %v9428_v55, %v4088_v48  ;;  %v5437_v48 = vadd.f32 %v5436_v50, %v5435_v36 }
 0x8c9   : > { %4236 = vperm.xlu1 %9737, %v4225_v1   ;;  %v5469_v33 = vrot.slane %v5468_v16, 2  ;;  %v9429_v1 = vsel %vm2358_vm0, 1.0, %v15686_v42  ;;  %v5464_v55 = vrot.slane %v5463_v7, 1  ;;  %v15980_v36 = vperm.slane %v15774_v4, 5 }
 0x8ca   : > { %v5475_v61 = vadd.f32 %v5474_v24, %v5473_v63  ;;  %v5444_v8 = vadd.f32 %v5443_v57, %v5442_v53 }
 0x8cb   : > { %v5470_v63 = vadd.f32 %v5469_v33, %v5468_v16 }
 0x8cc   : > { %v5476_v60 = vrot.slane %v5475_v61, 2  ;;  %v13024_v56 = vpop.permute.xlu2 %4100  ;;  %v6662_v16 = vsel %vm6585_vm2, %v5444_v8, %v5437_v48 }
 0x8cd   : > { %v5471_v58 = vrot.slane %v5470_v63, 1 }
 0x8ce   : > { %v5477_v51 = vadd.f32 %v5476_v60, %v5475_v61  ;;  %v5465_v60 = vadd.f32 %v5464_v55, %v5463_v7  ;;  %v15986_v55 = vld [vmem:[#allocation216_spill] sm:$0xff] }
 0x8cf   : > { %9738 = vset.pattern.permute.xlu2 %v10069_v28  ;;  %v5472_v18 = vadd.f32 %v5471_v58, %v5470_v63  ;;  %v13050_v58 = vpop.f32.mrf.mxu2  ;;  %vm2360_vm11 = vcmp.eq.s32.totalorder %v15986_v55, %v11637_v45  ;;  %v4146_v55 = vpop.permute.xlu0 %4145 }
 0x8d0   : > { %15985 = vst [vmem:[#allocation75_spill] sm:$0xff] %v13050_v58 }
 0x8d1   : > { %9739 = vset.pattern.permute.xlu1 %v10062_v25 }
 0x8d3   : > { %v4094_v29 = vpop.permute.xlu1 %4093 }
 0x8d4   : > { %v4790_v22 = vmul.f32 %v9429_v1, %v4094_v29  ;;  %v5478_v1 = vrot.slane %v5477_v51, 1  ;;  %v6663_v29 = vsel %vm6587_vm3, %v5451_v31, %v6662_v16  ;;  %v4120_v53 = vpop.permute.xlu2 %4119  ;;  %v4277_v31 = vperm.slane %v15774_v4, 6  ;;  %v15987_v16 = vld [vmem:[#allocation215_spill] sm:$0xff] }
 0x8d5   : > { %v6664_v61 = vsel %vm6589_vm4, %v5458_v30, %v6663_v29  ;;  %vm2359_vm12 = vcmp.eq.s32.totalorder %v15987_v16, %v11637_v45  ;;  %v15989_v29 = vld [vmem:[#allocation220_spill] sm:$0xff] }
 0x8d6   : > { %v5480_v38 = vadd.f32 %v4790_v22, %v4789_v43  ;;  %v5479_v57 = vadd.f32 %v5478_v1, %v5477_v51  ;;  %v6665_v41 = vsel %vm6591_vm5, %v5465_v60, %v6664_v61  ;;  %v13044_v51 = vpop.f32.mrf.mxu0  ;;  %v4290_v1 = vperm.slane %v15774_v4, 7  ;;  %v15990_v61 = vld [vmem:[#allocation283_spill] sm:$0xff] }
 0x8d7   : > { %4249 = vperm.xlu2 %9738, %v15979_v52   ;;  %v6666_v22 = vsel %vm6593_vm6, %v5472_v18, %v6665_v41  ;;  %15983 = vst [vmem:[#allocation6_spill] sm:$0xff] %v13044_v51  ;;  %vm2365_vm14 = vcmp.eq.s32.totalorder %v15989_v29, %v11637_v45  ;;  %vm2362_vm15 = vcmp.eq.s32.totalorder %v15990_v61, %v11637_v45  ;;  %v15991_v18 = vld [vmem:[#allocation217_spill] sm:$0xff]  ;;  %v15993_v4 = vld [vmem:[#allocation219_spill] sm:$0xff]  ;;  %v9431_v60 = vsel %vm2360_vm11, 1.0, %v15686_v42  ;;  %v16001_v51 = vld [vmem:[#allocation224_spill] sm:$0xff] }
 0x8d8   : > { %v5481_v24 = vrot.slane %v5480_v38, 4  ;;  %v6667_v11 = vsel %vm6595_vm7, %v5479_v57, %v6666_v22  ;;  %vm2361_vm1 = vcmp.eq.s32.totalorder %v15991_v18, %v11637_v45  ;;  %vm2364_vm10 = vcmp.eq.s32.totalorder %v15993_v4, %v11637_v45 }
 0x8d9   : > { %4256 = vperm.xlu1 %9739, %v4251_v26   ;;  %v9432_v22 = vsel %vm2361_vm1, 1.0, %v15686_v42 }
 0x8da   : > { %v5482_v2 = vadd.f32 %v5481_v24, %v5480_v38  ;;  %v13039_v38 = vpop.f32.mrf.mxu3  ;;  %v13047_v24 = vpop.f32.mrf.mxu1 }
 0x8db   : > { %v4107_v47 = vpop.permute.xlu1 %4106  ;;  %15982 = vst [vmem:[#allocation71_spill] sm:$0xff] %v13039_v38 }
 0x8dc   : > { %v5483_v33 = vrot.slane %v5482_v2, 2  ;;  %v4133_v7 = vpop.permute.xlu2 %4132  ;;  %15984 = vst [vmem:[#allocation28_spill] sm:$0xff] %v13047_v24 }
 0x8de   : > { %v5484_v27 = vadd.f32 %v5483_v33, %v5482_v2  ;;  %v15988_v33 = vld [vmem:[#allocation218_spill] sm:$0xff] }
 0x8df   : > { %4262 = vperm.xlu2 %9738, %v4251_v26   ;;  %vm2363_vm13 = vcmp.eq.s32.totalorder %v15988_v33, %v11637_v45  ;;  %v15994_v33 = vld [vmem:[#allocation133_spill] sm:$0xff] }
 0x8e0   : > { %v5485_v54 = vrot.slane %v5484_v27, 1  ;;  %v9434_v41 = vsel %vm2363_vm13, 1.0, %v15686_v42  ;;  %v4793_v29 = vmul.f32 %v9432_v22, %v15994_v33  ;;  %vm2370_vm13 = vcmp.eq.s32.totalorder %v16001_v51, %v11637_v45 }
 0x8e1   : > { %4269 = vperm.xlu1 %9739, %v15980_v36   ;;  %v4792_v36 = vmul.f32 %v9431_v60, %v4107_v47 }
 0x8e2   : > { %v5486_v43 = vadd.f32 %v5485_v54, %v5484_v27  ;;  %v15992_v27 = vld [vmem:[#allocation221_spill] sm:$0xff]  ;;  %v9430_v54 = vsel %vm2359_vm12, 1.0, %v15686_v42 }
 0x8e3   : > { %vm2366_vm9 = vcmp.eq.s32.totalorder %v15992_v27, %v11637_v45  ;;  %v15995_v27 = vld [vmem:[#allocation225_spill] sm:$0xff] }
 0x8e4   : > { %v6668_v50 = vsel %vm15981_vm8, %v5486_v43, %v6667_v11  ;;  %v9436_v43 = vsel %vm2365_vm14, 1.0, %v15686_v42  ;;  %v9437_v11 = vsel %vm2366_vm9, 1.0, %v15686_v42  ;;  %vm2371_vm0 = vcmp.eq.s32.totalorder %v15995_v27, %v11637_v45 }
 0x8e5   : > { %v13037_v63 = vand.u32 4294901760, %v6668_v50  ;;  %v4798_v61 = vmul.f32 %v9437_v11, %v4146_v55  ;;  %v15999_v11 = vld [vmem:[#allocation136_spill] sm:$0xff]  ;;  %vm16007_vm9 = vcmask 1047559  }
 0x8e7   : > { %7018 = vmatmul.f32.gmra.mxu3 %v13037_v63  ;;  %v6833_v26 = vsub.f32 %v6668_v50, %v13037_v63  ;;  %9740 = vset.pattern.permute.xlu2 %v10062_v25  ;;  %v9433_v50 = vsel %vm2362_vm15, 1.0, %v15686_v42 }
 0x8e9   : > { %9741 = vset.pattern.permute.xlu1 %v10069_v28  ;;  %7142 = vmatmul.f32.gmra.mxu0 %v6833_v26  ;;  %v6834_v8 = vand.u32 4294901760, %v6833_v26  ;;  %v4153_v2 = vpop.permute.xlu2 %4152 }
 0x8eb   : > { %7266 = vmatmul.f32.gmra.mxu1 %v6834_v8  ;;  %v6835_v52 = vsub.f32 %v6833_v26, %v6834_v8  ;;  %v4127_v48 = vpop.permute.xlu1 %4126  ;;  %v4791_v8 = vmul.f32 %v9430_v54, %v13024_v56  ;;  %v15997_v56 = vld [vmem:[#allocation55_spill] sm:$0xff] }
 0x8ec   : > { %v4795_v26 = vmul.f32 %v9434_v41, %v4127_v48  ;;  %vm2367_vm11 = vcmp.eq.s32.totalorder %v15997_v56, %v11637_v45 }
 0x8ed   : > { %v6836_v30 = vand.u32 4294901760, %v6835_v52  ;;  %v4794_v52 = vmul.f32 %v9433_v50, %v4120_v53  ;;  %v5487_v18 = vadd.f32 %v4792_v36, %v4791_v8  ;;  %v15998_v53 = vld [vmem:[#allocation222_spill] sm:$0xff] }
 0x8ee   : > { %vm2368_vm12 = vcmp.eq.s32.totalorder %v15998_v53, %v11637_v45 }
 0x8ef   : > { %6837 = vmatmul.f32.gmra.mxu2 %v6836_v30  ;;  %4282 = vperm.xlu2 %9740, %v4277_v31   ;;  %v5494_v60 = vadd.f32 %v4794_v52, %v4793_v29  ;;  %v9439_v52 = vsel %vm2368_vm12, 1.0, %v15686_v42 }
 0x8f1   : > { %4288 = vperm.xlu1 %9741, %v4277_v31   ;;  %v9435_v31 = vsel %vm2364_vm10, 1.0, %v15686_v42  ;;  %v4166_v30 = vpop.permute.xlu2 %4165  ;;  %v5495_v36 = vrot.slane %v5494_v60, 4 }
 0x8f2   : > { %v4796_v16 = vmul.f32 %v9435_v31, %v4133_v7  ;;  %v9442_v7 = vsel %vm2371_vm0, 1.0, %v15686_v42 }
 0x8f3   : > { %v4140_v57 = vpop.permute.xlu1 %4139  ;;  %v4803_v50 = vmul.f32 %v9442_v7, %v15999_v11  ;;  %v16002_v7 = vld [vmem:[#allocation223_spill] sm:$0xff] }
 0x8f4   : > { %v4797_v47 = vmul.f32 %v9436_v43, %v4140_v57  ;;  %v5501_v4 = vadd.f32 %v4796_v16, %v4795_v26  ;;  %v5488_v57 = vrot.slane %v5487_v18, 4  ;;  %v9438_v26 = vsel %vm2367_vm11, 1.0, %v15686_v42 }
 0x8f5   : > { %v4799_v55 = vmul.f32 %v9438_v26, %v4153_v2  ;;  %vm2369_vm14 = vcmp.eq.s32.totalorder %v16002_v7, %v11637_v45 }
 0x8f6   : > { %v5508_v48 = vadd.f32 %v4798_v61, %v4797_v47  ;;  %v5502_v54 = vrot.slane %v5501_v4, 4  ;;  %v5489_v47 = vadd.f32 %v5488_v57, %v5487_v18  ;;  %v16000_v61 = vld [vmem:[#allocation18_spill] sm:$0xff] }
 0x8f7   : > { %4295 = vperm.xlu2 %9740, %v4290_v1   ;;  %v4316_v27 = vperm.slane %v16000_v61, 1  ;;  %v16003_v18 = vperm.slane %v16000_v61, 0 }
 0x8f8   : > { %v5509_v41 = vrot.slane %v5508_v48, 4  ;;  %v5503_v33 = vadd.f32 %v5502_v54, %v5501_v4 }
 0x8f9   : > { %4301 = vperm.xlu1 %9741, %v4290_v1   ;;  %v15996_v1 = vld [vmem:[#allocation286_spill] sm:$0xff] }
 0x8fa   : > { %vm2372_vm8 = vcmp.eq.s32.totalorder %v15996_v1, %v11637_v45  ;;  %v5496_v1 = vadd.f32 %v5495_v36, %v5494_v60  ;;  %v5510_v56 = vadd.f32 %v5509_v41, %v5508_v48  ;;  %v5504_v2 = vrot.slane %v5503_v33, 2 }
 0x8fb   : > { %v9443_v43 = vsel %vm2372_vm8, 1.0, %v15686_v42  ;;  %v9440_v60 = vsel %vm2369_vm14, 1.0, %v15686_v42  ;;  %v9441_v36 = vsel %vm2370_vm13, 1.0, %v15686_v42 }
 0x8fc   : > { %v5497_v4 = vrot.slane %v5496_v1, 2  ;;  %v5511_v57 = vrot.slane %v5510_v56, 2  ;;  %v4801_v11 = vmul.f32 %v9440_v60, %v4166_v30 }
 0x8ff   : > { %9742 = vset.pattern.permute.xlu2 %v10069_v28 }
 0x901   : > { %9743 = vset.pattern.permute.xlu1 %v10062_v25  ;;  %v4185_v22 = vpop.permute.xlu2 %4184 }
 0x902   : > { %v4804_v8 = vmul.f32 %v9443_v43, %v4185_v22  ;;  %v5490_v43 = vrot.slane %v5489_v47, 2 }
 0x903   : > { %v4159_v31 = vpop.permute.xlu1 %4158 }
 0x904   : > { %v4800_v16 = vmul.f32 %v9439_v52, %v4159_v31  ;;  %v5529_v29 = vadd.f32 %v4804_v8, %v4803_v50  ;;  %v5491_v51 = vadd.f32 %v5490_v43, %v5489_v47  ;;  %v5505_v8 = vadd.f32 %v5504_v2, %v5503_v33 }
 0x905   : > { %v5498_v52 = vadd.f32 %v5497_v4, %v5496_v1  ;;  %v5512_v31 = vadd.f32 %v5511_v57, %v5510_v56 }
 0x906   : > { %v5515_v53 = vadd.f32 %v4800_v16, %v4799_v55  ;;  %v5530_v24 = vrot.slane %v5529_v29, 4 }
 0x907   : > { %4314 = vperm.xlu2 %9742, %v16003_v18   ;;  %v5492_v18 = vrot.slane %v5491_v51, 1 }
 0x908   : > { %v5516_v22 = vrot.slane %v5515_v53, 4  ;;  %v5531_v48 = vadd.f32 %v5530_v24, %v5529_v29  ;;  %v5499_v24 = vrot.slane %v5498_v52, 1  ;;  %v5513_v29 = vrot.slane %v5512_v31, 1 }
 0x909   : > { %4321 = vperm.xlu1 %9743, %v4316_v27   ;;  %v5493_v43 = vadd.f32 %v5492_v18, %v5491_v51 }
 0x90a   : > { %v5517_v54 = vadd.f32 %v5516_v22, %v5515_v53  ;;  %v5532_v16 = vrot.slane %v5531_v48, 2  ;;  %v5506_v53 = vrot.slane %v5505_v8, 1  ;;  %v16004_v22 = vperm.slane %v16000_v61, 2 }
 0x90b   : > { %v4172_v41 = vpop.permute.xlu1 %4171  ;;  %v5500_v1 = vadd.f32 %v5499_v24, %v5498_v52  ;;  %v5514_v56 = vadd.f32 %v5513_v29, %v5512_v31 }
 0x90c   : > { %v5518_v50 = vrot.slane %v5517_v54, 2  ;;  %v4802_v26 = vmul.f32 %v9441_v36, %v4172_v41  ;;  %v5533_v47 = vadd.f32 %v5532_v16, %v5531_v48  ;;  %v5507_v33 = vadd.f32 %v5506_v53, %v5505_v8  ;;  %v4198_v48 = vpop.permute.xlu2 %4197 }
 0x90d   : > { %v6669_v36 = vsel %vm6585_vm2, %v5500_v1, %v5493_v43  ;;  %v4342_v16 = vperm.slane %v16000_v61, 3 }
 0x90e   : > { %v5522_v55 = vadd.f32 %v4802_v26, %v4801_v11  ;;  %v5519_v7 = vadd.f32 %v5518_v50, %v5517_v54  ;;  %v5534_v4 = vrot.slane %v5533_v47, 1  ;;  %v16005_v54 = vld [vmem:[#allocation226_spill] sm:$0xff] }
 0x90f   : > { %4327 = vperm.xlu2 %9742, %v4316_v27   ;;  %vm2373_vm15 = vcmp.eq.s32.totalorder %v16005_v54, %v11637_v45  ;;  %v16006_v27 = vld [vmem:[#allocation227_spill] sm:$0xff]  ;;  %v13132_v54 = vpop.f32.mrf.mxu1 }
 0x910   : > { %v5523_v38 = vrot.slane %v5522_v55, 4  ;;  %v5520_v30 = vrot.slane %v5519_v7, 1  ;;  %vm2374_vm1 = vcmp.eq.s32.totalorder %v16006_v27, %v11637_v45  ;;  %v5535_v11 = vadd.f32 %v5534_v4, %v5533_v47  ;;  %v13129_v4 = vpop.f32.mrf.mxu0  ;;  %16010 = vst [vmem:[#allocation74_spill] sm:$0xff] %v13132_v54 }
 0x911   : > { %4334 = vperm.xlu1 %9743, %v16004_v22   ;;  %v9445_v26 = vsel %vm2374_vm1, 1.0, %v15686_v42  ;;  %v9444_v8 = vsel %vm2373_vm15, 1.0, %v15686_v42  ;;  %v4355_v47 = vperm.slane %v16000_v61, 4  ;;  %16009 = vst [vmem:[#allocation78_spill] sm:$0xff] %v13129_v4 }
 0x912   : > { %v5524_v20 = vadd.f32 %v5523_v38, %v5522_v55  ;;  %v5521_v57 = vadd.f32 %v5520_v30, %v5519_v7  ;;  %v6670_v38 = vsel %vm6587_vm3, %v5507_v33, %v6669_v36  ;;  %v4806_v31 = vmul.f32 %v9445_v26, %v4198_v48  ;;  %v13135_v48 = vpop.f32.mrf.mxu2 }
 0x913   : > { %16011 = vst [vmem:[#allocation76_spill] sm:$0xff] %v13135_v48 }
 0x914   : > { %v5525_v60 = vrot.slane %v5524_v20, 2 }
 0x916   : > { %v5526_v2 = vadd.f32 %v5525_v60, %v5524_v20  ;;  %v6671_v20 = vsel %vm6589_vm4, %v5514_v56, %v6670_v38  ;;  %v13124_v56 = vpop.f32.mrf.mxu3  ;;  %v4381_v38 = vperm.slane %v16000_v61, 6 }
 0x917   : > { %9744 = vset.pattern.permute.xlu2 %v10062_v25  ;;  %v6672_v50 = vsel %vm6591_vm5, %v5521_v57, %v6671_v20  ;;  %16008 = vst [vmem:[#allocation72_spill] sm:$0xff] %v13124_v56 }
 0x918   : > { %v5527_v41 = vrot.slane %v5526_v2, 1 }
 0x919   : > { %9745 = vset.pattern.permute.xlu1 %v10069_v28  ;;  %v4218_v20 = vpop.permute.xlu2 %4217 }
 0x91a   : > { %v5528_v51 = vadd.f32 %v5527_v41, %v5526_v2 }
 0x91b   : > { %v4192_v52 = vpop.permute.xlu1 %4191 }
 0x91c   : > { %v4805_v55 = vmul.f32 %v9444_v8, %v4192_v52  ;;  %v6673_v7 = vsel %vm6593_vm6, %v5528_v51, %v6672_v50  ;;  %v16012_v51 = vperm.slane %v16000_v61, 5  ;;  %v16013_v50 = vperm.slane %v16000_v61, 7 }
 0x91d   : > { %v6674_v18 = vsel %vm6595_vm7, %v5535_v11, %v6673_v7  ;;  %v16015_v7 = vld [vmem:[#allocation228_spill] sm:$0xff] }
 0x91e   : > { %v5536_v53 = vadd.f32 %v4806_v31, %v4805_v55  ;;  %v16014_v31 = vld [vmem:[#allocation17_spill] sm:$0xff]  ;;  %vm2375_vm10 = vcmp.eq.s32.totalorder %v16015_v7, %v11637_v45 }
 0x91f   : > { %4347 = vperm.xlu2 %9744, %v4342_v16   ;;  %v4407_v55 = vperm.slane %v16014_v31, 0 }
 0x920   : > { %v5537_v22 = vrot.slane %v5536_v53, 4 }
 0x921   : > { %4353 = vperm.xlu1 %9745, %v4342_v16   ;;  %v4231_v26 = vpop.permute.xlu2 %4230 }
 0x922   : > { %v5538_v24 = vadd.f32 %v5537_v22, %v5536_v53  ;;  %v16017_v53 = vld [vmem:[#allocation232_spill] sm:$0xff]  ;;  %v4211_v22 = vpop.permute.xlu0 %4210 }
 0x923   : > { %v4205_v27 = vpop.permute.xlu1 %4204  ;;  %vm2380_vm8 = vcmp.eq.s32.totalorder %v16017_v53, %v11637_v45 }
 0x924   : > { %v5539_v29 = vrot.slane %v5538_v24, 2 }
 0x926   : > { %v5540_v30 = vadd.f32 %v5539_v29, %v5538_v24  ;;  %v16018_v24 = vld [vmem:[#allocation229_spill] sm:$0xff]  ;;  %v16019_v29 = vld [vmem:[#allocation58_spill] sm:$0xff] }
 0x927   : > { %4360 = vperm.xlu2 %9744, %v4355_v47   ;;  %vm2376_vm11 = vcmp.eq.s32.totalorder %v16018_v24, %v11637_v45  ;;  %vm2377_vm12 = vcmp.eq.s32.totalorder %v16019_v29, %v11637_v45 }
 0x928   : > { %v5541_v43 = vrot.slane %v5540_v30, 1 }
 0x929   : > { %4366 = vperm.xlu1 %9745, %v4355_v47   ;;  %v16020_v47 = vld [vmem:[#allocation291_spill] sm:$0xff] }
 0x92a   : > { %v5542_v60 = vadd.f32 %v5541_v43, %v5540_v30  ;;  %vm2382_vm13 = vcmp.eq.s32.totalorder %v16020_v47, %v11637_v45  ;;  %v16021_v30 = vld [vmem:[#allocation231_spill] sm:$0xff]  ;;  %v9446_v43 = vsel %vm2375_vm10, 1.0, %v15686_v42 }
 0x92b   : > { %vm2379_vm14 = vcmp.eq.s32.totalorder %v16021_v30, %v11637_v45  ;;  %v4807_v29 = vmul.f32 %v9446_v43, %v4205_v27  ;;  %v16026_v30 = vld [vmem:[#allocation235_spill] sm:$0xff]  ;;  %v9453_v27 = vsel %vm2382_vm13, 1.0, %v15686_v42 }
 0x92c   : > { %v6675_v33 = vsel %vm16007_vm9, %v5542_v60, %v6674_v18  ;;  %v16016_v18 = vld [vmem:[#allocation230_spill] sm:$0xff]  ;;  %v9450_v24 = vsel %vm2379_vm14, 1.0, %v15686_v42  ;;  %vm16034_vm14 = vcmask 1047559  }
 0x92d   : > { %v13122_v1 = vand.u32 4294901760, %v6675_v33  ;;  %vm2378_vm0 = vcmp.eq.s32.totalorder %v16016_v18, %v11637_v45  ;;  %v16025_v18 = vld [vmem:[#allocation238_spill] sm:$0xff] }
 0x92e   : > { %v9449_v60 = vsel %vm2378_vm0, 1.0, %v15686_v42  ;;  %vm2386_vm10 = vcmp.eq.s32.totalorder %v16025_v18, %v11637_v45  ;;  %vm2384_vm0 = vcmp.eq.s32.totalorder %v16026_v30, %v11637_v45  ;;  %v16027_v18 = vld [vmem:[#allocation140_spill] sm:$0xff] }
 0x92f   : > { %7022 = vmatmul.f32.gmra.mxu3 %v13122_v1  ;;  %v6841_v2 = vsub.f32 %v6675_v33, %v13122_v1  ;;  %9746 = vset.pattern.permute.xlu2 %v10069_v28  ;;  %v9451_v33 = vsel %vm2380_vm8, 1.0, %v15686_v42 }
 0x931   : > { %9747 = vset.pattern.permute.xlu1 %v10062_v25  ;;  %7147 = vmatmul.f32.gmra.mxu0 %v6841_v2  ;;  %v6842_v57 = vand.u32 4294901760, %v6841_v2  ;;  %v4250_v52 = vpop.permute.xlu2 %4249 }
 0x933   : > { %7272 = vmatmul.f32.gmra.mxu1 %v6842_v57  ;;  %v6843_v36 = vsub.f32 %v6841_v2, %v6842_v57  ;;  %v4224_v11 = vpop.permute.xlu1 %4223  ;;  %v9447_v2 = vsel %vm2376_vm11, 1.0, %v15686_v42  ;;  %v16022_v57 = vld [vmem:[#allocation234_spill] sm:$0xff] }
 0x934   : > { %vm2383_vm15 = vcmp.eq.s32.totalorder %v16022_v57, %v11637_v45  ;;  %v4276_v57 = vpop.permute.xlu0 %4275 }
 0x935   : > { %v6844_v41 = vand.u32 4294901760, %v6843_v36  ;;  %v4810_v36 = vmul.f32 %v9449_v60, %v4224_v11  ;;  %v4808_v11 = vmul.f32 %v9447_v2, %v4211_v22  ;;  %v4811_v60 = vmul.f32 %v9450_v24, %v4231_v26 }
 0x936   : > { %v4814_v2 = vmul.f32 %v9453_v27, %v4250_v52  ;;  %v16029_v52 = vld [vmem:[#allocation239_spill] sm:$0xff] }
 0x937   : > { %6845 = vmatmul.f32.gmra.mxu2 %v6844_v41  ;;  %4379 = vperm.xlu2 %9746, %v16012_v51   ;;  %v16023_v51 = vld [vmem:[#allocation233_spill] sm:$0xff]  ;;  %v5543_v43 = vadd.f32 %v4808_v11, %v4807_v29  ;;  %vm2388_vm11 = vcmp.eq.s32.totalorder %v16029_v52, %v11637_v45 }
 0x938   : > { %vm2381_vm1 = vcmp.eq.s32.totalorder %v16023_v51, %v11637_v45 }
 0x939   : > { %4386 = vperm.xlu1 %9747, %v4381_v38   ;;  %v4263_v41 = vpop.permute.xlu2 %4262  ;;  %v9452_v51 = vsel %vm2381_vm1, 1.0, %v15686_v42  ;;  %v5544_v58 = vrot.slane %v5543_v43, 4 }
 0x93b   : > { %v4237_v8 = vpop.permute.xlu1 %4236 }
 0x93c   : > { %v4812_v7 = vmul.f32 %v9451_v33, %v4237_v8  ;;  %v9454_v8 = vsel %vm2383_vm15, 1.0, %v15686_v42 }
 0x93e   : > { %v5557_v26 = vadd.f32 %v4812_v7, %v4811_v60  ;;  %v5545_v7 = vadd.f32 %v5544_v58, %v5543_v43  ;;  %v16030_v58 = vld [vmem:[#allocation242_spill] sm:$0xff]  ;;  %v16031_v43 = vld [vmem:[#allocation241_spill] sm:$0xff] }
 0x93f   : > { %4392 = vperm.xlu2 %9746, %v4381_v38   ;;  %v4420_v38 = vperm.slane %v16014_v31, 1  ;;  %vm2389_vm13 = vcmp.eq.s32.totalorder %v16031_v43, %v11637_v45 }
 0x940   : > { %v5558_v48 = vrot.slane %v5557_v26, 4 }
 0x941   : > { %4399 = vperm.xlu1 %9747, %v16013_v50   ;;  %v16024_v50 = vld [vmem:[#allocation236_spill] sm:$0xff] }
 0x942   : > { %vm2385_vm9 = vcmp.eq.s32.totalorder %v16024_v50, %v11637_v45 }
 0x943   : > { %v9456_v33 = vsel %vm2385_vm9, 1.0, %v15686_v42 }
 0x947   : > { %9748 = vset.pattern.permute.xlu2 %v10062_v25 }
 0x949   : > { %9749 = vset.pattern.permute.xlu1 %v10069_v28  ;;  %v4283_v56 = vpop.permute.xlu2 %4282 }
 0x94b   : > { %v4257_v16 = vpop.permute.xlu1 %4256 }
 0x94c   : > { %v4815_v22 = vmul.f32 %v9454_v8, %v4257_v16  ;;  %v16028_v16 = vld [vmem:[#allocation61_spill] sm:$0xff] }
 0x94d   : > { %vm2387_vm8 = vcmp.eq.s32.totalorder %v16028_v16, %v11637_v45 }
 0x94e   : > { %v9458_v60 = vsel %vm2387_vm8, 1.0, %v15686_v42 }
 0x94f   : > { %4412 = vperm.xlu2 %9748, %v4407_v55  }
 0x951   : > { %4418 = vperm.xlu1 %9749, %v4407_v55   ;;  %v9448_v55 = vsel %vm2377_vm12, 1.0, %v15686_v42  ;;  %vm2390_vm12 = vcmp.eq.s32.totalorder %v16030_v58, %v11637_v45 }
 0x952   : > { %v4809_v53 = vmul.f32 %v9448_v55, %v4218_v20  ;;  %v9457_v20 = vsel %vm2386_vm10, 1.0, %v15686_v42  ;;  %v9461_v52 = vsel %vm2390_vm12, 1.0, %v15686_v42 }
 0x953   : > { %v4270_v54 = vpop.permute.xlu1 %4269  ;;  %v4818_v24 = vmul.f32 %v9457_v20, %v4276_v57  ;;  %v4819_v20 = vmul.f32 %v9458_v60, %v4283_v56  ;;  %v16032_v56 = vperm.slane %v16014_v31, 2 }
 0x954   : > { %v5550_v4 = vadd.f32 %v4810_v36, %v4809_v53  ;;  %v9455_v36 = vsel %vm2384_vm0, 1.0, %v15686_v42  ;;  %v4817_v50 = vmul.f32 %v9456_v33, %v4270_v54  ;;  %v4813_v53 = vmul.f32 %v9452_v51, %v16027_v18 }
 0x955   : > { %v4816_v55 = vmul.f32 %v9455_v36, %v4263_v41  ;;  %v5559_v54 = vadd.f32 %v5558_v48, %v5557_v26  ;;  %v9459_v51 = vsel %vm2388_vm11, 1.0, %v15686_v42  ;;  %v5546_v36 = vrot.slane %v5545_v7, 2  ;;  %v4296_v26 = vpop.permute.xlu2 %4295 }
 0x956   : > { %v5551_v30 = vrot.slane %v5550_v4, 4  ;;  %v5564_v47 = vadd.f32 %v4814_v2, %v4813_v53  ;;  %v5578_v21 = vadd.f32 %v4818_v24, %v4817_v50 }
 0x957   : > { %4425 = vperm.xlu2 %9748, %v4420_v38   ;;  %v5571_v12 = vadd.f32 %v4816_v55, %v4815_v22  ;;  %v5560_v22 = vrot.slane %v5559_v54, 2  ;;  %v5547_v24 = vadd.f32 %v5546_v36, %v5545_v7 }
 0x958   : > { %v5565_v29 = vrot.slane %v5564_v47, 4  ;;  %v5579_v11 = vrot.slane %v5578_v21, 4 }
 0x959   : > { %4431 = vperm.xlu1 %9749, %v4420_v38   ;;  %v5552_v38 = vadd.f32 %v5551_v30, %v5550_v4  ;;  %v5572_v41 = vrot.slane %v5571_v12, 4  ;;  %v4446_v4 = vperm.slane %v16014_v31, 3  ;;  %v5561_v53 = vadd.f32 %v5560_v22, %v5559_v54 }
 0x95a   : > { %v5566_v48 = vadd.f32 %v5565_v29, %v5564_v47  ;;  %v5580_v50 = vadd.f32 %v5579_v11, %v5578_v21  ;;  %v9460_v21 = vsel %vm2389_vm13, 1.0, %v15686_v42 }
 0x95b   : > { %v5553_v33 = vrot.slane %v5552_v38, 2  ;;  %v5573_v2 = vadd.f32 %v5572_v41, %v5571_v12  ;;  %v4821_v11 = vmul.f32 %v9460_v21, %v4296_v26 }
 0x95c   : > { %v5567_v30 = vrot.slane %v5566_v48, 2  ;;  %v5581_v47 = vrot.slane %v5580_v50, 2 }
 0x95d   : > { %v5554_v55 = vadd.f32 %v5553_v33, %v5552_v38  ;;  %v5574_v12 = vrot.slane %v5573_v2, 2  ;;  %v5548_v33 = vrot.slane %v5547_v24, 1 }
 0x95e   : > { %v5582_v54 = vadd.f32 %v5581_v47, %v5580_v50 }
 0x95f   : > { %9750 = vset.pattern.permute.xlu2 %v10069_v28  ;;  %v5555_v29 = vrot.slane %v5554_v55, 1  ;;  %v5549_v26 = vadd.f32 %v5548_v33, %v5547_v24 }
 0x960   : > { %v5583_v21 = vrot.slane %v5582_v54, 1 }
 0x961   : > { %9751 = vset.pattern.permute.xlu1 %v10062_v25  ;;  %v5556_v36 = vadd.f32 %v5555_v29, %v5554_v55 }
 0x962   : > { %v5584_v55 = vadd.f32 %v5583_v21, %v5582_v54  ;;  %v13221_v54 = vpop.f32.mrf.mxu3  ;;  %v16039_v21 = vld [vmem:[#allocation248_spill] sm:$0xff] }
 0x963   : > { %v4289_v8 = vpop.permute.xlu1 %4288  ;;  %16035 = vst [vmem:[#allocation237_spill] sm:$0xff] %v13221_v54  ;;  %vm2395_vm1 = vcmp.eq.s32.totalorder %v16039_v21, %v11637_v45  ;;  %v16048_v21 = vld [vmem:[#allocation250_spill] sm:$0xff] }
 0x964   : > { %v4820_v27 = vmul.f32 %v9459_v51, %v4289_v8  ;;  %v5562_v51 = vrot.slane %v5561_v53, 1  ;;  %v5575_v8 = vadd.f32 %v5574_v12, %v5573_v2  ;;  %vm2398_vm13 = vcmp.eq.s32.totalorder %v16048_v21, %v11637_v45  ;;  %v16051_v21 = vld [vmem:[#allocation253_spill] sm:$0xff] }
 0x966   : > { %v5585_v57 = vadd.f32 %v4820_v27, %v4819_v20  ;;  %v5568_v20 = vadd.f32 %v5567_v30, %v5566_v48  ;;  %v13205_v27 = vpop.permute.xlu2 %4314  ;;  %v5563_v58 = vadd.f32 %v5562_v51, %v5561_v53  ;;  %v5576_v43 = vrot.slane %v5575_v8, 1 }
 0x967   : > { %4444 = vperm.xlu2 %9750, %v16032_v56   ;;  %v6676_v48 = vsel %vm6585_vm2, %v5556_v36, %v5549_v26  ;;  %v13225_v36 = vpop.f32.mrf.mxu0  ;;  %v16038_v26 = vld [vmem:[#allocation245_spill] sm:$0xff] }
 0x968   : > { %v5586_v18 = vrot.slane %v5585_v57, 4  ;;  %v5569_v56 = vrot.slane %v5568_v20, 1  ;;  %v6677_v12 = vsel %vm6587_vm3, %v5563_v58, %v6676_v48  ;;  %v5577_v30 = vadd.f32 %v5576_v43, %v5575_v8  ;;  %16036 = vst [vmem:[#allocation80_spill] sm:$0xff] %v13225_v36  ;;  %v13227_v58 = vpop.f32.mrf.mxu1  ;;  %v16042_v48 = vld [vmem:[#allocation244_spill] sm:$0xff] }
 0x969   : > { %4451 = vperm.xlu1 %9751, %v4446_v4   ;;  %v4472_v8 = vperm.slane %v16014_v31, 5  ;;  %16037 = vst [vmem:[#allocation82_spill] sm:$0xff] %v13227_v58  ;;  %vm2393_vm15 = vcmp.eq.s32.totalorder %v16038_v26, %v11637_v45  ;;  %vm2391_vm0 = vcmp.eq.s32.totalorder %v16042_v48, %v11637_v45 }
 0x96a   : > { %v5587_v16 = vadd.f32 %v5586_v18, %v5585_v57  ;;  %v16033_v18 = vperm.slane %v16014_v31, 4  ;;  %v5570_v47 = vadd.f32 %v5569_v56, %v5568_v20 }
 0x96b   : > { %v4302_v41 = vpop.permute.xlu1 %4301 }
 0x96c   : > { %v5588_v60 = vrot.slane %v5587_v16, 2  ;;  %v4822_v38 = vmul.f32 %v9461_v52, %v4302_v41  ;;  %v6678_v53 = vsel %vm6589_vm4, %v5570_v47, %v6677_v12  ;;  %v13242_v12 = vpop.f32.mrf.mxu2  ;;  %v9464_v47 = vsel %vm2393_vm15, 1.0, %v15686_v42 }
 0x96d   : > { %v6679_v24 = vsel %vm6591_vm5, %v5577_v30, %v6678_v53  ;;  %16044 = vst [vmem:[#allocation81_spill] sm:$0xff] %v13242_v12  ;;  %v9462_v53 = vsel %vm2391_vm0, 1.0, %v15686_v42  ;;  %vm2400_vm15 = vcmp.eq.s32.totalorder %v16051_v21, %v11637_v45 }
 0x96e   : > { %v5592_v7 = vadd.f32 %v4822_v38, %v4821_v11  ;;  %v5589_v22 = vadd.f32 %v5588_v60, %v5587_v16  ;;  %v4328_v41 = vpop.permute.xlu2 %4327  ;;  %v6680_v60 = vsel %vm6593_vm6, %v5584_v55, %v6679_v24 }
 0x96f   : > { %4457 = vperm.xlu2 %9750, %v4446_v4  }
 0x970   : > { %v5593_v57 = vrot.slane %v5592_v7, 4  ;;  %v5590_v2 = vrot.slane %v5589_v22, 1 }
 0x971   : > { %4464 = vperm.xlu1 %9751, %v16033_v18   ;;  %v4485_v18 = vperm.slane %v16014_v31, 6 }
 0x972   : > { %v5594_v52 = vadd.f32 %v5593_v57, %v5592_v7  ;;  %v5591_v4 = vadd.f32 %v5590_v2, %v5589_v22  ;;  %v16041_v2 = vld [vmem:[#allocation295_spill] sm:$0xff] }
 0x973   : > { %vm2392_vm10 = vcmp.eq.s32.totalorder %v16041_v2, %v11637_v45  ;;  %v16049_v2 = vld [vmem:[#allocation64_spill] sm:$0xff] }
 0x974   : > { %v5595_v50 = vrot.slane %v5594_v52, 2  ;;  %v6681_v38 = vsel %vm6595_vm7, %v5591_v4, %v6680_v60  ;;  %v9466_v4 = vsel %vm2395_vm1, 1.0, %v15686_v42 }
 0x976   : > { %v5596_v16 = vadd.f32 %v5595_v50, %v5594_v52  ;;  %v16040_v52 = vld [vmem:[#allocation249_spill] sm:$0xff]  ;;  %v16043_v50 = vld [vmem:[#allocation246_spill] sm:$0xff] }
 0x977   : > { %9752 = vset.pattern.permute.xlu2 %v10062_v25  ;;  %vm2396_vm9 = vcmp.eq.s32.totalorder %v16040_v52, %v11637_v45  ;;  %vm2394_vm8 = vcmp.eq.s32.totalorder %v16043_v50, %v11637_v45 }
 0x978   : > { %v5597_v29 = vrot.slane %v5596_v16, 1  ;;  %v9467_v55 = vsel %vm2396_vm9, 1.0, %v15686_v42  ;;  %v9465_v24 = vsel %vm2394_vm8, 1.0, %v15686_v42 }
 0x979   : > { %9753 = vset.pattern.permute.xlu1 %v10069_v28  ;;  %v4348_v22 = vpop.permute.xlu2 %4347 }
 0x97a   : > { %v5598_v11 = vadd.f32 %v5597_v29, %v5596_v16  ;;  %v9463_v29 = vsel %vm2392_vm10, 1.0, %v15686_v42 }
 0x97b   : > { %v4322_v33 = vpop.permute.xlu1 %4321 }
 0x97c   : > { %v6682_v51 = vsel %vm16034_vm14, %v5598_v11, %v6681_v38  ;;  %v4825_v16 = vmul.f32 %v9464_v47, %v4322_v33  ;;  %v4341_v38 = vpop.permute.xlu0 %4340  ;;  %v16046_v33 = vld [vmem:[#allocation255_spill] sm:$0xff]  ;;  %vm2397_vm14 = vcmp.eq.s32.totalorder %v16049_v2, %v11637_v45  ;;  %v9469_v47 = vsel %vm2398_vm13, 1.0, %v15686_v42  ;;  %v16052_v2 = vld [vmem:[#allocation252_spill] sm:$0xff] }
 0x97d   : > { %v13219_v20 = vand.u32 4294901760, %v6682_v51  ;;  %vm2401_vm11 = vcmp.eq.s32.totalorder %v16046_v33, %v11637_v45  ;;  %vm2399_vm1 = vcmp.eq.s32.totalorder %v16052_v2, %v11637_v45 }
 0x97f   : > { %7026 = vmatmul.f32.gmra.mxu3 %v13219_v20  ;;  %v6849_v7 = vsub.f32 %v6682_v51, %v13219_v20  ;;  %4477 = vperm.xlu2 %9752, %v4472_v8   ;;  %v4824_v51 = vmul.f32 %v9463_v29, %v13205_v27  ;;  %v9472_v27 = vsel %vm2401_vm11, 1.0, %v15686_v42  ;;  %vm16059_vm11 = vcmask 1047559  }
 0x981   : > { %4483 = vperm.xlu1 %9753, %v4472_v8   ;;  %7152 = vmatmul.f32.gmra.mxu0 %v6849_v7  ;;  %v6850_v57 = vand.u32 4294901760, %v6849_v7  ;;  %v4361_v11 = vpop.permute.xlu2 %4360  ;;  %v4826_v8 = vmul.f32 %v9465_v24, %v4328_v41 }
 0x983   : > { %7278 = vmatmul.f32.gmra.mxu1 %v6850_v57  ;;  %v6851_v43 = vsub.f32 %v6849_v7, %v6850_v57  ;;  %v4335_v30 = vpop.permute.xlu1 %4334  ;;  %v4828_v7 = vmul.f32 %v9467_v55, %v4341_v38  ;;  %v16045_v57 = vld [vmem:[#allocation144_spill] sm:$0xff]  ;;  %v5606_v26 = vadd.f32 %v4826_v8, %v4825_v16  ;;  %v16050_v55 = vld [vmem:[#allocation147_spill] sm:$0xff] }
 0x984   : > { %v4827_v60 = vmul.f32 %v9466_v4, %v4335_v30  ;;  %v4833_v16 = vmul.f32 %v9472_v27, %v16050_v55 }
 0x985   : > { %v6852_v56 = vand.u32 4294901760, %v6851_v43  ;;  %v4823_v43 = vmul.f32 %v9462_v53, %v16045_v57  ;;  %v5607_v41 = vrot.slane %v5606_v26, 4  ;;  %v9468_v53 = vsel %vm2397_vm14, 1.0, %v15686_v42 }
 0x987   : > { %6853 = vmatmul.f32.gmra.mxu2 %v6852_v56  ;;  %4490 = vperm.xlu2 %9752, %v4485_v18   ;;  %v16047_v56 = vld [vmem:[#allocation299_spill] sm:$0xff]  ;;  %v5599_v52 = vadd.f32 %v4824_v51, %v4823_v43  ;;  %v5608_v51 = vadd.f32 %v5607_v41, %v5606_v26 }
 0x988   : > { %vm2402_vm12 = vcmp.eq.s32.totalorder %v16047_v56, %v11637_v45 }
 0x989   : > { %4496 = vperm.xlu1 %9753, %v4485_v18   ;;  %v5613_v18 = vadd.f32 %v4828_v7, %v4827_v60  ;;  %v9473_v50 = vsel %vm2402_vm12, 1.0, %v15686_v42  ;;  %v5600_v4 = vrot.slane %v5599_v52, 4  ;;  %v4829_v60 = vmul.f32 %v9468_v53, %v4348_v22 }
 0x98a   : > { %v4511_v7 = vperm.slane %v15776_v32, 0  ;;  %v5609_v22 = vrot.slane %v5608_v51, 2 }
 0x98b   : > { %v5614_v48 = vrot.slane %v5613_v18, 4  ;;  %v5601_v33 = vadd.f32 %v5600_v4, %v5599_v52  ;;  %v9471_v52 = vsel %vm2400_vm15, 1.0, %v15686_v42 }
 0x98c   : > { %v5610_v53 = vadd.f32 %v5609_v22, %v5608_v51 }
 0x98d   : > { %v5615_v57 = vadd.f32 %v5614_v48, %v5613_v18  ;;  %v9470_v18 = vsel %vm2399_vm1, 1.0, %v15686_v42 }
 0x98e   : > { %v4831_v55 = vmul.f32 %v9470_v18, %v4361_v11 }
 0x98f   : > { %9754 = vset.pattern.permute.xlu2 %v10069_v28  ;;  %v5616_v26 = vrot.slane %v5615_v57, 2 }
 0x991   : > { %9755 = vset.pattern.permute.xlu1 %v10062_v25  ;;  %v4380_v30 = vpop.permute.xlu2 %4379 }
 0x992   : > { %v4834_v29 = vmul.f32 %v9473_v50, %v4380_v30  ;;  %v16053_v50 = vperm.slane %v16014_v31, 7  ;;  %v5602_v30 = vrot.slane %v5601_v33, 2 }
 0x993   : > { %v4354_v24 = vpop.permute.xlu1 %4353 }
 0x994   : > { %v4830_v38 = vmul.f32 %v9469_v47, %v4354_v24  ;;  %v5634_v8 = vadd.f32 %v4834_v29, %v4833_v16  ;;  %v5617_v29 = vadd.f32 %v5616_v26, %v5615_v57  ;;  %v16055_v26 = vld [vmem:[#allocation256_spill] sm:$0xff] }
 0x995   : > { %vm2403_vm9 = vcmp.eq.s32.totalorder %v16055_v26, %v11637_v45 }
 0x996   : > { %v5620_v43 = vadd.f32 %v4830_v38, %v4829_v60  ;;  %v5635_v56 = vrot.slane %v5634_v8, 4  ;;  %v5603_v60 = vadd.f32 %v5602_v30, %v5601_v33 }
 0x997   : > { %4509 = vperm.xlu2 %9754, %v16053_v50   ;;  %v5611_v50 = vrot.slane %v5610_v53, 1 }
 0x998   : > { %v5621_v27 = vrot.slane %v5620_v43, 4  ;;  %v5636_v48 = vadd.f32 %v5635_v56, %v5634_v8  ;;  %v5604_v56 = vrot.slane %v5603_v60, 1 }
 0x999   : > { %4516 = vperm.xlu1 %9755, %v4511_v7   ;;  %v5612_v18 = vadd.f32 %v5611_v50, %v5610_v53  ;;  %v9474_v53 = vsel %vm2403_vm9, 1.0, %v15686_v42  ;;  %v16057_v50 = vld [vmem:[#allocation261_spill] sm:$0xff] }
 0x99a   : > { %v5622_v41 = vadd.f32 %v5621_v27, %v5620_v43  ;;  %v5637_v38 = vrot.slane %v5636_v48, 2  ;;  %v16054_v43 = vperm.slane %v15776_v32, 1  ;;  %v5618_v27 = vrot.slane %v5617_v29, 1 }
 0x99b   : > { %v4367_v47 = vpop.permute.xlu1 %4366  ;;  %v5605_v57 = vadd.f32 %v5604_v56, %v5603_v60  ;;  %vm2406_vm0 = vcmp.eq.s32.totalorder %v16057_v50, %v11637_v45  ;;  %v13308_v50 = vpop.f32.mrf.mxu3 }
 0x99c   : > { %v5623_v16 = vrot.slane %v5622_v41, 2  ;;  %v4832_v4 = vmul.f32 %v9471_v52, %v4367_v47  ;;  %v5638_v58 = vadd.f32 %v5637_v38, %v5636_v48  ;;  %v5619_v52 = vadd.f32 %v5618_v27, %v5617_v29  ;;  %v4393_v48 = vpop.permute.xlu2 %4392  ;;  %16060 = vst [vmem:[#allocation79_spill] sm:$0xff] %v13308_v50 }
 0x99d   : > { %v6683_v30 = vsel %vm6585_vm2, %v5612_v18, %v5605_v57 }
 0x99e   : > { %v5627_v24 = vadd.f32 %v4832_v4, %v4831_v55  ;;  %v5624_v21 = vadd.f32 %v5623_v16, %v5622_v41  ;;  %v5639_v22 = vrot.slane %v5638_v58, 1  ;;  %v6684_v47 = vsel %vm6587_vm3, %v5619_v52, %v6683_v30 }
 0x99f   : > { %4522 = vperm.xlu2 %9754, %v4511_v7   ;;  %v16056_v7 = vld [vmem:[#allocation258_spill] sm:$0xff] }
 0x9a0   : > { %v5628_v2 = vrot.slane %v5627_v24, 4  ;;  %v5625_v36 = vrot.slane %v5624_v21, 1  ;;  %vm2404_vm10 = vcmp.eq.s32.totalorder %v16056_v7, %v11637_v45  ;;  %v5640_v16 = vadd.f32 %v5639_v22, %v5638_v58  ;;  %v16058_v58 = vld [vmem:[#allocation259_spill] sm:$0xff] }
 0x9a1   : > { %4529 = vperm.xlu1 %9755, %v16054_v43   ;;  %v9475_v4 = vsel %vm2404_vm10, 1.0, %v15686_v42  ;;  %vm2405_vm8 = vcmp.eq.s32.totalorder %v16058_v58, %v11637_v45  ;;  %v16061_v58 = vperm.slane %v15776_v32, 4 }
 0x9a2   : > { %v5629_v8 = vadd.f32 %v5628_v2, %v5627_v24  ;;  %v5626_v33 = vadd.f32 %v5625_v36, %v5624_v21  ;;  %v4836_v24 = vmul.f32 %v9475_v4, %v4393_v48  ;;  %v4537_v21 = vperm.slane %v15776_v32, 2 }
 0x9a3   : > { %v9476_v18 = vsel %vm2405_vm8, 1.0, %v15686_v42 }
 0x9a4   : > { %v5630_v11 = vrot.slane %v5629_v8, 2  ;;  %v6685_v36 = vsel %vm6589_vm4, %v5626_v33, %v6684_v47  ;;  %v4550_v33 = vperm.slane %v15776_v32, 3 }
 0x9a6   : > { %v5631_v51 = vadd.f32 %v5630_v11, %v5629_v8  ;;  %v9477_v8 = vsel %vm2406_vm0, 1.0, %v15686_v42  ;;  %v4406_v11 = vpop.permute.xlu0 %4405 }
 0x9a7   : > { %9756 = vset.pattern.permute.xlu2 %v10062_v25 }
 0x9a8   : > { %v5632_v41 = vrot.slane %v5631_v51, 1 }
 0x9a9   : > { %9757 = vset.pattern.permute.xlu1 %v10069_v28  ;;  %v13299_v47 = vpop.permute.xlu2 %4412 }
 0x9aa   : > { %v5633_v55 = vadd.f32 %v5632_v41, %v5631_v51  ;;  %v4838_v51 = vmul.f32 %v9477_v8, %v4406_v11  ;;  %v13316_v8 = vpop.f32.mrf.mxu1 }
 0x9ab   : > { %v4387_v29 = vpop.permute.xlu1 %4386  ;;  %16063 = vst [vmem:[#allocation29_spill] sm:$0xff] %v13316_v8 }
 0x9ac   : > { %v6686_v60 = vsel %vm6591_vm5, %v5633_v55, %v6685_v36  ;;  %v4835_v38 = vmul.f32 %v9474_v53, %v4387_v29 }
 0x9ad   : > { %v6687_v2 = vsel %vm6593_vm6, %v5640_v16, %v6686_v60 }
 0x9ae   : > { %v5641_v43 = vadd.f32 %v4836_v24, %v4835_v38  ;;  %v4576_v38 = vperm.slane %v15776_v32, 5 }
 0x9af   : > { %4542 = vperm.xlu2 %9756, %v4537_v21  }
 0x9b0   : > { %v5642_v27 = vrot.slane %v5641_v43, 4 }
 0x9b1   : > { %4548 = vperm.xlu1 %9757, %v4537_v21   ;;  %v4426_v21 = vpop.permute.xlu2 %4425 }
 0x9b2   : > { %v5643_v56 = vadd.f32 %v5642_v27, %v5641_v43  ;;  %v13314_v27 = vpop.f32.mrf.mxu0 }
 0x9b3   : > { %v4400_v52 = vpop.permute.xlu1 %4399  ;;  %16062 = vst [vmem:[#allocation84_spill] sm:$0xff] %v13314_v27 }
 0x9b4   : > { %v5644_v57 = vrot.slane %v5643_v56, 2  ;;  %v4837_v22 = vmul.f32 %v9476_v18, %v4400_v52 }
 0x9b6   : > { %v5648_v26 = vadd.f32 %v4838_v51, %v4837_v22  ;;  %v5645_v7 = vadd.f32 %v5644_v57, %v5643_v56  ;;  %v13318_v51 = vpop.f32.mrf.mxu2  ;;  %v16065_v57 = vperm.slane %v15776_v32, 6 }
 0x9b7   : > { %4555 = vperm.xlu2 %9756, %v4550_v33   ;;  %16064 = vst [vmem:[#allocation89_spill] sm:$0xff] %v13318_v51 }
 0x9b8   : > { %v5649_v41 = vrot.slane %v5648_v26, 4  ;;  %v5646_v48 = vrot.slane %v5645_v7, 1 }
 0x9b9   : > { %4561 = vperm.xlu1 %9757, %v4550_v33  }
 0x9ba   : > { %v5650_v30 = vadd.f32 %v5649_v41, %v5648_v26  ;;  %v5647_v36 = vadd.f32 %v5646_v48, %v5645_v7  ;;  %v4602_v26 = vperm.slane %v15776_v32, 7  ;;  %v16067_v48 = vld [vmem:[#allocation262_spill] sm:$0xff] }
 0x9bb   : > { %vm2408_vm13 = vcmp.eq.s32.totalorder %v16067_v48, %v11637_v45 }
 0x9bc   : > { %v5651_v55 = vrot.slane %v5650_v30, 2  ;;  %v6688_v29 = vsel %vm6595_vm7, %v5647_v36, %v6687_v2  ;;  %v16072_v36 = vld [vmem:[#allocation302_spill] sm:$0xff] }
 0x9bd   : > { %vm2412_vm10 = vcmp.eq.s32.totalorder %v16072_v36, %v11637_v45 }
 0x9be   : > { %v5652_v16 = vadd.f32 %v5651_v55, %v5650_v30  ;;  %v16066_v30 = vld [vmem:[#allocation265_spill] sm:$0xff]  ;;  %v16068_v55 = vld [vmem:[#allocation264_spill] sm:$0xff]  ;;  %v9483_v48 = vsel %vm2412_vm10, 1.0, %v15686_v42  ;;  %vm16086_vm10 = vcmask 130048  }
 0x9bf   : > { %9759 = vset.pattern.permute.xlu2 %v10069_v28  ;;  %vm2410_vm12 = vcmp.eq.s32.totalorder %v16066_v30, %v11637_v45  ;;  %vm2409_vm14 = vcmp.eq.s32.totalorder %v16068_v55, %v11637_v45 }
 0x9c0   : > { %v5653_v4 = vrot.slane %v5652_v16, 1  ;;  %v9481_v32 = vsel %vm2410_vm12, 1.0, %v15686_v42 }
 0x9c1   : > { %9760 = vset.pattern.permute.xlu1 %v10062_v25  ;;  %v4445_v52 = vpop.permute.xlu2 %4444 }
 0x9c2   : > { %v5654_v53 = vadd.f32 %v5653_v4, %v5652_v16  ;;  %v16069_v16 = vld [vmem:[#allocation268_spill] sm:$0xff]  ;;  %v16073_v4 = vld [vmem:[#allocation267_spill] sm:$0xff] }
 0x9c3   : > { %v4419_v56 = vpop.permute.xlu1 %4418  ;;  %vm2413_vm15 = vcmp.eq.s32.totalorder %v16069_v16, %v11637_v45  ;;  %vm2411_vm0 = vcmp.eq.s32.totalorder %v16073_v4, %v11637_v45  ;;  %v4844_v16 = vmul.f32 %v9483_v48, %v4445_v52  ;;  %v4471_v4 = vpop.permute.xlu0 %4470  ;;  %v16078_v52 = vld [vmem:[#allocation303_spill] sm:$0xff] }
 0x9c4   : > { %v6689_v24 = vsel %vm16059_vm11, %v5654_v53, %v6688_v29  ;;  %v16074_v53 = vld [vmem:[#allocation273_spill] sm:$0xff] }
 0x9c5   : > { %v13305_v60 = vand.u32 4294901760, %v6689_v24  ;;  %vm2416_vm8 = vcmp.eq.s32.totalorder %v16074_v53, %v11637_v45  ;;  %v16076_v53 = vld [vmem:[#allocation150_spill] sm:$0xff] }
 0x9c6   : > { %v9487_v30 = vsel %vm2416_vm8, 1.0, %v15686_v42  ;;  %vm16088_vm8 = vcmask 1047559  }
 0x9c7   : > { %7030 = vmatmul.f32.gmra.mxu3 %v13305_v60  ;;  %v6857_v43 = vsub.f32 %v6689_v24, %v13305_v60  ;;  %4574 = vperm.xlu2 %9759, %v16061_v58   ;;  %v9480_v24 = vsel %vm2409_vm14, 1.0, %v15686_v42  ;;  %v16075_v58 = vld [vmem:[#allocation270_spill] sm:$0xff]  ;;  %v4848_v8 = vmul.f32 %v9487_v30, %v4471_v4 }
 0x9c8   : > { %vm2414_vm11 = vcmp.eq.s32.totalorder %v16075_v58, %v11637_v45 }
 0x9c9   : > { %4581 = vperm.xlu1 %9760, %v4576_v38   ;;  %7157 = vmatmul.f32.gmra.mxu0 %v6857_v43  ;;  %v6858_v2 = vand.u32 4294901760, %v6857_v43  ;;  %v4458_v33 = vpop.permute.xlu2 %4457 }
 0x9cb   : > { %7284 = vmatmul.f32.gmra.mxu1 %v6858_v2  ;;  %v6859_v11 = vsub.f32 %v6857_v43, %v6858_v2  ;;  %v4432_v22 = vpop.permute.xlu1 %4431  ;;  %v9484_v43 = vsel %vm2413_vm15, 1.0, %v15686_v42  ;;  %v4841_v2 = vmul.f32 %v9480_v24, %v4426_v21 }
 0x9cc   : > { %v4842_v29 = vmul.f32 %v9481_v32, %v4432_v22 }
 0x9cd   : > { %v6860_v18 = vand.u32 4294901760, %v6859_v11 }
 0x9cf   : > { %6861 = vmatmul.f32.gmra.mxu2 %v6860_v18  ;;  %4587 = vperm.xlu2 %9759, %v4576_v38   ;;  %v9479_v38 = vsel %vm2408_vm13, 1.0, %v15686_v42  ;;  %vm2422_vm13 = vcmp.eq.s32.totalorder %v16078_v52, %v11637_v45 }
 0x9d0   : > { %v4840_v11 = vmul.f32 %v9479_v38, %v4419_v56  ;;  %v9485_v56 = vsel %vm2414_vm11, 1.0, %v15686_v42 }
 0x9d1   : > { %4594 = vperm.xlu1 %9760, %v16065_v57   ;;  %v4846_v58 = vmul.f32 %v9485_v56, %v4458_v33 }
 0x9d7   : > { %9761 = vset.pattern.permute.xlu2 %v10062_v25  ;;  %v16070_v25 = vld [vmem:[#allocation67_spill] sm:$0xff] }
 0x9d8   : > { %vm2407_vm1 = vcmp.eq.s32.totalorder %v16070_v25, %v11637_v45  ;;  %v16077_v25 = vld [vmem:[#allocation278_spill] sm:$0xff] }
 0x9d9   : > { %9762 = vset.pattern.permute.xlu1 %v10069_v28  ;;  %v4478_v41 = vpop.permute.xlu2 %4477  ;;  %v16071_v28 = vld [vmem:[#allocation271_spill] sm:$0xff]  ;;  %v9478_v22 = vsel %vm2407_vm1, 1.0, %v15686_v42  ;;  %vm2421_vm12 = vcmp.eq.s32.totalorder %v16077_v25, %v11637_v45 }
 0x9da   : > { %vm2415_vm9 = vcmp.eq.s32.totalorder %v16071_v28, %v11637_v45  ;;  %v4839_v55 = vmul.f32 %v9478_v22, %v13299_v47  ;;  %v5662_v28 = vadd.f32 %v4842_v29, %v4841_v2  ;;  %v9492_v33 = vsel %vm2421_vm12, 1.0, %v15686_v42  ;;  %v16081_v22 = vld [vmem:[#allocation153_spill] sm:$0xff] }
 0x9db   : > { %v4452_v7 = vpop.permute.xlu1 %4451  ;;  %v9486_v18 = vsel %vm2415_vm9, 1.0, %v15686_v42  ;;  %v4853_v48 = vmul.f32 %v9492_v33, %v16081_v22 }
 0x9dc   : > { %v4845_v21 = vmul.f32 %v9484_v43, %v4452_v7  ;;  %v5655_v38 = vadd.f32 %v4840_v11, %v4839_v55  ;;  %v5663_v50 = vrot.slane %v5662_v28, 4  ;;  %v16079_v7 = vld [vmem:[#allocation274_spill] sm:$0xff] }
 0x9dd   : > { %vm2418_vm14 = vcmp.eq.s32.totalorder %v16079_v7, %v11637_v45  ;;  %v16080_v43 = vld [vmem:[#allocation70_spill] sm:$0xff] }
 0x9de   : > { %v5676_v51 = vadd.f32 %v4846_v58, %v4845_v21  ;;  %v5656_v29 = vrot.slane %v5655_v38, 4  ;;  %vm2417_vm15 = vcmp.eq.s32.totalorder %v16080_v43, %v11637_v45  ;;  %v5664_v11 = vadd.f32 %v5663_v50, %v5662_v28  ;;  %v16082_v43 = vld [vmem:[#allocation277_spill] sm:$0xff] }
 0x9df   : > { %4607 = vperm.xlu2 %9761, %v4602_v26   ;;  %vm2420_vm1 = vcmp.eq.s32.totalorder %v16082_v43, %v11637_v45 }
 0x9e0   : > { %v5657_v55 = vadd.f32 %v5656_v29, %v5655_v38  ;;  %v16083_v38 = vld [vmem:[#allocation275_spill] sm:$0xff] }
 0x9e1   : > { %4613 = vperm.xlu1 %9762, %v4602_v26   ;;  %v9482_v26 = vsel %vm2411_vm0, 1.0, %v15686_v42  ;;  %v4491_v32 = vpop.permute.xlu2 %4490  ;;  %vm2419_vm9 = vcmp.eq.s32.totalorder %v16083_v38, %v11637_v45  ;;  %vm16087_vm0 = vmmov %vm16086_vm10 }
 0x9e2   : > { %v4843_v24 = vmul.f32 %v9482_v26, %v16076_v53  ;;  %v9493_v26 = vsel %vm2422_vm13, 1.0, %v15686_v42  ;;  %v5658_v52 = vrot.slane %v5657_v55, 2  ;;  %vm16090_vm11 = vmmov %vm16087_vm0 }
 0x9e3   : > { %v4465_v57 = vpop.permute.xlu1 %4464  ;;  %vm16091_vm12 = vmmov %vm16087_vm0 }
 0x9e4   : > { %v4847_v36 = vmul.f32 %v9486_v18, %v4465_v57  ;;  %v5669_v27 = vadd.f32 %v4844_v16, %v4843_v24  ;;  %v5677_v18 = vrot.slane %v5676_v51, 4  ;;  %v9488_v16 = vsel %vm2417_vm15, 1.0, %v15686_v42  ;;  %vm16094_vm13 = vmmov %vm16087_vm0 }
 0x9e5   : > { %v5665_v24 = vrot.slane %v5664_v11, 2  ;;  %vm16097_vm15 = vmmov %vm16087_vm0 }
 0x9e6   : > { %v5683_v47 = vadd.f32 %v4848_v8, %v4847_v36  ;;  %v5670_v2 = vrot.slane %v5669_v27, 4  ;;  %v9489_v8 = vsel %vm2418_vm14, 1.0, %v15686_v42  ;;  %v4849_v36 = vmul.f32 %v9488_v16, %v4478_v41  ;;  %vm16096_vm14 = vmmov %vm16087_vm0 }
 0x9e7   : > { %v5678_v58 = vadd.f32 %v5677_v18, %v5676_v51  ;;  %v5659_v51 = vadd.f32 %v5658_v52, %v5657_v55 }
 0x9e8   : > { %v5684_v57 = vrot.slane %v5683_v47, 4  ;;  %v5671_v53 = vadd.f32 %v5670_v2, %v5669_v27 }
 0x9e9   : > { %v5679_v41 = vrot.slane %v5678_v58, 2 }
 0x9ea   : > { %v5685_v28 = vadd.f32 %v5684_v57, %v5683_v47  ;;  %v5672_v33 = vrot.slane %v5671_v53, 2  ;;  %v9490_v47 = vsel %vm2419_vm9, 1.0, %v15686_v42  ;;  %v9491_v57 = vsel %vm2420_vm1, 1.0, %v15686_v42  ;;  %vm16099_vm1 = vmmov %vm16087_vm0 }
 0x9eb   : > { %v4851_v22 = vmul.f32 %v9490_v47, %v4491_v32  ;;  %vm16101_vm9 = vmmov %vm16087_vm0 }
 0x9ec   : > { %v5686_v27 = vrot.slane %v5685_v28, 2 }
 0x9f1   : > { %v4510_v30 = vpop.permute.xlu2 %4509 }
 0x9f2   : > { %v4854_v21 = vmul.f32 %v9493_v26, %v4510_v30  ;;  %v5666_v26 = vadd.f32 %v5665_v24, %v5664_v11  ;;  %v5687_v11 = vadd.f32 %v5686_v27, %v5685_v28  ;;  %v7529_v28 = vld [vmem:[%s10968_s21 + $0x18] sm:$0xff] }
 0x9f3   : > { %v4484_v56 = vpop.permute.xlu1 %4483 }
 0x9f4   : > { %v4850_v4 = vmul.f32 %v9489_v8, %v4484_v56  ;;  %v5704_v50 = vadd.f32 %v4854_v21, %v4853_v48  ;;  %v7526_v8 = vld [vmem:[%s10968_s21] sm:$0xff]  ;;  %v5673_v21 = vadd.f32 %v5672_v33, %v5671_v53  ;;  %v5667_v56 = vrot.slane %v5666_v26, 1 }
 0x9f5   : > { %v7542_v43 = vcvt.s32.f32 %v7526_v8  ;;  %v5688_v32 = vrot.slane %v5687_v11, 1 }
 0x9f6   : > { %v5690_v25 = vadd.f32 %v4850_v4, %v4849_v36  ;;  %v5705_v7 = vrot.slane %v5704_v50, 4  ;;  %v5680_v36 = vadd.f32 %v5679_v41, %v5678_v58  ;;  %v7527_v4 = vld [vmem:[%s10968_s21 + $0x8] sm:$0xff] }
 0x9f8   : > { %v5691_v29 = vrot.slane %v5690_v25, 4  ;;  %v5706_v18 = vadd.f32 %v5705_v7, %v5704_v50  ;;  %v7543_v50 = vcvt.s32.f32 %v7527_v4  ;;  %v5674_v7 = vrot.slane %v5673_v21, 1 }
 0x9f9   : > { %v5681_v54 = vrot.slane %v5680_v36, 1  ;;  %v5689_v4 = vadd.f32 %v5688_v32, %v5687_v11 }
 0x9fa   : > { %v5692_v2 = vadd.f32 %v5691_v29, %v5690_v25  ;;  %v5660_v25 = vrot.slane %v5659_v51, 1  ;;  %v5707_v55 = vrot.slane %v5706_v18, 2  ;;  %v5668_v29 = vadd.f32 %v5667_v56, %v5666_v26 }
 0x9fb   : > { %v4497_v30 = vpop.permute.xlu1 %4496  ;;  %v7545_v56 = vcvt.s32.f32 %v7529_v28 }
 0x9fc   : > { %v5693_v48 = vrot.slane %v5692_v2, 2  ;;  %v4852_v16 = vmul.f32 %v9491_v57, %v4497_v30  ;;  %v16084_v57 = vld [vmem:[#allocation7_spill] sm:$0xff]  ;;  %v5661_v33 = vadd.f32 %v5660_v25, %v5659_v51  ;;  %v5708_v58 = vadd.f32 %v5707_v55, %v5706_v18  ;;  %v16085_v30 = vld [vmem:[#allocation10_spill] sm:$0xff] }
 0x9fd   : > { %v7558_v53 = vmul.f32 %v7542_v43, %v16084_v57  ;;  %v7559_v8 = vmul.f32 %v7543_v50, %v16085_v30  ;;  %v7561_v11 = vmul.f32 %v7545_v56, %v15735_v37  ;;  %v13398_v57 = vpop.f32.mrf.mxu3  ;;  %v7534_v30 = vld [vmem:[%s10968_s21 + $0x40] sm:$0xff] }
 0x9fe   : > { %v5697_v24 = vadd.f32 %v4852_v16, %v4851_v22  ;;  %v5694_v52 = vadd.f32 %v5693_v48, %v5692_v2  ;;  %v5675_v22 = vadd.f32 %v5674_v7, %v5673_v21  ;;  %v6690_v2 = vsel %vm6585_vm2, %v5668_v29, %v5661_v33  ;;  %v7530_v16 = vld [vmem:[%s10968_s21 + $0x20] sm:$0xff]  ;;  %16089 = vst [vmem:[#allocation85_spill] sm:$0xff] %v13398_v57 }
 0x9ff   : > { %v5682_v48 = vadd.f32 %v5681_v54, %v5680_v36  ;;  %v7574_v26 = vsel %vm16086_vm10, %v7558_v53, 0.0  ;;  %v7577_v25 = vsel %vm16087_vm0, %v7559_v8, 0.0  ;;  %v7546_v55 = vcvt.s32.f32 %v7530_v16  ;;  %v13410_v8 = vpop.f32.mrf.mxu1  ;;  %v13414_v16 = vpop.f32.mrf.mxu2  ;;  %vm16102_vm10 = vmmov %vm16087_vm0 }
 0xa00   : > { %v5698_v38 = vrot.slane %v5697_v24, 4  ;;  %v5695_v41 = vrot.slane %v5694_v52, 1  ;;  %v6691_v51 = vsel %vm6587_vm3, %v5675_v22, %v6690_v2  ;;  %16093 = vst [vmem:[#allocation88_spill] sm:$0xff] %v13410_v8  ;;  %v7550_v56 = vcvt.s32.f32 %v7534_v30 }
 0xa01   : > { %v6692_v21 = vsel %vm6589_vm4, %v5682_v48, %v6691_v51  ;;  %v7562_v29 = vmul.f32 %v7546_v55, %v15750_v34  ;;  %v13406_v34 = vpop.f32.mrf.mxu0  ;;  %v7536_v48 = vld [vmem:[%s10968_s21 + $0x50] sm:$0xff]  ;;  %v13425_v55 = vpop.permute.xlu2 %4522 }
 0xa02   : > { %v5699_v47 = vadd.f32 %v5698_v38, %v5697_v24  ;;  %v5709_v24 = vrot.slane %v5708_v58, 1  ;;  %v5696_v43 = vadd.f32 %v5695_v41, %v5694_v52  ;;  %v6693_v54 = vsel %vm6591_vm5, %v5689_v4, %v6692_v21  ;;  %v7531_v52 = vld [vmem:[%s10968_s21 + $0x28] sm:$0xff]  ;;  %16092 = vst [vmem:[#allocation13_spill] sm:$0xff] %v13406_v34 }
 0xa03   : > { %v7547_v37 = vcvt.s32.f32 %v7531_v52  ;;  %v7552_v51 = vcvt.s32.f32 %v7536_v48  ;;  %v7539_v21 = vld [vmem:[%s10968_s21 + $0x68] sm:$0xff] }
 0xa04   : > { %v5700_v27 = vrot.slane %v5699_v47, 2  ;;  %v5710_v38 = vadd.f32 %v5709_v24, %v5708_v58  ;;  %v6694_v50 = vsel %vm6593_vm6, %v5696_v43, %v6693_v54  ;;  %v7586_v58 = vsel %vm16091_vm12, %v7562_v29, 0.0  ;;  %v7540_v29 = vld [vmem:[%s10968_s21 + $0x70] sm:$0xff] }
 0xa06   : > { %v5701_v12 = vadd.f32 %v5700_v27, %v5699_v47  ;;  %v7533_v47 = vld [vmem:[%s10968_s21 + $0x38] sm:$0xff]  ;;  %v7563_v27 = vmul.f32 %v7547_v37, %v15781_v19  ;;  %v13419_v19 = vpop.f32.mrf.mxu3 }
 0xa07   : > { %v7549_v41 = vcvt.s32.f32 %v7533_v47  ;;  %16095 = vst [vmem:[#allocation87_spill] sm:$0xff] %v13419_v19 }
 0xa08   : > { %v5702_v18 = vrot.slane %v5701_v12, 1  ;;  %7575 = vadd.xlane.f32.xlu2 %v7574_v26  ;;  %v7589_v26 = vsel %vm16094_vm13, %v7563_v27, 0.0 }
 0xa09   : > { %v7565_v2 = vmul.f32 %v7549_v41, %v15833_v15  ;;  %v7537_v15 = vld [vmem:[%s10968_s21 + $0x58] sm:$0xff]  ;;  %s9161_s21 = scalar_lea.hbm %s15097_s10, %s9986_s9 }
 0xa0a   : > { %v5703_v36 = vadd.f32 %v5702_v18, %v5701_v12  ;;  %v7583_v12 = vsel %vm16090_vm11, %v7561_v11, 0.0  ;;  %v7566_v18 = vmul.f32 %v7550_v56, %v15873_v9  ;;  %v13429_v11 = vpop.f32.mrf.mxu2  ;;  %v16111_v56 = vld [vmem:[#allocation290_spill] sm:$0xff]  ;;  %s9165_s30 = sshll.u32 %s9161_s21, 4  ;;  %s9166_s30 = int_to_ptr.hbm [resolvable:$true] %s9165_s30 }
 0xa0b   : > { %7578 = vadd.xlane.f32.xlu1 %v7577_v25  ;;  %v13417_v24 = vpop.permute.xlu1 %4516  ;;  %v7595_v43 = vsel %vm16096_vm14, %v7565_v2, 0.0  ;;  %v7568_v25 = vmul.f32 %v7552_v51, %v15923_v46  ;;  %16098 = vst [vmem:[#allocation16_spill] sm:$0xff] %v13429_v11  ;;  %v16107_v2 = vld [vmem:[#allocation284_spill] sm:$0xff]  ;;  %vm2430_vm14 = vcmp.eq.s32.totalorder %v16111_v56, %v11637_v45  ;;  %v4536_v51 = vpop.permute.xlu0 %4535  ;;  %s9856_s9 = sshra.s32 %s9166_s30, 4  ;;  %s9857_s9 = int_to_ptr.hbm [resolvable:$true] %s9856_s9 }
 0xa0c   : > { %v6695_v7 = vsel %vm6595_vm7, %v5703_v36, %v6694_v50  ;;  %v7598_v54 = vsel %vm16097_vm15, %v7566_v18, 0.0  ;;  %v7553_v36 = vcvt.s32.f32 %v7537_v15  ;;  %v7555_v50 = vcvt.s32.f32 %v7539_v21  ;;  %v16113_v15 = vld [vmem:[#allocation308_spill] sm:$0xff]  ;;  %s9858_s12 = scalar_lea.hbm %s9857_s9, 1  ;;  %p9863_p0 = scmp.lt.s32.totalorder %s9857_s9, %s15097_s10 }
 0xa0d   : > { %v6696_v32 = vsel %vm16088_vm8, %v5710_v38, %v6695_v7  ;;  %v7604_v38 = vsel %vm16099_vm1, %v7568_v25, 0.0  ;;  %vm2426_vm8 = vcmp.eq.s32.totalorder %v16107_v2, %v11637_v45  ;;  %vm2432_vm1 = vcmp.eq.s32.totalorder %v16113_v15, %v11637_v45  ;;  %v16114_v25 = vld [vmem:[#allocation281_spill] sm:$0xff]  ;;  %p9859_p11 = scmp.ne.s32.totalorder %s9857_s9, %s9858_s12 }
 0xa0e   : > { %v13400_v53 = vand.u32 4294901760, %v6696_v32  ;;  %v13432_v7 = vpop.f32.mrf.mxu3  ;;  %v7569_v9 = vmul.f32 %v7553_v36, %v15940_v14  ;;  %v7571_v46 = vmul.f32 %v7555_v50, %v16000_v61  ;;  %v9497_v18 = vsel %vm2426_vm8, 1.0, %v15686_v42 }
 0xa0f   : > { %16100 = vst [vmem:[#allocation19_spill] sm:$0xff] %v13432_v7  ;;  %v16167_v7 = vld [vmem:[#allocation288_spill] sm:$0xff]  ;;  %p9860_p12 = pnand %p9859_p11, %p10003_p5 }
 0xa10   : > { %7034 = vmatmul.f32.gmra.mxu3 %v13400_v53  ;;  %v6865_v33 = vsub.f32 %v6696_v32, %v13400_v53  ;;  %7584 = vadd.xlane.f32.xlu2 %v7583_v12  ;;  %v4543_v32 = vpop.permute.xlu2 %4542  ;;  %v7607_v47 = vsel %vm16101_vm9, %v7569_v9, 0.0  ;;  %v7556_v12 = vcvt.s32.f32 %v7540_v29  ;;  %v7613_v37 = vsel %vm16102_vm10, %v7571_v46, 0.0 }
 0xa11   : > { %vm2424_vm9 = vcmp.eq.s32.totalorder %v16114_v25, %v11637_v45  ;;  %v9501_v29 = vsel %vm2430_vm14, 1.0, %v15686_v42  ;;  %v4858_v46 = vmul.f32 %v9497_v18, %v4536_v51  ;;  %p9861_p13 = pneg %p9860_p12 }
 0xa12   : > { %7162 = vmatmul.f32.gmra.mxu0 %v6865_v33  ;;  %v6866_v28 = vand.u32 4294901760, %v6865_v33  ;;  %v7572_v41 = vmul.f32 %v7556_v12, %v16014_v31  ;;  %v16109_v31 = vld [vmem:[#allocation282_spill] sm:$0xff]  ;;  %v16117_v12 = vld [vmem:[#allocation293_spill] sm:$0xff] }
 0xa13   : > { %7587 = vadd.xlane.f32.xlu1 %v7586_v58  ;;  %v4530_v52 = vpop.permute.xlu1 %4529  ;;  %v13439_v58 = vpop.f32.mrf.mxu2  ;;  %vm2425_vm12 = vcmp.eq.s32.totalorder %v16109_v31, %v11637_v45  ;;  %vm2431_vm8 = vcmp.eq.s32.totalorder %v16117_v12, %v11637_v45  ;;  %v16120_v31 = vld [vmem:[#allocation298_spill] sm:$0xff] }
 0xa14   : > { %7290 = vmatmul.f32.gmra.mxu1 %v6866_v28  ;;  %v6867_v22 = vsub.f32 %v6865_v33, %v6866_v28  ;;  %16103 = vst [vmem:[#allocation20_spill] sm:$0xff] %v13439_v58  ;;  %v7616_v14 = vsel %vm16087_vm0, %v7572_v41, 0.0  ;;  %v16118_v41 = vld [vmem:[#allocation300_spill] sm:$0xff]  ;;  %v9502_v25 = vsel %vm2431_vm8, 1.0, %v15686_v42 }
 0xa16   : > { %v6868_v4 = vand.u32 4294901760, %v6867_v22  ;;  %v13442_v28 = vpop.f32.mrf.mxu3 }
 0xa17   : > { %16104 = vst [vmem:[#allocation8_spill] sm:$0xff] %v13442_v28 }
 0xa18   : > { %6869 = vmatmul.f32.gmra.mxu2 %v6868_v4  ;;  %7590 = vadd.xlane.f32.xlu2 %v7589_v26  ;;  %v4556_v27 = vpop.permute.xlu2 %4555  ;;  %v16108_v4 = vld [vmem:[#allocation279_spill] sm:$0xff]  ;;  %v16110_v26 = vld [vmem:[#allocation285_spill] sm:$0xff] }
 0xa19   : > { %vm2423_vm11 = vcmp.eq.s32.totalorder %v16108_v4, %v11637_v45  ;;  %vm2428_vm13 = vcmp.eq.s32.totalorder %v16110_v26, %v11637_v45 }
 0xa1a   : > { %v9494_v21 = vsel %vm2423_vm11, 1.0, %v15686_v42  ;;  %v9499_v9 = vsel %vm2428_vm13, 1.0, %v15686_v42  ;;  %vm2436_vm11 = vcmp.eq.s32.totalorder %v16118_v41, %v11637_v45  ;;  %v4601_v41 = vpop.permute.xlu0 %4600 }
 0xa1b   : > { %7596 = vadd.xlane.f32.xlu1 %v7595_v43  ;;  %v13445_v30 = vpop.f32.mrf.mxu2  ;;  %v16112_v43 = vld [vmem:[#allocation73_spill] sm:$0xff]  ;;  %v4855_v2 = vmul.f32 %v9494_v21, %v13417_v24 }
 0xa1c   : > { %16105 = vst [vmem:[#allocation91_spill] sm:$0xff] %v13445_v30  ;;  %vm2427_vm15 = vcmp.eq.s32.totalorder %v16112_v43, %v11637_v45  ;;  %v16121_v43 = vld [vmem:[#allocation297_spill] sm:$0xff] }
 0xa1d   : > { %vm2434_vm13 = vcmp.eq.s32.totalorder %v16121_v43, %v11637_v45 }
 0xa1e   : > { %v13447_v22 = vpop.f32.mrf.mxu3 }
 0xa1f   : > { %16106 = vst [vmem:[#allocation30_spill] sm:$0xff] %v13447_v22 }
 0xa20   : > { %7599 = vadd.xlane.f32.xlu2 %v7598_v54  ;;  %v9496_v54 = vsel %vm2425_vm12, 1.0, %v15686_v42  ;;  %vm2435_vm12 = vcmp.eq.s32.totalorder %v16120_v31, %v11637_v45 }
 0xa21   : > { %v4575_v48 = vpop.permute.xlu2 %4574  ;;  %v4857_v50 = vmul.f32 %v9496_v54, %v4530_v52  ;;  %v9498_v52 = vsel %vm2427_vm15, 1.0, %v15686_v42  ;;  %v9506_v12 = vsel %vm2435_vm12, 1.0, %v15686_v42 }
 0xa22   : > { %v4859_v26 = vmul.f32 %v9498_v52, %v4543_v32  ;;  %v9507_v32 = vsel %vm2436_vm11, 1.0, %v15686_v42 }
 0xa23   : > { %7605 = vadd.xlane.f32.xlu1 %v7604_v38  ;;  %v4549_v33 = vpop.permute.xlu1 %4548  ;;  %v16115_v38 = vld [vmem:[#allocation289_spill] sm:$0xff]  ;;  %v5718_v18 = vadd.f32 %v4858_v46, %v4857_v50  ;;  %v9505_v46 = vsel %vm2434_vm13, 1.0, %v15686_v42 }
 0xa24   : > { %vm2429_vm10 = vcmp.eq.s32.totalorder %v16115_v38, %v11637_v45 }
 0xa25   : > { %v9500_v56 = vsel %vm2429_vm10, 1.0, %v15686_v42 }
 0xa26   : > { %v13497_v51 = vpop.f32.mrf.mxu3 }
 0xa27   : > { %16122 = vst [vmem:[#allocation94_spill] sm:$0xff] %v13497_v51 }
 0xa28   : > { %7608 = vadd.xlane.f32.xlu2 %v7607_v47  ;;  %v16116_v47 = vld [vmem:[#allocation294_spill] sm:$0xff] }
 0xa29   : > { %vm2433_vm0 = vcmp.eq.s32.totalorder %v16116_v47, %v11637_v45  ;;  %v4588_v54 = vpop.permute.xlu2 %4587  ;;  %v5719_v47 = vrot.slane %v5718_v18, 4 }
 0xa2a   : > { %v9504_v38 = vsel %vm2433_vm0, 1.0, %v15686_v42  ;;  %v4866_v52 = vmul.f32 %v9505_v46, %v4588_v54 }
 0xa2b   : > { %7614 = vadd.xlane.f32.xlu1 %v7613_v37  ;;  %v4562_v61 = vpop.permute.xlu1 %4561  ;;  %v4860_v37 = vmul.f32 %v9499_v9, %v4549_v33  ;;  %v9495_v33 = vsel %vm2424_vm9, 1.0, %v15686_v42 }
 0xa2c   : > { %v4862_v4 = vmul.f32 %v9501_v29, %v4562_v61  ;;  %v4856_v24 = vmul.f32 %v9495_v33, %v13425_v55  ;;  %v4861_v61 = vmul.f32 %v9500_v56, %v4556_v27  ;;  %v9503_v55 = vsel %vm2432_vm1, 1.0, %v15686_v42  ;;  %v16123_v33 = vld [vmem:[#allocation156_spill] sm:$0xff] }
 0xa2d   : > { %v5725_v21 = vadd.f32 %v4860_v37, %v4859_v26  ;;  %v4864_v29 = vmul.f32 %v9503_v55, %v4575_v48  ;;  %v4863_v26 = vmul.f32 %v9502_v25, %v16123_v33  ;;  %v4868_v56 = vmul.f32 %v9507_v32, %v4601_v41 }
 0xa2e   : > { %v5711_v9 = vadd.f32 %v4856_v24, %v4855_v2  ;;  %v5732_v27 = vadd.f32 %v4862_v4, %v4861_v61  ;;  %v13521_v31 = vpop.f32.mrf.mxu3 }
 0xa2f   : > { %v5726_v15 = vrot.slane %v5725_v21, 4  ;;  %v5739_v48 = vadd.f32 %v4864_v29, %v4863_v26  ;;  %16125 = vst [vmem:[#allocation97_spill] sm:$0xff] %v13521_v31  ;;  %v16126_v29 = vld [vmem:[#allocation77_spill] sm:$0xff] }
 0xa30   : > { %7617 = vadd.xlane.f32.xlu2 %v7616_v14  ;;  %v13478_v14 = vpop.f32.mrf.mxu2  ;;  %v5712_v43 = vrot.slane %v5711_v9, 4  ;;  %v5733_v4 = vrot.slane %v5732_v27, 4  ;;  %vm2437_vm14 = vcmp.eq.s32.totalorder %v16126_v29, %v11637_v45 }
 0xa31   : > { %16119 = vst [vmem:[#allocation240_spill] sm:$0xff] %v13478_v14  ;;  %v5727_v55 = vadd.f32 %v5726_v15, %v5725_v21  ;;  %v5740_v54 = vrot.slane %v5739_v48, 4  ;;  %v9508_v15 = vsel %vm2437_vm14, 1.0, %v15686_v42 }
 0xa32   : > { %v5713_v51 = vadd.f32 %v5712_v43, %v5711_v9  ;;  %v5734_v22 = vadd.f32 %v5733_v4, %v5732_v27 }
 0xa33   : > { %v5728_v25 = vrot.slane %v5727_v55, 2  ;;  %v5741_v33 = vadd.f32 %v5740_v54, %v5739_v48 }
 0xa34   : > { %v5714_v32 = vrot.slane %v5713_v51, 2 }
 0xa38   : > { %v13519_v61 = vpop.f32.mrf.mxu2 }
 0xa39   : > { %16124 = vst [vmem:[#allocation93_spill] sm:$0xff] %v13519_v61  ;;  %v4608_v9 = vpop.permute.xlu2 %4607 }
 0xa3b   : > { %v4582_v36 = vpop.permute.xlu1 %4581 }
 0xa3c   : > { %v4865_v50 = vmul.f32 %v9504_v38, %v4582_v36  ;;  %v5720_v38 = vadd.f32 %v5719_v47, %v5718_v18  ;;  %v16127_v18 = vld [vmem:[#allocation301_spill] sm:$0xff]  ;;  %v5729_v47 = vadd.f32 %v5728_v25, %v5727_v55 }
 0xa3d   : > { %vm2438_vm15 = vcmp.eq.s32.totalorder %v16127_v18, %v11637_v45 }
 0xa3e   : > { %v5746_v36 = vadd.f32 %v4866_v52, %v4865_v50  ;;  %v5715_v52 = vadd.f32 %v5714_v32, %v5713_v51  ;;  %v9509_v43 = vsel %vm2438_vm15, 1.0, %v15686_v42 }
 0xa40   : > { %v5747_v14 = vrot.slane %v5746_v36, 4  ;;  %v13527_v27 = vpop.f32.mrf.mxu2  ;;  %v5716_v55 = vrot.slane %v5715_v52, 1 }
 0xa41   : > { %16128 = vst [vmem:[#allocation100_spill] sm:$0xff] %v13527_v27 }
 0xa42   : > { %v5748_v41 = vadd.f32 %v5747_v14, %v5746_v36  ;;  %v13531_v36 = vpop.f32.mrf.mxu3  ;;  %v5717_v29 = vadd.f32 %v5716_v55, %v5715_v52  ;;  %v13554_v55 = vpop.f32.mrf.mxu1 }
 0xa43   : > { %v4595_v37 = vpop.permute.xlu1 %4594  ;;  %16129 = vst [vmem:[#allocation96_spill] sm:$0xff] %v13531_v36 }
 0xa44   : > { %v4867_v2 = vmul.f32 %v9506_v12, %v4595_v37  ;;  %v5721_v12 = vrot.slane %v5720_v38, 2  ;;  %v5735_v37 = vrot.slane %v5734_v22, 2  ;;  %v5749_v26 = vrot.slane %v5748_v41, 2  ;;  %16136 = vst [vmem:[#allocation95_spill] sm:$0xff] %v13554_v55 }
 0xa46   : > { %v5753_v24 = vadd.f32 %v4868_v56, %v4867_v2  ;;  %v5722_v21 = vadd.f32 %v5721_v12, %v5720_v38  ;;  %v5736_v2 = vadd.f32 %v5735_v37, %v5734_v22  ;;  %v5742_v56 = vrot.slane %v5741_v33, 2 }
 0xa47   : > { %v5730_v38 = vrot.slane %v5729_v47, 1 }
 0xa48   : > { %v5754_v46 = vrot.slane %v5753_v24, 4  ;;  %v5723_v48 = vrot.slane %v5722_v21, 1  ;;  %v5737_v54 = vrot.slane %v5736_v2, 1  ;;  %v5743_v51 = vadd.f32 %v5742_v56, %v5741_v33  ;;  %v13533_v36 = vpop.f32.mrf.mxu2 }
 0xa49   : > { %v5731_v37 = vadd.f32 %v5730_v38, %v5729_v47  ;;  %16130 = vst [vmem:[#allocation90_spill] sm:$0xff] %v13533_v36 }
 0xa4a   : > { %v5755_v50 = vadd.f32 %v5754_v46, %v5753_v24  ;;  %v4869_v24 = vmul.f32 %v9508_v15, %v4608_v9  ;;  %v5750_v46 = vadd.f32 %v5749_v26, %v5748_v41  ;;  %v5724_v25 = vadd.f32 %v5723_v48, %v5722_v21  ;;  %v13537_v41 = vpop.f32.mrf.mxu3 }
 0xa4b   : > { %v5738_v18 = vadd.f32 %v5737_v54, %v5736_v2  ;;  %v5744_v27 = vrot.slane %v5743_v51, 1  ;;  %16131 = vst [vmem:[#allocation99_spill] sm:$0xff] %v13537_v41 }
 0xa4c   : > { %v5756_v14 = vrot.slane %v5755_v50, 2  ;;  %v5751_v31 = vrot.slane %v5750_v46, 1  ;;  %v6697_v9 = vsel %vm6585_vm2, %v5724_v25, %v5717_v29  ;;  %vm16132_vm2 = vcmask 1047559  }
 0xa4d   : > { %v5745_v47 = vadd.f32 %v5744_v27, %v5743_v51 }
 0xa4e   : > { %v5757_v22 = vadd.f32 %v5756_v14, %v5755_v50  ;;  %v5752_v50 = vadd.f32 %v5751_v31, %v5750_v46 }
 0xa50   : > { %v5758_v61 = vrot.slane %v5757_v22, 1 }
 0xa52   : > { %v5759_v52 = vadd.f32 %v5758_v61, %v5757_v22  ;;  %v13550_v27 = vpop.f32.mrf.mxu3  ;;  %v13552_v61 = vpop.f32.mrf.mxu0 }
 0xa53   : > { %v4614_v4 = vpop.permute.xlu1 %4613  ;;  %16134 = vst [vmem:[#allocation92_spill] sm:$0xff] %v13550_v27 }
 0xa54   : > { %v4870_v45 = vmul.f32 %v9509_v43, %v4614_v4  ;;  %v6698_v43 = vsel %vm6587_vm3, %v5731_v37, %v6697_v9  ;;  %16135 = vst [vmem:[#allocation102_spill] sm:$0xff] %v13552_v61 }
 0xa55   : > { %v6699_v33 = vsel %vm6589_vm4, %v5738_v18, %v6698_v43  ;;  %v13599_v43 = vpop.f32.mrf.mxu1 }
 0xa56   : > { %v5760_v12 = vadd.f32 %v4870_v45, %v4869_v24  ;;  %v6700_v26 = vsel %vm6591_vm5, %v5745_v47, %v6699_v33  ;;  %v13546_v45 = vpop.f32.mrf.mxu2  ;;  %16143 = vst [vmem:[#allocation109_spill] sm:$0xff] %v13599_v43 }
 0xa57   : > { %v6701_v14 = vsel %vm6593_vm6, %v5752_v50, %v6700_v26  ;;  %16133 = vst [vmem:[#allocation243_spill] sm:$0xff] %v13546_v45 }
 0xa58   : > { %v5761_v32 = vrot.slane %v5760_v12, 4  ;;  %v6702_v4 = vsel %vm6595_vm7, %v5759_v52, %v6701_v14  ;;  %v7960_v14 = vld [vmem:[%s15093_s6 + $0x70] sm:$0xff] }
 0xa5a   : > { %v5762_v42 = vadd.f32 %v5761_v32, %v5760_v12  ;;  %v13559_v51 = vpop.f32.mrf.mxu3 }
 0xa5c   : > { %v5763_v15 = vrot.slane %v5762_v42, 2 }
 0xa5d   : > { %v13616_v47 = vpop.f32.mrf.mxu1 }
 0xa5e   : > { %v5764_v21 = vadd.f32 %v5763_v15, %v5762_v42  ;;  %v13557_v12 = vpop.f32.mrf.mxu2  ;;  %v13597_v15 = vpop.f32.mrf.mxu0  ;;  %16147 = vst [vmem:[#allocation113_spill] sm:$0xff] %v13616_v47 }
 0xa5f   : > { %16137 = vst [vmem:[#allocation103_spill] sm:$0xff] %v13557_v12 }
 0xa60   : > { %v5765_v2 = vrot.slane %v5764_v21, 1  ;;  %16142 = vst [vmem:[#allocation112_spill] sm:$0xff] %v13597_v15 }
 0xa62   : > { %v5766_v56 = vadd.f32 %v5765_v2, %v5764_v21  ;;  %v13565_v25 = vpop.f32.mrf.mxu3 }
 0xa64   : > { %v6703_v48 = vsel %vm16132_vm2, %v5766_v56, %v6702_v4 }
 0xa65   : > { %v13544_v24 = vand.u32 4294901760, %v6703_v48 }
 0xa66   : > { %v13563_v22 = vpop.f32.mrf.mxu2  ;;  %v13607_v50 = vpop.f32.mrf.mxu0 }
 0xa67   : > { %7038 = vmatmul.f32.gmra.mxu3 %v13544_v24  ;;  %v6873_v31 = vsub.f32 %v6703_v48, %v13544_v24  ;;  %16146 = vst [vmem:[#allocation114_spill] sm:$0xff] %v13607_v50  ;;  %v13639_v48 = vand.u32 4294901760, %v7960_v14  ;;  %v7953_v50 = vld [vmem:[%s15093_s6 + $0x38] sm:$0xff] }
 0xa69   : > { %7167 = vmatmul.f32.gmra.mxu0 %v6873_v31  ;;  %v6874_v38 = vand.u32 4294901760, %v6873_v31 }
 0xa6a   : > { %v13571_v37 = vpop.f32.mrf.mxu3 }
 0xa6b   : > { %7296 = vmatmul.f32.gmra.mxu1 %v6874_v38  ;;  %v6875_v54 = vsub.f32 %v6873_v31, %v6874_v38 }
 0xa6d   : > { %v6876_v46 = vand.u32 4294901760, %v6875_v54  ;;  %v13647_v54 = vsub.f32 %v7960_v14, %v13639_v48 }
 0xa6e   : > { %v13569_v32 = vpop.f32.mrf.mxu2  ;;  %v13632_v56 = vpop.f32.mrf.mxu0 }
 0xa6f   : > { %6877 = vmatmul.f32.gmra.mxu2 %v6876_v46  ;;  %7462 = vmatmul.f32.vlgmr.msrb.gmra.mxu3 %v12073_v35  ;;  %16150 = vst [vmem:[#allocation119_spill] sm:$0xff] %v13632_v56  ;;  %v15299_v46 = vand.u32 4294901760, %v13647_v54 }
 0xa76   : > { %v13575_v29 = vpop.f32.mrf.mxu2 }
 0xa77   : > { %7365 = vmatmul.f32.vlgmr.msrb.gmra.mxu2 %v12073_v35  ;;  %7466 = vmatmul.f32.gmra.mxu3 %v12188_v6  ;;  %v13577_v35 = vpop.f32.mrf.mxu3 }
 0xa7e   : > { %v13581_v18 = vpop.f32.mrf.mxu2 }
 0xa7f   : > { %7369 = vmatmul.f32.gmra.mxu2 %v12188_v6  ;;  %7470 = vmatmul.f32.gmra.mxu3 %v12294_v39  ;;  %v13583_v6 = vpop.f32.mrf.mxu3 }
 0xa80   : > { %16138 = vst [vmem:[#allocation105_spill] sm:$0xff] %v13583_v6 }
 0xa86   : > { %v13587_v42 = vpop.f32.mrf.mxu2 }
 0xa87   : > { %7373 = vmatmul.f32.gmra.mxu2 %v12294_v39  ;;  %7474 = vmatmul.f32.gmra.mxu3 %v12376_v17  ;;  %v13589_v39 = vpop.f32.mrf.mxu3 }
 0xa88   : > { %16139 = vst [vmem:[#allocation108_spill] sm:$0xff] %v13589_v39 }
 0xa8e   : > { %v13593_v9 = vpop.f32.mrf.mxu2 }
 0xa8f   : > { %7377 = vmatmul.f32.gmra.mxu2 %v12376_v17  ;;  %7478 = vmatmul.f32.gmra.mxu3 %v12463_v23  ;;  %16140 = vst [vmem:[#allocation106_spill] sm:$0xff] %v13593_v9  ;;  %v13595_v17 = vpop.f32.mrf.mxu3 }
 0xa90   : > { %16141 = vst [vmem:[#allocation31_spill] sm:$0xff] %v13595_v17 }
 0xa97   : > { %7381 = vmatmul.f32.gmra.mxu2 %v12463_v23  ;;  %7482 = vmatmul.f32.gmra.mxu3 %v12561_v44  ;;  %v13603_v23 = vpop.f32.mrf.mxu2  ;;  %v13605_v33 = vpop.f32.mrf.mxu3 }
 0xa98   : > { %16144 = vst [vmem:[#allocation110_spill] sm:$0xff] %v13603_v23 }
 0xa99   : > { %16145 = vst [vmem:[#allocation247_spill] sm:$0xff] %v13605_v33  ;;  %v13757_v33 = vand.u32 4294901760, %v7953_v50 }
 0xa9f   : > { %7385 = vmatmul.f32.gmra.mxu2 %v12561_v44  ;;  %7486 = vmatmul.f32.gmra.mxu3 %v12649_v62  ;;  %v7961_v44 = vld [vmem:[%s15093_s6 + $0x78] sm:$0xff]  ;;  %v13620_v52 = vpop.f32.mrf.mxu3 }
 0xaa0   : > { %v13614_v21 = vand.u32 4294901760, %v7961_v44  ;;  %16149 = vst [vmem:[#allocation116_spill] sm:$0xff] %v13620_v52 }
 0xaa2   : > { %7967 = vmatpush.msrb.mxu0 %v13614_v21  ;;  %v13624_v2 = vsub.f32 %v7961_v44, %v13614_v21  ;;  %8418 = vmatpush.msra.mxu3 %v13614_v21  ;;  %v8136_v44 = vsub.f32 %v13647_v54, %v15299_v46 }
 0xaa4   : > { %8290 = vmatpush.msra.mxu2 %v13624_v2  ;;  %7969 = vmatpush.msrb.mxu0 %v13639_v48  ;;  %v8137_v14 = vand.u32 4294901760, %v8136_v44  ;;  %v7958_v44 = vld [vmem:[%s15093_s6 + $0x60] sm:$0xff] }
 0xaa5   : > { %8420 = vmatpush.msra.mxu3 %v13639_v48  ;;  %v13682_v45 = vand.u32 4294901760, %v7958_v44 }
 0xaa6   : > { %8293 = vmatpush.msra.mxu2 %v13647_v54 }
 0xaa7   : > { %7389 = vmatmul.f32.gmra.mxu2 %v12649_v62  ;;  %7490 = vmatmul.f32.gmra.mxu3 %v12752_v5  ;;  %v13618_v62 = vpop.f32.mrf.mxu2  ;;  %v13643_v38 = vpop.f32.mrf.mxu3  ;;  %v13693_v36 = vsub.f32 %v7958_v44, %v13682_v45 }
 0xaa8   : > { %16148 = vst [vmem:[#allocation117_spill] sm:$0xff] %v13618_v62 }
 0xaa9   : > { %16152 = vst [vmem:[#allocation98_spill] sm:$0xff] %v13643_v38  ;;  %v7955_v38 = vld [vmem:[%s15093_s6 + $0x48] sm:$0xff] }
 0xaaf   : > { %7393 = vmatmul.f32.gmra.mxu2 %v12752_v5  ;;  %7494 = vmatmul.f32.gmra.mxu3 %v12838_v40  ;;  %v15298_v5 = vand.u32 4294901760, %v13624_v2  ;;  %v13641_v31 = vpop.f32.mrf.mxu2  ;;  %v13668_v12 = vpop.f32.mrf.mxu3 }
 0xab0   : > { %16151 = vst [vmem:[#allocation33_spill] sm:$0xff] %v13641_v31 }
 0xab1   : > { %v8130_v26 = vsub.f32 %v13624_v2, %v15298_v5  ;;  %v13664_v5 = vpop.f32.mrf.mxu0  ;;  %16156 = vst [vmem:[#allocation101_spill] sm:$0xff] %v13668_v12 }
 0xab2   : > { %16154 = vst [vmem:[#allocation251_spill] sm:$0xff] %v13664_v5  ;;  %v15301_v5 = vand.u32 4294901760, %v13693_v36 }
 0xab3   : > { %v8131_v4 = vand.u32 4294901760, %v8130_v26  ;;  %v7959_v26 = vld [vmem:[%s15093_s6 + $0x68] sm:$0xff] }
 0xab5   : > { %8132 = vmatpush.msrb.mxu1 %v8131_v4  ;;  %v13662_v4 = vand.u32 4294901760, %v7959_v26 }
 0xab7   : > { %7397 = vmatmul.f32.gmra.mxu2 %v12838_v40  ;;  %7498 = vmatmul.f32.gmra.mxu3 %v12933_v0  ;;  %v13649_v40 = vpop.f32.mrf.mxu1  ;;  %v13666_v27 = vpop.f32.mrf.mxu2 }
 0xab8   : > { %16153 = vst [vmem:[#allocation125_spill] sm:$0xff] %v13649_v40  ;;  %8138 = vmatpush.msrb.mxu1 %v8137_v14  ;;  %7971 = vmatpush.msrb.mxu0 %v13662_v4 }
 0xab9   : > { %16155 = vst [vmem:[#allocation120_spill] sm:$0xff] %v13666_v27  ;;  %8422 = vmatpush.msra.mxu3 %v13662_v4  ;;  %v13717_v56 = vpop.f32.mrf.mxu0 }
 0xaba   : > { %7973 = vmatpush.msrb.mxu0 %v13682_v45  ;;  %16160 = vst [vmem:[#allocation36_spill] sm:$0xff] %v13717_v56 }
 0xabb   : > { %8424 = vmatpush.msra.mxu3 %v13682_v45 }
 0xabf   : > { %7401 = vmatmul.f32.gmra.mxu2 %v12933_v0  ;;  %7502 = vmatmul.f32.gmra.mxu3 %v13037_v63  ;;  %v13672_v0 = vsub.f32 %v7959_v26, %v13662_v4  ;;  %v13680_v41 = vpop.f32.mrf.mxu1  ;;  %v7957_v26 = vld [vmem:[%s15093_s6 + $0x58] sm:$0xff]  ;;  %v13709_v40 = vpop.f32.mrf.mxu2 }
 0xac0   : > { %16157 = vst [vmem:[#allocation123_spill] sm:$0xff] %v13680_v41  ;;  %v13695_v12 = vand.u32 4294901760, %v7957_v26 }
 0xac1   : > { %v15300_v46 = vand.u32 4294901760, %v13672_v0  ;;  %8296 = vmatpush.msra.mxu2 %v13672_v0  ;;  %16158 = vst [vmem:[#allocation122_spill] sm:$0xff] %v13709_v40  ;;  %v13800_v15 = vpop.f32.mrf.mxu0 }
 0xac2   : > { %7975 = vmatpush.msrb.mxu0 %v13695_v12  ;;  %8426 = vmatpush.msra.mxu3 %v13695_v12  ;;  %16164 = vst [vmem:[#allocation132_spill] sm:$0xff] %v13800_v15  ;;  %v7949_v15 = vld [vmem:[%s15093_s6 + $0x18] sm:$0xff] }
 0xac3   : > { %v8142_v14 = vsub.f32 %v13672_v0, %v15300_v46  ;;  %v7956_v46 = vld [vmem:[%s15093_s6 + $0x50] sm:$0xff]  ;;  %8299 = vmatpush.msra.mxu2 %v13693_v36  ;;  %v13829_v23 = vand.u32 4294901760, %v7949_v15 }
 0xac4   : > { %v13707_v44 = vand.u32 4294901760, %v7956_v46 }
 0xac5   : > { %v8143_v41 = vand.u32 4294901760, %v8142_v14  ;;  %v13711_v14 = vpop.f32.mrf.mxu3 }
 0xac6   : > { %16159 = vst [vmem:[#allocation12_spill] sm:$0xff] %v13711_v14  ;;  %v13724_v47 = vsub.f32 %v7956_v46, %v13707_v44  ;;  %v7954_v14 = vld [vmem:[%s15093_s6 + $0x40] sm:$0xff]  ;;  %7977 = vmatpush.msrb.mxu0 %v13707_v44  ;;  %8428 = vmatpush.msra.mxu3 %v13707_v44 }
 0xac7   : > { %7405 = vmatmul.f32.gmra.mxu2 %v13037_v63  ;;  %7506 = vmatmul.f32.gmra.mxu3 %v13122_v1  ;;  %v13704_v63 = vsub.f32 %v7957_v26, %v13695_v12  ;;  %v8148_v26 = vsub.f32 %v13693_v36, %v15301_v5  ;;  %v13743_v52 = vand.u32 4294901760, %v7954_v14 }
 0xac8   : > { %8144 = vmatpush.msrb.mxu1 %v8143_v41  ;;  %v13727_v41 = vand.u32 4294901760, %v7955_v38  ;;  %v15303_v46 = vand.u32 4294901760, %v13724_v47 }
 0xac9   : > { %v15302_v27 = vand.u32 4294901760, %v13704_v63  ;;  %8302 = vmatpush.msra.mxu2 %v13704_v63  ;;  %v8149_v56 = vand.u32 4294901760, %v8148_v26  ;;  %v13749_v26 = vpop.f32.mrf.mxu1  ;;  %v13760_v43 = vsub.f32 %v7954_v14, %v13743_v52  ;;  %v13776_v14 = vpop.f32.mrf.mxu2 }
 0xaca   : > { %v13739_v40 = vsub.f32 %v7955_v38, %v13727_v41  ;;  %7979 = vmatpush.msrb.mxu0 %v13727_v41  ;;  %16161 = vst [vmem:[#allocation126_spill] sm:$0xff] %v13749_v26  ;;  %8430 = vmatpush.msra.mxu3 %v13727_v41 }
 0xacb   : > { %v8154_v5 = vsub.f32 %v13704_v63, %v15302_v27  ;;  %8305 = vmatpush.msra.mxu2 %v13724_v47  ;;  %v8160_v27 = vsub.f32 %v13724_v47, %v15303_v46  ;;  %8150 = vmatpush.msrb.mxu1 %v8149_v56  ;;  %v13770_v46 = vsub.f32 %v7953_v50, %v13757_v33  ;;  %v7951_v50 = vld [vmem:[%s15093_s6 + $0x28] sm:$0xff] }
 0xacc   : > { %v15304_v31 = vand.u32 4294901760, %v13739_v40  ;;  %7981 = vmatpush.msrb.mxu0 %v13743_v52  ;;  %16162 = vst [vmem:[#allocation129_spill] sm:$0xff] %v13776_v14  ;;  %8432 = vmatpush.msra.mxu3 %v13743_v52  ;;  %v13790_v14 = vand.u32 4294901760, %v7951_v50 }
 0xacd   : > { %v8155_v38 = vand.u32 4294901760, %v8154_v5  ;;  %8308 = vmatpush.msra.mxu2 %v13739_v40  ;;  %v8161_v26 = vand.u32 4294901760, %v8160_v27  ;;  %v13778_v28 = vpop.f32.mrf.mxu3  ;;  %v15305_v27 = vand.u32 4294901760, %v13760_v43 }
 0xace   : > { %v8166_v5 = vsub.f32 %v13739_v40, %v15304_v31  ;;  %16163 = vst [vmem:[#allocation128_spill] sm:$0xff] %v13778_v28  ;;  %7983 = vmatpush.msrb.mxu0 %v13757_v33  ;;  %8434 = vmatpush.msra.mxu3 %v13757_v33 }
 0xacf   : > { %7409 = vmatmul.f32.gmra.mxu2 %v13122_v1  ;;  %7510 = vmatmul.f32.gmra.mxu3 %v13219_v20  ;;  %v7952_v1 = vld [vmem:[%s15093_s6 + $0x30] sm:$0xff] }
 0xad0   : > { %v13773_v56 = vand.u32 4294901760, %v7952_v1  ;;  %8156 = vmatpush.msrb.mxu1 %v8155_v38  ;;  %8311 = vmatpush.msra.mxu2 %v13760_v43  ;;  %v8167_v31 = vand.u32 4294901760, %v8166_v5  ;;  %v8172_v38 = vsub.f32 %v13760_v43, %v15305_v27  ;;  %v7950_v5 = vld [vmem:[%s15093_s6 + $0x20] sm:$0xff] }
 0xad1   : > { %v13810_v27 = vand.u32 4294901760, %v7950_v5 }
 0xad2   : > { %v13787_v62 = vsub.f32 %v7952_v1, %v13773_v56  ;;  %8162 = vmatpush.msrb.mxu1 %v8161_v26  ;;  %8314 = vmatpush.msra.mxu2 %v13770_v46  ;;  %v16165_v1 = vand.u32 4294901760, %v13770_v46  ;;  %v13807_v26 = vsub.f32 %v7951_v50, %v13790_v14  ;;  %v8173_v55 = vand.u32 4294901760, %v8172_v38  ;;  %v16166_v38 = vld [vmem:[#allocation287_spill] sm:$0xff] }
 0xad3   : > { %7985 = vmatpush.msrb.mxu0 %v13773_v56  ;;  %v6009_v61 = vadd.f32 %v16167_v7, %v16166_v38  ;;  %8436 = vmatpush.msra.mxu3 %v13773_v56 }
 0xad4   : > { %v8178_v28 = vsub.f32 %v13770_v46, %v16165_v1  ;;  %v15306_v30 = vand.u32 4294901760, %v13787_v62  ;;  %8168 = vmatpush.msrb.mxu1 %v8167_v31  ;;  %8317 = vmatpush.msra.mxu2 %v13787_v62  ;;  %v15307_v17 = vand.u32 4294901760, %v13807_v26  ;;  %v13824_v31 = vsub.f32 %v7950_v5, %v13810_v27 }
 0xad5   : > { %7987 = vmatpush.msrb.mxu0 %v13790_v14  ;;  %v13846_v38 = vpop.f32.mrf.mxu3  ;;  %8438 = vmatpush.msra.mxu3 %v13790_v14 }
 0xad6   : > { %v8179_v50 = vand.u32 4294901760, %v8178_v28  ;;  %v8184_v1 = vsub.f32 %v13787_v62, %v15306_v30  ;;  %8174 = vmatpush.msrb.mxu1 %v8173_v55  ;;  %8320 = vmatpush.msra.mxu2 %v13807_v26  ;;  %v13834_v28 = vpop.f32.mrf.mxu1  ;;  %v8190_v5 = vsub.f32 %v13807_v26, %v15307_v17  ;;  %v15308_v58 = vand.u32 4294901760, %v13824_v31  ;;  %v13844_v55 = vpop.f32.mrf.mxu2  ;;  %16170 = vst [vmem:[#allocation134_spill] sm:$0xff] %v13846_v38 }
 0xad7   : > { %7413 = vmatmul.f32.gmra.mxu2 %v13219_v20  ;;  %7514 = vmatmul.f32.gmra.mxu3 %v13305_v60  ;;  %v7948_v20 = vld [vmem:[%s15093_s6 + $0x10] sm:$0xff]  ;;  %16168 = vst [vmem:[#allocation131_spill] sm:$0xff] %v13834_v28  ;;  %v13849_v28 = vsub.f32 %v7949_v15, %v13829_v23  ;;  %v6095_v15 = vadd.f32 %v12851_v3, %v6009_v61 }
 0xad8   : > { %v8185_v30 = vand.u32 4294901760, %v8184_v1  ;;  %v13841_v7 = vand.u32 4294901760, %v7948_v20  ;;  %16169 = vst [vmem:[#allocation135_spill] sm:$0xff] %v13844_v55  ;;  %8180 = vmatpush.msrb.mxu1 %v8179_v50  ;;  %8323 = vmatpush.msra.mxu2 %v13824_v31  ;;  %v7947_v1 = vld [vmem:[%s15093_s6 + $0x8] sm:$0xff]  ;;  %v8191_v17 = vand.u32 4294901760, %v8190_v5  ;;  %v8196_v8 = vsub.f32 %v13824_v31, %v15308_v58  ;;  %v7946_v5 = vld [vmem:[%s15093_s6] sm:$0xff] }
 0xad9   : > { %v13862_v50 = vand.u32 4294901760, %v7947_v1  ;;  %7989 = vmatpush.msrb.mxu0 %v13810_v27  ;;  %v15309_v38 = vand.u32 4294901760, %v13849_v28  ;;  %8440 = vmatpush.msra.mxu3 %v13810_v27  ;;  %v13876_v19 = vand.u32 4294901760, %v7946_v5 }
 0xada   : > { %v13860_v55 = vsub.f32 %v7948_v20, %v13841_v7  ;;  %8186 = vmatpush.msrb.mxu1 %v8185_v30  ;;  %8326 = vmatpush.msra.mxu2 %v13849_v28  ;;  %v8197_v58 = vand.u32 4294901760, %v8196_v8  ;;  %v13883_v30 = vpop.f32.mrf.mxu0 }
 0xadb   : > { %v13874_v20 = vsub.f32 %v7947_v1, %v13862_v50  ;;  %7991 = vmatpush.msrb.mxu0 %v13829_v23  ;;  %v8202_v3 = vsub.f32 %v13849_v28, %v15309_v38  ;;  %16171 = vst [vmem:[#allocation138_spill] sm:$0xff] %v13883_v30  ;;  %v16172_v1 = vld [vmem:[#allocation32_spill] sm:$0xff]  ;;  %8442 = vmatpush.msra.mxu3 %v13829_v23 }
 0xadc   : > { %v15310_v39 = vand.u32 4294901760, %v13860_v55  ;;  %8192 = vmatpush.msrb.mxu1 %v8191_v17  ;;  %8329 = vmatpush.msra.mxu2 %v13860_v55  ;;  %v13892_v17 = vsub.f32 %v7946_v5, %v13876_v19  ;;  %v13895_v34 = vmax.f32 %v16172_v1, 1.0  ;;  %v16173_v5 = vld [vmem:[#allocation21_spill] sm:$0xff] }
 0xadd   : > { %v15311_v61 = vand.u32 4294901760, %v13874_v20  ;;  %v8203_v38 = vand.u32 4294901760, %v8202_v3  ;;  %7993 = vmatpush.msrb.mxu0 %v13841_v7  ;;  %v13906_v1 = vmax.f32 %v16173_v5, 1.0  ;;  %v13910_v3 = vpop.f32.mrf.mxu3  ;;  %8444 = vmatpush.msra.mxu3 %v13841_v7 }
 0xade   : > { %v8208_v8 = vsub.f32 %v13860_v55, %v15310_v39  ;;  %8198 = vmatpush.msrb.mxu1 %v8197_v58  ;;  %v15312_v39 = vand.u32 4294901760, %v13892_v17  ;;  %8332 = vmatpush.msra.mxu2 %v13874_v20  ;;  %v13908_v58 = vpop.f32.mrf.mxu2  ;;  %16175 = vst [vmem:[#allocation137_spill] sm:$0xff] %v13910_v3  ;;  %9766 = vrcp.f32 %v13895_v34  ;;  %vm7771_vm6 = vweird.f32 %v13895_v34 }
 0xadf   : > { %7417 = vmatmul.f32.gmra.mxu2 %v13305_v60  ;;  %7518 = vmatmul.f32.gmra.mxu3 %v13400_v53  ;;  %v6195_v60 = vadd.f32 %v12841_v10, %v6095_v15  ;;  %v8214_v9 = vsub.f32 %v13874_v20, %v15311_v61  ;;  %16174 = vst [vmem:[#allocation254_spill] sm:$0xff] %v13908_v58  ;;  %v16177_v61 = vld [vmem:[#allocation292_spill] sm:$0xff]  ;;  %9768 = vrcp.f32 %v13906_v1  ;;  %vm7711_vm3 = vweird.f32 %v13906_v1 }
 0xae0   : > { %v8209_v30 = vand.u32 4294901760, %v8208_v8  ;;  %8204 = vmatpush.msrb.mxu1 %v8203_v38  ;;  %v8220_v15 = vsub.f32 %v13892_v17, %v15312_v39  ;;  %8335 = vmatpush.msra.mxu2 %v13892_v17  ;;  %v13918_v8 = vpop.f32.mrf.mxu1  ;;  %v6100_v38 = vadd.f32 %v12944_v49, %v16177_v61  ;;  %v16178_v39 = vld [vmem:[#allocation34_spill] sm:$0xff]  ;;  %v16179_v49 = vand.u32 4294901760, %v13624_v2 }
 0xae1   : > { %v8215_v10 = vand.u32 4294901760, %v8214_v9  ;;  %7995 = vmatpush.msrb.mxu0 %v13862_v50  ;;  %16176 = vst [vmem:[#allocation141_spill] sm:$0xff] %v13918_v8  ;;  %8446 = vmatpush.msra.mxu3 %v13862_v50  ;;  %v6312_v9 = vadd.f32 %v12847_v13, %v6195_v60  ;;  %v13927_v58 = vmax.f32 %v16178_v39, 1.0  ;;  %v16180_v13 = vld [vmem:[#allocation22_spill] sm:$0xff]  ;;  %v16185_v2 = vand.u32 4294901760, %v13647_v54 }
 0xae2   : > { %8210 = vmatpush.msrb.mxu1 %v8209_v30  ;;  %v8221_v3 = vand.u32 4294901760, %v8220_v15  ;;  %v13936_v30 = vmax.f32 %v16180_v13, 1.0  ;;  %v6201_v61 = vadd.f32 %v12935_v59, %v6100_v38  ;;  %v13939_v60 = vpop.f32.mrf.mxu0  ;;  %v16182_v15 = vld [vmem:[#allocation68_spill] sm:$0xff] }
 0xae3   : > { %7997 = vmatpush.msrb.mxu0 %v13876_v19  ;;  %8448 = vmatpush.msra.mxu3 %v13876_v19  ;;  %16181 = vst [vmem:[#allocation139_spill] sm:$0xff] %v13939_v60  ;;  %v6395_v8 = vadd.f32 %v16182_v15, %v6312_v9  ;;  %9770 = vrcp.f32 %v13927_v58  ;;  %v16186_v38 = vld [vmem:[#allocation296_spill] sm:$0xff]  ;;  %vm7741_vm8 = vweird.f32 %v13927_v58 }
 0xae4   : > { %8216 = vmatpush.msrb.mxu1 %v8215_v10  ;;  %9772 = vrcp.f32 %v13936_v30  ;;  %vm7726_vm10 = vweird.f32 %v13936_v30 }
 0xae5   : > { %8549 = vmatpush.msra.mxu0 %v16179_v49  ;;  %v16187_v49 = vld [vmem:[#allocation75_spill] sm:$0xff]  ;;  %v6759_v15 = vadd.f32 %v13563_v22, %v6395_v8  ;;  %v16192_v8 = vld [vmem:[#allocation314_spill] sm:$0xff] }
 0xae6   : > { %8222 = vmatpush.msrb.mxu1 %v8221_v3  ;;  %v13950_v3 = vpop.eup %9766  ;;  %v6105_v9 = vadd.f32 %v16187_v49, %v16186_v38  ;;  %v16195_v49 = vand.u32 4294901760, %v13704_v63  ;;  %v16200_v63 = vand.u32 4294901760, %v13724_v47 }
 0xae7   : > { %7421 = vmatmul.f32.gmra.mxu2 %v13400_v53  ;;  %7522 = vmatmul.f32.gmra.mxu3 %v13544_v24  ;;  %v13944_v53 = vpop.f32.mrf.mxu2  ;;  %v13953_v59 = vpop.eup %9768  ;;  %vm7772_vm7 = vweird.f32 %v13950_v3 }
 0xae8   : > { %8676 = vmatpush.msra.mxu1 %v13614_v21  ;;  %16183 = vst [vmem:[#allocation142_spill] sm:$0xff] %v13944_v53  ;;  %8553 = vmatpush.msra.mxu0 %v16185_v2  ;;  %v16188_v21 = vand.u32 4294901760, %v13672_v0  ;;  %v13963_v54 = vpop.f32.mrf.mxu1  ;;  %v7767_v2 = vmul.f32 %v13950_v3, %v13895_v34  ;;  %v7707_v0 = vmul.f32 %v13953_v59, %v13906_v1  ;;  %vm7712_vm4 = vweird.f32 %v13953_v59  ;;  %vm14173_vm14 = vmor %vm7771_vm6, %vm7772_vm7 }
 0xae9   : > { %16190 = vst [vmem:[#allocation39_spill] sm:$0xff] %v13963_v54  ;;  %v13973_v22 = vpop.eup %9770  ;;  %v6980_v54 = vadd.f32 %v13559_v51, %v6759_v15  ;;  %vm14072_vm5 = vmor %vm7711_vm3, %vm7712_vm4 }
 0xaea   : > { %v13946_v10 = vpop.f32.mrf.mxu3  ;;  %8678 = vmatpush.msra.mxu1 %v13639_v48  ;;  %8557 = vmatpush.msra.mxu0 %v16188_v21  ;;  %v16191_v48 = vand.u32 4294901760, %v13693_v36  ;;  %v7747_v36 = vand.u32 2147483648, %v13927_v58  ;;  %v16196_v21 = vld [vmem:[#allocation35_spill] sm:$0xff]  ;;  %v7737_v51 = vmul.f32 %v13973_v22, %v13927_v58  ;;  %vm7742_vm9 = vweird.f32 %v13973_v22 }
 0xaeb   : > { %16184 = vst [vmem:[#allocation104_spill] sm:$0xff] %v13946_v10  ;;  %v16189_v10 = vld [vmem:[#allocation86_spill] sm:$0xff]  ;;  %vm14197_vm2 = vmor %vm7741_vm8, %vm7742_vm9 }
 0xaec   : > { %v6316_v60 = vadd.f32 %v16189_v10, %v6201_v61  ;;  %8680 = vmatpush.msra.mxu1 %v13662_v4  ;;  %8561 = vmatpush.msra.mxu0 %v16191_v48  ;;  %v16193_v61 = vld [vmem:[#allocation315_spill] sm:$0xff]  ;;  %v13982_v48 = vmax.f32 %v16196_v21, 1.0  ;;  %v16202_v21 = vld [vmem:[#allocation6_spill] sm:$0xff]  ;;  %v14006_v47 = vor.u32 1.1754944e-38, %v7747_v36 }
 0xaed   : > { %v6021_v4 = vadd.f32 %v16193_v61, %v16192_v8  ;;  %v16194_v10 = vld [vmem:[#allocation71_spill] sm:$0xff]  ;;  %v7777_v61 = vand.u32 2147483648, %v13895_v34 }
 0xaee   : > { %8682 = vmatpush.msra.mxu1 %v13682_v45  ;;  %v6207_v38 = vadd.f32 %v16194_v10, %v6105_v9  ;;  %8565 = vmatpush.msra.mxu0 %v16195_v49  ;;  %v16198_v45 = vld [vmem:[#allocation37_spill] sm:$0xff]  ;;  %v13997_v10 = vpop.eup %9772  ;;  %v7768_v49 = vsub.f32 1.0, %v7767_v2  ;;  %16203 = vst [vmem:[#allocation146_spill] sm:$0xff] %v14006_v47  ;;  %9774 = vrcp.f32 %v13982_v48  ;;  %v7579_v47 = vpop.xlane.xlu1 %7578 }
 0xaef   : > { %7425 = vmatmul.f32.gmra.mxu2 %v13544_v24  ;;  %v16197_v24 = vld [vmem:[#allocation69_spill] sm:$0xff]  ;;  %v13988_v11 = vmax.f32 %v16198_v45, 1.0  ;;  %v14018_v36 = vor.u32 1.1754944e-38, %v7777_v61  ;;  %v16210_v61 = vld [vmem:[#allocation28_spill] sm:$0xff]  ;;  %vm7727_vm0 = vweird.f32 %v13997_v10 }
 0xaf0   : > { %v6399_v53 = vadd.f32 %v16197_v24, %v6316_v60  ;;  %8684 = vmatpush.msra.mxu1 %v13695_v12  ;;  %8569 = vmatpush.msra.mxu0 %v16200_v63  ;;  %v7708_v60 = vsub.f32 1.0, %v7707_v0  ;;  %v7093_v12 = vpop.f32.mrf.mxu0  ;;  %v16201_v24 = vld [vmem:[#allocation76_spill] sm:$0xff]  ;;  %v6320_v45 = vadd.f32 %v16202_v21, %v6207_v38  ;;  %v16204_v63 = vand.u32 4294901760, %v13739_v40  ;;  %v16207_v21 = vld [vmem:[#allocation306_spill] sm:$0xff]  ;;  %v7207_v6 = vpop.f32.mrf.mxu1  ;;  %vm14124_vm11 = vmor %vm7726_vm10, %vm7727_vm0 }
 0xaf1   : > { %v7094_v0 = vadd.f32 %v7093_v12, %v6980_v54  ;;  %9776 = vrcp.f32 %v13988_v11  ;;  %v7762_v38 = vand.u32 2147483648, %v13988_v11  ;;  %16205 = vst [vmem:[#allocation257_spill] sm:$0xff] %v14018_v36  ;;  %v16206_v40 = vand.u32 4294901760, %v13760_v43  ;;  %v16208_v12 = vld [vmem:[#allocation304_spill] sm:$0xff] }
 0xaf2   : > { %v13990_v8 = vpop.f32.mrf.mxu2  ;;  %v13992_v9 = vpop.f32.mrf.mxu3  ;;  %8686 = vmatpush.msra.mxu1 %v13707_v44  ;;  %8573 = vmatpush.msra.mxu0 %v16204_v63  ;;  %v6767_v2 = vadd.f32 %v13569_v32, %v6399_v53  ;;  %v7722_v44 = vmul.f32 %v13997_v10, %v13936_v30  ;;  %v7769_v32 = vmul.f32 %v13950_v3, %v7768_v49  ;;  %v7738_v53 = vsub.f32 1.0, %v7737_v51  ;;  %v16209_v63 = vld [vmem:[#allocation72_spill] sm:$0xff] }
 0xaf3   : > { %16199 = vst [vmem:[#allocation143_spill] sm:$0xff] %v13990_v8  ;;  %v6110_v8 = vadd.f32 %v16201_v24, %v6021_v4  ;;  %v7576_v4 = vpop.xlane.xlu2 %7575  ;;  %v7709_v54 = vmul.f32 %v13953_v59, %v7708_v60  ;;  %v6025_v24 = vadd.f32 %v16208_v12, %v16207_v21  ;;  %v6403_v36 = vadd.f32 %v16210_v61, %v6320_v45 }
 0xaf4   : > { %8688 = vmatpush.msra.mxu1 %v13727_v41  ;;  %8577 = vmatpush.msra.mxu0 %v16206_v40  ;;  %v16211_v40 = vand.u32 4294901760, %v13770_v46  ;;  %v6984_v49 = vadd.f32 %v13565_v25, %v6767_v2  ;;  %v7622_v51 = vsub.f32 %v16173_v5, %v7576_v4  ;;  %v7208_v60 = vadd.f32 %v7207_v6, %v7094_v0  ;;  %v14045_v25 = vpop.eup %9774  ;;  %v14056_v5 = vld [vmem:[%s15091_s4 + $0x1] ss:$0 sm:$0xff] }
 0xaf5   : > { %v6213_v15 = vadd.f32 %v16209_v63, %v6110_v8  ;;  %v7717_v8 = vand.u32 2147483648, %v13906_v1  ;;  %v14040_v45 = vor.u32 1.1754944e-38, %v7762_v38  ;;  %v7792_v46 = vand.u32 2147483648, %v13982_v48 }
 0xaf6   : > { %8690 = vmatpush.msra.mxu1 %v13743_v52  ;;  %8581 = vmatpush.msra.mxu0 %v16211_v40  ;;  %v7723_v52 = vsub.f32 1.0, %v7722_v44  ;;  %v16213_v63 = vand.u32 4294901760, %v13787_v62  ;;  %v7739_v6 = vmul.f32 %v13973_v22, %v7738_v53  ;;  %v7710_v44 = vadd.f32 %v13953_v59, %v7709_v54  ;;  %v16214_v53 = vld [vmem:[#allocation38_spill] sm:$0xff]  ;;  %v16215_v40 = vld [vmem:[#allocation81_spill] sm:$0xff] }
 0xaf7   : > { %16212 = vst [vmem:[#allocation149_spill] sm:$0xff] %v14040_v45  ;;  %v7715_v62 = vand.u32 2147483647, %v13906_v1  ;;  %v14061_v38 = vpop.eup %9776  ;;  %v14064_v61 = vmax.f32 %v16214_v53, 1.0  ;;  %v6775_v43 = vadd.f32 %v13575_v29, %v6403_v36  ;;  %v14077_v54 = vadd.f32 %v13950_v3, %v7769_v32  ;;  %v16221_v53 = vld [vmem:[#allocation307_spill] sm:$0xff]  ;;  %v16222_v45 = vld [vmem:[#allocation305_spill] sm:$0xff] }
 0xaf8   : > { %8692 = vmatpush.msra.mxu1 %v13757_v33  ;;  %8585 = vmatpush.msra.mxu0 %v16213_v63  ;;  %v14051_v33 = vld [vmem:[%s15091_s4] ss:$0 sm:$0xff]  ;;  %v7098_v2 = vpop.f32.mrf.mxu0  ;;  %v6115_v63 = vadd.f32 %v16215_v40, %v6025_v24  ;;  %v16219_v24 = vld [vmem:[#allocation78_spill] sm:$0xff]  ;;  %v16220_v40 = vld [vmem:[#allocation40_spill] sm:$0xff]  ;;  %v7724_v32 = vmul.f32 %v13997_v10, %v7723_v52  ;;  %v6029_v57 = vadd.f32 %v16222_v45, %v16221_v53  ;;  %v7213_v52 = vpop.f32.mrf.mxu1  ;;  %v16227_v53 = vand.u32 4294901760, %v13860_v55 }
 0xaf9   : > { %v6324_v29 = vadd.f32 %v16219_v24, %v6213_v15  ;;  %v7640_v36 = vmul.f32 %v14051_v33, %v7622_v51  ;;  %v14088_v41 = vmax.f32 %v16220_v40, 1.0  ;;  %v7674_v15 = vmul.f32 %v14056_v5, %v7576_v4  ;;  %v16226_v4 = vld [vmem:[#allocation74_spill] sm:$0xff] }
 0xafa   : > { %v7366_v21 = vpop.f32.mrf.mxu2  ;;  %v14038_v12 = vpop.f32.mrf.mxu3  ;;  %8694 = vmatpush.msra.mxu1 %v13773_v56  ;;  %v16218_v56 = vand.u32 4294901760, %v13807_v26  ;;  %v7718_v26 = vor.u32 1.1754944e-38, %v7717_v8  ;;  %vm7716_vm1 = vcmp.eq.f32.partialorder %v7715_v62, 8.507059e+37  ;;  %v6988_v8 = vadd.f32 %v13571_v37, %v6775_v43 }
 0xafb   : > { %v7367_v0 = vadd.f32 %v7366_v21, %v7208_v60  ;;  %v7099_v21 = vadd.f32 %v7098_v2, %v6984_v49  ;;  %v6407_v45 = vadd.f32 %v16226_v4, %v6324_v29  ;;  %v7725_v43 = vadd.f32 %v13997_v10, %v7724_v32 }
 0xafc   : > { %8589 = vmatpush.msra.mxu0 %v16218_v56  ;;  %8696 = vmatpush.msra.mxu1 %v13790_v14  ;;  %v16223_v56 = vand.u32 4294901760, %v13824_v31  ;;  %v7714_v14 = vsel %vm14072_vm5, %v13953_v59, %v7710_v44  ;;  %v16225_v31 = vand.u32 4294901760, %v13849_v28  ;;  %v7623_v59 = vsub.f32 %v16180_v13, %v7579_v47 }
 0xafd   : > { %v7464_v1 = vadd.f32 %v13992_v9, %v7367_v0  ;;  %v16224_v9 = vld [vmem:[#allocation237_spill] sm:$0xff]  ;;  %v7214_v0 = vadd.f32 %v7213_v52, %v7099_v21  ;;  %v7732_v62 = vand.u32 2147483648, %v13936_v30  ;;  %v14116_v28 = vadd.f32 %v13973_v22, %v7739_v6 }
 0xafe   : > { %8593 = vmatpush.msra.mxu0 %v16223_v56  ;;  %8698 = vmatpush.msra.mxu1 %v13810_v27  ;;  %v6219_v49 = vadd.f32 %v16224_v9, %v6115_v63  ;;  %v7719_v27 = vsel %vm7716_vm1, %v7718_v26, %v7714_v14  ;;  %v7730_v24 = vand.u32 2147483647, %v13936_v30  ;;  %v14129_v29 = vor.u32 1.1754944e-38, %v7792_v46  ;;  %v16230_v6 = vld [vmem:[#allocation89_spill] sm:$0xff]  ;;  %v7582_v56 = vpop.xlane.xlu0 %7581 }
 0xaff   : > { %v7656_v51 = vadd.f32 %v7640_v36, %v7464_v1  ;;  %v14134_v55 = vmul.f32 %v14045_v25, %v13982_v48  ;;  %v6120_v36 = vadd.f32 %v16230_v6, %v6029_v57  ;;  %v16231_v1 = vld [vmem:[#allocation80_spill] sm:$0xff]  ;;  %v16232_v26 = vand.u32 4294901760, %v13874_v20  ;;  %v16236_v20 = vld [vmem:[#allocation23_spill] sm:$0xff] }
 0xb00   : > { %8597 = vmatpush.msra.mxu0 %v16225_v31  ;;  %8700 = vmatpush.msra.mxu1 %v13829_v23  ;;  %v7103_v13 = vpop.f32.mrf.mxu0  ;;  %v6328_v21 = vadd.f32 %v16231_v1, %v6219_v49  ;;  %v7641_v30 = vmul.f32 %v14051_v33, %v7623_v59  ;;  %v7752_v57 = vmul.f32 %v14061_v38, %v13988_v11  ;;  %v14155_v9 = vmax.f32 %v16236_v20, 1.0  ;;  %v16246_v59 = vld [vmem:[#allocation310_spill] sm:$0xff] }
 0xb01   : > { %v7690_v2 = vadd.f32 %v7674_v15, %v7656_v51  ;;  %v7104_v32 = vadd.f32 %v7103_v13, %v6988_v8  ;;  %v6783_v15 = vadd.f32 %v13581_v18, %v6407_v45  ;;  %v16233_v51 = vand.u32 2147483647, %v13927_v58  ;;  %v16245_v45 = vld [vmem:[#allocation309_spill] sm:$0xff] }
 0xb02   : > { %v7370_v44 = vpop.f32.mrf.mxu2  ;;  %v14111_v37 = vpop.f32.mrf.mxu3  ;;  %8601 = vmatpush.msra.mxu0 %v16227_v53  ;;  %8702 = vmatpush.msra.mxu1 %v13841_v7  ;;  %v7729_v18 = vsel %vm14124_vm11, %v13997_v10, %v7725_v43  ;;  %v7733_v49 = vor.u32 1.1754944e-38, %v7732_v62  ;;  %v7675_v52 = vmul.f32 %v14056_v5, %v7579_v47  ;;  %vm14165_vm13 = vcmp.eq.f32.partialorder %v7730_v24, 8.507059e+37  ;;  %v16248_v43 = vld [vmem:[#allocation82_spill] sm:$0xff] }
 0xb03   : > { %v7720_v63 = vmul.f32 %v7719_v27, %v7690_v2  ;;  %v7371_v60 = vadd.f32 %v7370_v44, %v7214_v0  ;;  %vm14147_vm12 = vcmp.eq.f32.partialorder %v16233_v51, 8.507059e+37  ;;  %v7624_v4 = vsub.f32 %v16178_v39, %v7582_v56  ;;  %v16247_v0 = vld [vmem:[#allocation79_spill] sm:$0xff]  ;;  %v7219_v44 = vpop.f32.mrf.mxu1 }
 0xb04   : > { %8605 = vmatpush.msra.mxu0 %v16232_v26  ;;  %8704 = vmatpush.msra.mxu1 %v13862_v50  ;;  %v6033_v2 = vadd.f32 %v16246_v59, %v16245_v45  ;;  %v6225_v27 = vadd.f32 %v16247_v0, %v6120_v36  ;;  %v6411_v62 = vadd.f32 %v16248_v43, %v6328_v21  ;;  %9778 = vrcp.f32 %v14064_v61  ;;  %v16255_v50 = vld [vmem:[#allocation85_spill] sm:$0xff] }
 0xb05   : > { %v14142_v46 = vand.u32 4294901760, %v7720_v63  ;;  %v7468_v7 = vadd.f32 %v14038_v12, %v7371_v60  ;;  %v16237_v12 = vand.u32 4294901760, %v13892_v17  ;;  %v16242_v17 = vand.u32 2147483647, %v13895_v34  ;;  %v16257_v45 = vld [vmem:[#allocation29_spill] sm:$0xff] }
 0xb06   : > { %8706 = vmatpush.msra.mxu1 %v13876_v19  ;;  %v6992_v53 = vadd.f32 %v13577_v35, %v6783_v15  ;;  %v7220_v34 = vadd.f32 %v7219_v44, %v7104_v32  ;;  %v7753_v60 = vsub.f32 1.0, %v7752_v57  ;;  %v7734_v24 = vsel %vm14165_vm13, %v7733_v49, %v7729_v18  ;;  %v16252_v49 = vld [vmem:[#allocation146_spill] sm:$0xff] }
 0xb07   : > { %8609 = vmatpush.msra.mxu0 %v16237_v12  ;;  %v7999_v8 = vsub.f32 %v7720_v63, %v14142_v46  ;;  %v7657_v31 = vadd.f32 %v7641_v30, %v7468_v7  ;;  %8224 = vmatmul.f32.vlgmr.msrb.gmra.mxu1 %v14142_v46  ;;  %vm14179_vm15 = vcmp.eq.f32.partialorder %v16242_v17, 8.507059e+37  ;;  %v7774_v35 = vsel %vm14173_vm14, %v13950_v3, %v14077_v54  ;;  %v16251_v30 = vld [vmem:[#allocation84_spill] sm:$0xff]  ;;  %v16256_v17 = vld [vmem:[#allocation105_spill] sm:$0xff] }
 0xb08   : > { %v7108_v6 = vpop.f32.mrf.mxu0  ;;  %v7744_v32 = vsel %vm14197_vm2, %v13973_v22, %v14116_v28  ;;  %v7642_v58 = vmul.f32 %v14051_v33, %v7624_v4  ;;  %v6125_v26 = vadd.f32 %v13414_v16, %v6033_v2  ;;  %v6791_v15 = vadd.f32 %v13587_v42, %v6411_v62  ;;  %v7585_v28 = vpop.xlane.xlu2 %7584  ;;  %v16283_v62 = vld [vmem:[#allocation20_spill] sm:$0xff] }
 0xb09   : > { %v7691_v13 = vadd.f32 %v7675_v52, %v7657_v31  ;;  %8338 = vmatmul.f32.vlgmr.msra.gmra.mxu2 %v7999_v8  ;;  %v8000_v63 = vand.u32 4294901760, %v7999_v8  ;;  %v6332_v7 = vadd.f32 %v16251_v30, %v6225_v27  ;;  %vm7756_vm3 = vweird.f32 %v13988_v11  ;;  %v16253_v52 = vld [vmem:[#allocation311_spill] sm:$0xff] }
 0xb0a   : > { %v7374_v39 = vpop.f32.mrf.mxu2  ;;  %v7475_v23 = vpop.f32.mrf.mxu3  ;;  %v7109_v57 = vadd.f32 %v7108_v6, %v6992_v53  ;;  %v7783_v18 = vsub.f32 1.0, %v14134_v55  ;;  %v7754_v22 = vmul.f32 %v14061_v38, %v7753_v60  ;;  %v7749_v16 = vsel %vm14147_vm12, %v16252_v49, %v7744_v32  ;;  %v16262_v60 = vld [vmem:[#allocation257_spill] sm:$0xff] }
 0xb0b   : > { %v7375_v36 = vadd.f32 %v7374_v39, %v7220_v34  ;;  %8452 = vmatmul.f32.vlgmr.msra.gmra.mxu3 %v8000_v63  ;;  %v8001_v1 = vsub.f32 %v7999_v8, %v8000_v63  ;;  %v7735_v21 = vmul.f32 %v7734_v24, %v7691_v13  ;;  %vm7757_vm4 = vweird.f32 %v14061_v38  ;;  %v14227_v55 = vpop.eup %9778  ;;  %v16254_v8 = vld [vmem:[#allocation312_spill] sm:$0xff]  ;;  %v7225_v10 = vpop.f32.mrf.mxu1 }
 0xb0c   : > { %9780 = vrcp.f32 %v14088_v41  ;;  %v7676_v42 = vmul.f32 %v14056_v5, %v7582_v56  ;;  %v6037_v31 = vadd.f32 %v16254_v8, %v16253_v52  ;;  %v6231_v14 = vadd.f32 %v16255_v50, %v6125_v26  ;;  %v16258_v56 = vld [vmem:[#allocation37_spill] sm:$0xff]  ;;  %vm14264_vm1 = vmor %vm7756_vm3, %vm7757_vm4 }
 0xb0d   : > { %v7472_v3 = vadd.f32 %v14111_v37, %v7375_v36  ;;  %v8002_v54 = vand.u32 4294901760, %v8001_v1  ;;  %v14215_v51 = vand.u32 4294901760, %v7735_v21  ;;  %v6996_v4 = vadd.f32 %v16256_v17, %v6791_v15  ;;  %v16265_v15 = vld [vmem:[#allocation13_spill] sm:$0xff] }
 0xb0e   : > { %v6415_v59 = vadd.f32 %v16257_v45, %v6332_v7  ;;  %vm7786_vm5 = vweird.f32 %v13982_v48  ;;  %vm7787_vm6 = vweird.f32 %v14045_v25  ;;  %v7625_v2 = vsub.f32 %v16258_v56, %v7585_v28 }
 0xb0f   : > { %v7658_v37 = vadd.f32 %v7642_v58, %v7472_v3  ;;  %8003 = vmatmul.f32.vlgmr.msrb.gmra.mxu0 %v8002_v54  ;;  %8228 = vmatmul.f32.gmra.mxu1 %v14215_v51  ;;  %v8007_v12 = vsub.f32 %v7735_v21, %v14215_v51  ;;  %v7226_v27 = vadd.f32 %v7225_v10, %v7109_v57  ;;  %v16259_v43 = vand.u32 2147483647, %v13988_v11  ;;  %v16263_v21 = vld [vmem:[#allocation16_spill] sm:$0xff]  ;;  %v16264_v58 = vld [vmem:[#allocation106_spill] sm:$0xff]  ;;  %v16273_v10 = vld [vmem:[#allocation53_spill] sm:$0xff] }
 0xb10   : > { %v7784_v53 = vmul.f32 %v14045_v25, %v7783_v18  ;;  %9782 = vrcp.f32 %v14155_v9  ;;  %v7755_v63 = vadd.f32 %v14061_v38, %v7754_v22  ;;  %v14249_v39 = vsel %vm14179_vm15, %v16262_v60, %v7774_v35  ;;  %v7113_v24 = vpop.f32.mrf.mxu0  ;;  %v7588_v22 = vpop.xlane.xlu1 %7587  ;;  %v16278_v60 = vld [vmem:[#allocation43_spill] sm:$0xff]  ;;  %vm14313_vm10 = vmor %vm7786_vm5, %vm7787_vm6  ;;  %v16284_v18 = vld [vmem:[#allocation110_spill] sm:$0xff] }
 0xb11   : > { %v7692_v0 = vadd.f32 %v7676_v42, %v7658_v37  ;;  %8343 = vmatmul.f32.gmra.mxu2 %v8007_v12  ;;  %v8008_v44 = vand.u32 4294901760, %v8007_v12  ;;  %vm14239_vm7 = vcmp.eq.f32.partialorder %v16259_v43, 8.507059e+37  ;;  %v7820_v1 = vand.u32 2147483647, %v14088_v41  ;;  %v16268_v37 = vld [vmem:[#allocation41_spill] sm:$0xff] }
 0xb12   : > { %v7378_v13 = vpop.f32.mrf.mxu2  ;;  %v7479_v34 = vpop.f32.mrf.mxu3  ;;  %v6130_v32 = vadd.f32 %v16263_v21, %v6037_v31  ;;  %v6799_v26 = vadd.f32 %v16264_v58, %v6415_v59  ;;  %v6336_v30 = vadd.f32 %v16265_v15, %v6231_v14  ;;  %v7114_v7 = vadd.f32 %v7113_v24, %v6996_v4  ;;  %v16272_v14 = vld [vmem:[#allocation54_spill] sm:$0xff]  ;;  %v16274_v4 = vld [vmem:[#allocation87_spill] sm:$0xff]  ;;  %v16275_v59 = vld [vmem:[#allocation108_spill] sm:$0xff] }
 0xb13   : > { %v7379_v19 = vadd.f32 %v7378_v13, %v7226_v27  ;;  %8458 = vmatmul.f32.gmra.mxu3 %v8008_v44  ;;  %v8009_v6 = vsub.f32 %v8007_v12, %v8008_v44  ;;  %v7750_v36 = vmul.f32 %v7749_v16, %v7692_v0  ;;  %v14255_v3 = vpop.eup %9780  ;;  %v7643_v47 = vmul.f32 %v14051_v33, %v7625_v2  ;;  %v16276_v2 = vld [vmem:[#allocation88_spill] sm:$0xff] }
 0xb14   : > { %v7759_v49 = vsel %vm14264_vm1, %v14061_v38, %v7755_v63  ;;  %v14272_v16 = vadd.f32 %v14045_v25, %v7784_v53  ;;  %v7835_v42 = vand.u32 2147483647, %v14064_v61  ;;  %v14277_v12 = vmax.f32 %v16268_v37, 1.0  ;;  %v16277_v27 = vld [vmem:[#allocation32_spill] sm:$0xff] }
 0xb15   : > { %v7476_v35 = vadd.f32 %v7475_v23, %v7379_v19  ;;  %v8010_v54 = vand.u32 4294901760, %v8009_v6  ;;  %v14258_v57 = vand.u32 4294901760, %v7750_v36  ;;  %v7822_v23 = vand.u32 2147483648, %v14088_v41  ;;  %v16280_v58 = vld [vmem:[#allocation24_spill] sm:$0xff] }
 0xb16   : > { %v7677_v11 = vmul.f32 %v14056_v5, %v7585_v28  ;;  %v16269_v38 = vand.u32 2147483647, %v13982_v48  ;;  %v14288_v50 = vpop.eup %9782  ;;  %v6041_v17 = vadd.f32 %v16273_v10, %v16272_v14  ;;  %v6237_v45 = vadd.f32 %v16274_v4, %v6130_v32  ;;  %v7231_v28 = vpop.f32.mrf.mxu1 }
 0xb17   : > { %v7659_v52 = vadd.f32 %v7643_v47, %v7476_v35  ;;  %8011 = vmatmul.f32.gmra.mxu0 %v8010_v54  ;;  %8232 = vmatmul.f32.gmra.mxu1 %v14258_v57  ;;  %v8015_v8 = vsub.f32 %v7750_v36, %v14258_v57  ;;  %v7000_v56 = vadd.f32 %v16275_v59, %v6799_v26  ;;  %v14299_v24 = vmax.f32 %v16278_v60, 1.0  ;;  %v16279_v36 = vld [vmem:[#allocation149_spill] sm:$0xff]  ;;  %v16287_v59 = vld [vmem:[#allocation27_spill] sm:$0xff] }
 0xb18   : > { %vm14284_vm9 = vcmp.eq.f32.partialorder %v16269_v38, 8.507059e+37  ;;  %v6419_v0 = vadd.f32 %v16276_v2, %v6336_v30  ;;  %v7626_v44 = vsub.f32 %v16277_v27, %v7588_v22  ;;  %v7232_v53 = vadd.f32 %v7231_v28, %v7114_v7  ;;  %v7118_v15 = vpop.f32.mrf.mxu0  ;;  %v16286_v28 = vld [vmem:[#allocation161_spill] sm:$0xff]  ;;  %v7591_v2 = vpop.xlane.xlu2 %7590 }
 0xb19   : > { %v7693_v43 = vadd.f32 %v7677_v11, %v7659_v52  ;;  %8348 = vmatmul.f32.gmra.mxu2 %v8015_v8  ;;  %v8016_v13 = vand.u32 4294901760, %v8015_v8  ;;  %v7827_v63 = vmul.f32 %v14227_v55, %v14064_v61  ;;  %v7764_v21 = vsel %vm14239_vm7, %v16279_v36, %v7759_v49  ;;  %v16290_v36 = vld [vmem:[#allocation95_spill] sm:$0xff] }
 0xb1a   : > { %v7382_v19 = vpop.f32.mrf.mxu2  ;;  %v7483_v6 = vpop.f32.mrf.mxu3  ;;  %v14304_v32 = vor.u32 1.1754944e-38, %v7822_v23  ;;  %v14307_v26 = vmax.f32 %v16280_v58, 1.0  ;;  %v6135_v54 = vadd.f32 %v16283_v62, %v6041_v17  ;;  %v6807_v49 = vadd.f32 %v16284_v18, %v6419_v0  ;;  %v16285_v23 = vld [vmem:[#allocation102_spill] sm:$0xff]  ;;  %v16292_v62 = vld [vmem:[#allocation91_spill] sm:$0xff] }
 0xb1b   : > { %v7383_v30 = vadd.f32 %v7382_v19, %v7232_v53  ;;  %8464 = vmatmul.f32.gmra.mxu3 %v8016_v13  ;;  %v8017_v7 = vsub.f32 %v8015_v8, %v8016_v13  ;;  %v7765_v47 = vmul.f32 %v7764_v21, %v7693_v43  ;;  %v6340_v11 = vadd.f32 %v16285_v23, %v6237_v45  ;;  %v16289_v13 = vld [vmem:[#allocation31_spill] sm:$0xff] }
 0xb1c   : > { %v7119_v52 = vadd.f32 %v7118_v15, %v7000_v56  ;;  %v7644_v38 = vmul.f32 %v14051_v33, %v7626_v44  ;;  %v7812_v48 = vmul.f32 %v14255_v3, %v14088_v41  ;;  %v7797_v4 = vmul.f32 %v14288_v50, %v14155_v9  ;;  %v16288_v44 = vld [vmem:[#allocation19_spill] sm:$0xff] }
 0xb1d   : > { %v7480_v14 = vadd.f32 %v7479_v34, %v7383_v30  ;;  %v8018_v8 = vand.u32 4294901760, %v8017_v7  ;;  %v14321_v10 = vand.u32 4294901760, %v7765_v47  ;;  %v6045_v17 = vadd.f32 %v16287_v59, %v16286_v28  ;;  %v16291_v15 = vld [vmem:[#allocation35_spill] sm:$0xff] }
 0xb1e   : > { %v7789_v45 = vsel %vm14313_vm10, %v14045_v25, %v14272_v16  ;;  %9784 = vrcp.f32 %v14277_v12  ;;  %v7678_v34 = vmul.f32 %v14056_v5, %v7588_v22  ;;  %v7828_v27 = vsub.f32 1.0, %v7827_v63  ;;  %v7237_v53 = vpop.f32.mrf.mxu1 }
 0xb1f   : > { %v7660_v56 = vadd.f32 %v7644_v38, %v7480_v14  ;;  %8019 = vmatmul.f32.gmra.mxu0 %v8018_v8  ;;  %8236 = vmatmul.f32.gmra.mxu1 %v14321_v10  ;;  %v8023_v0 = vsub.f32 %v7765_v47, %v14321_v10  ;;  %v6243_v43 = vadd.f32 %v16288_v44, %v6135_v54  ;;  %v7813_v7 = vsub.f32 1.0, %v7812_v48  ;;  %v16293_v14 = vld [vmem:[#allocation117_spill] sm:$0xff]  ;;  %v16294_v48 = vld [vmem:[#allocation112_spill] sm:$0xff] }
 0xb20   : > { %v7004_v19 = vadd.f32 %v16289_v13, %v6807_v49  ;;  %v6423_v21 = vadd.f32 %v16290_v36, %v6340_v11  ;;  %v7627_v25 = vsub.f32 %v16291_v15, %v7591_v2  ;;  %v7238_v30 = vadd.f32 %v7237_v53, %v7119_v52  ;;  %v7123_v54 = vpop.f32.mrf.mxu0  ;;  %v16297_v53 = vld [vmem:[#allocation8_spill] sm:$0xff]  ;;  %v16298_v15 = vld [vmem:[#allocation109_spill] sm:$0xff] }
 0xb21   : > { %v7694_v16 = vadd.f32 %v7678_v34, %v7660_v56  ;;  %8353 = vmatmul.f32.gmra.mxu2 %v8023_v0  ;;  %v8024_v22 = vand.u32 4294901760, %v8023_v0  ;;  %v7798_v35 = vsub.f32 1.0, %v7797_v4  ;;  %v6140_v18 = vadd.f32 %v16292_v62, %v6045_v17  ;;  %v7594_v17 = vpop.xlane.xlu0 %7593 }
 0xb22   : > { %v7386_v23 = vpop.f32.mrf.mxu2  ;;  %v7487_v47 = vpop.f32.mrf.mxu3  ;;  %v7794_v63 = vsel %vm14284_vm9, %v14129_v29, %v7789_v45  ;;  %9786 = vrcp.f32 %v14299_v24  ;;  %v7829_v52 = vmul.f32 %v14227_v55, %v7828_v27  ;;  %v6815_v8 = vadd.f32 %v16293_v14, %v6423_v21  ;;  %v16296_v27 = vld [vmem:[#allocation62_spill] sm:$0xff] }
 0xb23   : > { %v7387_v49 = vadd.f32 %v7386_v23, %v7238_v30  ;;  %8470 = vmatmul.f32.gmra.mxu3 %v8024_v22  ;;  %v8025_v11 = vsub.f32 %v8023_v0, %v8024_v22  ;;  %v7780_v38 = vmul.f32 %v14249_v39, %v7694_v16  ;;  %v6344_v4 = vadd.f32 %v16294_v48, %v6243_v43  ;;  %v16295_v0 = vld [vmem:[#allocation63_spill] sm:$0xff] }
 0xb24   : > { %v7124_v28 = vadd.f32 %v7123_v54, %v7004_v19  ;;  %v14350_v59 = vpop.eup %9784  ;;  %v7645_v29 = vmul.f32 %v14051_v33, %v7627_v25  ;;  %v14356_v56 = vmul.f32 %v14255_v3, %v7813_v7  ;;  %v7799_v39 = vmul.f32 %v14288_v50, %v7798_v35  ;;  %v16299_v16 = vld [vmem:[#allocation247_spill] sm:$0xff] }
 0xb25   : > { %v7484_v31 = vadd.f32 %v7483_v6, %v7387_v49  ;;  %v8026_v45 = vand.u32 4294901760, %v8025_v11  ;;  %v14353_v34 = vand.u32 4294901760, %v7780_v38  ;;  %v6049_v44 = vadd.f32 %v16296_v27, %v16295_v0  ;;  %v16304_v0 = vld [vmem:[#allocation114_spill] sm:$0xff] }
 0xb26   : > { %v6249_v43 = vadd.f32 %v16297_v53, %v6140_v18  ;;  %9788 = vrcp.f32 %v14307_v26  ;;  %v7679_v13 = vmul.f32 %v14056_v5, %v7591_v2  ;;  %v7628_v36 = vsub.f32 %v16236_v20, %v7594_v17  ;;  %v7243_v21 = vpop.f32.mrf.mxu1 }
 0xb27   : > { %v7661_v19 = vadd.f32 %v7645_v29, %v7484_v31  ;;  %8027 = vmatmul.f32.gmra.mxu0 %v8026_v45  ;;  %8240 = vmatmul.f32.gmra.mxu1 %v14353_v34  ;;  %v8031_v6 = vsub.f32 %v7780_v38, %v14353_v34  ;;  %v6427_v25 = vadd.f32 %v16298_v15, %v6344_v4  ;;  %vm7801_vm0 = vweird.f32 %v14155_v9  ;;  %v16303_v45 = vld [vmem:[#allocation33_spill] sm:$0xff] }
 0xb28   : > { %vm7802_vm8 = vweird.f32 %v14288_v50  ;;  %vm7831_vm11 = vweird.f32 %v14064_v61  ;;  %vm7832_vm12 = vweird.f32 %v14227_v55  ;;  %v14372_v2 = vpop.eup %9786  ;;  %v7008_v30 = vadd.f32 %v16299_v16, %v6815_v8  ;;  %v7128_v11 = vpop.f32.mrf.mxu0 }
 0xb29   : > { %v7695_v22 = vadd.f32 %v7679_v13, %v7661_v19  ;;  %8358 = vmatmul.f32.gmra.mxu2 %v8031_v6  ;;  %v7244_v7 = vadd.f32 %v7243_v21, %v7124_v28  ;;  %v8032_v35 = vand.u32 4294901760, %v8031_v6  ;;  %v7800_v18 = vadd.f32 %v14288_v50, %v7799_v39  ;;  %vm14386_vm14 = vmor %vm7801_vm0, %vm7802_vm8  ;;  %v16302_v28 = vld [vmem:[#allocation240_spill] sm:$0xff]  ;;  %v7597_v21 = vpop.xlane.xlu1 %7596 }
 0xb2a   : > { %v7390_v20 = vpop.f32.mrf.mxu2  ;;  %v14375_v62 = vpop.f32.mrf.mxu3  ;;  %v7807_v23 = vand.u32 2147483648, %v14155_v9  ;;  %vm7817_vm13 = vweird.f32 %v14255_v3  ;;  %v7837_v54 = vand.u32 2147483648, %v14064_v61  ;;  %v7865_v49 = vand.u32 2147483647, %v14299_v24  ;;  %vm14446_vm5 = vmor %vm7831_vm11, %vm7832_vm12 }
 0xb2b   : > { %v7391_v38 = vadd.f32 %v7390_v20, %v7244_v7  ;;  %8476 = vmatmul.f32.gmra.mxu3 %v8032_v35  ;;  %v8033_v14 = vsub.f32 %v8031_v6, %v8032_v35  ;;  %v7795_v8 = vmul.f32 %v7794_v63, %v7695_v22  ;;  %v7805_v4 = vand.u32 2147483647, %v14155_v9  ;;  %v16312_v20 = vld [vmem:[#allocation116_spill] sm:$0xff] }
 0xb2c   : > { %v6145_v29 = vadd.f32 %v16302_v28, %v6049_v44  ;;  %v7646_v31 = vmul.f32 %v14051_v33, %v7628_v36  ;;  %v6823_v39 = vadd.f32 %v16303_v45, %v6427_v25  ;;  %v6348_v27 = vadd.f32 %v16304_v0, %v6249_v43  ;;  %v14396_v63 = vpop.eup %9788 }
 0xb2d   : > { %vm7816_vm15 = vweird.f32 %v14088_v41  ;;  %v7488_v53 = vadd.f32 %v7487_v47, %v7391_v38  ;;  %v8034_v13 = vand.u32 4294901760, %v8033_v14  ;;  %v14398_v19 = vand.u32 4294901760, %v7795_v8 }
 0xb2e   : > { %v7129_v6 = vadd.f32 %v7128_v11, %v7008_v30  ;;  %v7804_v9 = vsel %vm14386_vm14, %v14288_v50, %v7800_v18  ;;  %v7808_v44 = vor.u32 1.1754944e-38, %v7807_v23  ;;  %v14404_v36 = vadd.f32 %v14227_v55, %v7829_v52  ;;  %v16309_v52 = vld [vmem:[#allocation172_spill] sm:$0xff]  ;;  %v16310_v30 = vld [vmem:[#allocation65_spill] sm:$0xff]  ;;  %v7249_v35 = vpop.f32.mrf.mxu1  ;;  %vm14461_vm6 = vmor %vm7816_vm15, %vm7817_vm13 }
 0xb2f   : > { %v7867_v43 = vand.u32 2147483648, %v14299_v24  ;;  %v7680_v15 = vmul.f32 %v14056_v5, %v7594_v17  ;;  %v7662_v25 = vadd.f32 %v7646_v31, %v7488_v53  ;;  %8035 = vmatmul.f32.gmra.mxu0 %v8034_v13  ;;  %8244 = vmatmul.f32.gmra.mxu1 %v14398_v19  ;;  %v8039_v47 = vsub.f32 %v7795_v8, %v14398_v19  ;;  %v16311_v17 = vld [vmem:[#allocation30_spill] sm:$0xff]  ;;  %v16313_v23 = vld [vmem:[#allocation113_spill] sm:$0xff] }
 0xb30   : > { %vm14410_vm2 = vcmp.eq.f32.partialorder %v7805_v4, 8.507059e+37  ;;  %vm14416_vm3 = vcmp.eq.f32.partialorder %v7835_v42, 8.507059e+37  ;;  %v6053_v22 = vadd.f32 %v16310_v30, %v16309_v52  ;;  %v6255_v7 = vadd.f32 %v16311_v17, %v6145_v29  ;;  %v16316_v4 = vld [vmem:[#allocation44_spill] sm:$0xff]  ;;  %v16317_v29 = vld [vmem:[#allocation46_spill] sm:$0xff]  ;;  %v16322_v52 = vld [vmem:[#allocation119_spill] sm:$0xff] }
 0xb31   : > { %v7012_v18 = vadd.f32 %v16312_v20, %v6823_v39  ;;  %v6431_v11 = vadd.f32 %v16313_v23, %v6348_v27  ;;  %v7629_v38 = vsub.f32 %v16220_v40, %v7597_v21  ;;  %v7696_v14 = vadd.f32 %v7680_v15, %v7662_v25  ;;  %8363 = vmatmul.f32.gmra.mxu2 %v8039_v47  ;;  %v7133_v27 = vpop.f32.mrf.mxu0  ;;  %v16320_v25 = vld [vmem:[#allocation93_spill] sm:$0xff] }
 0xb32   : > { %v7250_v8 = vadd.f32 %v7249_v35, %v7129_v6  ;;  %v8040_v48 = vand.u32 4294901760, %v8039_v47  ;;  %vm14428_vm4 = vcmp.eq.f32.partialorder %v7820_v1, 8.507059e+37  ;;  %v14433_v28 = vmax.f32 %v16316_v4, 1.0  ;;  %v7394_v45 = vpop.f32.mrf.mxu2  ;;  %v7495_v39 = vpop.f32.mrf.mxu3 }
 0xb33   : > { %v14436_v31 = vmax.f32 %v16317_v29, 1.0  ;;  %v7809_v40 = vsel %vm14410_vm2, %v7808_v44, %v7804_v9  ;;  %v7815_v0 = vadd.f32 %v14255_v3, %v14356_v56  ;;  %v7838_v15 = vor.u32 1.1754944e-38, %v7837_v54  ;;  %v16321_v9 = vld [vmem:[#allocation120_spill] sm:$0xff] }
 0xb34   : > { %v7395_v53 = vadd.f32 %v7394_v45, %v7250_v8  ;;  %8482 = vmatmul.f32.gmra.mxu3 %v8040_v48  ;;  %v8041_v1 = vsub.f32 %v8039_v47, %v8040_v48  ;;  %v7810_v13 = vmul.f32 %v7809_v40, %v7696_v14  ;;  %v6150_v16 = vadd.f32 %v16320_v25, %v6053_v22  ;;  %v16327_v40 = vld [vmem:[#allocation98_spill] sm:$0xff] }
 0xb35   : > { %v6831_v44 = vadd.f32 %v16321_v9, %v6431_v11  ;;  %v6352_v56 = vadd.f32 %v16322_v52, %v6255_v7  ;;  %v7134_v30 = vadd.f32 %v7133_v27, %v7012_v18  ;;  %v7647_v17 = vmul.f32 %v14051_v33, %v7629_v38  ;;  %v7600_v7 = vpop.xlane.xlu2 %7599  ;;  %v16325_v18 = vld [vmem:[#allocation25_spill] sm:$0xff]  ;;  %v16329_v27 = vld [vmem:[#allocation38_spill] sm:$0xff] }
 0xb36   : > { %v7492_v47 = vadd.f32 %v14375_v62, %v7395_v53  ;;  %v8042_v35 = vand.u32 4294901760, %v8041_v1  ;;  %v14455_v20 = vand.u32 4294901760, %v7810_v13  ;;  %v14467_v54 = vmul.f32 %v14350_v59, %v14277_v12  ;;  %v7255_v45 = vpop.f32.mrf.mxu1  ;;  %v16330_v9 = vld [vmem:[#allocation57_spill] sm:$0xff] }
 0xb37   : > { %v7842_v22 = vmul.f32 %v14396_v63, %v14307_v26  ;;  %v7819_v62 = vsel %vm14461_vm6, %v14255_v3, %v7815_v0  ;;  %v7834_v41 = vsel %vm14446_vm5, %v14227_v55, %v14404_v36  ;;  %v14479_v23 = vmax.f32 %v16325_v18, 1.0  ;;  %v16326_v3 = vld [vmem:[#allocation94_spill] sm:$0xff]  ;;  %v16328_v36 = vld [vmem:[#allocation125_spill] sm:$0xff] }
 0xb38   : > { %v7681_v11 = vmul.f32 %v14056_v5, %v7597_v21  ;;  %v7663_v38 = vadd.f32 %v7647_v17, %v7492_v47  ;;  %8043 = vmatmul.f32.gmra.mxu0 %v8042_v35  ;;  %8248 = vmatmul.f32.gmra.mxu1 %v14455_v20  ;;  %v8047_v14 = vsub.f32 %v7810_v13, %v14455_v20  ;;  %v16331_v13 = vld [vmem:[#allocation313_spill] sm:$0xff]  ;;  %9790 = vrcp.f32 %v14436_v31 }
 0xb39   : > { %v14486_v8 = vmul.f32 %v14372_v2, %v14299_v24  ;;  %v6261_v48 = vadd.f32 %v16326_v3, %v6150_v16  ;;  %v7016_v55 = vadd.f32 %v16327_v40, %v6831_v44  ;;  %v6435_v0 = vadd.f32 %v16328_v36, %v6352_v56  ;;  %v7138_v35 = vpop.f32.mrf.mxu0  ;;  %v16333_v3 = vld [vmem:[#allocation251_spill] sm:$0xff]  ;;  %v7603_v36 = vpop.xlane.xlu0 %7602 }
 0xb3a   : > { %v7630_v53 = vsub.f32 %v16329_v27, %v7600_v7  ;;  %v7697_v21 = vadd.f32 %v7681_v11, %v7663_v38  ;;  %8368 = vmatmul.f32.gmra.mxu2 %v8047_v14  ;;  %v7256_v1 = vadd.f32 %v7255_v45, %v7134_v30  ;;  %v8048_v6 = vand.u32 4294901760, %v8047_v14  ;;  %v7398_v17 = vpop.f32.mrf.mxu2  ;;  %v7499_v47 = vpop.f32.mrf.mxu3 }
 0xb3b   : > { %v7843_v25 = vsub.f32 1.0, %v7842_v22  ;;  %v6057_v52 = vadd.f32 %v16331_v13, %v16330_v9  ;;  %v7824_v16 = vsel %vm14428_vm4, %v14304_v32, %v7819_v62  ;;  %v7839_v44 = vsel %vm14416_vm3, %v7838_v15, %v7834_v41  ;;  %v16332_v22 = vld [vmem:[#allocation122_spill] sm:$0xff]  ;;  %v16334_v41 = vld [vmem:[#allocation100_spill] sm:$0xff] }
 0xb3c   : > { %v7873_v56 = vsub.f32 1.0, %v14467_v54  ;;  %v7399_v61 = vadd.f32 %v7398_v17, %v7256_v1  ;;  %8488 = vmatmul.f32.gmra.mxu3 %v8048_v6  ;;  %v8049_v30 = vsub.f32 %v8047_v14, %v8048_v6  ;;  %v7825_v11 = vmul.f32 %v7824_v16, %v7697_v21  ;;  %v16339_v17 = vld [vmem:[#allocation97_spill] sm:$0xff] }
 0xb3d   : > { %v6839_v38 = vadd.f32 %v16332_v22, %v6435_v0  ;;  %v6356_v45 = vadd.f32 %v16333_v3, %v6261_v48  ;;  %v7139_v40 = vadd.f32 %v7138_v35, %v7016_v55  ;;  %v7648_v32 = vmul.f32 %v14051_v33, %v7630_v53  ;;  %v16335_v53 = vld [vmem:[#allocation123_spill] sm:$0xff] }
 0xb3e   : > { %v7496_v42 = vadd.f32 %v7495_v39, %v7399_v61  ;;  %v8050_v50 = vand.u32 4294901760, %v8049_v30  ;;  %v14504_v15 = vand.u32 4294901760, %v7825_v11  ;;  %v7858_v54 = vsub.f32 1.0, %v14486_v8  ;;  %v7261_v55 = vpop.f32.mrf.mxu1  ;;  %v14523_v13 = vpop.eup %9790 }
 0xb3f   : > { %v7844_v62 = vmul.f32 %v14396_v63, %v7843_v25  ;;  %9792 = vrcp.f32 %v14479_v23  ;;  %v6155_v14 = vadd.f32 %v16334_v41, %v6057_v52  ;;  %v7682_v0 = vmul.f32 %v14056_v5, %v7600_v7  ;;  %v16336_v7 = vld [vmem:[#allocation101_spill] sm:$0xff]  ;;  %v16338_v52 = vld [vmem:[#allocation60_spill] sm:$0xff] }
 0xb40   : > { %v7664_v27 = vadd.f32 %v7648_v32, %v7496_v42  ;;  %8051 = vmatmul.f32.gmra.mxu0 %v8050_v50  ;;  %8252 = vmatmul.f32.gmra.mxu1 %v14504_v15  ;;  %v8055_v48 = vsub.f32 %v7825_v11, %v14504_v15  ;;  %v14515_v39 = vor.u32 1.1754944e-38, %v7867_v43  ;;  %v7631_v8 = vsub.f32 %v16280_v58, %v7603_v36  ;;  %v16337_v43 = vld [vmem:[#allocation56_spill] sm:$0xff]  ;;  %v16340_v50 = vld [vmem:[#allocation129_spill] sm:$0xff] }
 0xb41   : > { %v6439_v21 = vadd.f32 %v16335_v53, %v6356_v45  ;;  %vm7862_vm7 = vweird.f32 %v14372_v2  ;;  %vm7846_vm1 = vweird.f32 %v14307_v26  ;;  %vm7847_vm9 = vweird.f32 %v14396_v63  ;;  %v7143_v22 = vpop.f32.mrf.mxu0 }
 0xb42   : > { %v7020_v1 = vadd.f32 %v16336_v7, %v6839_v38  ;;  %v7698_v6 = vadd.f32 %v7682_v0, %v7664_v27  ;;  %8373 = vmatmul.f32.gmra.mxu2 %v8055_v48  ;;  %v7262_v25 = vadd.f32 %v7261_v55, %v7139_v40  ;;  %v8056_v9 = vand.u32 4294901760, %v8055_v48  ;;  %v7402_v35 = vpop.f32.mrf.mxu2  ;;  %v7503_v61 = vpop.f32.mrf.mxu3  ;;  %vm14541_vm0 = vmor %vm7846_vm1, %vm7847_vm9 }
 0xb43   : > { %v6061_v58 = vadd.f32 %v16338_v52, %v16337_v43  ;;  %v6267_v16 = vadd.f32 %v16339_v17, %v6155_v14  ;;  %vm7861_vm10 = vweird.f32 %v14299_v24  ;;  %v7845_v30 = vadd.f32 %v14396_v63, %v7844_v62 }
 0xb44   : > { %v7852_v11 = vand.u32 2147483648, %v14307_v26  ;;  %v7403_v38 = vadd.f32 %v7402_v35, %v7262_v25  ;;  %8494 = vmatmul.f32.gmra.mxu3 %v8056_v9  ;;  %v8057_v3 = vsub.f32 %v8055_v48, %v8056_v9  ;;  %v7840_v45 = vmul.f32 %v7839_v44, %v7698_v6  ;;  %v7606_v6 = vpop.xlane.xlu1 %7605  ;;  %v16348_v35 = vld [vmem:[#allocation66_spill] sm:$0xff]  ;;  %vm14575_vm14 = vmor %vm7861_vm10, %vm7862_vm7 }
 0xb45   : > { %v7850_v40 = vand.u32 2147483647, %v14307_v26  ;;  %v14532_v32 = vpop.eup %9792  ;;  %v7649_v42 = vmul.f32 %v14051_v33, %v7631_v8  ;;  %v6847_v41 = vadd.f32 %v16340_v50, %v6439_v21  ;;  %v7859_v14 = vmul.f32 %v14372_v2, %v7858_v54  ;;  %v16343_v8 = vld [vmem:[#allocation90_spill] sm:$0xff]  ;;  %v16344_v54 = vld [vmem:[#allocation36_spill] sm:$0xff] }
 0xb46   : > { %v7874_v44 = vmul.f32 %v14350_v59, %v7873_v56  ;;  %v7500_v0 = vadd.f32 %v7499_v47, %v7403_v38  ;;  %v8058_v27 = vand.u32 4294901760, %v8057_v3  ;;  %v14546_v48 = vand.u32 4294901760, %v7840_v45  ;;  %v16351_v38 = vld [vmem:[#allocation126_spill] sm:$0xff] }
 0xb47   : > { %v7144_v55 = vadd.f32 %v7143_v22, %v7020_v1  ;;  %v6160_v53 = vadd.f32 %v16343_v8, %v6061_v58  ;;  %v7683_v21 = vmul.f32 %v14056_v5, %v7603_v36  ;;  %v6360_v7 = vadd.f32 %v16344_v54, %v6267_v16  ;;  %v7267_v36 = vpop.f32.mrf.mxu1  ;;  %v16347_v1 = vld [vmem:[#allocation12_spill] sm:$0xff] }
 0xb48   : > { %v7853_v25 = vor.u32 1.1754944e-38, %v7852_v11  ;;  %v7665_v26 = vadd.f32 %v7649_v42, %v7500_v0  ;;  %8059 = vmatmul.f32.gmra.mxu0 %v8058_v27  ;;  %8256 = vmatmul.f32.gmra.mxu1 %v14546_v48  ;;  %v8063_v9 = vsub.f32 %v7840_v45, %v14546_v48  ;;  %vm14555_vm8 = vcmp.eq.f32.partialorder %v7865_v49, 8.507059e+37  ;;  %v16349_v11 = vld [vmem:[#allocation59_spill] sm:$0xff] }
 0xb49   : > { %v7849_v56 = vsel %vm14541_vm0, %v14396_v63, %v7845_v30  ;;  %vm7851_vm11 = vcmp.eq.f32.partialorder %v7850_v40, 8.507059e+37  ;;  %v7024_v43 = vadd.f32 %v16347_v1, %v6847_v41  ;;  %v7860_v52 = vadd.f32 %v14372_v2, %v7859_v14  ;;  %v16350_v63 = vld [vmem:[#allocation96_spill] sm:$0xff]  ;;  %v7148_v42 = vpop.f32.mrf.mxu0  ;;  %v16354_v0 = vld [vmem:[#allocation135_spill] sm:$0xff] }
 0xb4a   : > { %vm7876_vm12 = vweird.f32 %v14277_v12  ;;  %vm7877_vm13 = vweird.f32 %v14350_v59  ;;  %v7632_v58 = vsub.f32 %v16278_v60, %v7606_v6  ;;  %v7699_v49 = vadd.f32 %v7683_v21, %v7665_v26  ;;  %8378 = vmatmul.f32.gmra.mxu2 %v8063_v9  ;;  %v7406_v45 = vpop.f32.mrf.mxu2  ;;  %v7507_v8 = vpop.f32.mrf.mxu3 }
 0xb4b   : > { %v7268_v17 = vadd.f32 %v7267_v36, %v7144_v55  ;;  %v8064_v16 = vand.u32 4294901760, %v8063_v9  ;;  %v6065_v22 = vadd.f32 %v16349_v11, %v16348_v35  ;;  %v6273_v30 = vadd.f32 %v16350_v63, %v6160_v53  ;;  %v16356_v36 = vld [vmem:[#allocation132_spill] sm:$0xff]  ;;  %vm14605_vm15 = vmor %vm7876_vm12, %vm7877_vm13 }
 0xb4c   : > { %v6443_v3 = vadd.f32 %v16351_v38, %v6360_v7  ;;  %v7854_v40 = vsel %vm7851_vm11, %v7853_v25, %v7849_v56  ;;  %v7880_v62 = vand.u32 2147483647, %v14277_v12  ;;  %v7864_v55 = vsel %vm14575_vm14, %v14372_v2, %v7860_v52  ;;  %v16363_v38 = vld [vmem:[#allocation9_spill] sm:$0xff] }
 0xb4d   : > { %v7407_v50 = vadd.f32 %v7406_v45, %v7268_v17  ;;  %8500 = vmatmul.f32.gmra.mxu3 %v8064_v16  ;;  %v8065_v41 = vsub.f32 %v8063_v9, %v8064_v16  ;;  %v7855_v14 = vmul.f32 %v7854_v40, %v7699_v49  ;;  %v7149_v53 = vadd.f32 %v7148_v42, %v7024_v43  ;;  %v16355_v9 = vld [vmem:[#allocation243_spill] sm:$0xff]  ;;  %v7609_v49 = vpop.xlane.xlu2 %7608  ;;  %v16357_v17 = vld [vmem:[#allocation128_spill] sm:$0xff] }
 0xb4e   : > { %v6855_v27 = vadd.f32 %v16354_v0, %v6443_v3  ;;  %v7882_v21 = vand.u32 2147483648, %v14277_v12  ;;  %v7650_v24 = vmul.f32 %v14051_v33, %v7632_v58  ;;  %v7887_v26 = vmul.f32 %v14532_v32, %v14479_v23  ;;  %v16364_v12 = vld [vmem:[#allocation99_spill] sm:$0xff] }
 0xb4f   : > { %v7504_v54 = vadd.f32 %v7503_v61, %v7407_v50  ;;  %v8066_v7 = vand.u32 4294901760, %v8065_v41  ;;  %v14586_v25 = vand.u32 4294901760, %v7855_v14  ;;  %v6165_v56 = vadd.f32 %v16355_v9, %v6065_v22  ;;  %v7273_v58 = vpop.f32.mrf.mxu1  ;;  %v16365_v40 = vld [vmem:[#allocation131_spill] sm:$0xff] }
 0xb50   : > { %v6364_v1 = vadd.f32 %v16356_v36, %v6273_v30  ;;  %v7875_v2 = vadd.f32 %v14350_v59, %v7874_v44  ;;  %9794 = vrcp.f32 %v14433_v28  ;;  %v7684_v43 = vmul.f32 %v14056_v5, %v7606_v6  ;;  %v16362_v30 = vld [vmem:[#allocation83_spill] sm:$0xff] }
 0xb51   : > { %v7666_v52 = vadd.f32 %v7650_v24, %v7504_v54  ;;  %8067 = vmatmul.f32.gmra.mxu0 %v8066_v7  ;;  %8260 = vmatmul.f32.gmra.mxu1 %v14586_v25  ;;  %v8071_v61 = vsub.f32 %v7855_v14, %v14586_v25  ;;  %v7028_v16 = vadd.f32 %v16357_v17, %v6855_v27  ;;  %vm14609_vm2 = vcmp.eq.f32.partialorder %v7880_v62, 8.507059e+37  ;;  %v7153_v60 = vpop.f32.mrf.mxu0  ;;  %v16366_v27 = vld [vmem:[#allocation254_spill] sm:$0xff]  ;;  %v7612_v24 = vpop.xlane.xlu0 %7611 }
 0xb52   : > { %v7869_v35 = vsel %vm14555_vm8, %v14515_v39, %v7864_v55  ;;  %v7883_v6 = vor.u32 1.1754944e-38, %v7882_v21  ;;  %v7633_v11 = vsub.f32 %v16268_v37, %v7609_v49  ;;  %v7274_v63 = vadd.f32 %v7273_v58, %v7149_v53  ;;  %v7410_v50 = vpop.f32.mrf.mxu2 }
 0xb53   : > { %v7700_v22 = vadd.f32 %v7684_v43, %v7666_v52  ;;  %8383 = vmatmul.f32.gmra.mxu2 %v8071_v61  ;;  %v8072_v47 = vand.u32 4294901760, %v8071_v61  ;;  %v7888_v39 = vsub.f32 1.0, %v7887_v26  ;;  %v6069_v3 = vadd.f32 %v16363_v38, %v16362_v30  ;;  %v7511_v43 = vpop.f32.mrf.mxu3  ;;  %v16372_v30 = vld [vmem:[#allocation141_spill] sm:$0xff] }
 0xb54   : > { %v6279_v45 = vadd.f32 %v16364_v12, %v6165_v56  ;;  %v6447_v42 = vadd.f32 %v16365_v40, %v6364_v1  ;;  %v7411_v14 = vadd.f32 %v7410_v50, %v7274_v63  ;;  %v7879_v37 = vsel %vm14605_vm15, %v14350_v59, %v7875_v2  ;;  %v16367_v56 = vld [vmem:[#allocation103_spill] sm:$0xff]  ;;  %v16368_v59 = vld [vmem:[#allocation138_spill] sm:$0xff] }
 0xb55   : > { %v7870_v41 = vmul.f32 %v7869_v35, %v7700_v22  ;;  %8506 = vmatmul.f32.gmra.mxu3 %v8072_v47  ;;  %v8073_v62 = vsub.f32 %v8071_v61, %v8072_v47  ;;  %v7902_v0 = vmul.f32 %v14523_v13, %v14436_v31  ;;  %v7154_v53 = vadd.f32 %v7153_v60, %v7028_v16  ;;  %v16369_v61 = vld [vmem:[#allocation26_spill] sm:$0xff]  ;;  %v16371_v47 = vld [vmem:[#allocation92_spill] sm:$0xff]  ;;  %v16379_v50 = vld [vmem:[#allocation143_spill] sm:$0xff] }
 0xb56   : > { %v6863_v55 = vadd.f32 %v16366_v27, %v6447_v42  ;;  %v14624_v21 = vpop.eup %9794  ;;  %v7651_v54 = vmul.f32 %v14051_v33, %v7633_v11  ;;  %v7508_v7 = vadd.f32 %v7507_v8, %v7411_v14  ;;  %v6170_v36 = vadd.f32 %v16367_v56, %v6069_v3  ;;  %v14640_v33 = vld [vmem:[%s15091_s4 + $0x1] ss:$0 sm:$0xff] }
 0xb57   : > { %v8074_v26 = vand.u32 4294901760, %v8073_v62  ;;  %v14627_v9 = vand.u32 4294901760, %v7870_v41  ;;  %v6368_v1 = vadd.f32 %v16368_v59, %v6279_v45  ;;  %v7884_v2 = vsel %vm14609_vm2, %v7883_v6, %v7879_v37  ;;  %v7279_v5 = vpop.f32.mrf.mxu1  ;;  %v16370_v6 = vld [vmem:[#allocation134_spill] sm:$0xff]  ;;  %v14666_v37 = vld [vmem:[%s15091_s4] ss:$0 sm:$0xff] }
 0xb58   : > { %v7889_v52 = vmul.f32 %v14532_v32, %v7888_v39  ;;  %v14635_v58 = vmax.f32 %v16369_v61, 1.0  ;;  %v7685_v8 = vmul.f32 %v14640_v33, %v7609_v49  ;;  %v7667_v17 = vadd.f32 %v7651_v54, %v7508_v7 }
 0xb59   : > { %8075 = vmatmul.f32.gmra.mxu0 %v8074_v26  ;;  %8264 = vmatmul.f32.gmra.mxu1 %v14627_v9  ;;  %v8079_v16 = vsub.f32 %v7870_v41, %v14627_v9  ;;  %v7903_v35 = vsub.f32 1.0, %v7902_v0  ;;  %v7634_v44 = vsub.f32 %v16325_v18, %v7612_v24  ;;  %vm7891_vm3 = vweird.f32 %v14479_v23  ;;  %v7158_v45 = vpop.f32.mrf.mxu0  ;;  %v16375_v0 = vld [vmem:[#allocation142_spill] sm:$0xff] }
 0xb5a   : > { %vm7892_vm4 = vweird.f32 %v14532_v32  ;;  %v7032_v11 = vadd.f32 %v16370_v6, %v6863_v55  ;;  %v7701_v22 = vadd.f32 %v7685_v8, %v7667_v17  ;;  %v7280_v63 = vadd.f32 %v7279_v5, %v7154_v53  ;;  %v7414_v3 = vpop.f32.mrf.mxu2  ;;  %v7615_v55 = vpop.xlane.xlu1 %7614  ;;  %v16377_v17 = vld [vmem:[#allocation137_spill] sm:$0xff] }
 0xb5b   : > { %8388 = vmatmul.f32.gmra.mxu2 %v8079_v16  ;;  %v8080_v49 = vand.u32 4294901760, %v8079_v16  ;;  %v6285_v39 = vadd.f32 %v16371_v47, %v6170_v36  ;;  %v6451_v38 = vadd.f32 %v16372_v30, %v6368_v1  ;;  %v7890_v12 = vadd.f32 %v14532_v32, %v7889_v52  ;;  %vm14655_vm5 = vmor %vm7891_vm3, %vm7892_vm4  ;;  %v16376_v1 = vld [vmem:[#allocation139_spill] sm:$0xff] }
 0xb5c   : > { %v7897_v18 = vand.u32 2147483648, %v14479_v23  ;;  %v7885_v40 = vmul.f32 %v7884_v2, %v7701_v22  ;;  %v7415_v42 = vadd.f32 %v7414_v3, %v7280_v63  ;;  %v7895_v60 = vand.u32 2147483647, %v14479_v23  ;;  %v16378_v30 = vld [vmem:[#allocation39_spill] sm:$0xff] }
 0xb5d   : > { %8512 = vmatmul.f32.gmra.mxu3 %v8080_v49  ;;  %v8081_v41 = vsub.f32 %v8079_v16, %v8080_v49  ;;  %v7917_v14 = vmul.f32 %v14624_v21, %v14433_v28  ;;  %9796 = vrcp.f32 %v14635_v58  ;;  %v7652_v62 = vmul.f32 %v14666_v37, %v7634_v44  ;;  %v7515_v44 = vpop.f32.mrf.mxu3 }
 0xb5e   : > { %v6871_v27 = vadd.f32 %v16375_v0, %v6451_v38  ;;  %v7512_v53 = vadd.f32 %v7511_v43, %v7415_v42  ;;  %v14670_v23 = vand.u32 4294901760, %v7885_v40  ;;  %v7159_v7 = vadd.f32 %v7158_v45, %v7032_v11  ;;  %v7618_v42 = vpop.xlane.xlu2 %7617 }
 0xb5f   : > { %v8082_v54 = vand.u32 4294901760, %v8081_v41  ;;  %v7686_v26 = vmul.f32 %v14640_v33, %v7612_v24  ;;  %v7894_v56 = vsel %vm14655_vm5, %v14532_v32, %v7890_v12  ;;  %v7898_v36 = vor.u32 1.1754944e-38, %v7897_v18  ;;  %v7285_v8 = vpop.f32.mrf.mxu1 }
 0xb60   : > { %v7904_v59 = vmul.f32 %v14523_v13, %v7903_v35  ;;  %v6372_v2 = vadd.f32 %v16376_v1, %v6285_v39  ;;  %v7668_v52 = vadd.f32 %v7652_v62, %v7512_v53  ;;  %vm7896_vm6 = vcmp.eq.f32.partialorder %v7895_v60, 8.507059e+37 }
 0xb61   : > { %8083 = vmatmul.f32.gmra.mxu0 %v8082_v54  ;;  %8268 = vmatmul.f32.gmra.mxu1 %v14670_v23  ;;  %v8087_v43 = vsub.f32 %v7885_v40, %v14670_v23  ;;  %v7036_v16 = vadd.f32 %v16377_v17, %v6871_v27  ;;  %v7635_v24 = vsub.f32 %v16317_v29, %v7615_v55  ;;  %v7910_v35 = vand.u32 2147483647, %v14436_v31  ;;  %v7163_v39 = vpop.f32.mrf.mxu0 }
 0xb62   : > { %v7702_v5 = vadd.f32 %v7686_v26, %v7668_v52  ;;  %v7286_v32 = vadd.f32 %v7285_v8, %v7159_v7  ;;  %v7918_v22 = vsub.f32 1.0, %v7917_v14  ;;  %v7899_v63 = vsel %vm7896_vm6, %v7898_v36, %v7894_v56  ;;  %v7418_v49 = vpop.f32.mrf.mxu2 }
 0xb63   : > { %8393 = vmatmul.f32.gmra.mxu2 %v8087_v43  ;;  %v8088_v6 = vand.u32 4294901760, %v8087_v43  ;;  %v14683_v11 = vpop.eup %9796  ;;  %v7905_v47 = vadd.f32 %v14523_v13, %v7904_v59  ;;  %vm7907_vm7 = vweird.f32 %v14523_v13  ;;  %v6455_v38 = vadd.f32 %v16378_v30, %v6372_v2 }
 0xb64   : > { %v7900_v29 = vmul.f32 %v7899_v63, %v7702_v5  ;;  %v7419_v3 = vadd.f32 %v7418_v49, %v7286_v32  ;;  %v7653_v18 = vmul.f32 %v14666_v37, %v7635_v24  ;;  %vm7906_vm1 = vweird.f32 %v14436_v31  ;;  %v7621_v49 = vpop.xlane.xlu0 %7620 }
 0xb65   : > { %8518 = vmatmul.f32.gmra.mxu3 %v8088_v6  ;;  %v8089_v12 = vsub.f32 %v8087_v43, %v8088_v6  ;;  %v7912_v45 = vand.u32 2147483648, %v14436_v31  ;;  %v7164_v40 = vadd.f32 %v7163_v39, %v7036_v16  ;;  %v6879_v60 = vadd.f32 %v16379_v50, %v6455_v38  ;;  %vm14692_vm9 = vmor %vm7906_vm1, %vm7907_vm7  ;;  %v7519_v17 = vpop.f32.mrf.mxu3 }
 0xb66   : > { %v7516_v41 = vadd.f32 %v7515_v44, %v7419_v3  ;;  %v14696_v0 = vand.u32 4294901760, %v7900_v29  ;;  %v7932_v27 = vmul.f32 %v14683_v11, %v14635_v58  ;;  %v7909_v53 = vsel %vm14692_vm9, %v14523_v13, %v7905_v47  ;;  %v16382_v13 = vld [vmem:[#allocation104_spill] sm:$0xff] }
 0xb67   : > { %v8090_v62 = vand.u32 4294901760, %v8089_v12  ;;  %v7919_v31 = vmul.f32 %v14624_v21, %v7918_v22  ;;  %v7687_v54 = vmul.f32 %v14640_v33, %v7615_v55  ;;  %vm7911_vm10 = vcmp.eq.f32.partialorder %v7910_v35, 8.507059e+37  ;;  %v7291_v56 = vpop.f32.mrf.mxu1 }
 0xb68   : > { %v7669_v7 = vadd.f32 %v7653_v18, %v7516_v41  ;;  %v8095_v26 = vsub.f32 %v7900_v29, %v14696_v0  ;;  %v7636_v36 = vsub.f32 %v16316_v4, %v7618_v42  ;;  %v7913_v59 = vor.u32 1.1754944e-38, %v7912_v45 }
 0xb69   : > { %8091 = vmatmul.f32.gmra.mxu0 %v8090_v62  ;;  %8272 = vmatmul.f32.gmra.mxu1 %v14696_v0  ;;  %vm7921_vm0 = vweird.f32 %v14433_v28  ;;  %vm7922_vm8 = vweird.f32 %v14624_v21  ;;  %v7040_v1 = vadd.f32 %v16382_v13, %v6879_v60  ;;  %v7292_v55 = vadd.f32 %v7291_v56, %v7164_v40  ;;  %v7168_v63 = vpop.f32.mrf.mxu0 }
 0xb6a   : > { %v7703_v2 = vadd.f32 %v7687_v54, %v7669_v7  ;;  %v8096_v52 = vand.u32 4294901760, %v8095_v26  ;;  %v7933_v43 = vsub.f32 1.0, %v7932_v27  ;;  %v7914_v8 = vsel %vm7911_vm10, %v7913_v59, %v7909_v53  ;;  %v7422_v16 = vpop.f32.mrf.mxu2  ;;  %vm14715_vm11 = vmor %vm7921_vm0, %vm7922_vm8 }
 0xb6b   : > { %8398 = vmatmul.f32.gmra.mxu2 %v8095_v26  ;;  %v7920_v24 = vadd.f32 %v14624_v21, %v7919_v31  ;;  %v7927_v44 = vand.u32 2147483648, %v14433_v28  ;;  %v7423_v5 = vadd.f32 %v7422_v16, %v7292_v55  ;;  %v7925_v35 = vand.u32 2147483647, %v14433_v28 }
 0xb6c   : > { %v7915_v4 = vmul.f32 %v7914_v8, %v7703_v2  ;;  %v8097_v6 = vsub.f32 %v8095_v26, %v8096_v52  ;;  %v7654_v22 = vmul.f32 %v14666_v37, %v7636_v36  ;;  %v7169_v38 = vadd.f32 %v7168_v63, %v7040_v1 }
 0xb6d   : > { %8524 = vmatmul.f32.gmra.mxu3 %v8096_v52  ;;  %v7520_v47 = vadd.f32 %v7519_v17, %v7423_v5  ;;  %v7924_v29 = vsel %vm14715_vm11, %v14624_v21, %v7920_v24  ;;  %v7928_v3 = vor.u32 1.1754944e-38, %v7927_v44  ;;  %v7934_v12 = vmul.f32 %v14683_v11, %v7933_v43  ;;  %v7523_v7 = vpop.f32.mrf.mxu3 }
 0xb6e   : > { %v8098_v39 = vand.u32 4294901760, %v8097_v6  ;;  %v14721_v30 = vand.u32 4294901760, %v7915_v4  ;;  %v7688_v28 = vmul.f32 %v14640_v33, %v7618_v42  ;;  %vm7926_vm12 = vcmp.eq.f32.partialorder %v7925_v35, 8.507059e+37  ;;  %v14759_v35 = vld [vmem:[%s15094_s7] ss:$0 sm:$0xff] }
 0xb6f   : > { %v7670_v18 = vadd.f32 %v7654_v22, %v7520_v47  ;;  %v7637_v40 = vsub.f32 %v16369_v61, %v7621_v49  ;;  %v7297_v50 = vpop.f32.mrf.mxu1  ;;  %vm7936_vm13 = vweird.f32 %v14635_v58  ;;  %vm7937_vm14 = vweird.f32 %v14683_v11 }
 0xb70   : > { %v8103_v45 = vsub.f32 %v7915_v4, %v14721_v30  ;;  %v7298_v21 = vadd.f32 %v7297_v50, %v7169_v38  ;;  %v7929_v14 = vsel %vm7926_vm12, %v7928_v3, %v7924_v29  ;;  %v7935_v62 = vadd.f32 %v14683_v11, %v7934_v12  ;;  %vm14738_vm15 = vmor %vm7936_vm13, %vm7937_vm14 }
 0xb71   : > { %8099 = vmatmul.f32.gmra.mxu0 %v8098_v39  ;;  %8276 = vmatmul.f32.gmra.mxu1 %v14721_v30  ;;  %v7704_v60 = vadd.f32 %v7688_v28, %v7670_v18  ;;  %v7942_v27 = vand.u32 2147483648, %v14635_v58  ;;  %v7940_v54 = vand.u32 2147483647, %v14635_v58  ;;  %v7655_v56 = vmul.f32 %v14666_v37, %v7637_v40 }
 0xb72   : > { %v8104_v41 = vand.u32 4294901760, %v8103_v45  ;;  %v7426_v42 = vpop.f32.mrf.mxu2  ;;  %v7689_v1 = vmul.f32 %v14640_v33, %v7621_v49  ;;  %v7939_v52 = vsel %vm14738_vm15, %v14683_v11, %v7935_v62 }
 0xb73   : > { %8403 = vmatmul.f32.gmra.mxu2 %v8103_v45  ;;  %v7930_v53 = vmul.f32 %v7929_v14, %v7704_v60  ;;  %v7427_v31 = vadd.f32 %v7426_v42, %v7298_v21  ;;  %v7943_v2 = vor.u32 1.1754944e-38, %v7942_v27  ;;  %vm7941_vm2 = vcmp.eq.f32.partialorder %v7940_v54, 8.507059e+37 }
 0xb74   : > { %v8105_v61 = vsub.f32 %v8103_v45, %v8104_v41 }
 0xb75   : > { %8530 = vmatmul.f32.gmra.mxu3 %v8104_v41  ;;  %v7524_v36 = vadd.f32 %v7523_v7, %v7427_v31  ;;  %v14743_v13 = vand.u32 4294901760, %v7930_v53  ;;  %v7944_v8 = vsel %vm7941_vm2, %v7943_v2, %v7939_v52 }
 0xb76   : > { %v8106_v59 = vand.u32 4294901760, %v8105_v61 }
 0xb77   : > { %v7671_v55 = vadd.f32 %v7655_v56, %v7524_v36  ;;  %v8111_v58 = vsub.f32 %v7930_v53, %v14743_v13 }
 0xb79   : > { %8107 = vmatmul.f32.gmra.mxu0 %v8106_v59  ;;  %8280 = vmatmul.f32.gmra.mxu1 %v14743_v13  ;;  %v7705_v43 = vadd.f32 %v7689_v1, %v7671_v55  ;;  %v8112_v37 = vand.u32 4294901760, %v8111_v58 }
 0xb7b   : > { %8408 = vmatmul.f32.gmra.mxu2 %v8111_v58  ;;  %v7945_v17 = vmul.f32 %v7944_v8, %v7705_v43  ;;  %v8113_v16 = vsub.f32 %v8111_v58, %v8112_v37 }
 0xb7d   : > { %8536 = vmatmul.f32.gmra.mxu3 %v8112_v37  ;;  %v8114_v33 = vand.u32 4294901760, %v8113_v16  ;;  %v14751_v24 = vand.u32 4294901760, %v7945_v17 }
 0xb7f   : > { %v8119_v11 = vsub.f32 %v7945_v17, %v14751_v24 }
 0xb81   : > { %8115 = vmatmul.f32.gmra.mxu0 %v8114_v33  ;;  %8284 = vmatmul.f32.gmra.mxu1 %v14751_v24  ;;  %v8120_v44 = vand.u32 4294901760, %v8119_v11 }
 0xb83   : > { %8413 = vmatmul.f32.gmra.mxu2 %v8119_v11  ;;  %v8121_v4 = vsub.f32 %v8119_v11, %v8120_v44 }
 0xb84   : > { %v8225_v5 = vpop.f32.mrf.mxu1 }
 0xb85   : > { %8542 = vmatmul.f32.gmra.mxu3 %v8120_v44  ;;  %v8122_v32 = vand.u32 4294901760, %v8121_v4 }
 0xb89   : > { %8123 = vmatmul.f32.gmra.mxu0 %v8122_v32  ;;  %8708 = vmatmul.f32.vlgmr.msra.gmra.mxu1 %v14142_v46 }
 0xb8c   : > { %v8004_v6 = vpop.f32.mrf.mxu0  ;;  %v8229_v22 = vpop.f32.mrf.mxu1 }
 0xb8d   : > { %v8005_v63 = vadd.f32 %v14759_v35, %v8004_v6  ;;  %v8339_v49 = vpop.f32.mrf.mxu2 }
 0xb8e   : > { %v8453_v47 = vpop.f32.mrf.mxu3 }
 0xb8f   : > { %v8226_v39 = vadd.f32 %v8225_v5, %v8005_v63 }
 0xb91   : > { %8611 = vmatmul.f32.vlgmr.msra.gmra.mxu0 %v14142_v46  ;;  %8712 = vmatmul.f32.gmra.mxu1 %v14215_v51  ;;  %v8340_v38 = vadd.f32 %v8339_v49, %v8226_v39 }
 0xb93   : > { %v14764_v29 = vadd.f32 %v8453_v47, %v8340_v38 }
 0xb94   : > { %v8012_v3 = vpop.f32.mrf.mxu0  ;;  %v8233_v12 = vpop.f32.mrf.mxu1 }
 0xb95   : > { %v8013_v28 = vadd.f32 %v14759_v35, %v8012_v3  ;;  %v8344_v18 = vpop.f32.mrf.mxu2 }
 0xb96   : > { %v8459_v45 = vpop.f32.mrf.mxu3 }
 0xb97   : > { %v8230_v40 = vadd.f32 %v8229_v22, %v8013_v28 }
 0xb99   : > { %8615 = vmatmul.f32.gmra.mxu0 %v14215_v51  ;;  %8716 = vmatmul.f32.gmra.mxu1 %v14258_v57  ;;  %v8345_v50 = vadd.f32 %v8344_v18, %v8230_v40 }
 0xb9b   : > { %v14769_v60 = vadd.f32 %v8459_v45, %v8345_v50 }
 0xb9c   : > { %v8020_v46 = vpop.f32.mrf.mxu0  ;;  %v8237_v21 = vpop.f32.mrf.mxu1 }
 0xb9d   : > { %v8021_v41 = vadd.f32 %v14759_v35, %v8020_v46  ;;  %v8349_v14 = vpop.f32.mrf.mxu2 }
 0xb9e   : > { %v8465_v42 = vpop.f32.mrf.mxu3 }
 0xb9f   : > { %v8234_v62 = vadd.f32 %v8233_v12, %v8021_v41 }
 0xba1   : > { %8619 = vmatmul.f32.gmra.mxu0 %v14258_v57  ;;  %8720 = vmatmul.f32.gmra.mxu1 %v14321_v10  ;;  %v8350_v27 = vadd.f32 %v8349_v14, %v8234_v62 }
 0xba3   : > { %v14774_v53 = vadd.f32 %v8465_v42, %v8350_v27 }
 0xba4   : > { %v8028_v51 = vpop.f32.mrf.mxu0  ;;  %v8241_v31 = vpop.f32.mrf.mxu1 }
 0xba5   : > { %v8029_v54 = vadd.f32 %v14759_v35, %v8028_v51  ;;  %v8354_v61 = vpop.f32.mrf.mxu2 }
 0xba6   : > { %v8471_v7 = vpop.f32.mrf.mxu3 }
 0xba7   : > { %v8238_v26 = vadd.f32 %v8237_v21, %v8029_v54 }
 0xba9   : > { %8623 = vmatmul.f32.gmra.mxu0 %v14321_v10  ;;  %8724 = vmatmul.f32.gmra.mxu1 %v14353_v34  ;;  %v8355_v56 = vadd.f32 %v8354_v61, %v8238_v26 }
 0xbab   : > { %v14779_v36 = vadd.f32 %v8471_v7, %v8355_v56 }
 0xbac   : > { %v8036_v57 = vpop.f32.mrf.mxu0  ;;  %v8245_v59 = vpop.f32.mrf.mxu1 }
 0xbad   : > { %v8037_v1 = vadd.f32 %v14759_v35, %v8036_v57  ;;  %v8359_v2 = vpop.f32.mrf.mxu2 }
 0xbae   : > { %v8477_v55 = vpop.f32.mrf.mxu3 }
 0xbaf   : > { %v8242_v52 = vadd.f32 %v8241_v31, %v8037_v1 }
 0xbb1   : > { %8627 = vmatmul.f32.gmra.mxu0 %v14353_v34  ;;  %8728 = vmatmul.f32.gmra.mxu1 %v14398_v19  ;;  %v8360_v58 = vadd.f32 %v8359_v2, %v8242_v52 }
 0xbb3   : > { %v14784_v43 = vadd.f32 %v8477_v55, %v8360_v58 }
 0xbb5   : > { %v8044_v10 = vpop.f32.mrf.mxu0  ;;  %v8249_v37 = vpop.f32.mrf.mxu1 }
 0xbb6   : > { %v8045_v8 = vadd.f32 %v14759_v35, %v8044_v10  ;;  %v8364_v17 = vpop.f32.mrf.mxu2 }
 0xbb7   : > { %v8483_v16 = vpop.f32.mrf.mxu3 }
 0xbb8   : > { %v8246_v33 = vadd.f32 %v8245_v59, %v8045_v8 }
 0xbb9   : > { %8631 = vmatmul.f32.gmra.mxu0 %v14398_v19  ;;  %8732 = vmatmul.f32.gmra.mxu1 %v14455_v20 }
 0xbba   : > { %v8365_v11 = vadd.f32 %v8364_v17, %v8246_v33 }
 0xbbc   : > { %v14789_v44 = vadd.f32 %v8483_v16, %v8365_v11 }
 0xbbd   : > { %v8052_v34 = vpop.f32.mrf.mxu0  ;;  %v8253_v4 = vpop.f32.mrf.mxu1 }
 0xbbe   : > { %v8053_v5 = vadd.f32 %v14759_v35, %v8052_v34  ;;  %v8369_v32 = vpop.f32.mrf.mxu2 }
 0xbbf   : > { %v8489_v6 = vpop.f32.mrf.mxu3 }
 0xbc0   : > { %v8250_v22 = vadd.f32 %v8249_v37, %v8053_v5 }
 0xbc1   : > { %8635 = vmatmul.f32.gmra.mxu0 %v14455_v20  ;;  %8736 = vmatmul.f32.gmra.mxu1 %v14504_v15 }
 0xbc2   : > { %v8370_v63 = vadd.f32 %v8369_v32, %v8250_v22 }
 0xbc4   : > { %v14794_v49 = vadd.f32 %v8489_v6, %v8370_v63 }
 0xbc5   : > { %v8060_v19 = vpop.f32.mrf.mxu0  ;;  %v8257_v47 = vpop.f32.mrf.mxu1 }
 0xbc6   : > { %v8061_v39 = vadd.f32 %v14759_v35, %v8060_v19  ;;  %v8374_v38 = vpop.f32.mrf.mxu2 }
 0xbc7   : > { %v8495_v3 = vpop.f32.mrf.mxu3 }
 0xbc8   : > { %v8254_v12 = vadd.f32 %v8253_v4, %v8061_v39 }
 0xbc9   : > { %8639 = vmatmul.f32.gmra.mxu0 %v14504_v15  ;;  %8740 = vmatmul.f32.gmra.mxu1 %v14546_v48 }
 0xbca   : > { %v8375_v28 = vadd.f32 %v8374_v38, %v8254_v12 }
 0xbcc   : > { %v14799_v18 = vadd.f32 %v8495_v3, %v8375_v28 }
 0xbce   : > { %v8068_v20 = vpop.f32.mrf.mxu0  ;;  %v8261_v45 = vpop.f32.mrf.mxu1 }
 0xbcf   : > { %v8069_v40 = vadd.f32 %v14759_v35, %v8068_v20  ;;  %v8379_v50 = vpop.f32.mrf.mxu2 }
 0xbd0   : > { %v8501_v21 = vpop.f32.mrf.mxu3 }
 0xbd1   : > { %v8258_v46 = vadd.f32 %v8257_v47, %v8069_v40  ;;  %8643 = vmatmul.f32.gmra.mxu0 %v14546_v48  ;;  %8744 = vmatmul.f32.gmra.mxu1 %v14586_v25 }
 0xbd3   : > { %v8380_v41 = vadd.f32 %v8379_v50, %v8258_v46 }
 0xbd5   : > { %v14804_v14 = vadd.f32 %v8501_v21, %v8380_v41 }
 0xbd6   : > { %v8076_v15 = vpop.f32.mrf.mxu0  ;;  %v8265_v42 = vpop.f32.mrf.mxu1 }
 0xbd7   : > { %v8077_v62 = vadd.f32 %v14759_v35, %v8076_v15  ;;  %v8384_v51 = vpop.f32.mrf.mxu2 }
 0xbd8   : > { %v8507_v54 = vpop.f32.mrf.mxu3 }
 0xbd9   : > { %v8262_v27 = vadd.f32 %v8261_v45, %v8077_v62  ;;  %8647 = vmatmul.f32.gmra.mxu0 %v14586_v25  ;;  %8748 = vmatmul.f32.gmra.mxu1 %v14627_v9 }
 0xbdb   : > { %v8385_v31 = vadd.f32 %v8384_v51, %v8262_v27 }
 0xbdd   : > { %v14809_v61 = vadd.f32 %v8507_v54, %v8385_v31 }
 0xbde   : > { %v8084_v48 = vpop.f32.mrf.mxu0  ;;  %v8269_v7 = vpop.f32.mrf.mxu1 }
 0xbdf   : > { %v8085_v26 = vadd.f32 %v14759_v35, %v8084_v48 }
 0xbe1   : > { %v14812_v56 = vadd.f32 %v8265_v42, %v8085_v26  ;;  %8651 = vmatmul.f32.gmra.mxu0 %v14627_v9  ;;  %8752 = vmatmul.f32.gmra.mxu1 %v14670_v23 }
 0xbe6   : > { %v8092_v57 = vpop.f32.mrf.mxu0  ;;  %v8273_v59 = vpop.f32.mrf.mxu1 }
 0xbe7   : > { %v8093_v25 = vadd.f32 %v14759_v35, %v8092_v57 }
 0xbe9   : > { %v14817_v1 = vadd.f32 %v8269_v7, %v8093_v25  ;;  %8655 = vmatmul.f32.gmra.mxu0 %v14670_v23  ;;  %8756 = vmatmul.f32.gmra.mxu1 %v14696_v0  ;;  %v8513_v7 = vpop.f32.mrf.mxu3 }
 0xbee   : > { %v8100_v2 = vpop.f32.mrf.mxu0  ;;  %v8277_v55 = vpop.f32.mrf.mxu1 }
 0xbef   : > { %v8101_v52 = vadd.f32 %v14759_v35, %v8100_v2 }
 0xbf1   : > { %v14822_v58 = vadd.f32 %v8273_v59, %v8101_v52  ;;  %8659 = vmatmul.f32.gmra.mxu0 %v14696_v0  ;;  %8760 = vmatmul.f32.gmra.mxu1 %v14721_v30  ;;  %v8519_v2 = vpop.f32.mrf.mxu3 }
 0xbf6   : > { %v8108_v9 = vpop.f32.mrf.mxu0  ;;  %v8281_v10 = vpop.f32.mrf.mxu1 }
 0xbf7   : > { %v8109_v37 = vadd.f32 %v14759_v35, %v8108_v9 }
 0xbf9   : > { %v14827_v8 = vadd.f32 %v8277_v55, %v8109_v37  ;;  %8663 = vmatmul.f32.gmra.mxu0 %v14721_v30  ;;  %8764 = vmatmul.f32.gmra.mxu1 %v14743_v13  ;;  %v8525_v9 = vpop.f32.mrf.mxu3 }
 0xbfe   : > { %v8116_v23 = vpop.f32.mrf.mxu0  ;;  %v8285_v17 = vpop.f32.mrf.mxu1 }
 0xbff   : > { %v8117_v16 = vadd.f32 %v14759_v35, %v8116_v23 }
 0xc01   : > { %v14832_v33 = vadd.f32 %v8281_v10, %v8117_v16  ;;  %8667 = vmatmul.f32.gmra.mxu0 %v14743_v13  ;;  %8768 = vmatmul.f32.gmra.mxu1 %v14751_v24 }
 0xc06   : > { %v8124_v0 = vpop.f32.mrf.mxu0  ;;  %v8709_v11 = vpop.f32.mrf.mxu1 }
 0xc07   : > { %v8125_v34 = vadd.f32 %v14759_v35, %v8124_v0 }
 0xc09   : > { %v14837_v4 = vadd.f32 %v8285_v17, %v8125_v34  ;;  %8671 = vmatmul.f32.gmra.mxu0 %v14751_v24 }
 0xc0e   : > { %v8612_v30 = vpop.f32.mrf.mxu0  ;;  %v8713_v5 = vpop.f32.mrf.mxu1 }
 0xc0f   : > { %v8613_v32 = vadd.f32 %v8612_v30, %v14764_v29 }
 0xc11   : > { %v14841_v6 = vadd.f32 %v8709_v11, %v8613_v32 }
 0xc16   : > { %v8616_v22 = vpop.f32.mrf.mxu0  ;;  %v8717_v63 = vpop.f32.mrf.mxu1 }
 0xc17   : > { %v8617_v13 = vadd.f32 %v8616_v22, %v14769_v60 }
 0xc19   : > { %v14844_v19 = vadd.f32 %v8713_v5, %v8617_v13 }
 0xc1e   : > { %v8620_v47 = vpop.f32.mrf.mxu0  ;;  %v8721_v39 = vpop.f32.mrf.mxu1 }
 0xc1f   : > { %v8621_v35 = vadd.f32 %v8620_v47, %v14774_v53 }
 0xc21   : > { %v14847_v38 = vadd.f32 %v8717_v63, %v8621_v35 }
 0xc26   : > { %v8624_v3 = vpop.f32.mrf.mxu0  ;;  %v8725_v24 = vpop.f32.mrf.mxu1 }
 0xc27   : > { %v8625_v12 = vadd.f32 %v8624_v3, %v14779_v36 }
 0xc29   : > { %v14850_v28 = vadd.f32 %v8721_v39, %v8625_v12 }
 0xc2e   : > { %v8628_v29 = vpop.f32.mrf.mxu0  ;;  %v8729_v20 = vpop.f32.mrf.mxu1 }
 0xc2f   : > { %v8629_v45 = vadd.f32 %v8628_v29, %v14784_v43  ;;  %v8389_v43 = vpop.f32.mrf.mxu2 }
 0xc31   : > { %v14853_v40 = vadd.f32 %v8725_v24, %v8629_v45 }
 0xc36   : > { %v8632_v60 = vpop.f32.mrf.mxu0  ;;  %v8733_v50 = vpop.f32.mrf.mxu1 }
 0xc37   : > { %v8633_v46 = vadd.f32 %v8632_v60, %v14789_v44  ;;  %v8394_v59 = vpop.f32.mrf.mxu2 }
 0xc38   : > { %v8395_v12 = vadd.f32 %v8394_v59, %v14817_v1 }
 0xc39   : > { %v14856_v21 = vadd.f32 %v8729_v20, %v8633_v46 }
 0xc3e   : > { %v8636_v53 = vpop.f32.mrf.mxu0  ;;  %v8737_v41 = vpop.f32.mrf.mxu1 }
 0xc3f   : > { %v8637_v15 = vadd.f32 %v8636_v53, %v14794_v49  ;;  %v8399_v52 = vpop.f32.mrf.mxu2 }
 0xc40   : > { %v8400_v63 = vadd.f32 %v8399_v52, %v14822_v58 }
 0xc41   : > { %v14859_v42 = vadd.f32 %v8733_v50, %v8637_v15  ;;  %v8520_v50 = vadd.f32 %v8519_v2, %v8395_v12 }
 0xc42   : > { %v8526_v29 = vadd.f32 %v8525_v9, %v8400_v63 }
 0xc46   : > { %v8640_v36 = vpop.f32.mrf.mxu0  ;;  %v8741_v62 = vpop.f32.mrf.mxu1 }
 0xc47   : > { %v8641_v27 = vadd.f32 %v8640_v36, %v14799_v18  ;;  %v8404_v23 = vpop.f32.mrf.mxu2 }
 0xc49   : > { %v14862_v51 = vadd.f32 %v8737_v41, %v8641_v27 }
 0xc4e   : > { %v8644_v31 = vpop.f32.mrf.mxu0  ;;  %v8745_v54 = vpop.f32.mrf.mxu1 }
 0xc4f   : > { %v8645_v48 = vadd.f32 %v8644_v31, %v14804_v14  ;;  %v8531_v14 = vpop.f32.mrf.mxu3  ;;  %v8409_v0 = vpop.f32.mrf.mxu2 }
 0xc50   : > { %v8410_v34 = vadd.f32 %v8409_v0, %v14832_v33 }
 0xc51   : > { %v14865_v44 = vadd.f32 %v8741_v62, %v8645_v48 }
 0xc56   : > { %v8648_v26 = vpop.f32.mrf.mxu0  ;;  %v8749_v57 = vpop.f32.mrf.mxu1 }
 0xc57   : > { %v8649_v49 = vadd.f32 %v8648_v26, %v14809_v61  ;;  %v8537_v30 = vpop.f32.mrf.mxu3  ;;  %v8405_v61 = vadd.f32 %v8404_v23, %v14827_v8  ;;  %v8414_v39 = vpop.f32.mrf.mxu2  ;;  %v8390_v8 = vadd.f32 %v8389_v43, %v14812_v56 }
 0xc58   : > { %v8538_v5 = vadd.f32 %v8537_v30, %v8410_v34  ;;  %v8415_v35 = vadd.f32 %v8414_v39, %v14837_v4 }
 0xc59   : > { %v14868_v25 = vadd.f32 %v8745_v54, %v8649_v49  ;;  %v8532_v13 = vadd.f32 %v8531_v14, %v8405_v61  ;;  %v8514_v36 = vadd.f32 %v8513_v7, %v8390_v8 }
 0xc5e   : > { %v8652_v55 = vpop.f32.mrf.mxu0  ;;  %v8753_v18 = vpop.f32.mrf.mxu1 }
 0xc5f   : > { %v8543_v20 = vpop.f32.mrf.mxu3  ;;  %v8653_v1 = vadd.f32 %v8652_v55, %v8514_v36 }
 0xc60   : > { %v8544_v33 = vadd.f32 %v8543_v20, %v8415_v35 }
 0xc61   : > { %v8750_v48 = vadd.f32 %v8749_v57, %v8653_v1 }
 0xc66   : > { %v8656_v10 = vpop.f32.mrf.mxu0  ;;  %v8757_v37 = vpop.f32.mrf.mxu1 }
 0xc67   : > { %v8657_v53 = vadd.f32 %v8656_v10, %v8520_v50 }
 0xc69   : > { %v8754_v27 = vadd.f32 %v8753_v18, %v8657_v53 }
 0xc6e   : > { %v8660_v17 = vpop.f32.mrf.mxu0  ;;  %v8761_v16 = vpop.f32.mrf.mxu1 }
 0xc6f   : > { %v8661_v45 = vadd.f32 %v8660_v17, %v8526_v29 }
 0xc71   : > { %v8758_v15 = vadd.f32 %v8757_v37, %v8661_v45 }
 0xc76   : > { %v8664_v11 = vpop.f32.mrf.mxu0  ;;  %v8765_v32 = vpop.f32.mrf.mxu1 }
 0xc77   : > { %v8665_v3 = vadd.f32 %v8664_v11, %v8532_v13 }
 0xc79   : > { %v8762_v60 = vadd.f32 %v8761_v16, %v8665_v3 }
 0xc7e   : > { %v8668_v22 = vpop.f32.mrf.mxu0  ;;  %v8769_v41 = vpop.f32.mrf.mxu1 }
 0xc7f   : > { %v8669_v47 = vadd.f32 %v8668_v22, %v8538_v5 }
 0xc81   : > { %v8766_v24 = vadd.f32 %v8765_v32, %v8669_v47 }
 0xc83   : > { %9798 = vtanh.f32 %v8766_v24 }
 0xc84   : > { %9800 = vtanh.f32 %v8762_v60 }
 0xc86   : > { %v8672_v46 = vpop.f32.mrf.mxu0 }
 0xc87   : > { %v8673_v58 = vadd.f32 %v8672_v46, %v8544_v33 }
 0xc89   : > { %v8770_v4 = vadd.f32 %v8769_v41, %v8673_v58  ;;  %v9799_v62 = vpop.eup %9798 }
 0xc8a   : > { %v14876_v31 = vand.u32 4294901760, %v9799_v62  ;;  %v9801_v54 = vpop.eup %9800 }
 0xc8b   : > { %9802 = vtanh.f32 %v8770_v4  ;;  %v14880_v26 = vand.u32 4294901760, %v9801_v54 }
 0xc8c   : > { %9804 = vtanh.f32 %v8758_v15  ;;  %v14883_v49 = vsub.f32 %v9799_v62, %v14876_v31 }
 0xc8d   : > { %9806 = vtanh.f32 %v8754_v27  ;;  %v14895_v52 = vsub.f32 %v9801_v54, %v14880_v26 }
 0xc8e   : > { %9808 = vtanh.f32 %v8750_v48  ;;  %v8840_v55 = vand.u32 4294901760, %v14883_v49 }
 0xc8f   : > { %9810 = vtanh.f32 %v14868_v25  ;;  %v8846_v14 = vand.u32 4294901760, %v14895_v52 }
 0xc90   : > { %v8841_v17 = vsub.f32 %v14883_v49, %v8840_v55  ;;  %9812 = vtanh.f32 %v14865_v44 }
 0xc91   : > { %v9803_v56 = vpop.eup %9802  ;;  %v8847_v34 = vsub.f32 %v14895_v52, %v8846_v14  ;;  %9814 = vtanh.f32 %v14862_v51 }
 0xc92   : > { %v14878_v43 = vand.u32 4294901760, %v9803_v56  ;;  %v9805_v59 = vpop.eup %9804  ;;  %v8842_v11 = vand.u32 4294901760, %v8841_v17  ;;  %9816 = vtanh.f32 %v14859_v42 }
 0xc93   : > { %v9807_v2 = vpop.eup %9806  ;;  %v14892_v18 = vand.u32 4294901760, %v9805_v59  ;;  %v8848_v32 = vand.u32 4294901760, %v8847_v34  ;;  %9818 = vtanh.f32 %v14856_v21 }
 0xc94   : > { %8792 = vmatpush.xpose.msrb.mxu2 %v14878_v43  ;;  %9096 = vmatpush.xpose.msrb.mxu1 %v14878_v43  ;;  %v14888_v7 = vsub.f32 %v9803_v56, %v14878_v43  ;;  %v14901_v10 = vand.u32 4294901760, %v9807_v2  ;;  %v9809_v37 = vpop.eup %9808  ;;  %9820 = vtanh.f32 %v14853_v40 }
 0xc95   : > { %v14906_v16 = vsub.f32 %v9805_v59, %v14892_v18  ;;  %v14911_v25 = vand.u32 4294901760, %v9809_v37  ;;  %v9811_v0 = vpop.eup %9810  ;;  %9822 = vtanh.f32 %v14850_v28 }
 0xc96   : > { %v8834_v57 = vand.u32 4294901760, %v14888_v7  ;;  %v14916_v61 = vsub.f32 %v9807_v2, %v14901_v10  ;;  %v14921_v44 = vand.u32 4294901760, %v9811_v0  ;;  %v9813_v5 = vpop.eup %9812  ;;  %9824 = vtanh.f32 %v14847_v38 }
 0xc97   : > { %v8852_v30 = vand.u32 4294901760, %v14906_v16  ;;  %v14926_v13 = vsub.f32 %v9809_v37, %v14911_v25  ;;  %v14931_v51 = vand.u32 4294901760, %v9813_v5  ;;  %v9815_v47 = vpop.eup %9814  ;;  %9826 = vtanh.f32 %v14844_v19 }
 0xc98   : > { %8794 = vmatpush.xpose.msrb.mxu2 %v14876_v31  ;;  %9029 = vmatpush.xpose.msrb.mxu0 %v8834_v57  ;;  %v8835_v9 = vsub.f32 %v14888_v7, %v8834_v57  ;;  %v8858_v63 = vand.u32 4294901760, %v14916_v61  ;;  %v14936_v24 = vsub.f32 %v9811_v0, %v14921_v44  ;;  %v14941_v42 = vand.u32 4294901760, %v9815_v47  ;;  %v9817_v12 = vpop.eup %9816 }
 0xc99   : > { %9098 = vmatpush.xpose.msrb.mxu1 %v14876_v31  ;;  %v8853_v22 = vsub.f32 %v14906_v16, %v8852_v30  ;;  %v8864_v3 = vand.u32 4294901760, %v14926_v13  ;;  %v14946_v45 = vsub.f32 %v9813_v5, %v14931_v51  ;;  %v14951_v21 = vand.u32 4294901760, %v9817_v12  ;;  %v9819_v60 = vpop.eup %9818 }
 0xc9a   : > { %v8836_v23 = vand.u32 4294901760, %v8835_v9  ;;  %v8859_v35 = vsub.f32 %v14916_v61, %v8858_v63  ;;  %v8870_v33 = vand.u32 4294901760, %v14936_v24  ;;  %v14956_v58 = vsub.f32 %v9815_v47, %v14941_v42  ;;  %v9821_v53 = vpop.eup %9820 }
 0xc9b   : > { %v8854_v39 = vand.u32 4294901760, %v8853_v22  ;;  %v8865_v20 = vsub.f32 %v14926_v13, %v8864_v3  ;;  %v8876_v46 = vand.u32 4294901760, %v14946_v45  ;;  %v14961_v40 = vand.u32 4294901760, %v9819_v60  ;;  %v9823_v62 = vpop.eup %9822 }
 0xc9c   : > { %8796 = vmatpush.xpose.msrb.mxu2 %v14880_v26  ;;  %8837 = vmatpush.xpose.msrb.mxu3 %v8836_v23  ;;  %v8860_v29 = vand.u32 4294901760, %v8859_v35  ;;  %v8871_v50 = vsub.f32 %v14936_v24, %v8870_v33  ;;  %v8882_v4 = vand.u32 4294901760, %v14956_v58  ;;  %v14966_v36 = vsub.f32 %v9817_v12, %v14951_v21  ;;  %v9825_v56 = vpop.eup %9824 }
 0xc9d   : > { %9033 = vmatpush.xpose.msrb.mxu0 %v8840_v55  ;;  %9100 = vmatpush.xpose.msrb.mxu1 %v14880_v26  ;;  %v8866_v8 = vand.u32 4294901760, %v8865_v20  ;;  %v8877_v15 = vsub.f32 %v14946_v45, %v8876_v46  ;;  %v14971_v28 = vand.u32 4294901760, %v9821_v53  ;;  %v14976_v48 = vsub.f32 %v9819_v60, %v14961_v40  ;;  %v9827_v9 = vpop.eup %9826 }
 0xc9e   : > { %v8872_v41 = vand.u32 4294901760, %v8871_v50  ;;  %v8883_v27 = vsub.f32 %v14956_v58, %v8882_v4  ;;  %v8888_v54 = vand.u32 4294901760, %v14966_v36  ;;  %v14981_v38 = vand.u32 4294901760, %v9823_v62 }
 0xc9f   : > { %v8878_v1 = vand.u32 4294901760, %v8877_v15  ;;  %v8894_v57 = vand.u32 4294901760, %v14976_v48  ;;  %v14986_v55 = vsub.f32 %v9821_v53, %v14971_v28  ;;  %9828 = vtanh.f32 %v14841_v6 }
 0xca0   : > { %8798 = vmatpush.xpose.msrb.mxu2 %v14892_v18  ;;  %8843 = vmatpush.xpose.msrb.mxu3 %v8842_v11  ;;  %v8884_v59 = vand.u32 4294901760, %v8883_v27  ;;  %v8889_v2 = vsub.f32 %v14966_v36, %v8888_v54  ;;  %v14991_v19 = vand.u32 4294901760, %v9825_v56  ;;  %v15000_v6 = vand.u32 4294901760, %v9827_v9 }
 0xca1   : > { %9037 = vmatpush.xpose.msrb.mxu0 %v8846_v14  ;;  %9102 = vmatpush.xpose.msrb.mxu1 %v14892_v18  ;;  %v8895_v23 = vsub.f32 %v14976_v48, %v8894_v57  ;;  %v8900_v17 = vand.u32 4294901760, %v14986_v55  ;;  %v14996_v14 = vsub.f32 %v9823_v62, %v14981_v38 }
 0xca2   : > { %v8890_v37 = vand.u32 4294901760, %v8889_v2  ;;  %v15005_v5 = vsub.f32 %v9825_v56, %v14991_v19 }
 0xca3   : > { %v8896_v11 = vand.u32 4294901760, %v8895_v23  ;;  %v8901_v34 = vsub.f32 %v14986_v55, %v8900_v17 }
 0xca4   : > { %8800 = vmatpush.xpose.msrb.mxu2 %v14901_v10  ;;  %8849 = vmatpush.xpose.msrb.mxu3 %v8848_v32  ;;  %v8912_v47 = vand.u32 4294901760, %v15005_v5 }
 0xca5   : > { %9041 = vmatpush.xpose.msrb.mxu0 %v8852_v30  ;;  %9104 = vmatpush.xpose.msrb.mxu1 %v14901_v10  ;;  %v9829_v0 = vpop.eup %9828  ;;  %v8906_v30 = vand.u32 4294901760, %v14996_v14  ;;  %v8902_v22 = vand.u32 4294901760, %v8901_v34 }
 0xca6   : > { %v15009_v32 = vand.u32 4294901760, %v9829_v0 }
 0xca8   : > { %8802 = vmatpush.xpose.msrb.mxu2 %v14911_v25  ;;  %8855 = vmatpush.xpose.msrb.mxu3 %v8854_v39  ;;  %v8917_v39 = vsub.f32 %v9827_v9, %v15000_v6 }
 0xca9   : > { %9045 = vmatpush.xpose.msrb.mxu0 %v8858_v63  ;;  %9106 = vmatpush.xpose.msrb.mxu1 %v14911_v25  ;;  %v8907_v63 = vsub.f32 %v14996_v14, %v8906_v30 }
 0xcaa   : > { %v8918_v12 = vand.u32 4294901760, %v8917_v39 }
 0xcab   : > { %v8908_v35 = vand.u32 4294901760, %v8907_v63 }
 0xcac   : > { %8804 = vmatpush.xpose.msrb.mxu2 %v14921_v44  ;;  %8861 = vmatpush.xpose.msrb.mxu3 %v8860_v29  ;;  %v8923_v29 = vsub.f32 %v9829_v0, %v15009_v32 }
 0xcad   : > { %9049 = vmatpush.xpose.msrb.mxu0 %v8864_v3  ;;  %9108 = vmatpush.xpose.msrb.mxu1 %v14921_v44  ;;  %v8913_v3 = vsub.f32 %v15005_v5, %v8912_v47 }
 0xcae   : > { %v8924_v60 = vand.u32 4294901760, %v8923_v29 }
 0xcaf   : > { %v8914_v20 = vand.u32 4294901760, %v8913_v3 }
 0xcb0   : > { %8806 = vmatpush.xpose.msrb.mxu2 %v14931_v51  ;;  %8867 = vmatpush.xpose.msrb.mxu3 %v8866_v8  ;;  %v8925_v50 = vsub.f32 %v8923_v29, %v8924_v60 }
 0xcb1   : > { %9053 = vmatpush.xpose.msrb.mxu0 %v8870_v33  ;;  %9110 = vmatpush.xpose.msrb.mxu1 %v14931_v51  ;;  %v8919_v33 = vsub.f32 %v8917_v39, %v8918_v12 }
 0xcb3   : > { %v8920_v8 = vand.u32 4294901760, %v8919_v33 }
 0xcb4   : > { %8808 = vmatpush.xpose.msrb.mxu2 %v14941_v42  ;;  %8873 = vmatpush.xpose.msrb.mxu3 %v8872_v41 }
 0xcb5   : > { %9057 = vmatpush.xpose.msrb.mxu0 %v8876_v46  ;;  %9112 = vmatpush.xpose.msrb.mxu1 %v14941_v42  ;;  %v8926_v46 = vand.u32 4294901760, %v8925_v50 }
 0xcb8   : > { %8810 = vmatpush.xpose.msrb.mxu2 %v14951_v21  ;;  %8879 = vmatpush.xpose.msrb.mxu3 %v8878_v1 }
 0xcb9   : > { %9061 = vmatpush.xpose.msrb.mxu0 %v8882_v4  ;;  %9114 = vmatpush.xpose.msrb.mxu1 %v14951_v21 }
 0xcbc   : > { %8812 = vmatpush.xpose.msrb.mxu2 %v14961_v40  ;;  %8885 = vmatpush.xpose.msrb.mxu3 %v8884_v59 }
 0xcbd   : > { %9065 = vmatpush.xpose.msrb.mxu0 %v8888_v54  ;;  %9116 = vmatpush.xpose.msrb.mxu1 %v14961_v40 }
 0xcc0   : > { %8814 = vmatpush.xpose.msrb.mxu2 %v14971_v28  ;;  %8891 = vmatpush.xpose.msrb.mxu3 %v8890_v37 }
 0xcc1   : > { %9069 = vmatpush.xpose.msrb.mxu0 %v8894_v57  ;;  %9118 = vmatpush.xpose.msrb.mxu1 %v14971_v28 }
 0xcc4   : > { %8816 = vmatpush.xpose.msrb.mxu2 %v14981_v38  ;;  %8897 = vmatpush.xpose.msrb.mxu3 %v8896_v11 }
 0xcc5   : > { %9073 = vmatpush.xpose.msrb.mxu0 %v8900_v17  ;;  %9120 = vmatpush.xpose.msrb.mxu1 %v14981_v38 }
 0xcc8   : > { %8818 = vmatpush.xpose.msrb.mxu2 %v14991_v19  ;;  %8903 = vmatpush.xpose.msrb.mxu3 %v8902_v22 }
 0xcc9   : > { %9077 = vmatpush.xpose.msrb.mxu0 %v8906_v30  ;;  %9122 = vmatpush.xpose.msrb.mxu1 %v14991_v19 }
 0xccc   : > { %8820 = vmatpush.xpose.msrb.mxu2 %v15000_v6  ;;  %8909 = vmatpush.xpose.msrb.mxu3 %v8908_v35 }
 0xccd   : > { %9081 = vmatpush.xpose.msrb.mxu0 %v8912_v47  ;;  %9124 = vmatpush.xpose.msrb.mxu1 %v15000_v6 }
 0xcd0   : > { %8822 = vmatpush.xpose.msrb.mxu2 %v15009_v32  ;;  %8915 = vmatpush.xpose.msrb.mxu3 %v8914_v20 }
 0xcd1   : > { %9085 = vmatpush.xpose.msrb.mxu0 %v8918_v12  ;;  %9126 = vmatpush.xpose.msrb.mxu1 %v15009_v32 }
 0xcd4   : > { %8935 = vmatpush.xpose.msra.mxu2 %v14888_v7  ;;  %8921 = vmatpush.xpose.msrb.mxu3 %v8920_v8 }
 0xcd5   : > { %9089 = vmatpush.xpose.msrb.mxu0 %v8924_v60 }
 0xcd8   : > { %8938 = vmatpush.xpose.msra.mxu2 %v14883_v49  ;;  %8927 = vmatpush.xpose.msrb.mxu3 %v8926_v46 }
 0xcdc   : > { %8988 = vmatpush.xpose.msra.mxu3 %v14878_v43  ;;  %8941 = vmatpush.xpose.msra.mxu2 %v14895_v52  ;;  %v8788_v43 = vld [vmem:[%s15095_s8] sm:$0x1] }
 0xcdd   : > { %v8823_v49 = vand.u32 4294901760, %v8788_v43 }
 0xcdf   : > { %8929 = vmatmul.f32.vlgmr.msrb.gmra.mxu3 %v8823_v49  ;;  %9091 = vmatmul.f32.vlgmr.msrb.gmra.mxu0 %v8823_v49 }
 0xce0   : > { %8990 = vmatpush.xpose.msra.mxu3 %v14876_v31  ;;  %8944 = vmatpush.xpose.msra.mxu2 %v14906_v16  ;;  %v8824_v31 = vsub.f32 %v8788_v43, %v8823_v49 }
 0xce1   : > { %9128 = vmatmul.f32.vlgmr.msrb.gmra.mxu1 %v8823_v49 }
 0xce4   : > { %8992 = vmatpush.xpose.msra.mxu3 %v14880_v26  ;;  %8947 = vmatpush.xpose.msra.mxu2 %v14916_v61  ;;  %v8825_v26 = vand.u32 4294901760, %v8824_v31 }
 0xce6   : > { %v8826_v7 = vsub.f32 %v8824_v31, %v8825_v26 }
 0xce8   : > { %8994 = vmatpush.xpose.msra.mxu3 %v14892_v18  ;;  %8950 = vmatpush.xpose.msra.mxu2 %v14926_v13  ;;  %v8827_v18 = vand.u32 4294901760, %v8826_v7 }
 0xcea   : > { %8828 = vmatmul.f32.vlgmr.msrb.gmra.mxu2 %v8827_v18 }
 0xcec   : > { %8996 = vmatpush.xpose.msra.mxu3 %v14901_v10  ;;  %8953 = vmatpush.xpose.msra.mxu2 %v14936_v24  ;;  %v8790_v10 = vstv %s8789_s19  ;;  %s9862_s19 = scalar_lea.hbm %s15097_s10, 2 }
 0xced   : > { %p9864_p1 = scmp.lt.s32.totalorder %s9862_s19, %s9858_s12 }
 0xcef   : > { %p9865_p2 = por %p9864_p1, %p9863_p0 }
 0xcf0   : > { %8998 = vmatpush.xpose.msra.mxu3 %v14911_v25  ;;  %8956 = vmatpush.xpose.msra.mxu2 %v14946_v45 }
 0xcf1   : > { %p9866_p3 = pnand %p9865_p2, %p9861_p13 }
 0xcf4   : > { %9000 = vmatpush.xpose.msra.mxu3 %v14921_v44  ;;  %8959 = vmatpush.xpose.msra.mxu2 %v14956_v58 }
 0xcf8   : > { %9002 = vmatpush.xpose.msra.mxu3 %v14931_v51  ;;  %8962 = vmatpush.xpose.msra.mxu2 %v14966_v36 }
 0xcfc   : > { %9004 = vmatpush.xpose.msra.mxu3 %v14941_v42  ;;  %8965 = vmatpush.xpose.msra.mxu2 %v14976_v48 }
 0xd00   : > { %9006 = vmatpush.xpose.msra.mxu3 %v14951_v21  ;;  %8968 = vmatpush.xpose.msra.mxu2 %v14986_v55 }
 0xd04   : > { %9008 = vmatpush.xpose.msra.mxu3 %v14961_v40  ;;  %8971 = vmatpush.xpose.msra.mxu2 %v14996_v14 }
 0xd08   : > { %9010 = vmatpush.xpose.msra.mxu3 %v14971_v28  ;;  %8974 = vmatpush.xpose.msra.mxu2 %v15005_v5 }
 0xd0c   : > { %9012 = vmatpush.xpose.msra.mxu3 %v14981_v38  ;;  %8977 = vmatpush.xpose.msra.mxu2 %v8917_v39 }
 0xd10   : > { %9014 = vmatpush.xpose.msra.mxu3 %v14991_v19  ;;  %8980 = vmatpush.xpose.msra.mxu2 %v8923_v29 }
 0xd13   : > { %8983 = vmatmul.f32.vlgmr.msra.gmra.mxu2 %v8824_v31 }
 0xd14   : > { %9016 = vmatpush.xpose.msra.mxu3 %v15000_v6 }
 0xd18   : > { %9018 = vmatpush.xpose.msra.mxu3 %v15009_v32 }
 0xd1b   : > { %9022 = vmatmul.f32.vlgmr.msra.gmra.mxu3 %v8825_v26 }
 0xd5c   : > { %v9092_v24 = vpop.f32.mrf.mxu0 }
 0xd5e   : > { %v9129_v45 = vpop.f32.mrf.mxu1 }
 0xd62   : > { %v8930_v16 = vpop.f32.mrf.mxu3 }
 0xd6d   : > { %v8829_v52 = vpop.f32.mrf.mxu2 }
 0xd6e   : > { %v8830_v25 = vadd.f32 %v8829_v52, %v8790_v10 }
 0xd70   : > { %v8931_v61 = vadd.f32 %v8930_v16, %v8830_v25 }
 0xd96   : > { %v8984_v44 = vpop.f32.mrf.mxu2 }
 0xd97   : > { %v8985_v13 = vadd.f32 %v8984_v44, %v8931_v61 }
 0xd9e   : > { %v9023_v51 = vpop.f32.mrf.mxu3 }
 0xd9f   : > { %v9024_v42 = vadd.f32 %v9023_v51, %v8985_v13 }
 0xda1   : > { %v9093_v21 = vadd.f32 %v9092_v24, %v9024_v42 }
 0xda3   : > { %v9130_v58 = vadd.f32 %v9129_v45, %v9093_v21 }
 0xda5   : > { %v9510_v40 = vmul.f32 -1.442695, %v9130_v58 }
 0xda7   : > { %9830 = vpow2.f32 %v9510_v40 }
 0xdad   : > { %v9831_v53 = vpop.eup %9830 }
 0xdae   : > { %v9135_v41 = vadd.f32 1.0, %v9831_v53 }
 0xdb0   : > { %9832 = vrcp.f32 %v9135_v41  ;;  %v9147_v28 = vand.u32 2147483648, %v9135_v41  ;;  %v9145_v1 = vand.u32 2147483647, %v9135_v41  ;;  %vm9141_vm4 = vweird.f32 %v9135_v41 }
 0xdb2   : > { %v9148_v54 = vor.u32 1.1754944e-38, %v9147_v28  ;;  %vm9146_vm6 = vcmp.eq.f32.partialorder %v9145_v1, 8.507059e+37 }
 0xdb6   : > { %v9833_v15 = vpop.eup %9832 }
 0xdb7   : > { %v9137_v4 = vmul.f32 %v9833_v15, %v9135_v41  ;;  %vm9142_vm3 = vweird.f32 %v9833_v15 }
 0xdb8   : > { %vm9143_vm5 = vmor %vm9141_vm4, %vm9142_vm3 }
 0xdb9   : > { %v9138_v36 = vsub.f32 1.0, %v9137_v4 }
 0xdbb   : > { %v9139_v62 = vmul.f32 %v9833_v15, %v9138_v36 }
 0xdbd   : > { %v9140_v27 = vadd.f32 %v9833_v15, %v9139_v62 }
 0xdbf   : > { %v9144_v48 = vsel %vm9143_vm5, %v9833_v15, %v9140_v27 }
 0xdc0   : > { %v9149_v38 = vsel %vm9146_vm6, %v9148_v54, %v9144_v48 }
 0xdc1   : > { %9151 = vst [vmem:[%s385_s28] sm:$0x1] %v9149_v38 }
 0xdc2   : > { %9869 = shalt.err (!%p9866_p3)
}
 0xdc3   : > { %9517 = dma.vmem_to_hbm [thread:$0]  (%p10003_p5), %s9164_s29, 16, %s9166_s30, %s9153_s11  }
 0xdc4 PF: > { %p9523_p4 = scmp.ge.s32.totalorder %s9904_s18, 2  ;;  %s9177_s22 = sand.u32 1, %s9892_s15  }
 0xdc5   : > { %s9178_s21 = scalar_lea.sflag [#allocation4], %s9177_s22 }
 0xdc6   : > { %p9520_p7 = pnand %p9523_p4, %p10007_p6 }
 0xdc8   : > { %p9521_p8 = pneg %p9520_p7 }
 0xdca   : > { %9887 = dma.done.wait (%p9521_p8), %s9178_s21, 16  }
 0xdcb   : > { %9889 = vsyncadd (%p9521_p8), %s9178_s21, 4294967280  ;;  %p21_p9 = scmp.ge.s32.totalorder %s9990_s20, 4   ;;  %s16387_s15 = smov %s9896_s16 }
 0xdcc   : > { %s16388_s16 = smov %s9900_s17  ;;  %s16389_s17 = smov %s10001_s23 }
 0xdcd   : > { %s16390_s18 = smov %s9990_s20  ;;  %23 = sbr.rel (!%p21_p9) target bundleno = 5 (0x5), region = 101 }
 0xdd2   :  { %9183 = vsyncpa [#allocation4], 1 }
 0xdd3   :  { %9185 = vsyncpa [#allocation4 + $0x1], 1 }

</bundles_post_ra>
